<compile_context>
chip_gen: v6e
topology: v6e:2x2x1
jax: 0.10.0
libtpu: 0.0.40
codegen_flags: <defaults>
</compile_context>

<pallas_src>
import functools

import jax
import jax.numpy as jnp
from jax.experimental import pallas as pl
from jax.experimental.pallas import tpu as pltpu


def _make_kernel(B_tile, K, P, S1, S2, H1, W1, H2, W2, Cin, Cmid, Cout, neg_slope):
    def pad_hw(a, pad):
        # a: (C, h, w) -> (C, h+2*pad, w+2*pad), zero border, kept in vregs.
        if pad == 0:
            return a
        C, h, w = a.shape
        zr = jnp.zeros((C, pad, w), a.dtype)
        a = jnp.concatenate([zr, a, zr], axis=1)
        zc = jnp.zeros((C, h + 2 * pad, pad), a.dtype)
        return jnp.concatenate([zc, a, zc], axis=2)

    def im2col(a, stride, Ho, Wo):
        # a: (C, Hp, Wp) -> (K*K*C, Ho*Wo); row order (kh, kw, c), c minor.
        C = a.shape[0]
        cols = []
        for kh in range(K):
            for kw in range(K):
                patch = a[:, kh:kh + stride * (Ho - 1) + 1:stride,
                             kw:kw + stride * (Wo - 1) + 1:stride]   # (C, Ho, Wo)
                cols.append(patch.reshape(C, Ho * Wo))
        return jnp.concatenate(cols, axis=0)                          # (K*K*C, Ho*Wo)

    def kernel(x_ref, w1_ref, b1_ref, w2_ref, b2_ref, o_ref):
        w1 = w1_ref[...]   # (Cmid, K*K*Cin)
        b1 = b1_ref[...]   # (Cmid, 1)
        w2 = w2_ref[...]   # (Cout, K*K*Cmid)
        b2 = b2_ref[...]   # (Cout, 1)
        for b in range(B_tile):
            xb = x_ref[b]                                             # (Cin, H, W)
            # ---- conv1: single im2col GEMM (contraction = K*K*Cin) ----
            p1 = im2col(pad_hw(xb, P), S1, H1, W1)                    # (K*K*Cin, H1*W1)
            h = jnp.dot(w1, p1, preferred_element_type=jnp.float32) + b1
            h = jnp.where(h > 0, h, neg_slope * h)                    # leaky_relu(0.01)
            # ---- conv2: intermediate stays in registers (no scratch) ----
            p2 = im2col(pad_hw(h.reshape(Cmid, H1, W1), P), S2, H2, W2)
            y = jnp.dot(w2, p2, preferred_element_type=jnp.float32) + b2
            o_ref[b] = y.astype(o_ref.dtype)                          # lane-dense store

    return kernel


def _largest_divisor_leq(n, cap):
    for d in range(min(n, cap), 0, -1):
        if n % d == 0:
            return d
    return 1


@functools.partial(jax.jit, static_argnames=("stride", "padding", "stride2"))
def double_conv_pallas(x_nchw, w1, b1, w2, b2, *, stride=1, padding=0, stride2=1):
    """Pallas implementation of DoubleConv.forward.

    x_nchw: (N, Cin, H, W) float32 (PyTorch NCHW)
    w1: (Cmid, Cin, k, k), b1: (Cmid,)
    w2: (Cout, Cmid, k, k), b2: (Cout,)
    returns: (N, Cout, H2, W2) float32
    """
    N, Cin, H, W = x_nchw.shape
    Cmid, Cin_w, K, K2 = w1.shape
    Cout, Cmid_w, K3, _ = w2.shape
    assert Cin_w == Cin and K2 == K and K3 == K and Cmid_w == Cmid
    P, S1, S2 = padding, stride, stride2

    H1 = (H + 2 * P - K) // S1 + 1
    W1 = (W + 2 * P - K) // S1 + 1
    H2 = (H1 + 2 * P - K) // S2 + 1
    W2 = (W1 + 2 * P - K) // S2 + 1

    # Weight / bias repack only (tiny). Activations stay in their HBM layout:
    # no transpose / pad HBM passes in the wrapper.
    w1_k = jnp.transpose(w1, (0, 2, 3, 1)).reshape(Cmid, K * K * Cin).astype(jnp.float32)
    w2_k = jnp.transpose(w2, (0, 2, 3, 1)).reshape(Cout, K * K * Cmid).astype(jnp.float32)
    b1_k = b1.reshape(Cmid, 1).astype(jnp.float32)
    b2_k = b2.reshape(Cout, 1).astype(jnp.float32)
    x = x_nchw.astype(jnp.float32)

    # Amortize per-grid-step overhead for tiny images while bounding VMEM.
    per_img_bytes = 4 * (Cin * H * W + K * K * Cin * H1 * W1
                         + K * K * Cmid * H2 * W2 + Cmid * H1 * W1 + Cout * H2 * W2)
    max_bt = max(1, min(4, (4 * 1024 * 1024) // max(per_img_bytes, 1)))
    B_tile = _largest_divisor_leq(N, max_bt)
    grid = (N // B_tile,)

    kernel = _make_kernel(B_tile, K, P, S1, S2, H1, W1, H2, W2,
                          Cin, Cmid, Cout, 0.01)

    out = pl.pallas_call(
        kernel,
        out_shape=jax.ShapeDtypeStruct((N, Cout, H2 * W2), jnp.float32),
        grid_spec=pltpu.PrefetchScalarGridSpec(
            num_scalar_prefetch=0,
            grid=grid,
            in_specs=[
                pl.BlockSpec((B_tile, Cin, H, W), lambda n: (n, 0, 0, 0)),
                pl.BlockSpec((Cmid, K * K * Cin), lambda n: (0, 0)),
                pl.BlockSpec((Cmid, 1), lambda n: (0, 0)),
                pl.BlockSpec((Cout, K * K * Cmid), lambda n: (0, 0)),
                pl.BlockSpec((Cout, 1), lambda n: (0, 0)),
            ],
            out_specs=pl.BlockSpec((B_tile, Cout, H2 * W2), lambda n: (n, 0, 0)),
        ),
        compiler_params=pltpu.CompilerParams(
            dimension_semantics=("parallel",),
            vmem_limit_bytes=64 * 1024 * 1024,
        ),
    )(x, w1_k, b1_k, w2_k, b2_k)

    # Free reshape back to NCHW (contiguous split of the last dim; no transpose).
    return out.reshape(N, Cout, H2, W2)


def _reference(x_nchw, w1, b1, w2, b2, stride, padding, stride2):
    dn = ("NCHW", "OIHW", "NCHW")
    y = jax.lax.conv_general_dilated(
        x_nchw, w1, (stride, stride), [(padding, padding)] * 2,
        dimension_numbers=dn) + b1[None, :, None, None]
    y = jnp.where(y > 0, y, 0.01 * y)
    y = jax.lax.conv_general_dilated(
        y, w2, (stride2, stride2), [(padding, padding)] * 2,
        dimension_numbers=dn) + b2[None, :, None, None]
    return y


if __name__ == "__main__":
    # DoubleConv(cin=4, cout=8, k=3, stride=1, padding=1) -> cmid = cin = 4
    N, Cin, H, W = 2, 4, 16, 16
    Cmid, Cout, K = 4, 8, 3
    stride, padding, stride2 = 1, 1, 1

    key = jax.random.PRNGKey(0)
    k1, k2, kx = jax.random.split(key, 3)

    # Deterministic kaiming-uniform-style init (bound = sqrt(6 / fan_in)); biases = 0,
    # matching DoubleConv.init_weights semantics.
    bound1 = (6.0 / (Cin * K * K)) ** 0.5
    bound2 = (6.0 / (Cmid * K * K)) ** 0.5
    w1 = jax.random.uniform(k1, (Cmid, Cin, K, K), jnp.float32, -bound1, bound1)
    w2 = jax.random.uniform(k2, (Cout, Cmid, K, K), jnp.float32, -bound2, bound2)
    b1 = jnp.zeros((Cmid,), jnp.float32)
    b2 = jnp.zeros((Cout,), jnp.float32)

    x = jax.random.normal(kx, (N, Cin, H, W), jnp.float32)

    out = double_conv_pallas(x, w1, b1, w2, b2,
                             stride=stride, padding=padding, stride2=stride2)
    out = jax.block_until_ready(out)

    ref = _reference(x, w1, b1, w2, b2, stride, padding, stride2)
    assert out.shape == ref.shape, (out.shape, ref.shape)
    assert jnp.allclose(out, ref, atol=1e-4, rtol=1e-4), float(
        jnp.max(jnp.abs(out - ref)))

    print("KERNEL_OK")
</pallas_src>

<mosaic_0001>
module attributes {stable_mosaic.version = 11 : i64} {
  func.func @kernel(%arg0: i32, %arg1: memref<2x4x16x16xf32, #tpu.memory_space<vmem>>, %arg2: memref<4x36xf32, #tpu.memory_space<vmem>>, %arg3: memref<4x1xf32, #tpu.memory_space<vmem>>, %arg4: memref<8x36xf32, #tpu.memory_space<vmem>>, %arg5: memref<8x1xf32, #tpu.memory_space<vmem>>, %arg6: memref<2x8x256xf32, #tpu.memory_space<vmem>>) attributes {dimension_semantics = [#tpu.dimension_semantics<parallel>], iteration_bounds = array<i64: 1>, scalar_prefetch = 0 : i64, scratch_operands = 0 : i64, tpu.core_type = #tpu.core_type<tc>, window_params = [{transform_indices = @transform_0, window_bounds = array<i64: 2, 4, 16, 16>}, {pipeline_mode = #tpu.pipeline_mode<synchronous>, transform_indices = @transform_1, window_bounds = array<i64: 4, 36>}, {pipeline_mode = #tpu.pipeline_mode<synchronous>, transform_indices = @transform_2, window_bounds = array<i64: 4, 1>}, {pipeline_mode = #tpu.pipeline_mode<synchronous>, transform_indices = @transform_3, window_bounds = array<i64: 8, 36>}, {pipeline_mode = #tpu.pipeline_mode<synchronous>, transform_indices = @transform_4, window_bounds = array<i64: 8, 1>}, {transform_indices = @transform_5, window_bounds = array<i64: 2, 8, 256>}]} {
    %c0 = arith.constant 0 : index
    %c0_0 = arith.constant 0 : index
    %0 = vector.load %arg2[%c0, %c0_0] : memref<4x36xf32, #tpu.memory_space<vmem>>, vector<4x36xf32>
    %c0_1 = arith.constant 0 : index
    %c0_2 = arith.constant 0 : index
    %1 = vector.load %arg3[%c0_1, %c0_2] : memref<4x1xf32, #tpu.memory_space<vmem>>, vector<4x1xf32>
    %c0_3 = arith.constant 0 : index
    %c0_4 = arith.constant 0 : index
    %2 = vector.load %arg4[%c0_3, %c0_4] : memref<8x36xf32, #tpu.memory_space<vmem>>, vector<8x36xf32>
    %c0_5 = arith.constant 0 : index
    %c0_6 = arith.constant 0 : index
    %3 = vector.load %arg5[%c0_5, %c0_6] : memref<8x1xf32, #tpu.memory_space<vmem>>, vector<8x1xf32>
    %c0_7 = arith.constant 0 : index
    %c0_8 = arith.constant 0 : index
    %c0_9 = arith.constant 0 : index
    %c0_10 = arith.constant 0 : index
    %4 = vector.load %arg1[%c0_7, %c0_8, %c0_9, %c0_10] : memref<2x4x16x16xf32, #tpu.memory_space<vmem>>, vector<1x4x16x16xf32>
    %5 = vector.shape_cast %4 : vector<1x4x16x16xf32> to vector<4x16x16xf32>
    %cst = arith.constant 0.000000e+00 : f32
    %6 = vector.broadcast %cst : f32 to vector<4x1x16xf32>
    %7 = tpu.concatenate %6, %5, %6 in 1 : vector<4x1x16xf32>, vector<4x16x16xf32>, vector<4x1x16xf32> -> vector<4x18x16xf32>
    %cst_11 = arith.constant 0.000000e+00 : f32
    %8 = vector.broadcast %cst_11 : f32 to vector<4x18x1xf32>
    %9 = tpu.concatenate %8, %7, %8 in 2 : vector<4x18x1xf32>, vector<4x18x16xf32>, vector<4x18x1xf32> -> vector<4x18x18xf32>
    %10 = vector.extract_strided_slice %9 {offsets = [0, 0, 0], sizes = [4, 16, 16], strides = [1, 1, 1]} : vector<4x18x18xf32> to vector<4x16x16xf32>
    %11 = vector.shape_cast %10 : vector<4x16x16xf32> to vector<4x256xf32>
    %12 = vector.extract_strided_slice %9 {offsets = [0, 0, 1], sizes = [4, 16, 16], strides = [1, 1, 1]} : vector<4x18x18xf32> to vector<4x16x16xf32>
    %13 = vector.shape_cast %12 : vector<4x16x16xf32> to vector<4x256xf32>
    %14 = vector.extract_strided_slice %9 {offsets = [0, 0, 2], sizes = [4, 16, 16], strides = [1, 1, 1]} : vector<4x18x18xf32> to vector<4x16x16xf32>
    %15 = vector.shape_cast %14 : vector<4x16x16xf32> to vector<4x256xf32>
    %16 = vector.extract_strided_slice %9 {offsets = [0, 1, 0], sizes = [4, 16, 16], strides = [1, 1, 1]} : vector<4x18x18xf32> to vector<4x16x16xf32>
    %17 = vector.shape_cast %16 : vector<4x16x16xf32> to vector<4x256xf32>
    %18 = vector.extract_strided_slice %9 {offsets = [0, 1, 1], sizes = [4, 16, 16], strides = [1, 1, 1]} : vector<4x18x18xf32> to vector<4x16x16xf32>
    %19 = vector.shape_cast %18 : vector<4x16x16xf32> to vector<4x256xf32>
    %20 = vector.extract_strided_slice %9 {offsets = [0, 1, 2], sizes = [4, 16, 16], strides = [1, 1, 1]} : vector<4x18x18xf32> to vector<4x16x16xf32>
    %21 = vector.shape_cast %20 : vector<4x16x16xf32> to vector<4x256xf32>
    %22 = vector.extract_strided_slice %9 {offsets = [0, 2, 0], sizes = [4, 16, 16], strides = [1, 1, 1]} : vector<4x18x18xf32> to vector<4x16x16xf32>
    %23 = vector.shape_cast %22 : vector<4x16x16xf32> to vector<4x256xf32>
    %24 = vector.extract_strided_slice %9 {offsets = [0, 2, 1], sizes = [4, 16, 16], strides = [1, 1, 1]} : vector<4x18x18xf32> to vector<4x16x16xf32>
    %25 = vector.shape_cast %24 : vector<4x16x16xf32> to vector<4x256xf32>
    %26 = vector.extract_strided_slice %9 {offsets = [0, 2, 2], sizes = [4, 16, 16], strides = [1, 1, 1]} : vector<4x18x18xf32> to vector<4x16x16xf32>
    %27 = vector.shape_cast %26 : vector<4x16x16xf32> to vector<4x256xf32>
    %28 = tpu.concatenate %11, %13, %15, %17, %19, %21, %23, %25, %27 in 0 : vector<4x256xf32>, vector<4x256xf32>, vector<4x256xf32>, vector<4x256xf32>, vector<4x256xf32>, vector<4x256xf32>, vector<4x256xf32>, vector<4x256xf32>, vector<4x256xf32> -> vector<36x256xf32>
    %cst_12 = arith.constant dense<0.000000e+00> : vector<4x256xf32>
    %29 = tpu.matmul %0, %28, %cst_12 {dimension_numbers = #tpu.dot_dimension_numbers<[1], [0], [0], [1], [0, 0, 1, 1], [], []>} : vector<4x36xf32>, vector<36x256xf32>, vector<4x256xf32> -> vector<4x256xf32>
    %30 = vector.broadcast %1 : vector<4x1xf32> to vector<4x256xf32>
    %31 = arith.addf %29, %30 : vector<4x256xf32>
    %cst_13 = arith.constant 0.000000e+00 : f32
    %32 = vector.broadcast %cst_13 : f32 to vector<4x256xf32>
    %33 = arith.cmpf ogt, %31, %32 : vector<4x256xf32>
    %cst_14 = arith.constant 0.00999999977 : f32
    %34 = vector.broadcast %cst_14 : f32 to vector<4x256xf32>
    %35 = arith.mulf %34, %31 : vector<4x256xf32>
    %36 = arith.select %33, %31, %35 : vector<4x256xi1>, vector<4x256xf32>
    %37 = vector.shape_cast %36 : vector<4x256xf32> to vector<4x16x16xf32>
    %cst_15 = arith.constant 0.000000e+00 : f32
    %38 = vector.broadcast %cst_15 : f32 to vector<4x1x16xf32>
    %39 = tpu.concatenate %38, %37, %38 in 1 : vector<4x1x16xf32>, vector<4x16x16xf32>, vector<4x1x16xf32> -> vector<4x18x16xf32>
    %cst_16 = arith.constant 0.000000e+00 : f32
    %40 = vector.broadcast %cst_16 : f32 to vector<4x18x1xf32>
    %41 = tpu.concatenate %40, %39, %40 in 2 : vector<4x18x1xf32>, vector<4x18x16xf32>, vector<4x18x1xf32> -> vector<4x18x18xf32>
    %42 = vector.extract_strided_slice %41 {offsets = [0, 0, 0], sizes = [4, 16, 16], strides = [1, 1, 1]} : vector<4x18x18xf32> to vector<4x16x16xf32>
    %43 = vector.shape_cast %42 : vector<4x16x16xf32> to vector<4x256xf32>
    %44 = vector.extract_strided_slice %41 {offsets = [0, 0, 1], sizes = [4, 16, 16], strides = [1, 1, 1]} : vector<4x18x18xf32> to vector<4x16x16xf32>
    %45 = vector.shape_cast %44 : vector<4x16x16xf32> to vector<4x256xf32>
    %46 = vector.extract_strided_slice %41 {offsets = [0, 0, 2], sizes = [4, 16, 16], strides = [1, 1, 1]} : vector<4x18x18xf32> to vector<4x16x16xf32>
    %47 = vector.shape_cast %46 : vector<4x16x16xf32> to vector<4x256xf32>
    %48 = vector.extract_strided_slice %41 {offsets = [0, 1, 0], sizes = [4, 16, 16], strides = [1, 1, 1]} : vector<4x18x18xf32> to vector<4x16x16xf32>
    %49 = vector.shape_cast %48 : vector<4x16x16xf32> to vector<4x256xf32>
    %50 = vector.extract_strided_slice %41 {offsets = [0, 1, 1], sizes = [4, 16, 16], strides = [1, 1, 1]} : vector<4x18x18xf32> to vector<4x16x16xf32>
    %51 = vector.shape_cast %50 : vector<4x16x16xf32> to vector<4x256xf32>
    %52 = vector.extract_strided_slice %41 {offsets = [0, 1, 2], sizes = [4, 16, 16], strides = [1, 1, 1]} : vector<4x18x18xf32> to vector<4x16x16xf32>
    %53 = vector.shape_cast %52 : vector<4x16x16xf32> to vector<4x256xf32>
    %54 = vector.extract_strided_slice %41 {offsets = [0, 2, 0], sizes = [4, 16, 16], strides = [1, 1, 1]} : vector<4x18x18xf32> to vector<4x16x16xf32>
    %55 = vector.shape_cast %54 : vector<4x16x16xf32> to vector<4x256xf32>
    %56 = vector.extract_strided_slice %41 {offsets = [0, 2, 1], sizes = [4, 16, 16], strides = [1, 1, 1]} : vector<4x18x18xf32> to vector<4x16x16xf32>
    %57 = vector.shape_cast %56 : vector<4x16x16xf32> to vector<4x256xf32>
    %58 = vector.extract_strided_slice %41 {offsets = [0, 2, 2], sizes = [4, 16, 16], strides = [1, 1, 1]} : vector<4x18x18xf32> to vector<4x16x16xf32>
    %59 = vector.shape_cast %58 : vector<4x16x16xf32> to vector<4x256xf32>
    %60 = tpu.concatenate %43, %45, %47, %49, %51, %53, %55, %57, %59 in 0 : vector<4x256xf32>, vector<4x256xf32>, vector<4x256xf32>, vector<4x256xf32>, vector<4x256xf32>, vector<4x256xf32>, vector<4x256xf32>, vector<4x256xf32>, vector<4x256xf32> -> vector<36x256xf32>
    %cst_17 = arith.constant dense<0.000000e+00> : vector<8x256xf32>
    %61 = tpu.matmul %2, %60, %cst_17 {dimension_numbers = #tpu.dot_dimension_numbers<[1], [0], [0], [1], [0, 0, 1, 1], [], []>} : vector<8x36xf32>, vector<36x256xf32>, vector<8x256xf32> -> vector<8x256xf32>
    %62 = vector.broadcast %3 : vector<8x1xf32> to vector<8x256xf32>
    %63 = arith.addf %61, %62 : vector<8x256xf32>
    %c0_18 = arith.constant 0 : index
    %c0_19 = arith.constant 0 : index
    %c0_20 = arith.constant 0 : index
    %64 = vector.load %arg6[%c0_18, %c0_19, %c0_20] : memref<2x8x256xf32, #tpu.memory_space<vmem>>, vector<1x8x256xf32>
    %65 = vector.shape_cast %64 : vector<1x8x256xf32> to vector<8x256xf32>
    %66 = vector.shape_cast %63 : vector<8x256xf32> to vector<1x8x256xf32>
    tpu.vector_store %arg6[%c0_18, %c0_19, %c0_20], %66 {strides = array<i32>} : memref<2x8x256xf32, #tpu.memory_space<vmem>>, vector<1x8x256xf32>,
    %c1 = arith.constant 1 : index
    %c0_21 = arith.constant 0 : index
    %c0_22 = arith.constant 0 : index
    %c0_23 = arith.constant 0 : index
    %67 = vector.load %arg1[%c1, %c0_21, %c0_22, %c0_23] : memref<2x4x16x16xf32, #tpu.memory_space<vmem>>, vector<1x4x16x16xf32>
    %68 = vector.shape_cast %67 : vector<1x4x16x16xf32> to vector<4x16x16xf32>
    %cst_24 = arith.constant 0.000000e+00 : f32
    %69 = vector.broadcast %cst_24 : f32 to vector<4x1x16xf32>
    %70 = tpu.concatenate %69, %68, %69 in 1 : vector<4x1x16xf32>, vector<4x16x16xf32>, vector<4x1x16xf32> -> vector<4x18x16xf32>
    %cst_25 = arith.constant 0.000000e+00 : f32
    %71 = vector.broadcast %cst_25 : f32 to vector<4x18x1xf32>
    %72 = tpu.concatenate %71, %70, %71 in 2 : vector<4x18x1xf32>, vector<4x18x16xf32>, vector<4x18x1xf32> -> vector<4x18x18xf32>
    %73 = vector.extract_strided_slice %72 {offsets = [0, 0, 0], sizes = [4, 16, 16], strides = [1, 1, 1]} : vector<4x18x18xf32> to vector<4x16x16xf32>
    %74 = vector.shape_cast %73 : vector<4x16x16xf32> to vector<4x256xf32>
    %75 = vector.extract_strided_slice %72 {offsets = [0, 0, 1], sizes = [4, 16, 16], strides = [1, 1, 1]} : vector<4x18x18xf32> to vector<4x16x16xf32>
    %76 = vector.shape_cast %75 : vector<4x16x16xf32> to vector<4x256xf32>
    %77 = vector.extract_strided_slice %72 {offsets = [0, 0, 2], sizes = [4, 16, 16], strides = [1, 1, 1]} : vector<4x18x18xf32> to vector<4x16x16xf32>
    %78 = vector.shape_cast %77 : vector<4x16x16xf32> to vector<4x256xf32>
    %79 = vector.extract_strided_slice %72 {offsets = [0, 1, 0], sizes = [4, 16, 16], strides = [1, 1, 1]} : vector<4x18x18xf32> to vector<4x16x16xf32>
    %80 = vector.shape_cast %79 : vector<4x16x16xf32> to vector<4x256xf32>
    %81 = vector.extract_strided_slice %72 {offsets = [0, 1, 1], sizes = [4, 16, 16], strides = [1, 1, 1]} : vector<4x18x18xf32> to vector<4x16x16xf32>
    %82 = vector.shape_cast %81 : vector<4x16x16xf32> to vector<4x256xf32>
    %83 = vector.extract_strided_slice %72 {offsets = [0, 1, 2], sizes = [4, 16, 16], strides = [1, 1, 1]} : vector<4x18x18xf32> to vector<4x16x16xf32>
    %84 = vector.shape_cast %83 : vector<4x16x16xf32> to vector<4x256xf32>
    %85 = vector.extract_strided_slice %72 {offsets = [0, 2, 0], sizes = [4, 16, 16], strides = [1, 1, 1]} : vector<4x18x18xf32> to vector<4x16x16xf32>
    %86 = vector.shape_cast %85 : vector<4x16x16xf32> to vector<4x256xf32>
    %87 = vector.extract_strided_slice %72 {offsets = [0, 2, 1], sizes = [4, 16, 16], strides = [1, 1, 1]} : vector<4x18x18xf32> to vector<4x16x16xf32>
    %88 = vector.shape_cast %87 : vector<4x16x16xf32> to vector<4x256xf32>
    %89 = vector.extract_strided_slice %72 {offsets = [0, 2, 2], sizes = [4, 16, 16], strides = [1, 1, 1]} : vector<4x18x18xf32> to vector<4x16x16xf32>
    %90 = vector.shape_cast %89 : vector<4x16x16xf32> to vector<4x256xf32>
    %91 = tpu.concatenate %74, %76, %78, %80, %82, %84, %86, %88, %90 in 0 : vector<4x256xf32>, vector<4x256xf32>, vector<4x256xf32>, vector<4x256xf32>, vector<4x256xf32>, vector<4x256xf32>, vector<4x256xf32>, vector<4x256xf32>, vector<4x256xf32> -> vector<36x256xf32>
    %cst_26 = arith.constant dense<0.000000e+00> : vector<4x256xf32>
    %92 = tpu.matmul %0, %91, %cst_26 {dimension_numbers = #tpu.dot_dimension_numbers<[1], [0], [0], [1], [0, 0, 1, 1], [], []>} : vector<4x36xf32>, vector<36x256xf32>, vector<4x256xf32> -> vector<4x256xf32>
    %93 = vector.broadcast %1 : vector<4x1xf32> to vector<4x256xf32>
    %94 = arith.addf %92, %93 : vector<4x256xf32>
    %cst_27 = arith.constant 0.000000e+00 : f32
    %95 = vector.broadcast %cst_27 : f32 to vector<4x256xf32>
    %96 = arith.cmpf ogt, %94, %95 : vector<4x256xf32>
    %cst_28 = arith.constant 0.00999999977 : f32
    %97 = vector.broadcast %cst_28 : f32 to vector<4x256xf32>
    %98 = arith.mulf %97, %94 : vector<4x256xf32>
    %99 = arith.select %96, %94, %98 : vector<4x256xi1>, vector<4x256xf32>
    %100 = vector.shape_cast %99 : vector<4x256xf32> to vector<4x16x16xf32>
    %cst_29 = arith.constant 0.000000e+00 : f32
    %101 = vector.broadcast %cst_29 : f32 to vector<4x1x16xf32>
    %102 = tpu.concatenate %101, %100, %101 in 1 : vector<4x1x16xf32>, vector<4x16x16xf32>, vector<4x1x16xf32> -> vector<4x18x16xf32>
    %cst_30 = arith.constant 0.000000e+00 : f32
    %103 = vector.broadcast %cst_30 : f32 to vector<4x18x1xf32>
    %104 = tpu.concatenate %103, %102, %103 in 2 : vector<4x18x1xf32>, vector<4x18x16xf32>, vector<4x18x1xf32> -> vector<4x18x18xf32>
    %105 = vector.extract_strided_slice %104 {offsets = [0, 0, 0], sizes = [4, 16, 16], strides = [1, 1, 1]} : vector<4x18x18xf32> to vector<4x16x16xf32>
    %106 = vector.shape_cast %105 : vector<4x16x16xf32> to vector<4x256xf32>
    %107 = vector.extract_strided_slice %104 {offsets = [0, 0, 1], sizes = [4, 16, 16], strides = [1, 1, 1]} : vector<4x18x18xf32> to vector<4x16x16xf32>
    %108 = vector.shape_cast %107 : vector<4x16x16xf32> to vector<4x256xf32>
    %109 = vector.extract_strided_slice %104 {offsets = [0, 0, 2], sizes = [4, 16, 16], strides = [1, 1, 1]} : vector<4x18x18xf32> to vector<4x16x16xf32>
    %110 = vector.shape_cast %109 : vector<4x16x16xf32> to vector<4x256xf32>
    %111 = vector.extract_strided_slice %104 {offsets = [0, 1, 0], sizes = [4, 16, 16], strides = [1, 1, 1]} : vector<4x18x18xf32> to vector<4x16x16xf32>
    %112 = vector.shape_cast %111 : vector<4x16x16xf32> to vector<4x256xf32>
    %113 = vector.extract_strided_slice %104 {offsets = [0, 1, 1], sizes = [4, 16, 16], strides = [1, 1, 1]} : vector<4x18x18xf32> to vector<4x16x16xf32>
    %114 = vector.shape_cast %113 : vector<4x16x16xf32> to vector<4x256xf32>
    %115 = vector.extract_strided_slice %104 {offsets = [0, 1, 2], sizes = [4, 16, 16], strides = [1, 1, 1]} : vector<4x18x18xf32> to vector<4x16x16xf32>
    %116 = vector.shape_cast %115 : vector<4x16x16xf32> to vector<4x256xf32>
    %117 = vector.extract_strided_slice %104 {offsets = [0, 2, 0], sizes = [4, 16, 16], strides = [1, 1, 1]} : vector<4x18x18xf32> to vector<4x16x16xf32>
    %118 = vector.shape_cast %117 : vector<4x16x16xf32> to vector<4x256xf32>
    %119 = vector.extract_strided_slice %104 {offsets = [0, 2, 1], sizes = [4, 16, 16], strides = [1, 1, 1]} : vector<4x18x18xf32> to vector<4x16x16xf32>
    %120 = vector.shape_cast %119 : vector<4x16x16xf32> to vector<4x256xf32>
    %121 = vector.extract_strided_slice %104 {offsets = [0, 2, 2], sizes = [4, 16, 16], strides = [1, 1, 1]} : vector<4x18x18xf32> to vector<4x16x16xf32>
    %122 = vector.shape_cast %121 : vector<4x16x16xf32> to vector<4x256xf32>
    %123 = tpu.concatenate %106, %108, %110, %112, %114, %116, %118, %120, %122 in 0 : vector<4x256xf32>, vector<4x256xf32>, vector<4x256xf32>, vector<4x256xf32>, vector<4x256xf32>, vector<4x256xf32>, vector<4x256xf32>, vector<4x256xf32>, vector<4x256xf32> -> vector<36x256xf32>
    %cst_31 = arith.constant dense<0.000000e+00> : vector<8x256xf32>
    %124 = tpu.matmul %2, %123, %cst_31 {dimension_numbers = #tpu.dot_dimension_numbers<[1], [0], [0], [1], [0, 0, 1, 1], [], []>} : vector<8x36xf32>, vector<36x256xf32>, vector<8x256xf32> -> vector<8x256xf32>
    %125 = vector.broadcast %3 : vector<8x1xf32> to vector<8x256xf32>
    %126 = arith.addf %124, %125 : vector<8x256xf32>
    %c1_32 = arith.constant 1 : index
    %c0_33 = arith.constant 0 : index
    %c0_34 = arith.constant 0 : index
    %127 = vector.load %arg6[%c1_32, %c0_33, %c0_34] : memref<2x8x256xf32, #tpu.memory_space<vmem>>, vector<1x8x256xf32>
    %128 = vector.shape_cast %127 : vector<1x8x256xf32> to vector<8x256xf32>
    %129 = vector.shape_cast %126 : vector<8x256xf32> to vector<1x8x256xf32>
    tpu.vector_store %arg6[%c1_32, %c0_33, %c0_34], %129 {strides = array<i32>} : memref<2x8x256xf32, #tpu.memory_space<vmem>>, vector<1x8x256xf32>,
    return
  }
  func.func @transform_0(%arg0: i32) -> (i32, i32, i32, i32) {
    %c0_i32 = arith.constant 0 : i32
    %c0_i32_0 = arith.constant 0 : i32
    %c0_i32_1 = arith.constant 0 : i32
    %c0_i32_2 = arith.constant 0 : i32
    return %arg0, %c0_i32, %c0_i32_0, %c0_i32_1 : i32, i32, i32, i32
  }
  func.func @transform_1(%arg0: i32) -> (i32, i32) {
    %c0_i32 = arith.constant 0 : i32
    %c0_i32_0 = arith.constant 0 : i32
    %c0_i32_1 = arith.constant 0 : i32
    return %c0_i32, %c0_i32_0 : i32, i32
  }
  func.func @transform_2(%arg0: i32) -> (i32, i32) {
    %c0_i32 = arith.constant 0 : i32
    %c0_i32_0 = arith.constant 0 : i32
    %c0_i32_1 = arith.constant 0 : i32
    return %c0_i32, %c0_i32_0 : i32, i32
  }
  func.func @transform_3(%arg0: i32) -> (i32, i32) {
    %c0_i32 = arith.constant 0 : i32
    %c0_i32_0 = arith.constant 0 : i32
    %c0_i32_1 = arith.constant 0 : i32
    return %c0_i32, %c0_i32_0 : i32, i32
  }
  func.func @transform_4(%arg0: i32) -> (i32, i32) {
    %c0_i32 = arith.constant 0 : i32
    %c0_i32_0 = arith.constant 0 : i32
    %c0_i32_1 = arith.constant 0 : i32
    return %c0_i32, %c0_i32_0 : i32, i32
  }
  func.func @transform_5(%arg0: i32) -> (i32, i32, i32) {
    %c0_i32 = arith.constant 0 : i32
    %c0_i32_0 = arith.constant 0 : i32
    %c0_i32_1 = arith.constant 0 : i32
    return %arg0, %c0_i32, %c0_i32_0 : i32, i32, i32
  }
}

</mosaic_0001>

<bundles_post_ra>
// kernel: double_conv_pallas.1
= control target key start
LH: loop header
LB: loop body
LE: loop exit
PB: predicated region body
PF: predicated region fallthrough
CT: control target
= control target key end

     0   :  { %vm40_vm0 = vcmask 1040384   ;;  %s9607_s26 = smov 1   ;;  %v15932_v28 = vmov 0.0   ;;  %vm113_vm1 = vcmask 7168   ;;  %vm126_vm2 = vcmask 138240   ;;  %s9609_s10 = smov 127   ;;  %s15926_s0 = inlined_call_operand.vmem [shape: f32[2,4,16,16], index: 0, kind: input, shape index: {}]   ;;  %s15927_s2 = inlined_call_operand.vmem [shape: f32[4,1], index: 2, kind: input, shape index: {}]   ;;  %s15928_s1 = inlined_call_operand.vmem [shape: f32[4,36], index: 1, kind: input, shape index: {}]   ;;  %s15929_s4 = inlined_call_operand.vmem [shape: f32[8,1], index: 4, kind: input, shape index: {}]   ;;  %s15930_s3 = inlined_call_operand.vmem [shape: f32[8,36], index: 3, kind: input, shape index: {}]   ;;  %s15931_s5 = inlined_call_operand.vmem [shape: f32[2,8,256], index: 5, kind: output, shape index: {}]  }
   0x1   :  { %v25_v0 = vld [vmem:[%s15926_s0 + $0x8] sm:$0xff]  ;;  %v24_v1 = vld [vmem:[%s15926_s0] sm:$0xff]  ;;  %v26_v2 = vld [vmem:[%s15926_s0 + $0x10] sm:$0xff]  ;;  %2326 = vmatprep.mubr.f32.mxu0 %v15932_v28  ;;  %4799 = vmatprep.mubr.f32.mxu1 %v15932_v28  ;;  %vm1519_vm3 = vcmask 1045504   ;;  %s9610_s11 = smov 126   ;;  %vm824_vm4 = vcmask 1046528  }
   0x2   :  { %v42_v3 = vrot.slane %v25_v0, 7  ;;  %v41_v4 = vrot.slane %v24_v1, 7  ;;  %v44_v5 = vrot.slane %v26_v2, 7  ;;  %v27_v6 = vld [vmem:[%s15926_s0 + $0x18] sm:$0xff]  ;;  %v28_v12 = vld [vmem:[%s15926_s0 + $0x20] sm:$0xff]  ;;  %v29_v13 = vld [vmem:[%s15926_s0 + $0x28] sm:$0xff] }
   0x3   :  { %v45_v11 = vrot.slane %v27_v6, 7  ;;  %v47_v16 = vrot.slane %v28_v12, 7  ;;  %v48_v17 = vrot.slane %v29_v13, 7  ;;  %v30_v18 = vld [vmem:[%s15926_s0 + $0x30] sm:$0xff]  ;;  %v31_v22 = vld [vmem:[%s15926_s0 + $0x38] sm:$0xff]  ;;  %s9613_s12 = smov 32  }
   0x4   :  { %v65_v7 = vsel %vm40_vm0, %v42_v3, 0.0  ;;  %v61_v8 = vsel %vm40_vm0, 0.0, %v41_v4  ;;  %v62_v9 = vsel %vm40_vm0, 0.0, %v44_v5  ;;  %v43_v10 = vsel %vm40_vm0, %v41_v4, %v42_v3  ;;  %s9614_s13 = smov 64   ;;  %s9615_s14 = smov 96  }
   0x5   :  { %81 = vrot.lane.b32.xlu1 %v65_v7, %s9607_s26  ;;  %77 = vrot.lane.b32.xlu0 %v61_v8, %s9607_s26  ;;  %v66_v14 = vsel %vm40_vm0, %v45_v11, 0.0  ;;  %v46_v15 = vsel %vm40_vm0, %v44_v5, %v45_v11  ;;  %v49_v19 = vsel %vm40_vm0, %v47_v16, %v48_v17  ;;  %v63_v20 = vsel %vm40_vm0, 0.0, %v47_v16  ;;  %s9616_s15 = smov 16   ;;  %s9617_s16 = smov 48  }
   0x6   :  { %v50_v21 = vrot.slane %v30_v18, 7  ;;  %v67_v24 = vsel %vm40_vm0, %v48_v17, 0.0  ;;  %v51_v25 = vrot.slane %v31_v22, 7  ;;  %s9618_s17 = smov 80   ;;  %s9619_s18 = smov 112   ;;  %vm331_vm5 = vcmask 130048  }
   0x7   :  { %vm333_vm6 = vcmask 261120   ;;  %vm335_vm7 = vcmask 392192   ;;  %vm337_vm8 = vcmask 523264   ;;  %vm339_vm9 = vcmask 654336  }
   0x8   :  { %v64_v23 = vsel %vm40_vm0, 0.0, %v50_v21  ;;  %v68_v26 = vsel %vm40_vm0, %v51_v25, 0.0  ;;  %v52_v27 = vsel %vm40_vm0, %v50_v21, %v51_v25  ;;  %vm341_vm10 = vcmask 785408  }
   0x9   :  { %83 = vrot.lane.b32.xlu1 %v62_v9, %s9607_s26  ;;  %79 = vrot.lane.b32.xlu0 %v43_v10, %s9607_s26  ;;  %vm343_vm11 = vcmask 916480   ;;  %vm2238_vm12 = vcmask 1043456   ;;  %vm2252_vm13 = vcmask 293888  }
   0xd   :  { %87 = vrot.lane.b32.xlu1 %v66_v14, %s9607_s26  ;;  %85 = vrot.lane.b32.xlu0 %v46_v15, %s9607_s26 }
  0x11   :  { %91 = vrot.lane.b32.xlu1 %v49_v19, %s9607_s26  ;;  %89 = vrot.lane.b32.xlu0 %v63_v20, %s9607_s26 }
  0x15   :  { %95 = vrot.lane.b32.xlu1 %v64_v23, %s9607_s26  ;;  %93 = vrot.lane.b32.xlu0 %v67_v24, %s9607_s26 }
  0x19   :  { %99 = vrot.lane.b32.xlu1 %v68_v26, %s9607_s26  ;;  %97 = vrot.lane.b32.xlu0 %v52_v27, %s9607_s26 }
  0x77   :  { %v82_v29 = vpop.permute.xlu1 %81  ;;  %v78_v30 = vpop.permute.xlu0 %77 }
  0x78   :  { %v116_v31 = vsel %vm113_vm1, 0.0, %v82_v29  ;;  %v114_v32 = vsel %vm113_vm1, 0.0, %v78_v30 }
  0x79   :  { %v9704_v33 = vsel %vm126_vm2, %v116_v31, 0.0  ;;  %v9707_v34 = vsel %vm126_vm2, %v114_v32, 0.0 }
  0x7a   :  { %360 = vrot.lane.b32.xlu0 %v9707_v34, %s9609_s10  ;;  %v1523_v37 = vrot.slane %v9704_v33, 2  ;;  %v1520_v42 = vrot.slane %v9707_v34, 2  ;;  %v825_v22 = vrot.slane %v9707_v34, 1  ;;  %v828_v23 = vrot.slane %v9704_v33, 1 }
  0x7b   :  { %v84_v35 = vpop.permute.xlu1 %83  ;;  %v80_v36 = vpop.permute.xlu0 %79  ;;  %v9611_v33 = vmov 1983009808  }
  0x7c   :  { %v117_v38 = vsel %vm113_vm1, 0.0, %v84_v35  ;;  %v115_v39 = vsel %vm113_vm1, 0.0, %v80_v36  ;;  %v142_v35 = vunpack.c.l.s4 %v9611_v33  ;;  %v144_v36 = vlaneseq }
  0x7d   :  { %v9715_v40 = vsel %vm126_vm2, %v117_v38, 0.0  ;;  %v9718_v41 = vsel %vm126_vm2, %v115_v39, 0.0 }
  0x7e   :  { %v1521_v43 = vrot.slane %v9718_v41, 2  ;;  %362 = vrot.lane.b32.xlu1 %v9718_v41, %s9609_s10  ;;  %364 = vrot.lane.b32.xlu0 %v9715_v40, %s9609_s10  ;;  %v1525_v44 = vrot.slane %v9715_v40, 2  ;;  %v826_v21 = vrot.slane %v9718_v41, 1  ;;  %v830_v25 = vrot.slane %v9715_v40, 1 }
  0x7f   :  { %v88_v45 = vpop.permute.xlu1 %87  ;;  %v86_v46 = vpop.permute.xlu0 %85 }
  0x80   :  { %v9728_v47 = vsel %vm1519_vm3, %v1520_v42, %v1521_v43  ;;  %v119_v48 = vsel %vm113_vm1, 0.0, %v88_v45  ;;  %v118_v49 = vsel %vm113_vm1, 0.0, %v86_v46  ;;  %v9733_v50 = vsel %vm1519_vm3, %v1521_v43, %v1523_v37 }
  0x81   :  { %v9736_v51 = vsel %vm126_vm2, %v119_v48, 0.0  ;;  %v9739_v52 = vsel %vm126_vm2, %v118_v49, 0.0  ;;  %v9813_v24 = vsel %vm824_vm4, %v825_v22, %v826_v21  ;;  %v9826_v30 = vsel %vm824_vm4, %v826_v21, %v828_v23 }
  0x82   :  { %v1528_v53 = vrot.slane %v9736_v51, 2  ;;  %v1526_v54 = vrot.slane %v9739_v52, 2  ;;  %366 = vrot.lane.b32.xlu1 %v9739_v52, %s9609_s10  ;;  %v831_v26 = vrot.slane %v9739_v52, 1  ;;  %v833_v27 = vrot.slane %v9736_v51, 1 }
  0x83   :  { %v92_v55 = vpop.permute.xlu1 %91  ;;  %v90_v56 = vpop.permute.xlu0 %89  ;;  %v145_v45 = vshrl.u32 %v144_v36, 7 }
  0x84   :  { %v9746_v57 = vsel %vm1519_vm3, %v1525_v44, %v1526_v54  ;;  %v9749_v58 = vsel %vm1519_vm3, %v1526_v54, %v1528_v53  ;;  %v121_v59 = vsel %vm113_vm1, 0.0, %v92_v55  ;;  %v120_v60 = vsel %vm113_vm1, 0.0, %v90_v56 }
  0x85   :  { %v9754_v61 = vsel %vm126_vm2, %v121_v59, 0.0  ;;  %v9757_v62 = vsel %vm126_vm2, %v120_v60, 0.0  ;;  %v9823_v29 = vsel %vm824_vm4, %v830_v25, %v831_v26  ;;  %v9835_v37 = vsel %vm824_vm4, %v831_v26, %v833_v27 }
  0x86   :  { %v1531_v63 = vrot.slane %v9754_v61, 2  ;;  %v1530_v0 = vrot.slane %v9757_v62, 2  ;;  %370 = vrot.lane.b32.xlu1 %v9754_v61, %s9609_s10  ;;  %368 = vrot.lane.b32.xlu0 %v9757_v62, %s9609_s10  ;;  %v835_v31 = vrot.slane %v9757_v62, 1  ;;  %v836_v32 = vrot.slane %v9754_v61, 1 }
  0x87   :  { %v96_v1 = vpop.permute.xlu1 %95  ;;  %v94_v2 = vpop.permute.xlu0 %93  ;;  %v143_v44 = vunpack.c.0.s8 %v142_v35  ;;  %v9612_v54 = vmov 1934713408   ;;  %v207_v56 = vcombine.low %v9718_v41, %v9754_v61 }
  0x88   :  { %v9766_v3 = vsel %vm1519_vm3, %v1530_v0, %v1531_v63  ;;  %v123_v4 = vsel %vm113_vm1, 0.0, %v96_v1  ;;  %v122_v5 = vsel %vm113_vm1, 0.0, %v94_v2  ;;  %v9838_v39 = vsel %vm824_vm4, %v835_v31, %v836_v32 }
  0x89   :  { %v9771_v6 = vsel %vm126_vm2, %v123_v4, 0.0  ;;  %v135_v7 = vsel %vm126_vm2, %v122_v5, 0.0  ;;  %v9858_v53 = vsub.s32 %v143_v44, %v145_v45  ;;  %v174_v55 = vunpack.c.l.s4 %v9612_v54 }
  0x8a   :  { %v1533_v8 = vrot.slane %v135_v7, 2  ;;  %372 = vrot.lane.b32.xlu0 %v9771_v6, %s9609_s10  ;;  %v1535_v11 = vrot.slane %v9771_v6, 2  ;;  %v838_v38 = vrot.slane %v135_v7, 1  ;;  %v840_v42 = vrot.slane %v9771_v6, 1 }
  0x8b   :  { %v100_v9 = vpop.permute.xlu1 %99  ;;  %v98_v10 = vpop.permute.xlu0 %97  ;;  %16095 = vst [vmem:[#allocation2_spill] sm:$0xff] %v9858_v53  ;;  %v155_v59 = vcombine.low %v9715_v40, %v9771_v6  ;;  %v139_v1 = vcombine.low %v9707_v34, %v9757_v62  ;;  %v175_v2 = vunpack.c.0.s8 %v174_v55  ;;  %v215_v4 = vrot.slane %v207_v56, %v9858_v53 }
  0x8c   :  { %v9778_v12 = vsel %vm1519_vm3, %v1531_v63, %v1533_v8  ;;  %v125_v13 = vsel %vm113_vm1, 0.0, %v100_v9  ;;  %v124_v14 = vsel %vm113_vm1, 0.0, %v98_v10  ;;  %v9849_v49 = vsel %vm824_vm4, %v836_v32, %v838_v38 }
  0x8d   :  { %v138_v15 = vsel %vm126_vm2, %v125_v13, 0.0  ;;  %v9784_v16 = vsel %vm126_vm2, %v124_v14, 0.0  ;;  %v208_v5 = vcombine.high %v9718_v41, %v9754_v61  ;;  %v156_v9 = vcombine.high %v9715_v40, %v9771_v6 }
  0x8e   :  { %v1538_v17 = vrot.slane %v138_v15, 2  ;;  %v1536_v18 = vrot.slane %v9784_v16, 2  ;;  %590 = vrot.lane.b32.xlu0 %v9707_v34, %s9610_s11  ;;  %374 = vrot.lane.b32.xlu1 %v9784_v16, %s9609_s10  ;;  %v841_v43 = vrot.slane %v9784_v16, 1  ;;  %v223_v46 = vcombine.low %v9739_v52, %v9784_v16 }
  0x8f   :  { %v843_v48 = vrot.slane %v138_v15, 1  ;;  %v224_v63 = vcombine.high %v9739_v52, %v9784_v16  ;;  %v147_v10 = vrot.slane %v139_v1, %v9858_v53  ;;  %v921_v38 = vcombine.low %v9826_v30, %v9849_v49 }
  0x90   :  { %v9792_v19 = vsel %vm1519_vm3, %v1535_v11, %v1536_v18  ;;  %v9795_v20 = vsel %vm1519_vm3, %v1536_v18, %v1538_v17  ;;  %v9852_v51 = vsel %vm824_vm4, %v840_v42, %v841_v43  ;;  %v231_v60 = vrot.slane %v223_v46, %v9858_v53 }
  0x91   :  { %v9868_v0 = vsel %vm824_vm4, %v841_v43, %v843_v48  ;;  %v238_v8 = vrot.slane %v224_v63, %v9858_v53  ;;  %v9888_v11 = vsub.s32 %v175_v2, %v145_v45  ;;  %v869_v42 = vcombine.low %v9823_v29, %v9852_v51 }
  0x92   :  { %594 = vrot.lane.b32.xlu0 %v9715_v40, %s9610_s11  ;;  %592 = vrot.lane.b32.xlu1 %v9718_v41, %s9610_s11  ;;  %v240_v7 = vcombine.high %v215_v4, %v231_v60  ;;  %v222_v41 = vrot.slane %v208_v5, %v9858_v53  ;;  %v170_v40 = vrot.slane %v156_v9, %v9858_v53 }
  0x93   :  { %16096 = vst [vmem:[#allocation3_spill] sm:$0xff] %v9888_v11  ;;  %v239_v21 = vcombine.low %v215_v4, %v231_v60  ;;  %v937_v33 = vcombine.low %v9835_v37, %v9868_v0  ;;  %v938_v43 = vcombine.high %v9835_v37, %v9868_v0  ;;  %v853_v48 = vcombine.low %v9813_v24, %v9838_v39 }
  0x94   :  { %v254_v14 = vrot.slane %v240_v7, %v9888_v11  ;;  %v255_v15 = vcombine.low %v222_v41, %v238_v8  ;;  %v922_v54 = vcombine.high %v9826_v30, %v9849_v49  ;;  %v929_v55 = vrot.slane %v921_v38, %v9858_v53 }
  0x95   :  { %v9914_v32 = vrot.slane %v239_v21, %v9888_v11  ;;  %v945_v46 = vrot.slane %v937_v33, %v9858_v53  ;;  %v952_v63 = vrot.slane %v938_v43, %v9858_v53  ;;  %v877_v1 = vrot.slane %v869_v42, %v9858_v53 }
  0x96   :  { %598 = vrot.lane.b32.xlu0 %v9757_v62, %s9610_s11  ;;  %596 = vrot.lane.b32.xlu1 %v9739_v52, %s9610_s11  ;;  %v163_v52 = vrot.slane %v155_v59, %v9858_v53  ;;  %v263_v17 = vrot.slane %v255_v15, %v9888_v11  ;;  %v272_v45 = vcombine.high %v254_v14, %v15932_v28 }
  0x97   :  { %v271_v36 = vcombine.high %v9914_v32, %v15932_v28  ;;  %v954_v60 = vcombine.high %v929_v55, %v945_v46  ;;  %v936_v2 = vrot.slane %v922_v54, %v9858_v53 }
  0x98   :  { %v172_v13 = vcombine.high %v147_v10, %v163_v52  ;;  %v273_v56 = vcombine.high %v263_v17, %v15932_v28 }
  0x99   :  { %v968_v5 = vrot.slane %v954_v60, %v9888_v11  ;;  %v970_v9 = vcombine.high %v936_v2, %v952_v63 }
  0x9a   :  { %602 = vrot.lane.b32.xlu0 %v9771_v6, %s9610_s11  ;;  %600 = vrot.lane.b32.xlu1 %v9754_v61, %s9610_s11  ;;  %v140_v61 = vcombine.high %v9707_v34, %v9757_v62  ;;  %v256_v34 = vcombine.high %v222_v41, %v238_v8  ;;  %v171_v62 = vcombine.low %v147_v10, %v163_v52 }
  0x9b   :  { %v969_v52 = vcombine.low %v936_v2, %v952_v63  ;;  %v984_v15 = vrot.slane %v970_v9, %v9888_v11 }
  0x9c   :  { %v154_v6 = vrot.slane %v140_v61, %v9858_v53  ;;  %v270_v23 = vrot.slane %v256_v34, %v9888_v11  ;;  %v9906_v26 = vrot.slane %v171_v62, %v9888_v11 }
  0x9d   :  { %v977_v10 = vrot.slane %v969_v52, %v9888_v11 }
  0x9e   :  { %1059 = vrot.lane.b32.xlu0 %v9813_v24, %s9609_s10  ;;  %604 = vrot.lane.b32.xlu1 %v9784_v16, %s9610_s11  ;;  %v186_v16 = vrot.slane %v172_v13, %v9888_v11  ;;  %v187_v18 = vcombine.low %v154_v6, %v170_v40  ;;  %v188_v25 = vcombine.high %v154_v6, %v170_v40 }
  0x9f   :  { %v203_v31 = vcombine.high %v9906_v26, %v15932_v28  ;;  %v274_v4 = vcombine.high %v270_v23, %v15932_v28 }
  0xa0   :  { %v195_v22 = vrot.slane %v187_v18, %v9888_v11  ;;  %v202_v27 = vrot.slane %v188_v25, %v9888_v11  ;;  %v204_v35 = vcombine.high %v186_v16, %v15932_v28 }
  0xa2   :  { %1063 = vrot.lane.b32.xlu0 %v9823_v29, %s9609_s10  ;;  %1061 = vrot.lane.b32.xlu1 %v9826_v30, %s9609_s10  ;;  %v205_v44 = vcombine.high %v195_v22, %v15932_v28  ;;  %v206_v59 = vcombine.high %v202_v27, %v15932_v28 }
  0xa6   :  { %1067 = vrot.lane.b32.xlu0 %v9838_v39, %s9609_s10  ;;  %1065 = vrot.lane.b32.xlu1 %v9835_v37, %s9609_s10 }
  0xaa   :  { %1069 = vrot.lane.b32.xlu1 %v9849_v49, %s9609_s10  ;;  %1071 = vrot.lane.b32.xlu0 %v9852_v51, %s9609_s10 }
  0xae   :  { %1073 = vrot.lane.b32.xlu1 %v9868_v0, %s9609_s10  ;;  %1289 = vrot.lane.b32.xlu0 %v9813_v24, %s9610_s11 }
  0xb2   :  { %1291 = vrot.lane.b32.xlu1 %v9826_v30, %s9610_s11  ;;  %1293 = vrot.lane.b32.xlu0 %v9823_v29, %s9610_s11  ;;  %v854_v30 = vcombine.high %v9813_v24, %v9838_v39 }
  0xb4   :  { %v868_v24 = vrot.slane %v854_v30, %v9858_v53 }
  0xb6   :  { %1295 = vrot.lane.b32.xlu1 %v9835_v37, %s9610_s11  ;;  %308 = vrot.lane.b32.xlu0 %v254_v14, %s9613_s12  ;;  %v870_v37 = vcombine.high %v9823_v29, %v9852_v51  ;;  %v861_v29 = vrot.slane %v853_v48, %v9858_v53  ;;  %v953_v14 = vcombine.low %v929_v55, %v945_v46 }
  0xb8   :  { %v886_v7 = vcombine.high %v861_v29, %v877_v1  ;;  %v884_v8 = vrot.slane %v870_v37, %v9858_v53  ;;  %v885_v13 = vcombine.low %v861_v29, %v877_v1  ;;  %v9974_v34 = vrot.slane %v953_v14, %v9888_v11 }
  0xba   :  { %280 = vrot.lane.b32.xlu1 %v186_v16, %s9613_s12  ;;  %316 = vrot.lane.b32.xlu0 %v263_v17, %s9614_s13  ;;  %v900_v41 = vrot.slane %v886_v7, %v9888_v11  ;;  %v901_v61 = vcombine.low %v868_v24, %v884_v8  ;;  %v9966_v6 = vrot.slane %v885_v13, %v9888_v11 }
  0xbb   :  { %v902_v16 = vcombine.high %v868_v24, %v884_v8  ;;  %v985_v21 = vcombine.high %v9974_v34, %v15932_v28 }
  0xbc   :  { %v909_v40 = vrot.slane %v901_v61, %v9888_v11  ;;  %v917_v17 = vcombine.high %v9966_v6, %v15932_v28  ;;  %v918_v62 = vcombine.high %v900_v41, %v15932_v28 }
  0xbd   :  { %v916_v18 = vrot.slane %v902_v16, %v9888_v11 }
  0xbe   :  { %288 = vrot.lane.b32.xlu1 %v195_v22, %s9614_s13  ;;  %324 = vrot.lane.b32.xlu0 %v270_v23, %s9615_s14  ;;  %v919_v22 = vcombine.high %v909_v40, %v15932_v28  ;;  %v986_v23 = vcombine.high %v968_v5, %v15932_v28 }
  0xbf   :  { %v920_v25 = vcombine.high %v916_v18, %v15932_v28 }
  0xc2   :  { %296 = vrot.lane.b32.xlu1 %v202_v27, %s9615_s14  ;;  %276 = vrot.lane.b32.xlu0 %v203_v31, %s9616_s15  ;;  %v987_v27 = vcombine.high %v977_v10, %v15932_v28  ;;  %v988_v31 = vcombine.high %v984_v15, %v15932_v28 }
  0xc6   :  { %284 = vrot.lane.b32.xlu0 %v204_v35, %s9617_s16  ;;  %304 = vrot.lane.b32.xlu1 %v271_v36, %s9616_s15 }
  0xca   :  { %292 = vrot.lane.b32.xlu0 %v205_v44, %s9618_s17  ;;  %312 = vrot.lane.b32.xlu1 %v272_v45, %s9617_s16 }
  0xce   :  { %300 = vrot.lane.b32.xlu0 %v206_v59, %s9619_s18  ;;  %320 = vrot.lane.b32.xlu1 %v273_v56, %s9618_s17 }
  0xd2   :  { %1022 = vrot.lane.b32.xlu0 %v968_v5, %s9613_s12  ;;  %328 = vrot.lane.b32.xlu1 %v274_v4, %s9619_s18 }
  0xd6   :  { %1030 = vrot.lane.b32.xlu0 %v977_v10, %s9614_s13  ;;  %994 = vrot.lane.b32.xlu1 %v900_v41, %s9613_s12 }
  0xda   :  { %1038 = vrot.lane.b32.xlu0 %v984_v15, %s9615_s14  ;;  %1002 = vrot.lane.b32.xlu1 %v909_v40, %s9614_s13 }
  0xde   :  { %990 = vrot.lane.b32.xlu0 %v917_v17, %s9616_s15  ;;  %1010 = vrot.lane.b32.xlu1 %v916_v18, %s9615_s14 }
  0xe2   :  { %998 = vrot.lane.b32.xlu0 %v918_v62, %s9617_s16  ;;  %1018 = vrot.lane.b32.xlu1 %v985_v21, %s9616_s15 }
  0xe6   :  { %1006 = vrot.lane.b32.xlu0 %v919_v22, %s9618_s17  ;;  %1026 = vrot.lane.b32.xlu1 %v986_v23, %s9617_s16 }
  0xea   :  { %1014 = vrot.lane.b32.xlu0 %v920_v25, %s9619_s18  ;;  %1034 = vrot.lane.b32.xlu1 %v987_v27, %s9618_s17 }
  0xec   :  { %v361_v33 = vpop.permute.xlu0 %360 }
  0xee   :  { %1297 = vrot.lane.b32.xlu0 %v9838_v39, %s9610_s11  ;;  %1042 = vrot.lane.b32.xlu1 %v988_v31, %s9619_s18 }
  0xf0   :  { %v363_v35 = vpop.permute.xlu1 %362  ;;  %v365_v36 = vpop.permute.xlu0 %364 }
  0xf2   :  { %1301 = vrot.lane.b32.xlu0 %v9852_v51, %s9610_s11  ;;  %1299 = vrot.lane.b32.xlu1 %v9849_v49, %s9610_s11 }
  0xf4   :  { %v367_v38 = vpop.permute.xlu1 %366 }
  0xf6   :  { %1303 = vrot.lane.b32.xlu1 %v9868_v0, %s9610_s11 }
  0xf8   :  { %v369_v42 = vpop.permute.xlu0 %368  ;;  %v371_v43 = vpop.permute.xlu1 %370 }
  0xf9   :  { %v384_v44 = vcombine.low %v361_v33, %v369_v42  ;;  %v385_v46 = vcombine.high %v361_v33, %v369_v42  ;;  %v452_v54 = vcombine.low %v363_v35, %v371_v43  ;;  %v453_v37 = vcombine.high %v363_v35, %v371_v43 }
  0xfb   :  { %v10002_v55 = vrot.slane %v384_v44, %v9858_v53  ;;  %v399_v0 = vrot.slane %v385_v46, %v9858_v53  ;;  %v10012_v30 = vrot.slane %v452_v54, %v9858_v53  ;;  %v467_v8 = vrot.slane %v453_v37, %v9858_v53 }
  0xfc   :  { %v373_v45 = vpop.permute.xlu0 %372 }
  0xfd   :  { %v400_v39 = vcombine.low %v365_v36, %v373_v45  ;;  %v401_v48 = vcombine.high %v365_v36, %v373_v45 }
  0xff   :  { %v10005_v51 = vrot.slane %v400_v39, %v9858_v53  ;;  %v415_v49 = vrot.slane %v401_v48, %v9858_v53 }
 0x100   :  { %v375_v56 = vpop.permute.xlu1 %374  ;;  %v591_v59 = vpop.permute.xlu0 %590 }
 0x101   :  { %v468_v60 = vcombine.low %v367_v38, %v375_v56  ;;  %v469_v63 = vcombine.high %v367_v38, %v375_v56  ;;  %v417_v1 = vcombine.high %v10002_v55, %v10005_v51  ;;  %v432_v5 = vcombine.low %v399_v0, %v415_v49 }
 0x102   :  { %v433_v14 = vcombine.high %v399_v0, %v415_v49 }
 0x103   :  { %v10015_v2 = vrot.slane %v468_v60, %v9858_v53  ;;  %v483_v29 = vrot.slane %v469_v63, %v9858_v53  ;;  %v10019_v4 = vrot.slane %v417_v1, %v9888_v11  ;;  %v10030_v10 = vrot.slane %v432_v5, %v9888_v11 }
 0x104   :  { %v593_v52 = vpop.permute.xlu1 %592  ;;  %v595_v7 = vpop.permute.xlu0 %594  ;;  %v10040_v21 = vrot.slane %v433_v14, %v9888_v11 }
 0x105   :  { %525 = vrot.lane.b32.xlu1 %v10019_v4, %s9613_s12  ;;  %v485_v24 = vcombine.high %v10012_v30, %v10015_v2  ;;  %v500_v41 = vcombine.low %v467_v8, %v483_v29  ;;  %v501_v16 = vcombine.high %v467_v8, %v483_v29  ;;  %v484_v5 = vcombine.low %v10012_v30, %v10015_v2 }
 0x107   :  { %v10027_v9 = vrot.slane %v485_v24, %v9888_v11  ;;  %v10037_v40 = vrot.slane %v500_v41, %v9888_v11  ;;  %v515_v35 = vrot.slane %v501_v16, %v9888_v11  ;;  %v416_v24 = vcombine.low %v10002_v55, %v10005_v51 }
 0x108   :  { %v597_v61 = vpop.permute.xlu1 %596  ;;  %v599_v13 = vpop.permute.xlu0 %598  ;;  %v10097_v2 = vrot.slane %v484_v5, %v9888_v11 }
 0x109   :  { %553 = vrot.lane.b32.xlu0 %v10027_v9, %s9613_s12  ;;  %533 = vrot.lane.b32.xlu1 %v10030_v10, %s9614_s13  ;;  %v614_v15 = vcombine.low %v591_v59, %v599_v13  ;;  %v615_v17 = vcombine.high %v591_v59, %v599_v13  ;;  %v10104_v51 = vrot.slane %v416_v24, %v9888_v11 }
 0x10b   :  { %v10047_v27 = vrot.slane %v614_v15, %v9858_v53  ;;  %v629_v36 = vrot.slane %v615_v17, %v9858_v53  ;;  %v516_v17 = vcombine.high %v10097_v2, %v15932_v28 }
 0x10c   :  { %v601_v18 = vpop.permute.xlu1 %600  ;;  %v603_v62 = vpop.permute.xlu0 %602 }
 0x10d   :  { %v630_v22 = vcombine.low %v595_v7, %v603_v62  ;;  %v631_v23 = vcombine.high %v595_v7, %v603_v62  ;;  %561 = vrot.lane.b32.xlu0 %v10037_v40, %s9614_s13  ;;  %v682_v25 = vcombine.low %v593_v52, %v601_v18  ;;  %541 = vrot.lane.b32.xlu1 %v10040_v21, %s9615_s14 }
 0x10e   :  { %v683_v43 = vcombine.high %v593_v52, %v601_v18  ;;  %v448_v18 = vcombine.high %v10104_v51, %v15932_v28 }
 0x10f   :  { %v10050_v31 = vrot.slane %v630_v22, %v9858_v53  ;;  %v645_v33 = vrot.slane %v631_v23, %v9858_v53  ;;  %v690_v39 = vrot.slane %v682_v25, %v9858_v53  ;;  %v517_v23 = vcombine.high %v10027_v9, %v15932_v28 }
 0x110   :  { %v605_v38 = vpop.permute.xlu1 %604  ;;  %v10055_v42 = vpop.permute.xlu0 %1059  ;;  %v697_v0 = vrot.slane %v683_v43, %v9858_v53  ;;  %v449_v25 = vcombine.high %v10019_v4, %v15932_v28  ;;  %v518_v43 = vcombine.high %v10037_v40, %v15932_v28  ;;  %v451_v40 = vcombine.high %v10040_v21, %v15932_v28 }
 0x111   :  { %v698_v44 = vcombine.low %v597_v61, %v605_v38  ;;  %v699_v45 = vcombine.high %v597_v61, %v605_v38  ;;  %569 = vrot.lane.b32.xlu0 %v515_v35, %s9615_s14  ;;  %v647_v46 = vcombine.high %v10047_v27, %v10050_v31  ;;  %v662_v37 = vcombine.low %v629_v36, %v645_v33 }
 0x112   :  { %v663_v8 = vcombine.high %v629_v36, %v645_v33  ;;  %v646_v9 = vcombine.low %v10047_v27, %v10050_v31 }
 0x113   :  { %v706_v48 = vrot.slane %v698_v44, %v9858_v53  ;;  %v713_v54 = vrot.slane %v699_v45, %v9858_v53  ;;  %v10064_v49 = vrot.slane %v647_v46, %v9888_v11  ;;  %v10075_v1 = vrot.slane %v662_v37, %v9888_v11 }
 0x114   :  { %v10066_v56 = vpop.permute.xlu1 %1061  ;;  %v10068_v59 = vpop.permute.xlu0 %1063  ;;  %v10094_v30 = vrot.slane %v663_v8, %v9888_v11  ;;  %v450_v44 = vcombine.high %v10030_v10, %v15932_v28  ;;  %v519_v46 = vcombine.high %v515_v35, %v15932_v28  ;;  %v10151_v27 = vrot.slane %v646_v9, %v9888_v11 }
 0x115   :  { %755 = vrot.lane.b32.xlu1 %v10064_v49, %s9613_s12  ;;  %v715_v60 = vcombine.high %v690_v39, %v706_v48  ;;  %v730_v29 = vcombine.low %v697_v0, %v713_v54  ;;  %v731_v61 = vcombine.high %v697_v0, %v713_v54  ;;  %v714_v33 = vcombine.low %v690_v39, %v706_v48 }
 0x116   :  { %16098 = vst [vmem:[#allocation5_spill] sm:$0xff] %v10151_v27  ;;  %v678_v48 = vcombine.high %v10151_v27, %v15932_v28  ;;  %v679_v5 = vcombine.high %v10064_v49, %v15932_v28  ;;  %v681_v9 = vcombine.high %v10094_v30, %v15932_v28 }
 0x117   :  { %v729_v63 = vrot.slane %v715_v60, %v9888_v11  ;;  %v738_v41 = vrot.slane %v730_v29, %v9888_v11  ;;  %v745_v55 = vrot.slane %v731_v61, %v9888_v11  ;;  %v10144_v39 = vrot.slane %v714_v33, %v9888_v11 }
 0x118   :  { %v10079_v52 = vpop.permute.xlu1 %1065  ;;  %v10081_v7 = vpop.permute.xlu0 %1067 }
 0x119   :  { %783 = vrot.lane.b32.xlu0 %v729_v63, %s9613_s12  ;;  %763 = vrot.lane.b32.xlu1 %v10075_v1, %s9614_s13  ;;  %v746_v35 = vcombine.high %v10144_v39, %v15932_v28  ;;  %v747_v0 = vcombine.high %v729_v63, %v15932_v28  ;;  %v1083_v60 = vcombine.low %v10055_v42, %v10081_v7 }
 0x11a   :  { %v1084_v49 = vcombine.high %v10055_v42, %v10081_v7  ;;  %v749_v42 = vcombine.high %v745_v55, %v15932_v28 }
 0x11c   :  { %v10089_v13 = vpop.permute.xlu1 %1069  ;;  %v10091_v14 = vpop.permute.xlu0 %1071 }
 0x11d   :  { %791 = vrot.lane.b32.xlu0 %v738_v41, %s9614_s13  ;;  %771 = vrot.lane.b32.xlu1 %v10094_v30, %s9615_s14  ;;  %v1099_v21 = vcombine.low %v10068_v59, %v10091_v14  ;;  %v1100_v8 = vcombine.high %v10068_v59, %v10091_v14 }
 0x11f   :  { %v10181_v24 = vrot.slane %v1099_v21, %v9858_v53 }
 0x120   :  { %v10106_v15 = vpop.permute.xlu1 %1073  ;;  %v10108_v16 = vpop.permute.xlu0 %1289 }
 0x121   :  { %799 = vrot.lane.b32.xlu0 %v745_v55, %s9615_s14  ;;  %549 = vrot.lane.b32.xlu1 %v516_v17, %s9616_s15  ;;  %v1167_v29 = vcombine.low %v10079_v52, %v10106_v15  ;;  %v748_v17 = vcombine.high %v738_v41, %v15932_v28  ;;  %v1168_v59 = vcombine.high %v10079_v52, %v10106_v15 }
 0x122   :  { %v680_v41 = vcombine.high %v10075_v1, %v15932_v28  ;;  %v1152_v52 = vcombine.high %v10066_v56, %v10089_v13  ;;  %v1098_v1 = vrot.slane %v1084_v49, %v9858_v53 }
 0x123   :  { %v10200_v14 = vrot.slane %v1167_v29, %v9858_v53  ;;  %v1182_v55 = vrot.slane %v1168_v59, %v9858_v53 }
 0x124   :  { %v10116_v62 = vpop.permute.xlu1 %1291  ;;  %v10118_v22 = vpop.permute.xlu0 %1293 }
 0x125   :  { %521 = vrot.lane.b32.xlu0 %v448_v18, %s9616_s15  ;;  %557 = vrot.lane.b32.xlu1 %v517_v23, %s9617_s16  ;;  %v1151_v18 = vcombine.low %v10066_v56, %v10089_v13  ;;  %v10194_v23 = vrot.slane %v1083_v60, %v9858_v53 }
 0x127   :  { %v1116_v33 = vcombine.high %v10194_v23, %v10181_v24  ;;  %v10215_v15 = vrot.slane %v1151_v18, %v9858_v53 }
 0x128   :  { %v10126_v36 = vpop.permute.xlu1 %1295  ;;  %v10128_v38 = vpop.permute.xlu0 %308 }
 0x129   :  { %529 = vrot.lane.b32.xlu0 %v449_v25, %s9617_s16  ;;  %565 = vrot.lane.b32.xlu1 %v518_v43, %s9618_s17  ;;  %v1114_v25 = vrot.slane %v1100_v8, %v9858_v53  ;;  %v10230_v13 = vrot.slane %v1116_v33, %v9888_v11 }
 0x12b   :  { %v1132_v21 = vcombine.high %v1098_v1, %v1114_v25 }
 0x12c   :  { %v10138_v45 = vpop.permute.xlu1 %280  ;;  %v10140_v4 = vpop.permute.xlu0 %316 }
 0x12d   :  { %16097 = vst [vmem:[#allocation4_spill] sm:$0xff] %v10140_v4  ;;  %537 = vrot.lane.b32.xlu0 %v450_v44, %s9618_s17  ;;  %573 = vrot.lane.b32.xlu1 %v519_v46, %s9619_s18  ;;  %v1184_v44 = vcombine.high %v10215_v15, %v10200_v14  ;;  %v1131_v46 = vcombine.low %v1098_v1, %v1114_v25 }
 0x12e   :  { %v10258_v49 = vrot.slane %v1132_v21, %v9888_v11 }
 0x12f   :  { %v10244_v29 = vrot.slane %v1131_v46, %v9888_v11 }
 0x130   :  { %v10153_v10 = vpop.permute.xlu1 %288  ;;  %v10155_v31 = vpop.permute.xlu0 %324 }
 0x131   :  { %16099 = vst [vmem:[#allocation6_spill] sm:$0xff] %v10153_v10  ;;  %16100 = vst [vmem:[#allocation7_spill] sm:$0xff] %v10155_v31  ;;  %545 = vrot.lane.b32.xlu0 %v451_v40, %s9619_s18  ;;  %779 = vrot.lane.b32.xlu1 %v746_v35, %s9616_s15  ;;  %v1166_v35 = vrot.slane %v1152_v52, %v9858_v53 }
 0x133   :  { %v1199_v30 = vcombine.low %v1166_v35, %v1182_v55 }
 0x134   :  { %v10165_v54 = vpop.permute.xlu1 %296  ;;  %v10167_v37 = vpop.permute.xlu0 %276 }
 0x135   :  { %16101 = vst [vmem:[#allocation8_spill] sm:$0xff] %v10165_v54  ;;  %751 = vrot.lane.b32.xlu0 %v678_v48, %s9616_s15  ;;  %787 = vrot.lane.b32.xlu1 %v747_v0, %s9617_s16  ;;  %v10237_v48 = vrot.slane %v1184_v44, %v9888_v11  ;;  %v10251_v8 = vrot.slane %v1199_v30, %v9888_v11 }
 0x138   :  { %v10183_v63 = vpop.permute.xlu1 %304  ;;  %v10185_v61 = vpop.permute.xlu0 %284 }
 0x139   :  { %759 = vrot.lane.b32.xlu0 %v679_v5, %s9617_s16  ;;  %795 = vrot.lane.b32.xlu1 %v748_v17, %s9618_s17  ;;  %v1200_v5 = vcombine.high %v1166_v35, %v1182_v55 }
 0x13b   :  { %v10265_v59 = vrot.slane %v1200_v5, %v9888_v11 }
 0x13c   :  { %v10208_v7 = vpop.permute.xlu1 %312  ;;  %v10210_v43 = vpop.permute.xlu0 %292 }
 0x13d   :  { %16102 = vst [vmem:[#allocation9_spill] sm:$0xff] %v10210_v43  ;;  %767 = vrot.lane.b32.xlu0 %v680_v41, %s9618_s17  ;;  %803 = vrot.lane.b32.xlu1 %v749_v42, %s9619_s18 }
 0x140   :  { %v10225_v40 = vpop.permute.xlu1 %320  ;;  %v10227_v56 = vpop.permute.xlu0 %300 }
 0x141   :  { %16103 = vst [vmem:[#allocation10_spill] sm:$0xff] %v10225_v40  ;;  %16104 = vst [vmem:[#allocation11_spill] sm:$0xff] %v10227_v56  ;;  %775 = vrot.lane.b32.xlu0 %v681_v9, %s9619_s18  ;;  %1224 = vrot.lane.b32.xlu1 %v10230_v13, %s9613_s12 }
 0x144   :  { %v10239_v0 = vpop.permute.xlu1 %328  ;;  %v10241_v60 = vpop.permute.xlu0 %1022 }
 0x145   :  { %16105 = vst [vmem:[#allocation12_spill] sm:$0xff] %v10239_v0  ;;  %1252 = vrot.lane.b32.xlu0 %v10237_v48, %s9613_s12  ;;  %1232 = vrot.lane.b32.xlu1 %v10244_v29, %s9614_s13 }
 0x148   :  { %v10253_v17 = vpop.permute.xlu1 %994  ;;  %v10255_v18 = vpop.permute.xlu0 %1030 }
 0x149   :  { %1260 = vrot.lane.b32.xlu0 %v10251_v8, %s9614_s13  ;;  %1240 = vrot.lane.b32.xlu1 %v10258_v49, %s9615_s14 }
 0x14c   :  { %v10267_v41 = vpop.permute.xlu1 %1002  ;;  %v10269_v25 = vpop.permute.xlu0 %1038 }
 0x14d   :  { %16106 = vst [vmem:[#allocation13_spill] sm:$0xff] %v10269_v25  ;;  %1268 = vrot.lane.b32.xlu0 %v10265_v59, %s9615_s14 }
 0x150   :  { %v10273_v33 = vpop.permute.xlu1 %1010  ;;  %v10275_v42 = vpop.permute.xlu0 %990 }
 0x151   :  { %16107 = vst [vmem:[#allocation14_spill] sm:$0xff] %v10273_v33 }
 0x154   :  { %v10277_v52 = vpop.permute.xlu1 %1018  ;;  %v10279_v1 = vpop.permute.xlu0 %998 }
 0x158   :  { %v10281_v9 = vpop.permute.xlu1 %1026  ;;  %v10283_v55 = vpop.permute.xlu0 %1006 }
 0x15c   :  { %v10285_v44 = vpop.permute.xlu1 %1034  ;;  %v10287_v46 = vpop.permute.xlu0 %1014 }
 0x15d   :  { %16108 = vst [vmem:[#allocation15_spill] sm:$0xff] %v10287_v46 }
 0x160   :  { %v10289_v35 = vpop.permute.xlu1 %1042  ;;  %v1298_v30 = vpop.permute.xlu0 %1297 }
 0x161   :  { %16109 = vst [vmem:[#allocation16_spill] sm:$0xff] %v10289_v35  ;;  %v1313_v21 = vcombine.low %v10108_v16, %v1298_v30  ;;  %v1314_v56 = vcombine.high %v10108_v16, %v1298_v30 }
 0x163   :  { %v1321_v31 = vrot.slane %v1313_v21, %v9858_v53  ;;  %v1328_v43 = vrot.slane %v1314_v56, %v9858_v53 }
 0x164   :  { %v1300_v5 = vpop.permute.xlu1 %1299  ;;  %v1302_v28 = vpop.permute.xlu0 %1301 }
 0x165   :  { %v1329_v0 = vcombine.low %v10118_v22, %v1302_v28  ;;  %v1330_v54 = vcombine.high %v10118_v22, %v1302_v28  ;;  %v1381_v46 = vcombine.low %v10116_v62, %v1300_v5  ;;  %v1382_v10 = vcombine.high %v10116_v62, %v1300_v5 }
 0x166   :  { %v1183_v62 = vcombine.low %v10215_v15, %v10200_v14 }
 0x167   :  { %v1337_v40 = vrot.slane %v1329_v0, %v9858_v53  ;;  %v1344_v33 = vrot.slane %v1330_v54, %v9858_v53  ;;  %v1389_v22 = vrot.slane %v1381_v46, %v9858_v53  ;;  %v1396_v56 = vrot.slane %v1382_v10, %v9858_v53 }
 0x168   :  { %v1304_v4 = vpop.permute.xlu1 %1303  ;;  %v10319_v10 = vrot.slane %v1183_v62, %v9888_v11 }
 0x169   :  { %v1346_v35 = vcombine.high %v1321_v31, %v1337_v40  ;;  %v1397_v16 = vcombine.low %v10126_v36, %v1304_v4  ;;  %v1398_v30 = vcombine.high %v10126_v36, %v1304_v4  ;;  %v1361_v27 = vcombine.low %v1328_v43, %v1344_v33 }
 0x16a   :  { %v1362_v5 = vcombine.high %v1328_v43, %v1344_v33  ;;  %v1115_v4 = vcombine.low %v10194_v23, %v10181_v24  ;;  %16110 = vst [vmem:[#allocation17_spill] sm:$0xff] %v10319_v10 }
 0x16b   :  { %v1360_v28 = vrot.slane %v1346_v35, %v9888_v11  ;;  %v1405_v0 = vrot.slane %v1397_v16, %v9858_v53  ;;  %v1412_v54 = vrot.slane %v1398_v30, %v9858_v53  ;;  %v1369_v36 = vrot.slane %v1361_v27, %v9888_v11 }
 0x16c   :  { %v1376_v16 = vrot.slane %v1362_v5, %v9888_v11  ;;  %v10323_v43 = vrot.slane %v1115_v4, %v9888_v11  ;;  %v16112_v27 = vmov 0.0   ;;  %v1345_v5 = vcombine.low %v1321_v31, %v1337_v40 }
 0x16d   :  { %1454 = vrot.lane.b32.xlu1 %v1360_v28, %s9613_s12  ;;  %v1414_v21 = vcombine.high %v1389_v22, %v1405_v0  ;;  %v1429_v35 = vcombine.low %v1396_v56, %v1412_v54  ;;  %v1215_v24 = vcombine.high %v10319_v10, %v16112_v27  ;;  %v1216_v15 = vcombine.high %v10237_v48, %v16112_v27 }
 0x16e   :  { %16111 = vst [vmem:[#allocation18_spill] sm:$0xff] %v10323_v43  ;;  %v1147_v23 = vcombine.high %v10323_v43, %v16112_v27  ;;  %v1148_v33 = vcombine.high %v10230_v13, %v16112_v27  ;;  %v1217_v62 = vcombine.high %v10251_v8, %v16112_v27  ;;  %v1149_v4 = vcombine.high %v10244_v29, %v16112_v27 }
 0x16f   :  { %v1428_v46 = vrot.slane %v1414_v21, %v9888_v11  ;;  %v1437_v14 = vrot.slane %v1429_v35, %v9888_v11  ;;  %v1413_v21 = vcombine.low %v1389_v22, %v1405_v0  ;;  %v1218_v35 = vcombine.high %v10265_v59, %v16112_v27 }
 0x170   :  { %v1150_v31 = vcombine.high %v10258_v49, %v16112_v27  ;;  %v10359_v40 = vrot.slane %v1345_v5, %v9888_v11  ;;  %v1430_v49 = vcombine.high %v1396_v56, %v1412_v54  ;;  %v1379_v5 = vcombine.high %v1369_v36, %v16112_v27 }
 0x171   :  { %1462 = vrot.lane.b32.xlu1 %v1369_v36, %s9614_s13  ;;  %1482 = vrot.lane.b32.xlu0 %v1428_v46, %s9613_s12  ;;  %v10354_v22 = vrot.slane %v1413_v21, %v9888_v11  ;;  %v1548_v21 = vcombine.low %v9728_v47, %v9766_v3  ;;  %v1447_v54 = vcombine.high %v1437_v14, %v16112_v27 }
 0x172   :  { %16115 = vst [vmem:[#allocation21_spill] sm:$0xff] %v10359_v40  ;;  %v1377_v59 = vcombine.high %v10359_v40, %v16112_v27  ;;  %v1444_v56 = vrot.slane %v1430_v49, %v9888_v11  ;;  %v1632_v36 = vcombine.low %v9749_v58, %v9795_v20 }
 0x173   :  { %16114 = vst [vmem:[#allocation20_spill] sm:$0xff] %v10354_v22  ;;  %v1445_v29 = vcombine.high %v10354_v22, %v16112_v27 }
 0x175   :  { %1470 = vrot.lane.b32.xlu1 %v1376_v16, %s9615_s14  ;;  %1490 = vrot.lane.b32.xlu0 %v1437_v14, %s9614_s13 }
 0x177   :  { %v10337_v30 = vpop.permute.xlu1 %525 }
 0x179   :  { %1248 = vrot.lane.b32.xlu1 %v1215_v24, %s9616_s15  ;;  %1220 = vrot.lane.b32.xlu0 %v1147_v23, %s9616_s15  ;;  %v1446_v24 = vcombine.high %v1428_v46, %v16112_v27  ;;  %v1564_v23 = vcombine.low %v9746_v57, %v9792_v19 }
 0x17b   :  { %v10346_v48 = vpop.permute.xlu0 %553  ;;  %v10349_v13 = vpop.permute.xlu1 %533  ;;  %v1572_v46 = vrot.slane %v1564_v23, %v9858_v53 }
 0x17c   :  { %16113 = vst [vmem:[#allocation19_spill] sm:$0xff] %v10349_v13 }
 0x17d   :  { %1256 = vrot.lane.b32.xlu1 %v1216_v15, %s9617_s16  ;;  %1228 = vrot.lane.b32.xlu0 %v1148_v33, %s9617_s16  ;;  %v1378_v15 = vcombine.high %v1360_v28, %v16112_v27  ;;  %v1565_v28 = vcombine.high %v9746_v57, %v9792_v19 }
 0x17f   :  { %v10365_v8 = vpop.permute.xlu0 %561  ;;  %v10369_v0 = vpop.permute.xlu1 %541  ;;  %v1579_v49 = vrot.slane %v1565_v28, %v9858_v53  ;;  %v1640_v28 = vrot.slane %v1632_v36, %v9858_v53 }
 0x180   :  { %16116 = vst [vmem:[#allocation22_spill] sm:$0xff] %v10365_v8  ;;  %16117 = vst [vmem:[#allocation23_spill] sm:$0xff] %v10369_v0 }
 0x181   :  { %1264 = vrot.lane.b32.xlu1 %v1217_v62, %s9618_s17  ;;  %1236 = vrot.lane.b32.xlu0 %v1149_v4, %s9618_s17  ;;  %v1556_v4 = vrot.slane %v1548_v21, %v9858_v53 }
 0x183   :  { %v10382_v62 = vpop.permute.xlu0 %569  ;;  %v1580_v23 = vcombine.low %v1556_v4, %v1572_v46 }
 0x184   :  { %16119 = vst [vmem:[#allocation25_spill] sm:$0xff] %v10382_v62 }
 0x185   :  { %1272 = vrot.lane.b32.xlu1 %v1218_v35, %s9619_s18  ;;  %1244 = vrot.lane.b32.xlu0 %v1150_v31, %s9619_s18  ;;  %v1549_v35 = vcombine.high %v9728_v47, %v9766_v3 }
 0x187   :  { %v10377_v33 = vpop.permute.xlu1 %755  ;;  %v1563_v21 = vrot.slane %v1549_v35, %v9858_v53 }
 0x188   :  { %16118 = vst [vmem:[#allocation24_spill] sm:$0xff] %v10377_v33 }
 0x189   :  { %1478 = vrot.lane.b32.xlu1 %v1445_v29, %s9616_s15  ;;  %1450 = vrot.lane.b32.xlu0 %v1377_v59, %s9616_s15  ;;  %v1448_v29 = vcombine.high %v1444_v56, %v16112_v27  ;;  %v1581_v59 = vcombine.high %v1556_v4, %v1572_v46  ;;  %v1597_v35 = vcombine.high %v1563_v21, %v1579_v49 }
 0x18b   :  { %v10395_v31 = vpop.permute.xlu0 %783  ;;  %v10398_v14 = vpop.permute.xlu1 %763 }
 0x18c   :  { %16120 = vst [vmem:[#allocation26_spill] sm:$0xff] %v10395_v31  ;;  %16121 = vst [vmem:[#allocation27_spill] sm:$0xff] %v10398_v14  ;;  %v10415_v14 = vrot.slane %v1580_v23, %v9888_v11 }
 0x18d   :  { %1486 = vrot.lane.b32.xlu1 %v1446_v24, %s9617_s16  ;;  %1458 = vrot.lane.b32.xlu0 %v1378_v15, %s9617_s16  ;;  %v1380_v24 = vcombine.high %v1376_v16, %v16112_v27  ;;  %v1616_v15 = vcombine.low %v9733_v50, %v9778_v12 }
 0x18e   :  { %16123 = vst [vmem:[#allocation29_spill] sm:$0xff] %v10415_v14  ;;  %v1612_v36 = vcombine.high %v10415_v14, %v16112_v27 }
 0x18f   :  { %v10412_v43 = vpop.permute.xlu0 %791  ;;  %v10417_v16 = vpop.permute.xlu1 %771  ;;  %v1624_v46 = vrot.slane %v1616_v15, %v9858_v53 }
 0x190   :  { %16122 = vst [vmem:[#allocation28_spill] sm:$0xff] %v10412_v43  ;;  %16124 = vst [vmem:[#allocation30_spill] sm:$0xff] %v10417_v16 }
 0x191   :  { %1494 = vrot.lane.b32.xlu1 %v1447_v54, %s9618_s17  ;;  %1466 = vrot.lane.b32.xlu0 %v1379_v5, %s9618_s17  ;;  %v1595_v54 = vrot.slane %v1581_v59, %v9888_v11  ;;  %v1596_v5 = vcombine.low %v1563_v21, %v1579_v49  ;;  %v1633_v59 = vcombine.high %v9749_v58, %v9795_v20 }
 0x192   :  { %v1611_v49 = vrot.slane %v1597_v35, %v9888_v11  ;;  %v1649_v21 = vcombine.high %v1624_v46, %v1640_v28 }
 0x193   :  { %v1604_v4 = vrot.slane %v1596_v5, %v9888_v11  ;;  %v10430_v23 = vpop.permute.xlu0 %799  ;;  %v1647_v5 = vrot.slane %v1633_v59, %v9858_v53  ;;  %v1613_v16 = vcombine.high %v1595_v54, %v16112_v27 }
 0x194   :  { %16125 = vst [vmem:[#allocation31_spill] sm:$0xff] %v10430_v23  ;;  %v1663_v23 = vrot.slane %v1649_v21, %v9888_v11  ;;  %v1615_v59 = vcombine.high %v1611_v49, %v16112_v27 }
 0x195   :  { %1502 = vrot.lane.b32.xlu1 %v1448_v29, %s9619_s18  ;;  %1474 = vrot.lane.b32.xlu0 %v1380_v24, %s9619_s18  ;;  %v1648_v29 = vcombine.low %v1624_v46, %v1640_v28  ;;  %v1617_v24 = vcombine.high %v9733_v50, %v9778_v12  ;;  %v1614_v28 = vcombine.high %v1604_v4, %v16112_v27 }
 0x197   :  { %v10437_v15 = vrot.slane %v1648_v29, %v9888_v11  ;;  %v1631_v14 = vrot.slane %v1617_v24, %v9858_v53  ;;  %v10447_v40 = vpop.permute.xlu0 %521 }
 0x199   :  { %1689 = vrot.lane.b32.xlu1 %v1595_v54, %s9613_s12  ;;  %1498 = vrot.lane.b32.xlu0 %v1444_v56, %s9615_s14  ;;  %v10433_v56 = vpop.permute.xlu1 %549  ;;  %16126 = vst [vmem:[#allocation32_spill] sm:$0xff] %v10437_v15  ;;  %v1664_v35 = vcombine.low %v1631_v14, %v1647_v5  ;;  %v1681_v54 = vcombine.high %v1663_v23, %v16112_v27 }
 0x19a   :  { %v1665_v29 = vcombine.high %v1631_v14, %v1647_v5 }
 0x19b   :  { %v10458_v24 = vpop.permute.xlu0 %529 }
 0x19d   :  { %1697 = vrot.lane.b32.xlu1 %v1604_v4, %s9614_s13  ;;  %1685 = vrot.lane.b32.xlu0 %v1612_v36, %s9616_s15  ;;  %v1680_v36 = vcombine.high %v10437_v15, %v16112_v27  ;;  %v10450_v46 = vpop.permute.xlu1 %557 }
 0x19f   :  { %v10468_v5 = vpop.permute.xlu0 %537 }
 0x1a0   :  { %16128 = vst [vmem:[#allocation34_spill] sm:$0xff] %v10468_v5 }
 0x1a1   :  { %1705 = vrot.lane.b32.xlu1 %v1611_v49, %s9615_s14  ;;  %1693 = vrot.lane.b32.xlu0 %v1613_v16, %s9617_s16  ;;  %v1672_v16 = vrot.slane %v1664_v35, %v9888_v11  ;;  %v10461_v4 = vpop.permute.xlu1 %565 }
 0x1a2   :  { %16127 = vst [vmem:[#allocation33_spill] sm:$0xff] %v10461_v4 }
 0x1a3   :  { %v1682_v21 = vcombine.high %v1672_v16, %v16112_v27  ;;  %v10476_v35 = vpop.permute.xlu0 %545 }
 0x1a4   :  { %16130 = vst [vmem:[#allocation36_spill] sm:$0xff] %v10476_v35 }
 0x1a5   :  { %1713 = vrot.lane.b32.xlu1 %v1680_v36, %s9616_s15  ;;  %1701 = vrot.lane.b32.xlu0 %v1614_v28, %s9618_s17  ;;  %v1679_v36 = vrot.slane %v1665_v29, %v9888_v11  ;;  %v10470_v49 = vpop.permute.xlu1 %573 }
 0x1a6   :  { %16129 = vst [vmem:[#allocation35_spill] sm:$0xff] %v10470_v49 }
 0x1a7   :  { %v1683_v14 = vcombine.high %v1679_v36, %v16112_v27 }
 0x1a9   :  { %1721 = vrot.lane.b32.xlu1 %v1681_v54, %s9617_s16  ;;  %1709 = vrot.lane.b32.xlu0 %v1615_v59, %s9619_s18  ;;  %v10479_v28 = vpop.permute.xlu1 %779 }
 0x1ad   :  { %1729 = vrot.lane.b32.xlu1 %v1682_v21, %s9618_s17  ;;  %1717 = vrot.lane.b32.xlu0 %v1663_v23, %s9613_s12  ;;  %v10485_v23 = vpop.permute.xlu0 %751  ;;  %v10487_v54 = vpop.permute.xlu1 %787 }
 0x1ae   :  { %16131 = vst [vmem:[#allocation37_spill] sm:$0xff] %v10485_v23  ;;  %16132 = vst [vmem:[#allocation38_spill] sm:$0xff] %v10487_v54 }
 0x1b1   :  { %1737 = vrot.lane.b32.xlu1 %v1683_v14, %s9619_s18  ;;  %1725 = vrot.lane.b32.xlu0 %v1672_v16, %s9614_s13  ;;  %v10495_v16 = vpop.permute.xlu0 %759  ;;  %v10499_v29 = vpop.permute.xlu1 %795 }
 0x1b2   :  { %16133 = vst [vmem:[#allocation39_spill] sm:$0xff] %v10495_v16  ;;  %16134 = vst [vmem:[#allocation40_spill] sm:$0xff] %v10499_v29 }
 0x1b5   :  { %1756 = vrot.lane.b32.xlu1 %v9733_v50, %s9609_s10  ;;  %1733 = vrot.lane.b32.xlu0 %v1679_v36, %s9615_s14  ;;  %v10503_v59 = vpop.permute.xlu0 %767  ;;  %v10505_v21 = vpop.permute.xlu1 %803 }
 0x1b6   :  { %16135 = vst [vmem:[#allocation41_spill] sm:$0xff] %v10503_v59  ;;  %16136 = vst [vmem:[#allocation42_spill] sm:$0xff] %v10505_v21 }
 0x1b9   :  { %1760 = vrot.lane.b32.xlu1 %v9749_v58, %s9609_s10  ;;  %1754 = vrot.lane.b32.xlu0 %v9728_v47, %s9609_s10  ;;  %v10507_v36 = vpop.permute.xlu0 %775  ;;  %v10509_v14 = vpop.permute.xlu1 %1224 }
 0x1ba   :  { %16137 = vst [vmem:[#allocation43_spill] sm:$0xff] %v10507_v36  ;;  %16138 = vst [vmem:[#allocation44_spill] sm:$0xff] %v10509_v14 }
 0x1bd   :  { %1764 = vrot.lane.b32.xlu1 %v9778_v12, %s9609_s10  ;;  %1758 = vrot.lane.b32.xlu0 %v9746_v57, %s9609_s10  ;;  %v10511_v15 = vpop.permute.xlu0 %1252  ;;  %v10513_v35 = vpop.permute.xlu1 %1232 }
 0x1be   :  { %16139 = vst [vmem:[#allocation45_spill] sm:$0xff] %v10511_v15  ;;  %16140 = vst [vmem:[#allocation46_spill] sm:$0xff] %v10513_v35 }
 0x1c1   :  { %1768 = vrot.lane.b32.xlu1 %v9795_v20, %s9609_s10  ;;  %1762 = vrot.lane.b32.xlu0 %v9766_v3, %s9609_s10  ;;  %v10515_v49 = vpop.permute.xlu0 %1260  ;;  %v10517_v0 = vpop.permute.xlu1 %1240 }
 0x1c2   :  { %16141 = vst [vmem:[#allocation47_spill] sm:$0xff] %v10515_v49  ;;  %16142 = vst [vmem:[#allocation48_spill] sm:$0xff] %v10517_v0 }
 0x1c5   :  { %1766 = vrot.lane.b32.xlu0 %v9792_v19, %s9609_s10  ;;  %v10521_v10 = vpop.permute.xlu0 %1268 }
 0x1c6   :  { %16144 = vst [vmem:[#allocation50_spill] sm:$0xff] %v10521_v10 }
 0x1df   :  { %v10519_v22 = vpop.permute.xlu1 %1454 }
 0x1e0   :  { %16143 = vst [vmem:[#allocation49_spill] sm:$0xff] %v10519_v22 }
 0x1e3   :  { %v10523_v29 = vpop.permute.xlu1 %1462  ;;  %v10525_v59 = vpop.permute.xlu0 %1482 }
 0x1e4   :  { %16145 = vst [vmem:[#allocation51_spill] sm:$0xff] %v10523_v29  ;;  %16146 = vst [vmem:[#allocation52_spill] sm:$0xff] %v10525_v59 }
 0x1e7   :  { %v10527_v21 = vpop.permute.xlu1 %1470  ;;  %v10529_v36 = vpop.permute.xlu0 %1490 }
 0x1e8   :  { %16147 = vst [vmem:[#allocation53_spill] sm:$0xff] %v10527_v21  ;;  %16148 = vst [vmem:[#allocation54_spill] sm:$0xff] %v10529_v36 }
 0x1eb   :  { %v10531_v14 = vpop.permute.xlu1 %1248  ;;  %v10533_v15 = vpop.permute.xlu0 %1220 }
 0x1ec   :  { %16149 = vst [vmem:[#allocation55_spill] sm:$0xff] %v10531_v14  ;;  %16150 = vst [vmem:[#allocation56_spill] sm:$0xff] %v10533_v15 }
 0x1ef   :  { %v10535_v35 = vpop.permute.xlu1 %1256  ;;  %v10537_v49 = vpop.permute.xlu0 %1228 }
 0x1f0   :  { %16151 = vst [vmem:[#allocation57_spill] sm:$0xff] %v10535_v35  ;;  %16152 = vst [vmem:[#allocation58_spill] sm:$0xff] %v10537_v49 }
 0x1f3   :  { %v10539_v0 = vpop.permute.xlu1 %1264  ;;  %v10541_v22 = vpop.permute.xlu0 %1236 }
 0x1f4   :  { %16153 = vst [vmem:[#allocation59_spill] sm:$0xff] %v10539_v0  ;;  %16154 = vst [vmem:[#allocation60_spill] sm:$0xff] %v10541_v22 }
 0x1f7   :  { %v10543_v10 = vpop.permute.xlu1 %1272  ;;  %v10545_v29 = vpop.permute.xlu0 %1244 }
 0x1f8   :  { %16155 = vst [vmem:[#allocation61_spill] sm:$0xff] %v10543_v10  ;;  %16156 = vst [vmem:[#allocation62_spill] sm:$0xff] %v10545_v29 }
 0x1fb   :  { %v10547_v59 = vpop.permute.xlu1 %1478  ;;  %v10549_v21 = vpop.permute.xlu0 %1450 }
 0x1fc   :  { %16157 = vst [vmem:[#allocation63_spill] sm:$0xff] %v10547_v59  ;;  %16158 = vst [vmem:[#allocation64_spill] sm:$0xff] %v10549_v21 }
 0x1ff   :  { %v10551_v36 = vpop.permute.xlu1 %1486  ;;  %v10553_v14 = vpop.permute.xlu0 %1458 }
 0x200   :  { %16159 = vst [vmem:[#allocation65_spill] sm:$0xff] %v10551_v36  ;;  %16160 = vst [vmem:[#allocation66_spill] sm:$0xff] %v10553_v14 }
 0x203   :  { %v10555_v15 = vpop.permute.xlu1 %1494  ;;  %v10557_v35 = vpop.permute.xlu0 %1466 }
 0x204   :  { %16161 = vst [vmem:[#allocation67_spill] sm:$0xff] %v10555_v15  ;;  %16162 = vst [vmem:[#allocation68_spill] sm:$0xff] %v10557_v35 }
 0x207   :  { %v10559_v49 = vpop.permute.xlu1 %1502  ;;  %v10561_v0 = vpop.permute.xlu0 %1474 }
 0x208   :  { %16163 = vst [vmem:[#allocation69_spill] sm:$0xff] %v10559_v49  ;;  %16164 = vst [vmem:[#allocation70_spill] sm:$0xff] %v10561_v0 }
 0x20b   :  { %v10563_v22 = vpop.permute.xlu1 %1689  ;;  %v10565_v10 = vpop.permute.xlu0 %1498 }
 0x20c   :  { %16165 = vst [vmem:[#allocation71_spill] sm:$0xff] %v10563_v22  ;;  %16166 = vst [vmem:[#allocation72_spill] sm:$0xff] %v10565_v10 }
 0x20f   :  { %v10567_v29 = vpop.permute.xlu1 %1697  ;;  %v10569_v59 = vpop.permute.xlu0 %1685 }
 0x210   :  { %16167 = vst [vmem:[#allocation73_spill] sm:$0xff] %v10567_v29  ;;  %16168 = vst [vmem:[#allocation74_spill] sm:$0xff] %v10569_v59 }
 0x213   :  { %v10571_v21 = vpop.permute.xlu1 %1705  ;;  %v10573_v36 = vpop.permute.xlu0 %1693 }
 0x214   :  { %16169 = vst [vmem:[#allocation75_spill] sm:$0xff] %v10571_v21  ;;  %16170 = vst [vmem:[#allocation76_spill] sm:$0xff] %v10573_v36 }
 0x217   :  { %v10575_v14 = vpop.permute.xlu1 %1713  ;;  %v10577_v15 = vpop.permute.xlu0 %1701 }
 0x218   :  { %16171 = vst [vmem:[#allocation77_spill] sm:$0xff] %v10575_v14  ;;  %16172 = vst [vmem:[#allocation78_spill] sm:$0xff] %v10577_v15 }
 0x21b   :  { %v10579_v35 = vpop.permute.xlu1 %1721  ;;  %v10581_v49 = vpop.permute.xlu0 %1709 }
 0x21c   :  { %16173 = vst [vmem:[#allocation79_spill] sm:$0xff] %v10579_v35  ;;  %16174 = vst [vmem:[#allocation80_spill] sm:$0xff] %v10581_v49 }
 0x21f   :  { %v10583_v0 = vpop.permute.xlu1 %1729  ;;  %v10585_v22 = vpop.permute.xlu0 %1717 }
 0x220   :  { %16175 = vst [vmem:[#allocation81_spill] sm:$0xff] %v10583_v0  ;;  %16176 = vst [vmem:[#allocation82_spill] sm:$0xff] %v10585_v22 }
 0x223   :  { %v10587_v10 = vpop.permute.xlu1 %1737  ;;  %v10589_v29 = vpop.permute.xlu0 %1725 }
 0x224   :  { %16177 = vst [vmem:[#allocation83_spill] sm:$0xff] %v10587_v10  ;;  %16178 = vst [vmem:[#allocation84_spill] sm:$0xff] %v10589_v29 }
 0x227   :  { %v1757_v59 = vpop.permute.xlu1 %1756  ;;  %v10591_v21 = vpop.permute.xlu0 %1733 }
 0x228   :  { %16179 = vst [vmem:[#allocation85_spill] sm:$0xff] %v10591_v21 }
 0x22b   :  { %v1761_v36 = vpop.permute.xlu1 %1760  ;;  %v1755_v16 = vpop.permute.xlu0 %1754 }
 0x22f   :  { %v1759_v14 = vpop.permute.xlu0 %1758  ;;  %v1765_v43 = vpop.permute.xlu1 %1764 }
 0x230   :  { %v1846_v54 = vcombine.low %v1757_v59, %v1765_v43 }
 0x233   :  { %v1763_v15 = vpop.permute.xlu0 %1762  ;;  %v1769_v35 = vpop.permute.xlu1 %1768 }
 0x234   :  { %v1778_v62 = vcombine.low %v1755_v16, %v1763_v15  ;;  %v1779_v49 = vcombine.high %v1755_v16, %v1763_v15  ;;  %v1862_v13 = vcombine.low %v1761_v36, %v1769_v35 }
 0x236   :  { %v1786_v22 = vrot.slane %v1778_v62, %v9858_v53  ;;  %v1793_v21 = vrot.slane %v1779_v49, %v9858_v53  ;;  %v1870_v31 = vrot.slane %v1862_v13, %v9858_v53  ;;  %v1863_v62 = vcombine.high %v1761_v36, %v1769_v35 }
 0x237   :  { %v1767_v33 = vpop.permute.xlu0 %1766  ;;  %v1847_v13 = vcombine.high %v1757_v59, %v1765_v43 }
 0x238   :  { %v1794_v5 = vcombine.low %v1759_v14, %v1767_v33  ;;  %v1795_v0 = vcombine.high %v1759_v14, %v1767_v33  ;;  %v1854_v33 = vrot.slane %v1846_v54, %v9858_v53 }
 0x239   :  { %v1861_v16 = vrot.slane %v1847_v13, %v9858_v53 }
 0x23a   :  { %v1802_v10 = vrot.slane %v1794_v5, %v9858_v53  ;;  %v1809_v29 = vrot.slane %v1795_v0, %v9858_v53  ;;  %v1878_v5 = vcombine.low %v1854_v33, %v1870_v31 }
 0x23c   :  { %v1810_v4 = vcombine.low %v1786_v22, %v1802_v10  ;;  %v1811_v23 = vcombine.high %v1786_v22, %v1802_v10  ;;  %v1826_v8 = vcombine.low %v1793_v21, %v1809_v29  ;;  %v1827_v49 = vcombine.high %v1793_v21, %v1809_v29 }
 0x23d   :  { %v10614_v35 = vrot.slane %v1878_v5, %v9888_v11 }
 0x23e   :  { %v1825_v25 = vrot.slane %v1811_v23, %v9888_v11  ;;  %v10600_v15 = vrot.slane %v1810_v4, %v9888_v11  ;;  %v1834_v10 = vrot.slane %v1826_v8, %v9888_v11  ;;  %v1877_v4 = vrot.slane %v1863_v62, %v9858_v53 }
 0x23f   :  { %v1879_v23 = vcombine.high %v1854_v33, %v1870_v31  ;;  %v1841_v54 = vrot.slane %v1827_v49, %v9888_v11 }
 0x240   :  { %1919 = vrot.lane.b32.xlu1 %v1825_v25, %s9613_s12  ;;  %v1842_v0 = vcombine.high %v10600_v15, %v16112_v27  ;;  %v1843_v22 = vcombine.high %v1825_v25, %v16112_v27  ;;  %v1844_v43 = vcombine.high %v1834_v10, %v16112_v27  ;;  %v1894_v8 = vcombine.low %v1861_v16, %v1877_v4 }
 0x241   :  { %v1910_v25 = vcombine.high %v10614_v35, %v16112_v27  ;;  %v1893_v31 = vrot.slane %v1879_v23, %v9888_v11  ;;  %v1845_v29 = vcombine.high %v1841_v54, %v16112_v27  ;;  %v1895_v59 = vcombine.high %v1861_v16, %v1877_v4 }
 0x242   :  { %1915 = vrot.lane.b32.xlu0 %v1842_v0, %s9616_s15  ;;  %v1902_v36 = vrot.slane %v1894_v8, %v9888_v11 }
 0x243   :  { %v1911_v21 = vcombine.high %v1893_v31, %v16112_v27  ;;  %v1909_v33 = vrot.slane %v1895_v59, %v9888_v11 }
 0x244   :  { %1927 = vrot.lane.b32.xlu1 %v1834_v10, %s9614_s13  ;;  %v1912_v14 = vcombine.high %v1902_v36, %v16112_v27 }
 0x245   :  { %v1913_v0 = vcombine.high %v1909_v33, %v16112_v27 }
 0x246   :  { %1923 = vrot.lane.b32.xlu0 %v1843_v22, %s9617_s16 }
 0x248   :  { %1935 = vrot.lane.b32.xlu1 %v1841_v54, %s9615_s14 }
 0x24a   :  { %1931 = vrot.lane.b32.xlu0 %v1844_v43, %s9618_s17 }
 0x24c   :  { %1943 = vrot.lane.b32.xlu1 %v1910_v25, %s9616_s15 }
 0x24e   :  { %1939 = vrot.lane.b32.xlu0 %v1845_v29, %s9619_s18 }
 0x250   :  { %1951 = vrot.lane.b32.xlu1 %v1911_v21, %s9617_s16 }
 0x252   :  { %1947 = vrot.lane.b32.xlu0 %v1893_v31, %s9613_s12 }
 0x254   :  { %1959 = vrot.lane.b32.xlu1 %v1912_v14, %s9618_s17 }
 0x256   :  { %1955 = vrot.lane.b32.xlu0 %v1902_v36, %s9614_s13 }
 0x258   :  { %1967 = vrot.lane.b32.xlu1 %v1913_v0, %s9619_s18 }
 0x25a   :  { %1963 = vrot.lane.b32.xlu0 %v1909_v33, %s9615_s14 }
 0x25c   :  { %1986 = vrot.lane.b32.xlu1 %v9733_v50, %s9610_s11  ;;  %v9620_v50 = vmov 0  }
 0x25d   :  { %9604 = vset.pattern.permute.xlu0 %v9620_v50 }
 0x25e   :  { %1984 = vrot.lane.b32.xlu0 %v9728_v47, %s9610_s11 }
 0x260   :  { %1990 = vrot.lane.b32.xlu1 %v9749_v58, %s9610_s11 }
 0x262   :  { %1988 = vrot.lane.b32.xlu0 %v9746_v57, %s9610_s11 }
 0x264   :  { %1994 = vrot.lane.b32.xlu1 %v9778_v12, %s9610_s11 }
 0x266   :  { %1992 = vrot.lane.b32.xlu0 %v9766_v3, %s9610_s11 }
 0x268   :  { %1998 = vrot.lane.b32.xlu1 %v9795_v20, %s9610_s11 }
 0x26a   :  { %1996 = vrot.lane.b32.xlu0 %v9792_v19, %s9610_s11 }
 0x2b2   :  { %v10653_v47 = vpop.permute.xlu1 %1919 }
 0x2b4   :  { %v10655_v58 = vpop.permute.xlu0 %1915 }
 0x2b6   :  { %v10657_v62 = vpop.permute.xlu1 %1927 }
 0x2b7   :  { %16180 = vst [vmem:[#allocation86_spill] sm:$0xff] %v10657_v62 }
 0x2b8   :  { %v10659_v57 = vpop.permute.xlu0 %1923 }
 0x2ba   :  { %v10661_v12 = vpop.permute.xlu1 %1935 }
 0x2bb   :  { %16181 = vst [vmem:[#allocation87_spill] sm:$0xff] %v10661_v12 }
 0x2bc   :  { %v10663_v5 = vpop.permute.xlu0 %1931 }
 0x2bd   :  { %16182 = vst [vmem:[#allocation88_spill] sm:$0xff] %v10663_v5 }
 0x2be   :  { %v10665_v3 = vpop.permute.xlu1 %1943 }
 0x2c0   :  { %v10667_v20 = vpop.permute.xlu0 %1939 }
 0x2c1   :  { %16183 = vst [vmem:[#allocation89_spill] sm:$0xff] %v10667_v20 }
 0x2c2   :  { %v10669_v49 = vpop.permute.xlu1 %1951 }
 0x2c4   :  { %v10671_v19 = vpop.permute.xlu0 %1947 }
 0x2c6   :  { %v10673_v10 = vpop.permute.xlu1 %1959 }
 0x2c7   :  { %16184 = vst [vmem:[#allocation90_spill] sm:$0xff] %v10673_v10 }
 0x2c8   :  { %v10675_v13 = vpop.permute.xlu0 %1955 }
 0x2c9   :  { %16185 = vst [vmem:[#allocation91_spill] sm:$0xff] %v10675_v13 }
 0x2ca   :  { %v10677_v22 = vpop.permute.xlu1 %1967 }
 0x2cb   :  { %16186 = vst [vmem:[#allocation92_spill] sm:$0xff] %v10677_v22 }
 0x2cc   :  { %v10679_v4 = vpop.permute.xlu0 %1963 }
 0x2cd   :  { %16187 = vst [vmem:[#allocation93_spill] sm:$0xff] %v10679_v4 }
 0x2ce   :  { %v1987_v23 = vpop.permute.xlu1 %1986 }
 0x2d0   :  { %v1985_v54 = vpop.permute.xlu0 %1984 }
 0x2d2   :  { %v1991_v16 = vpop.permute.xlu1 %1990 }
 0x2d4   :  { %v1989_v43 = vpop.permute.xlu0 %1988 }
 0x2d6   :  { %v1995_v8 = vpop.permute.xlu1 %1994 }
 0x2d7   :  { %v2076_v22 = vcombine.low %v1987_v23, %v1995_v8 }
 0x2d8   :  { %v1993_v25 = vpop.permute.xlu0 %1992 }
 0x2d9   :  { %v2008_v31 = vcombine.low %v1985_v54, %v1993_v25  ;;  %v2009_v14 = vcombine.high %v1985_v54, %v1993_v25  ;;  %v2084_v54 = vrot.slane %v2076_v22, %v9858_v53 }
 0x2da   :  { %v1999_v59 = vpop.permute.xlu1 %1998 }
 0x2db   :  { %v2016_v33 = vrot.slane %v2008_v31, %v9858_v53  ;;  %v2092_v0 = vcombine.low %v1991_v16, %v1999_v59  ;;  %v2023_v12 = vrot.slane %v2009_v14, %v9858_v53  ;;  %v2093_v31 = vcombine.high %v1991_v16, %v1999_v59 }
 0x2dc   :  { %v1997_v29 = vpop.permute.xlu0 %1996  ;;  %v2077_v14 = vcombine.high %v1987_v23, %v1995_v8 }
 0x2dd   :  { %v2024_v21 = vcombine.low %v1989_v43, %v1997_v29  ;;  %v2025_v36 = vcombine.high %v1989_v43, %v1997_v29  ;;  %v2100_v10 = vrot.slane %v2092_v0, %v9858_v53 }
 0x2df   :  { %v2032_v50 = vrot.slane %v2024_v21, %v9858_v53  ;;  %v2039_v20 = vrot.slane %v2025_v36, %v9858_v53  ;;  %v2108_v29 = vcombine.low %v2084_v54, %v2100_v10  ;;  %v2109_v22 = vcombine.high %v2084_v54, %v2100_v10 }
 0x2e1   :  { %v2040_v4 = vcombine.low %v2016_v33, %v2032_v50  ;;  %v2041_v5 = vcombine.high %v2016_v33, %v2032_v50  ;;  %v2056_v62 = vcombine.low %v2023_v12, %v2039_v20  ;;  %v2057_v21 = vcombine.high %v2023_v12, %v2039_v20 }
 0x2e2   :  { %v10702_v16 = vrot.slane %v2108_v29, %v9888_v11  ;;  %v2091_v12 = vrot.slane %v2077_v14, %v9858_v53  ;;  %v2123_v10 = vrot.slane %v2109_v22, %v9888_v11  ;;  %v9576_v14 = vld [vmem:[%s15926_s0 + $0x50] sm:$0xff] }
 0x2e3   :  { %v2055_v13 = vrot.slane %v2041_v5, %v9888_v11  ;;  %v10688_v43 = vrot.slane %v2040_v4, %v9888_v11  ;;  %v2064_v36 = vrot.slane %v2056_v62, %v9888_v11  ;;  %v2107_v4 = vrot.slane %v2093_v31, %v9858_v53  ;;  %v9575_v31 = vld [vmem:[%s15926_s0 + $0x48] sm:$0xff] }
 0x2e4   :  { %v2071_v33 = vrot.slane %v2057_v21, %v9888_v11  ;;  %v2141_v59 = vcombine.high %v2123_v10, %v16112_v27  ;;  %v4826_v21 = vrot.slane %v9575_v31, 7  ;;  %v4828_v22 = vrot.slane %v9576_v14, 7 }
 0x2e5   :  { %2149 = vrot.lane.b32.xlu1 %v2055_v13, %s9613_s12  ;;  %v2072_v25 = vcombine.high %v10688_v43, %v16112_v27  ;;  %v2073_v5 = vcombine.high %v2055_v13, %v16112_v27  ;;  %v2074_v62 = vcombine.high %v2064_v36, %v16112_v27  ;;  %v2124_v20 = vcombine.low %v2091_v12, %v2107_v4 }
 0x2e6   :  { %v2140_v13 = vcombine.high %v10702_v16, %v16112_v27  ;;  %v2075_v23 = vcombine.high %v2071_v33, %v16112_v27  ;;  %v2125_v8 = vcombine.high %v2091_v12, %v2107_v4  ;;  %v9578_v12 = vld [vmem:[%s15926_s0 + $0x60] sm:$0xff] }
 0x2e7   :  { %2145 = vrot.lane.b32.xlu0 %v2072_v25, %s9616_s15  ;;  %v2132_v0 = vrot.slane %v2124_v20, %v9888_v11  ;;  %v9574_v25 = vld [vmem:[%s15926_s0 + $0x40] sm:$0xff] }
 0x2e8   :  { %v2139_v54 = vrot.slane %v2125_v8, %v9888_v11  ;;  %v4825_v29 = vrot.slane %v9574_v25, 7  ;;  %v21_v20 = vld [vmem:[%s15927_s2] sm:$0xf]  ;;  %v9580_v8 = vld [vmem:[%s15926_s0 + $0x70] sm:$0xff] }
 0x2e9   :  { %2157 = vrot.lane.b32.xlu1 %v2064_v36, %s9614_s13  ;;  %v2142_v50 = vcombine.high %v2132_v0, %v16112_v27 }
 0x2ea   :  { %v2143_v36 = vcombine.high %v2139_v54, %v16112_v27  ;;  %v4827_v4 = vsel %vm40_vm0, %v4825_v29, %v4826_v21 }
 0x2eb   :  { %2153 = vrot.lane.b32.xlu0 %v2073_v5, %s9617_s16  ;;  %v9577_v5 = vld [vmem:[%s15926_s0 + $0x58] sm:$0xff] }
 0x2ed   :  { %2165 = vrot.lane.b32.xlu1 %v2071_v33, %s9615_s14  ;;  %v4829_v33 = vrot.slane %v9577_v5, 7 }
 0x2ef   :  { %2161 = vrot.lane.b32.xlu0 %v2074_v62, %s9618_s17  ;;  %v9579_v62 = vld [vmem:[%s15926_s0 + $0x68] sm:$0xff]  ;;  %v4850_v31 = vsel %vm40_vm0, %v4829_v33, 0.0 }
 0x2f1   :  { %2173 = vrot.lane.b32.xlu1 %v2140_v13, %s9616_s15  ;;  %v4830_v13 = vsel %vm40_vm0, %v4828_v22, %v4829_v33  ;;  %v4846_v33 = vsel %vm40_vm0, 0.0, %v4828_v22 }
 0x2f3   :  { %2169 = vrot.lane.b32.xlu0 %v2075_v23, %s9619_s18  ;;  %v4832_v23 = vrot.slane %v9579_v62, 7  ;;  %v1045_v62 = vsel %vm331_vm5, %v9966_v6, %v10275_v42  ;;  %v345_v6 = vsel %vm331_vm5, %v9914_v32, %v10183_v63 }
 0x2f5   :  { %2181 = vrot.lane.b32.xlu1 %v2141_v59, %s9617_s16  ;;  %v9581_v59 = vld [vmem:[%s15926_s0 + $0x78] sm:$0xff]  ;;  %v4851_v14 = vsel %vm40_vm0, %v4832_v23, 0.0 }
 0x2f6   :  { %v4835_v25 = vrot.slane %v9581_v59, 7  ;;  %v16193_v59 = vld [vmem:[#allocation6_spill] sm:$0xff] }
 0x2f7   :  { %2177 = vrot.lane.b32.xlu0 %v2123_v10, %s9613_s12  ;;  %v4831_v10 = vrot.slane %v9578_v12, 7 }
 0x2f8   :  { %v4852_v5 = vsel %vm40_vm0, %v4835_v25, 0.0 }
 0x2f9   :  { %2189 = vrot.lane.b32.xlu1 %v2142_v50, %s9618_s17  ;;  %v4833_v50 = vsel %vm40_vm0, %v4831_v10, %v4832_v23  ;;  %v16192_v23 = vld [vmem:[#allocation5_spill] sm:$0xff] }
 0x2fb   :  { %2185 = vrot.lane.b32.xlu0 %v2132_v0, %s9614_s13  ;;  %v4849_v0 = vsel %vm40_vm0, %v4826_v21, 0.0  ;;  %v4845_v21 = vsel %vm40_vm0, 0.0, %v4825_v29  ;;  %v1052_v29 = vsel %vm331_vm5, %v9974_v34, %v10277_v52  ;;  %v332_v34 = vsel %vm331_vm5, %v9906_v26, %v10167_v37 }
 0x2fc   :  { %v1053_v22 = vsel %vm333_vm6, %v1052_v29, %v10241_v60  ;;  %v1046_v52 = vsel %vm333_vm6, %v1045_v62, %v10253_v17  ;;  %v334_v32 = vsel %vm333_vm6, %v332_v34, %v10138_v45 }
 0x2fd   :  { %2197 = vrot.lane.b32.xlu1 %v2143_v36, %s9619_s18  ;;  %v1047_v60 = vsel %vm335_vm7, %v1046_v52, %v10279_v1  ;;  %v346_v1 = vsel %vm333_vm6, %v345_v6, %v10128_v38  ;;  %v16203_v52 = vld [vmem:[#allocation34_spill] sm:$0xff] }
 0x2ff   :  { %2193 = vrot.lane.b32.xlu0 %v2139_v54, %s9615_s14  ;;  %v4834_v54 = vrot.slane %v9580_v8, 7 }
 0x301   :  { %4863 = vrot.lane.b32.xlu1 %v4827_v4, %s9607_s26  ;;  %v4836_v36 = vsel %vm40_vm0, %v4834_v54, %v4835_v25  ;;  %v4847_v4 = vsel %vm40_vm0, 0.0, %v4831_v10  ;;  %v4848_v12 = vsel %vm40_vm0, 0.0, %v4834_v54  ;;  %v16196_v25 = vld [vmem:[#allocation38_spill] sm:$0xff] }
 0x303   :  { %2249 = vperm.xlu0 %9604, %v21_v20   ;;  %v1054_v20 = vsel %vm335_vm7, %v1053_v22, %v10281_v9  ;;  %v1048_v9 = vsel %vm337_vm8, %v1047_v60, %v10267_v41  ;;  %v16201_v22 = vld [vmem:[#allocation10_spill] sm:$0xff]  ;;  %v16204_v60 = vld [vmem:[#allocation24_spill] sm:$0xff] }
 0x304   :  { %v1055_v26 = vsel %vm337_vm8, %v1054_v20, %v10255_v18  ;;  %v336_v18 = vsel %vm335_vm7, %v334_v32, %v10185_v61 }
 0x305   :  { %4869 = vrot.lane.b32.xlu1 %v4830_v13, %s9607_s26  ;;  %v583_v13 = vsel %vm331_vm5, %v10097_v2, %v10433_v56  ;;  %v576_v2 = vsel %vm331_vm5, %v10104_v51, %v10447_v40  ;;  %v1056_v63 = vsel %vm339_vm9, %v1055_v26, %v10285_v44  ;;  %v813_v51 = vsel %vm331_vm5, %v10144_v39, %v10479_v28  ;;  %v16188_v40 = vld [vmem:[#allocation13_spill] sm:$0xff]  ;;  %v16189_v56 = vld [vmem:[#allocation22_spill] sm:$0xff] }
 0x306   :  { %v584_v37 = vsel %vm333_vm6, %v583_v13, %v10346_v48  ;;  %v577_v45 = vsel %vm333_vm6, %v576_v2, %v10337_v30  ;;  %v347_v48 = vsel %vm335_vm7, %v346_v1, %v10208_v7  ;;  %v1049_v39 = vsel %vm339_vm9, %v1048_v9, %v10283_v55  ;;  %v16191_v28 = vld [vmem:[#allocation37_spill] sm:$0xff]  ;;  %v16202_v13 = vld [vmem:[#allocation15_spill] sm:$0xff]  ;;  %v16208_v9 = vld [vmem:[#allocation40_spill] sm:$0xff] }
 0x307   :  { %4865 = vrot.lane.b32.xlu0 %v4849_v0, %s9607_s26  ;;  %v585_v42 = vsel %vm335_vm7, %v584_v37, %v10450_v46  ;;  %v578_v61 = vsel %vm335_vm7, %v577_v45, %v10458_v24  ;;  %v1057_v38 = vsel %vm341_vm10, %v1056_v63, %v16188_v40  ;;  %v16190_v46 = vld [vmem:[#allocation26_spill] sm:$0xff]  ;;  %v806_v7 = vsel %vm331_vm5, %v16192_v23, %v16191_v28  ;;  %v16194_v0 = vld [vmem:[#allocation16_spill] sm:$0xff]  ;;  %v16205_v37 = vld [vmem:[#allocation25_spill] sm:$0xff] }
 0x308   :  { %v586_v41 = vsel %vm337_vm8, %v585_v42, %v16189_v56  ;;  %v814_v30 = vsel %vm333_vm6, %v813_v51, %v16190_v46  ;;  %v338_v55 = vsel %vm337_vm8, %v336_v18, %v16193_v59  ;;  %v10850_v24 = vsel %vm343_vm11, %v1057_v38, %v16194_v0  ;;  %v16206_v63 = vld [vmem:[#allocation28_spill] sm:$0xff]  ;;  %v16207_v51 = vld [vmem:[#allocation39_spill] sm:$0xff]  ;;  %v16215_v23 = vld [vmem:[#allocation21_spill] sm:$0xff] }
 0x309   :  { %4875 = vrot.lane.b32.xlu1 %v4833_v50, %s9607_s26  ;;  %v16195_v50 = vld [vmem:[#allocation33_spill] sm:$0xff]  ;;  %v807_v2 = vsel %vm333_vm6, %v806_v7, %v16204_v60  ;;  %v2223_v26 = vrot.slane %v10850_v24, 4  ;;  %v16211_v40 = vld [vmem:[#allocation63_spill] sm:$0xff]  ;;  %v16212_v38 = vld [vmem:[#allocation20_spill] sm:$0xff]  ;;  %v1970_v59 = vsel %vm331_vm5, %v10600_v15, %v10655_v58 }
 0x30a   :  { %v587_v54 = vsel %vm339_vm9, %v586_v41, %v16195_v50  ;;  %v808_v18 = vsel %vm335_vm7, %v807_v2, %v16207_v51  ;;  %v1512_v56 = vsel %vm331_vm5, %v16212_v38, %v16211_v40  ;;  %v1977_v41 = vsel %vm331_vm5, %v10614_v35, %v10665_v3  ;;  %v16213_v46 = vld [vmem:[#allocation23_spill] sm:$0xff]  ;;  %v16214_v28 = vld [vmem:[#allocation64_spill] sm:$0xff]  ;;  %v16226_v60 = vld [vmem:[#allocation49_spill] sm:$0xff] }
 0x30b   :  { %4871 = vrot.lane.b32.xlu0 %v4850_v31, %s9607_s26  ;;  %v815_v31 = vsel %vm335_vm7, %v814_v30, %v16196_v25  ;;  %v588_v32 = vsel %vm341_vm10, %v587_v54, %v16205_v37  ;;  %v1505_v7 = vsel %vm331_vm5, %v16215_v23, %v16214_v28  ;;  %v16216_v50 = vld [vmem:[#allocation35_spill] sm:$0xff]  ;;  %v16217_v35 = vld [vmem:[#allocation36_spill] sm:$0xff]  ;;  %v1971_v37 = vsel %vm333_vm6, %v1970_v59, %v10653_v47  ;;  %v16228_v51 = vld [vmem:[#allocation66_spill] sm:$0xff] }
 0x30c   :  { %v816_v42 = vsel %vm337_vm8, %v815_v31, %v16206_v63  ;;  %v10912_v54 = vsel %vm343_vm11, %v588_v32, %v16216_v50  ;;  %v16218_v25 = vld [vmem:[#allocation27_spill] sm:$0xff]  ;;  %v1506_v2 = vsel %vm333_vm6, %v1505_v7, %v16226_v60  ;;  %v16227_v63 = vld [vmem:[#allocation44_spill] sm:$0xff]  ;;  %v16231_v47 = vld [vmem:[#allocation58_spill] sm:$0xff] }
 0x30d   :  { %4881 = vrot.lane.b32.xlu1 %v4836_v36, %s9607_s26  ;;  %v16197_v36 = vld [vmem:[#allocation9_spill] sm:$0xff]  ;;  %v817_v45 = vsel %vm339_vm9, %v816_v42, %v16208_v9  ;;  %v809_v31 = vsel %vm337_vm8, %v808_v18, %v16218_v25  ;;  %v16221_v15 = vld [vmem:[#allocation31_spill] sm:$0xff]  ;;  %v1507_v18 = vsel %vm335_vm7, %v1506_v2, %v16228_v51  ;;  %v1972_v9 = vsel %vm335_vm7, %v1971_v37, %v10659_v57  ;;  %v16235_v28 = vld [vmem:[#allocation74_spill] sm:$0xff] }
 0x30e   :  { %v10925_v58 = vsel %vm341_vm10, %v817_v45, %v16221_v15  ;;  %v16229_v45 = vld [vmem:[#allocation91_spill] sm:$0xff]  ;;  %v16236_v23 = vld [vmem:[#allocation29_spill] sm:$0xff]  ;;  %v16237_v59 = vld [vmem:[#allocation82_spill] sm:$0xff] }
 0x30f   :  { %4877 = vrot.lane.b32.xlu0 %v4851_v14, %s9607_s26  ;;  %v10858_v14 = vsel %vm339_vm9, %v338_v55, %v16197_v36  ;;  %v1978_v55 = vsel %vm333_vm6, %v1977_v41, %v10671_v19  ;;  %v16219_v36 = vld [vmem:[#allocation56_spill] sm:$0xff]  ;;  %v16222_v19 = vld [vmem:[#allocation41_spill] sm:$0xff]  ;;  %v1740_v7 = vsel %vm331_vm5, %v16236_v23, %v16235_v28  ;;  %v16238_v25 = vld [vmem:[#allocation51_spill] sm:$0xff] }
 0x310   :  { %v1979_v32 = vsel %vm335_vm7, %v1978_v55, %v10669_v49  ;;  %v16232_v49 = vld [vmem:[#allocation77_spill] sm:$0xff]  ;;  %v16241_v15 = vld [vmem:[#allocation68_spill] sm:$0xff]  ;;  %v16245_v60 = vld [vmem:[#allocation71_spill] sm:$0xff] }
 0x311   :  { %4861 = vrot.lane.b32.xlu1 %v4845_v21, %s9607_s26  ;;  %v16198_v21 = vld [vmem:[#allocation4_spill] sm:$0xff]  ;;  %v1741_v2 = vsel %vm333_vm6, %v1740_v7, %v16245_v60  ;;  %v16246_v37 = vld [vmem:[#allocation79_spill] sm:$0xff]  ;;  %v16254_v23 = vld [vmem:[#allocation70_spill] sm:$0xff] }
 0x312   :  { %v20_v24 = vld [vmem:[%s15928_s1] sm:$0xf] }
 0x313   :  { %4883 = vrot.lane.b32.xlu0 %v4852_v5, %s9607_s26  ;;  %v348_v5 = vsel %vm337_vm8, %v347_v48, %v16198_v21  ;;  %v16209_v48 = vld [vmem:[#allocation55_spill] sm:$0xff]  ;;  %v16220_v21 = vld [vmem:[#allocation18_spill] sm:$0xff] }
 0x314   :  { %v10870_v20 = vsel %vm339_vm9, %v348_v5, %v16201_v22  ;;  %v1275_v5 = vsel %vm331_vm5, %v16220_v21, %v16219_v36  ;;  %v16239_v36 = vld [vmem:[#allocation86_spill] sm:$0xff] }
 0x315   :  { %4873 = vrot.lane.b32.xlu1 %v4847_v4, %s9607_s26  ;;  %v16199_v4 = vld [vmem:[#allocation14_spill] sm:$0xff]  ;;  %v1276_v42 = vsel %vm333_vm6, %v1275_v5, %v16227_v63 }
 0x316   :  { %v1277_v38 = vsel %vm335_vm7, %v1276_v42, %v16231_v47  ;;  %v16247_v42 = vld [vmem:[#allocation72_spill] sm:$0xff]  ;;  %v16250_v47 = vld [vmem:[#allocation53_spill] sm:$0xff] }
 0x317   :  { %4867 = vrot.lane.b32.xlu0 %v4846_v33, %s9607_s26  ;;  %v1050_v33 = vsel %vm341_vm10, %v1049_v39, %v16199_v4  ;;  %v16210_v39 = vld [vmem:[#allocation17_spill] sm:$0xff]  ;;  %v10929_v4 = vsel %vm339_vm9, %v809_v31, %v16222_v19  ;;  %v1508_v31 = vsel %vm337_vm8, %v1507_v18, %v16238_v25  ;;  %v16248_v18 = vld [vmem:[#allocation76_spill] sm:$0xff] }
 0x318   :  { %v10874_v34 = vsel %vm343_vm11, %v1050_v33, %v16202_v13  ;;  %v16223_v33 = vld [vmem:[#allocation45_spill] sm:$0xff]  ;;  %v1509_v19 = vsel %vm339_vm9, %v1508_v31, %v16241_v15 }
 0x319   :  { %v16257_v31 = vld [vmem:[#allocation73_spill] sm:$0xff] }
 0x31a   :  { %v16260_v15 = vld [vmem:[#allocation85_spill] sm:$0xff] }
 0x31b   :  { %4879 = vrot.lane.b32.xlu0 %v4848_v12, %s9607_s26  ;;  %v16200_v12 = vld [vmem:[#allocation19_spill] sm:$0xff] }
 0x31c   :  { %v579_v29 = vsel %vm337_vm8, %v578_v61, %v16200_v12  ;;  %v1282_v61 = vsel %vm331_vm5, %v16210_v39, %v16209_v48  ;;  %v1980_v48 = vsel %vm337_vm8, %v1979_v32, %v16229_v45 }
 0x31d   :  { %v580_v6 = vsel %vm339_vm9, %v579_v29, %v16203_v52  ;;  %v1283_v12 = vsel %vm333_vm6, %v1282_v61, %v16223_v33  ;;  %v16224_v29 = vld [vmem:[#allocation52_spill] sm:$0xff]  ;;  %v16225_v52 = vld [vmem:[#allocation65_spill] sm:$0xff] }
 0x31e   :  { %v581_v30 = vsel %vm341_vm10, %v580_v6, %v16213_v46  ;;  %v1513_v22 = vsel %vm333_vm6, %v1512_v56, %v16224_v29  ;;  %v16230_v61 = vld [vmem:[#allocation57_spill] sm:$0xff]  ;;  %v16233_v56 = vld [vmem:[#allocation32_spill] sm:$0xff] }
 0x31f   :  { %v10916_v3 = vsel %vm343_vm11, %v581_v30, %v16217_v35  ;;  %v1514_v6 = vsel %vm335_vm7, %v1513_v22, %v16225_v52  ;;  %v1284_v40 = vsel %vm335_vm7, %v1283_v12, %v16230_v61  ;;  %v1747_v41 = vsel %vm331_vm5, %v16233_v56, %v16232_v49  ;;  %v16234_v30 = vld [vmem:[#allocation54_spill] sm:$0xff]  ;;  %v16242_v33 = vld [vmem:[#allocation88_spill] sm:$0xff]  ;;  %v16243_v29 = vld [vmem:[#allocation93_spill] sm:$0xff] }
 0x320   :  { %v1515_v57 = vsel %vm337_vm8, %v1514_v6, %v16234_v30  ;;  %v1748_v55 = vsel %vm333_vm6, %v1747_v41, %v16237_v59  ;;  %v16244_v52 = vld [vmem:[#allocation67_spill] sm:$0xff]  ;;  %v1510_v49 = vsel %vm341_vm10, %v1509_v19, %v16250_v47  ;;  %v16255_v59 = vld [vmem:[#allocation89_spill] sm:$0xff] }
 0x321   :  { %v1516_v6 = vsel %vm339_vm9, %v1515_v57, %v16244_v52  ;;  %v1749_v32 = vsel %vm335_vm7, %v1748_v55, %v16246_v37  ;;  %v16251_v56 = vld [vmem:[#allocation87_spill] sm:$0xff]  ;;  %v1511_v7 = vsel %vm343_vm11, %v1510_v49, %v16254_v23 }
 0x322   :  { %v1517_v51 = vsel %vm341_vm10, %v1516_v6, %v16247_v42  ;;  %v16253_v57 = vld [vmem:[#allocation47_spill] sm:$0xff]  ;;  %v2228_v42 = vrot.slane %v1511_v7, 4 }
 0x323   :  { %v1285_v28 = vsel %vm337_vm8, %v1284_v40, %v16253_v57  ;;  %v16272_v23 = vld [vmem:[#allocation43_spill] sm:$0xff] }
 0x357   :  { %v10794_v10 = vpop.permute.xlu1 %2149 }
 0x359   :  { %v10808_v17 = vpop.permute.xlu0 %2145 }
 0x35a   :  { %v2200_v46 = vsel %vm331_vm5, %v10688_v43, %v10808_v17  ;;  %v1973_v43 = vsel %vm337_vm8, %v1972_v9, %v16239_v36  ;;  %v16240_v17 = vld [vmem:[#allocation90_spill] sm:$0xff]  ;;  %v16249_v9 = vld [vmem:[#allocation84_spill] sm:$0xff] }
 0x35b   :  { %v10827_v44 = vpop.permute.xlu1 %2157  ;;  %v1981_v21 = vsel %vm339_vm9, %v1980_v48, %v16240_v17  ;;  %v1974_v12 = vsel %vm339_vm9, %v1973_v43, %v16242_v33  ;;  %v1750_v45 = vsel %vm337_vm8, %v1749_v32, %v16249_v9  ;;  %v16258_v43 = vld [vmem:[#allocation81_spill] sm:$0xff] }
 0x35c   :  { %v1975_v41 = vsel %vm341_vm10, %v1974_v12, %v16251_v56  ;;  %v1751_v17 = vsel %vm339_vm9, %v1750_v45, %v16258_v43  ;;  %v16266_v45 = vld [vmem:[#allocation42_spill] sm:$0xff]  ;;  %v16275_v43 = vld [vmem:[#allocation8_spill] sm:$0xff] }
 0x35d   :  { %v10844_v8 = vpop.permute.xlu0 %2153  ;;  %v1752_v19 = vsel %vm341_vm10, %v1751_v17, %v16260_v15  ;;  %v342_v17 = vsel %vm341_vm10, %v10858_v14, %v16275_v43 }
 0x35f   :  { %v10866_v62 = vpop.permute.xlu1 %2165 }
 0x361   :  { %v10887_v1 = vpop.permute.xlu0 %2161 }
 0x363   :  { %v2174_v0 = vpop.permute.xlu1 %2173 }
 0x364   :  { %v2207_v50 = vsel %vm331_vm5, %v10702_v16, %v2174_v0  ;;  %v1982_v16 = vsel %vm341_vm10, %v1981_v21, %v16243_v29  ;;  %v2201_v0 = vsel %vm333_vm6, %v2200_v46, %v10794_v10  ;;  %v1742_v10 = vsel %vm335_vm7, %v1741_v2, %v16248_v18  ;;  %v16252_v46 = vld [vmem:[#allocation92_spill] sm:$0xff]  ;;  %v16259_v21 = vld [vmem:[#allocation78_spill] sm:$0xff]  ;;  %v16261_v29 = vld [vmem:[#allocation59_spill] sm:$0xff] }
 0x365   :  { %v10935_v13 = vpop.permute.xlu0 %2169  ;;  %v2202_v63 = vsel %vm335_vm7, %v2201_v0, %v10844_v8  ;;  %v1983_v8 = vsel %vm343_vm11, %v1982_v16, %v16252_v46  ;;  %v1743_v36 = vsel %vm337_vm8, %v1742_v10, %v16257_v31  ;;  %v1286_v16 = vsel %vm339_vm9, %v1285_v28, %v16261_v29  ;;  %v16262_v0 = vld [vmem:[#allocation46_spill] sm:$0xff]  ;;  %v16265_v10 = vld [vmem:[#allocation83_spill] sm:$0xff]  ;;  %v16270_v46 = vld [vmem:[#allocation61_spill] sm:$0xff] }
 0x366   :  { %v2203_v55 = vsel %vm337_vm8, %v2202_v63, %v10827_v44  ;;  %v2235_v44 = vrot.slane %v1983_v8, 4  ;;  %v1278_v52 = vsel %vm337_vm8, %v1277_v38, %v16262_v0  ;;  %v1753_v9 = vsel %vm343_vm11, %v1752_v19, %v16265_v10  ;;  %v16274_v31 = vld [vmem:[#allocation7_spill] sm:$0xff] }
 0x367   :  { %v2182_v39 = vpop.permute.xlu1 %2181  ;;  %v2204_v40 = vsel %vm339_vm9, %v2203_v55, %v10887_v1  ;;  %v16263_v1 = vld [vmem:[#allocation60_spill] sm:$0xff]  ;;  %v2217_v28 = vrot.slane %v10912_v54, 4  ;;  %v350_v54 = vsel %vm341_vm10, %v10870_v20, %v16274_v31 }
 0x368   :  { %v1279_v2 = vsel %vm339_vm9, %v1278_v52, %v16263_v1  ;;  %v2246_v56 = vsel %vm2238_vm12, %v1753_v9, %v2235_v44 }
 0x369   :  { %v2178_v35 = vpop.permute.xlu0 %2177 }
 0x36a   :  { %v2208_v5 = vsel %vm333_vm6, %v2207_v50, %v2178_v35  ;;  %v16256_v35 = vld [vmem:[#allocation69_spill] sm:$0xff] }
 0x36b   :  { %v2190_v22 = vpop.permute.xlu1 %2189  ;;  %v2209_v48 = vsel %vm335_vm7, %v2208_v5, %v2182_v39  ;;  %v1976_v39 = vsel %vm343_vm11, %v1975_v41, %v16255_v59  ;;  %v1518_v25 = vsel %vm343_vm11, %v1517_v51, %v16256_v35  ;;  %v1744_v5 = vsel %vm339_vm9, %v1743_v36, %v16259_v21  ;;  %v16264_v51 = vld [vmem:[#allocation75_spill] sm:$0xff]  ;;  %v16269_v41 = vld [vmem:[#allocation30_spill] sm:$0xff] }
 0x36c   :  { %v2234_v6 = vrot.slane %v1976_v39, 4  ;;  %v2229_v37 = vrot.slane %v1518_v25, 4  ;;  %v1745_v18 = vsel %vm341_vm10, %v1744_v5, %v16264_v51  ;;  %v16273_v59 = vld [vmem:[#allocation62_spill] sm:$0xff]  ;;  %v2216_v35 = vrot.slane %v10916_v3, 4  ;;  %v16277_v21 = vld [vmem:[#allocation11_spill] sm:$0xff] }
 0x36d   :  { %v2186_v61 = vpop.permute.xlu0 %2185  ;;  %v344_v5 = vsel %vm343_vm11, %v342_v17, %v16277_v21 }
 0x36e   :  { %v2210_v30 = vsel %vm337_vm8, %v2209_v48, %v2186_v61  ;;  %v819_v48 = vsel %vm343_vm11, %v10925_v58, %v16266_v45  ;;  %v16267_v61 = vld [vmem:[#allocation50_spill] sm:$0xff]  ;;  %v2239_v14 = vsel %vm2238_vm12, %v344_v5, %v2216_v35 }
 0x36f   :  { %v2198_v50 = vpop.permute.xlu1 %2197  ;;  %v2211_v33 = vsel %vm339_vm9, %v2210_v30, %v2190_v22  ;;  %v2205_v22 = vsel %vm341_vm10, %v2204_v40, %v10866_v62  ;;  %v1287_v47 = vsel %vm341_vm10, %v1286_v16, %v16267_v61  ;;  %v16268_v62 = vld [vmem:[#allocation80_spill] sm:$0xff]  ;;  %v2242_v36 = vsel %vm2238_vm12, %v819_v48, %v2223_v26 }
 0x370   :  { %v2206_v38 = vsel %vm343_vm11, %v2205_v22, %v10935_v13  ;;  %v1746_v49 = vsel %vm343_vm11, %v1745_v18, %v16268_v62  ;;  %v811_v13 = vsel %vm341_vm10, %v10929_v4, %v16269_v41  ;;  %v1288_v8 = vsel %vm343_vm11, %v1287_v47, %v16270_v46  ;;  %v16271_v30 = vld [vmem:[#allocation48_spill] sm:$0xff] }
 0x371   :  { %v2194_v12 = vpop.permute.xlu0 %2193  ;;  %v1280_v58 = vsel %vm341_vm10, %v1279_v2, %v16271_v30  ;;  %v2245_v57 = vsel %vm2238_vm12, %v1746_v49, %v2234_v6  ;;  %v812_v7 = vsel %vm343_vm11, %v811_v13, %v16272_v23  ;;  %v2244_v4 = vsel %vm2238_vm12, %v1288_v8, %v2229_v37  ;;  %v16276_v40 = vld [vmem:[#allocation12_spill] sm:$0xff] }
 0x372   :  { %v2212_v60 = vsel %vm341_vm10, %v2211_v33, %v2194_v12  ;;  %v1281_v39 = vsel %vm343_vm11, %v1280_v58, %v16273_v59 }
 0x373   :  { %v4864_v32 = vpop.permute.xlu1 %4863  ;;  %v2213_v63 = vsel %vm343_vm11, %v2212_v60, %v2198_v50  ;;  %v2222_v50 = vrot.slane %v10874_v34, 4  ;;  %v2243_v25 = vsel %vm2238_vm12, %v1281_v39, %v2228_v42  ;;  %v351_v34 = vsel %vm343_vm11, %v350_v54, %v16276_v40 }
 0x374   :  { %9568 = vmatprep.subr.msk.mxu0 %vm2238_vm12, %v2213_v63  ;;  %v2240_v20 = vsel %vm2238_vm12, %v351_v34, %v2217_v28  ;;  %v4898_v26 = vsel %vm113_vm1, 0.0, %v4864_v32 }
 0x375   :  { %9569 = vmatpush1.msk.msra.mxu0 %vm2238_vm12, %v2206_v38  ;;  %v2241_v3 = vsel %vm2238_vm12, %v812_v7, %v2222_v50  ;;  %v11098_v33 = vsel %vm126_vm2, %v4898_v26, 0.0 }
 0x376   :  { %2286 = vmatprep.subr.mxu0 %v2246_v56  ;;  %v6294_v6 = vrot.slane %v11098_v33, 2  ;;  %v5600_v18 = vrot.slane %v11098_v33, 1 }
 0x377   :  { %v4870_v55 = vpop.permute.xlu1 %4869  ;;  %2287 = vmatpush1.msra.mxu0 %v2245_v57 }
 0x378   :  { %2288 = vmatprep.subr.mxu0 %v2244_v4  ;;  %v4901_v12 = vsel %vm113_vm1, 0.0, %v4870_v55 }
 0x379   :  { %2289 = vmatpush1.msra.mxu0 %v2243_v25  ;;  %v11107_v2 = vsel %vm126_vm2, %v4901_v12, 0.0 }
 0x37a   :  { %2290 = vmatprep.subr.mxu0 %v2242_v36  ;;  %16279 = vst [vmem:[#allocation22_spill] sm:$0xff] %v11107_v2  ;;  %v6299_v42 = vrot.slane %v11107_v2, 2  ;;  %v5605_v30 = vrot.slane %v11107_v2, 1 }
 0x37b   :  { %v4876_v15 = vpop.permute.xlu1 %4875  ;;  %2291 = vmatpush1.msra.mxu0 %v2241_v3 }
 0x37c   :  { %2292 = vmatprep.subr.mxu0 %v2240_v20  ;;  %v4904_v29 = vsel %vm113_vm1, 0.0, %v4876_v15 }
 0x37d   :  { %2293 = vmatpush1.msra.mxu0 %v2239_v14  ;;  %v11110_v37 = vsel %vm126_vm2, %v4904_v29, 0.0 }
 0x37e   :  { %9570 = vmatmul.mubr.msk.f32.vlgmr.msra.gmra.mxu0 %vm2252_vm13, %v20_v24  ;;  %v11094_v19 = vpop.permute.xlu0 %2249  ;;  %v6304_v51 = vrot.slane %v11110_v37, 2  ;;  %v5610_v62 = vrot.slane %v11110_v37, 1 }
 0x37f   :  { %16278 = vst [vmem:[#allocation13_spill] sm:$0xff] %v11094_v19  ;;  %v4882_v44 = vpop.permute.xlu1 %4881  ;;  %7089 = vmatprep.mubr.f32.mxu0 %v16112_v27 }
 0x380   :  { %v4907_v38 = vsel %vm113_vm1, 0.0, %v4882_v44 }
 0x381   :  { %v11134_v13 = vsel %vm126_vm2, %v4907_v38, 0.0 }
 0x382   :  { %v4866_v16 = vpop.permute.xlu0 %4865  ;;  %16282 = vst [vmem:[#allocation5_spill] sm:$0xff] %v11134_v13  ;;  %v6309_v36 = vrot.slane %v11134_v13, 2  ;;  %v5615_v43 = vrot.slane %v11134_v13, 1 }
 0x383   :  { %v4899_v0 = vsel %vm113_vm1, 0.0, %v4866_v16  ;;  %v4862_v52 = vpop.permute.xlu1 %4861 }
 0x384   :  { %v4911_v60 = vsel %vm126_vm2, %v4899_v0, 0.0  ;;  %v4897_v1 = vsel %vm113_vm1, 0.0, %v4862_v52 }
 0x385   :  { %v6296_v32 = vrot.slane %v4911_v60, 2  ;;  %v11113_v63 = vsel %vm126_vm2, %v4897_v1, 0.0  ;;  %v5602_v57 = vrot.slane %v4911_v60, 1 }
 0x386   :  { %16280 = vst [vmem:[#allocation26_spill] sm:$0xff] %v11113_v63  ;;  %v4872_v22 = vpop.permute.xlu0 %4871  ;;  %v6293_v48 = vrot.slane %v11113_v63, 2  ;;  %v5599_v49 = vrot.slane %v11113_v63, 1 }
 0x387   :  { %v4902_v10 = vsel %vm113_vm1, 0.0, %v4872_v22  ;;  %v4874_v9 = vpop.permute.xlu1 %4873  ;;  %v11121_v45 = vsel %vm1519_vm3, %v6294_v6, %v6296_v32  ;;  %v11175_v5 = vsel %vm824_vm4, %v5600_v18, %v5602_v57 }
 0x388   :  { %v4914_v61 = vsel %vm126_vm2, %v4902_v10, 0.0  ;;  %v4903_v47 = vsel %vm113_vm1, 0.0, %v4874_v9  ;;  %6529 = vrot.lane.b32.xlu1 %v11121_v45, %s9609_s10  ;;  %v11146_v7 = vsel %vm1519_vm3, %v6293_v48, %v6294_v6  ;;  %v11155_v55 = vsel %vm824_vm4, %v5599_v49, %v5600_v18 }
 0x389   :  { %v6301_v56 = vrot.slane %v4914_v61, 2  ;;  %v11131_v41 = vsel %vm126_vm2, %v4903_v47, 0.0  ;;  %v5607_v34 = vrot.slane %v4914_v61, 1 }
 0x38a   :  { %16281 = vst [vmem:[#allocation37_spill] sm:$0xff] %v11131_v41  ;;  %v4878_v46 = vpop.permute.xlu0 %4877  ;;  %v6303_v8 = vrot.slane %v11131_v41, 2  ;;  %v5609_v58 = vrot.slane %v11131_v41, 1 }
 0x38b   :  { %v4905_v28 = vsel %vm113_vm1, 0.0, %v4878_v46  ;;  %v11143_v23 = vsel %vm1519_vm3, %v6299_v42, %v6301_v56  ;;  %v11196_v6 = vsel %vm824_vm4, %v5605_v30, %v5607_v34 }
 0x38c   :  { %v4917_v59 = vsel %vm126_vm2, %v4905_v28, 0.0  ;;  %6533 = vrot.lane.b32.xlu0 %v11143_v23, %s9609_s10  ;;  %v11152_v39 = vsel %vm1519_vm3, %v6303_v8, %v6304_v51  ;;  %v11158_v4 = vsel %vm824_vm4, %v5609_v58, %v5610_v62 }
 0x38d   :  { %v5612_v50 = vrot.slane %v4917_v59, 1  ;;  %v6306_v35 = vrot.slane %v4917_v59, 2  ;;  %v6321_v25 = vcombine.low %v11146_v7, %v11152_v39  ;;  %v6322_v31 = vcombine.high %v11146_v7, %v11152_v39 }
 0x38e   :  { %v4884_v54 = vpop.permute.xlu0 %4883  ;;  %v5627_v17 = vcombine.low %v11155_v55, %v11158_v4  ;;  %v5628_v40 = vcombine.high %v11155_v55, %v11158_v4 }
 0x38f   :  { %v4908_v3 = vsel %vm113_vm1, 0.0, %v4884_v54  ;;  %v11172_v21 = vsel %vm1519_vm3, %v6304_v51, %v6306_v35  ;;  %v11185_v14 = vsel %vm824_vm4, %v5610_v62, %v5612_v50 }
 0x390   :  { %v4920_v15 = vsel %vm126_vm2, %v4908_v3, 0.0  ;;  %6537 = vrot.lane.b32.xlu1 %v11172_v21, %s9609_s10  ;;  %v6389_v20 = vcombine.low %v11121_v45, %v11172_v21  ;;  %v6390_v24 = vcombine.high %v11121_v45, %v11172_v21  ;;  %v5695_v12 = vcombine.low %v11175_v5, %v11185_v14 }
 0x391   :  { %v5617_v26 = vrot.slane %v4920_v15, 1  ;;  %v6311_v44 = vrot.slane %v4920_v15, 2  ;;  %v5696_v29 = vcombine.high %v11175_v5, %v11185_v14 }
 0x392   :  { %v4868_v16 = vpop.permute.xlu0 %4867  ;;  %v11215_v10 = vrot.slane %v6389_v20, %v9858_v53  ;;  %v11241_v58 = vrot.slane %v5695_v12, %v9858_v53  ;;  %v11248_v28 = vrot.slane %v6390_v24, %v9858_v53 }
 0x393   :  { %v4900_v0 = vsel %vm113_vm1, 0.0, %v4868_v16  ;;  %v6312_v52 = vsel %vm1519_vm3, %v6309_v36, %v6311_v44  ;;  %v11207_v22 = vsel %vm824_vm4, %v5615_v43, %v5617_v26  ;;  %v11252_v50 = vrot.slane %v5696_v29, %v9858_v53 }
 0x394   :  { %v11199_v60 = vsel %vm126_vm2, %v4900_v0, 0.0  ;;  %6527 = vrot.lane.b32.xlu1 %v11146_v7, %s9609_s10  ;;  %6541 = vrot.lane.b32.xlu0 %v6312_v52, %s9609_s10  ;;  %v6405_v1 = vcombine.low %v11143_v23, %v6312_v52  ;;  %v6406_v32 = vcombine.high %v11143_v23, %v6312_v52  ;;  %v5711_v18 = vcombine.low %v11196_v6, %v11207_v22 }
 0x395   :  { %16283 = vst [vmem:[#allocation6_spill] sm:$0xff] %v11199_v60  ;;  %v6298_v51 = vrot.slane %v11199_v60, 2  ;;  %v5712_v38 = vcombine.high %v11196_v6, %v11207_v22  ;;  %v5604_v47 = vrot.slane %v11199_v60, 1  ;;  %16286 = vst [vmem:[#allocation38_spill] sm:$0xff] %v11252_v50 }
 0x396   :  { %v11218_v9 = vrot.slane %v6405_v1, %v9858_v53  ;;  %v11221_v48 = vrot.slane %v6406_v32, %v9858_v53  ;;  %v4880_v61 = vpop.permute.xlu0 %4879  ;;  %v11229_v56 = vrot.slane %v5711_v18, %v9858_v53 }
 0x397   :  { %v4906_v62 = vsel %vm113_vm1, 0.0, %v4880_v61  ;;  %v6300_v49 = vsel %vm1519_vm3, %v6298_v51, %v6299_v42  ;;  %v11232_v46 = vrot.slane %v5712_v38, %v9858_v53  ;;  %v5606_v54 = vsel %vm824_vm4, %v5604_v47, %v5605_v30 }
 0x398   :  { %v11235_v8 = vsel %vm126_vm2, %v4906_v62, 0.0  ;;  %6535 = vrot.lane.b32.xlu1 %v11152_v39, %s9609_s10  ;;  %6531 = vrot.lane.b32.xlu0 %v6300_v49, %s9609_s10  ;;  %v6421_v42 = vcombine.low %v11215_v10, %v11218_v9 }
 0x399   :  { %16284 = vst [vmem:[#allocation16_spill] sm:$0xff] %v11232_v46  ;;  %16285 = vst [vmem:[#allocation33_spill] sm:$0xff] %v11235_v8  ;;  %v6308_v59 = vrot.slane %v11235_v8, 2  ;;  %v5614_v35 = vrot.slane %v11235_v8, 1 }
 0x39b   :  { %v6310_v15 = vsel %vm1519_vm3, %v6308_v59, %v6309_v36  ;;  %v5616_v20 = vsel %vm824_vm4, %v5614_v35, %v5615_v43  ;;  %v11275_v36 = vrot.slane %v6321_v25, %v9858_v53  ;;  %v11296_v25 = vrot.slane %v6322_v31, %v9858_v53 }
 0x39c   :  { %6759 = vrot.lane.b32.xlu1 %v11121_v45, %s9610_s11  ;;  %6539 = vrot.lane.b32.xlu0 %v6310_v15, %s9609_s10  ;;  %v6337_v30 = vcombine.low %v6300_v49, %v6310_v15  ;;  %v6338_v44 = vcombine.high %v6300_v49, %v6310_v15  ;;  %v5643_v12 = vcombine.low %v5606_v54, %v5616_v20 }
 0x39d   :  { %v5644_v43 = vcombine.high %v5606_v54, %v5616_v20  ;;  %v11287_v45 = vrot.slane %v5627_v17, %v9858_v53  ;;  %16288 = vst [vmem:[#allocation4_spill] sm:$0xff] %v11296_v25  ;;  %v11315_v31 = vrot.slane %v5628_v40, %v9858_v53 }
 0x39e   :  { %v11278_v29 = vrot.slane %v6337_v30, %v9858_v53  ;;  %v11281_v16 = vrot.slane %v6338_v44, %v9858_v53  ;;  %v11290_v0 = vrot.slane %v5643_v12, %v9858_v53 }
 0x39f   :  { %v11299_v1 = vrot.slane %v5644_v43, %v9858_v53  ;;  %16290 = vst [vmem:[#allocation19_spill] sm:$0xff] %v11315_v31 }
 0x3a0   :  { %16287 = vst [vmem:[#allocation9_spill] sm:$0xff] %v11281_v16  ;;  %6767 = vrot.lane.b32.xlu1 %v11172_v21, %s9610_s11  ;;  %6763 = vrot.lane.b32.xlu0 %v11143_v23, %s9610_s11 }
 0x3a1   :  { %16289 = vst [vmem:[#allocation14_spill] sm:$0xff] %v11299_v1 }
 0x3a4   :  { %6065 = vrot.lane.b32.xlu1 %v11175_v5, %s9610_s11  ;;  %6771 = vrot.lane.b32.xlu0 %v6312_v52, %s9610_s11 }
 0x3a8   :  { %6073 = vrot.lane.b32.xlu1 %v11185_v14, %s9610_s11  ;;  %6069 = vrot.lane.b32.xlu0 %v11196_v6, %s9610_s11 }
 0x3ac   :  { %6757 = vrot.lane.b32.xlu1 %v11146_v7, %s9610_s11  ;;  %6077 = vrot.lane.b32.xlu0 %v11207_v22, %s9610_s11 }
 0x3b0   :  { %6765 = vrot.lane.b32.xlu1 %v11152_v39, %s9610_s11  ;;  %6761 = vrot.lane.b32.xlu0 %v6300_v49, %s9610_s11 }
 0x3b4   :  { %6063 = vrot.lane.b32.xlu1 %v11155_v55, %s9610_s11  ;;  %6769 = vrot.lane.b32.xlu0 %v6310_v15, %s9610_s11 }
 0x3b8   :  { %6071 = vrot.lane.b32.xlu1 %v11158_v4, %s9610_s11  ;;  %6067 = vrot.lane.b32.xlu0 %v5606_v54, %s9610_s11 }
 0x3bc   :  { %5835 = vrot.lane.b32.xlu1 %v11175_v5, %s9609_s10  ;;  %6075 = vrot.lane.b32.xlu0 %v5616_v20, %s9610_s11 }
 0x3c0   :  { %5843 = vrot.lane.b32.xlu1 %v11185_v14, %s9609_s10  ;;  %5839 = vrot.lane.b32.xlu0 %v11196_v6, %s9609_s10 }
 0x3c4   :  { %5833 = vrot.lane.b32.xlu1 %v11155_v55, %s9609_s10  ;;  %5847 = vrot.lane.b32.xlu0 %v11207_v22, %s9609_s10 }
 0x3c8   :  { %5841 = vrot.lane.b32.xlu1 %v11158_v4, %s9609_s10  ;;  %5837 = vrot.lane.b32.xlu0 %v5606_v54, %s9609_s10 }
 0x3cc   :  { %5137 = vrot.lane.b32.xlu1 %v11098_v33, %s9609_s10  ;;  %5845 = vrot.lane.b32.xlu0 %v5616_v20, %s9609_s10 }
 0x3d0   :  { %5145 = vrot.lane.b32.xlu1 %v11110_v37, %s9609_s10  ;;  %5141 = vrot.lane.b32.xlu0 %v11107_v2, %s9609_s10 }
 0x3d4   :  { %5367 = vrot.lane.b32.xlu1 %v11098_v33, %s9610_s11  ;;  %5149 = vrot.lane.b32.xlu0 %v11134_v13, %s9609_s10 }
 0x3d8   :  { %5375 = vrot.lane.b32.xlu1 %v11110_v37, %s9610_s11  ;;  %5371 = vrot.lane.b32.xlu0 %v11107_v2, %s9610_s11 }
 0x3dc   :  { %5135 = vrot.lane.b32.xlu1 %v11113_v63, %s9609_s10  ;;  %5379 = vrot.lane.b32.xlu0 %v11134_v13, %s9610_s11 }
 0x3e0   :  { %5143 = vrot.lane.b32.xlu1 %v11131_v41, %s9609_s10  ;;  %5139 = vrot.lane.b32.xlu0 %v11199_v60, %s9609_s10 }
 0x3e4   :  { %5365 = vrot.lane.b32.xlu1 %v11113_v63, %s9610_s11  ;;  %5147 = vrot.lane.b32.xlu0 %v11235_v8, %s9609_s10 }
 0x3e8   :  { %5373 = vrot.lane.b32.xlu1 %v11131_v41, %s9610_s11  ;;  %5369 = vrot.lane.b32.xlu0 %v11199_v60, %s9610_s11 }
 0x3ec   :  { %5377 = vrot.lane.b32.xlu0 %v11235_v8, %s9610_s11 }
 0x3fa   :  { %v6530_v7 = vpop.permute.xlu1 %6529 }
 0x3fe   :  { %v6534_v39 = vpop.permute.xlu0 %6533 }
 0x402   :  { %v6538_v55 = vpop.permute.xlu1 %6537 }
 0x403   :  { %v6619_v4 = vcombine.low %v6530_v7, %v6538_v55  ;;  %v6620_v5 = vcombine.high %v6530_v7, %v6538_v55 }
 0x405   :  { %v6627_v62 = vrot.slane %v6619_v4, %v9858_v53  ;;  %v11400_v49 = vrot.slane %v6620_v5, %v9858_v53 }
 0x406   :  { %v6528_v14 = vpop.permute.xlu1 %6527  ;;  %v6542_v52 = vpop.permute.xlu0 %6541 }
 0x407   :  { %v6635_v6 = vcombine.low %v6534_v39, %v6542_v52  ;;  %v6636_v22 = vcombine.high %v6534_v39, %v6542_v52 }
 0x409   :  { %v6643_v59 = vrot.slane %v6635_v6, %v9858_v53  ;;  %v11404_v35 = vrot.slane %v6636_v22, %v9858_v53 }
 0x40a   :  { %v6536_v54 = vpop.permute.xlu1 %6535  ;;  %v6532_v15 = vpop.permute.xlu0 %6531 }
 0x40b   :  { %v6651_v20 = vcombine.low %v6627_v62, %v6643_v59  ;;  %v6551_v44 = vcombine.low %v6528_v14, %v6536_v54  ;;  %v6552_v12 = vcombine.high %v6528_v14, %v6536_v54  ;;  %v6652_v55 = vcombine.high %v6627_v62, %v6643_v59 }
 0x40d   :  { %v11409_v43 = vrot.slane %v6651_v20, %v9888_v11  ;;  %v11414_v6 = vrot.slane %v6551_v44, %v9858_v53  ;;  %v11417_v22 = vrot.slane %v6552_v12, %v9858_v53  ;;  %v6666_v20 = vrot.slane %v6652_v55, %v9888_v11 }
 0x40e   :  { %v6760_v7 = vpop.permute.xlu1 %6759  ;;  %v6540_v39 = vpop.permute.xlu0 %6539 }
 0x40f   :  { %16291 = vst [vmem:[#allocation10_spill] sm:$0xff] %v11409_v43  ;;  %v6567_v4 = vcombine.low %v6532_v15, %v6540_v39  ;;  %v6568_v5 = vcombine.high %v6532_v15, %v6540_v39  ;;  %v6683_v52 = vcombine.high %v11409_v43, %v16112_v27  ;;  %v11466_v15 = vrot.slane %v6421_v42, %v9888_v11 }
 0x410   :  { %v16301_v43 = vcombine.low %v11275_v36, %v11278_v29 }
 0x411   :  { %v6575_v47 = vrot.slane %v6567_v4, %v9858_v53  ;;  %v11421_v14 = vrot.slane %v6568_v5, %v9858_v53  ;;  %6716 = vrot.lane.b32.xlu1 %v6683_v52, %s9616_s15  ;;  %16294 = vst [vmem:[#allocation24_spill] sm:$0xff] %v11466_v15  ;;  %v6453_v24 = vcombine.high %v11466_v15, %v16112_v27 }
 0x412   :  { %v6768_v54 = vpop.permute.xlu1 %6767  ;;  %v6764_v62 = vpop.permute.xlu0 %6763 }
 0x413   :  { %v6583_v59 = vcombine.low %v11414_v6, %v6575_v47  ;;  %v6849_v44 = vcombine.low %v6760_v7, %v6768_v54  ;;  %v6850_v39 = vcombine.high %v6760_v7, %v6768_v54  ;;  %v6584_v42 = vcombine.high %v11414_v6, %v6575_v47 }
 0x415   :  { %6720 = vrot.lane.b32.xlu1 %v6666_v20, %s9613_s12  ;;  %v11430_v12 = vrot.slane %v6583_v59, %v9888_v11  ;;  %v6857_v38 = vrot.slane %v6849_v44, %v9858_v53  ;;  %v11438_v18 = vrot.slane %v6850_v39, %v9858_v53 }
 0x416   :  { %v11432_v4 = vpop.permute.xlu1 %6065  ;;  %v6772_v5 = vpop.permute.xlu0 %6771 }
 0x417   :  { %16292 = vst [vmem:[#allocation15_spill] sm:$0xff] %v11430_v12  ;;  %v6865_v52 = vcombine.low %v6764_v62, %v6772_v5  ;;  %v6866_v61 = vcombine.high %v6764_v62, %v6772_v5  ;;  %v6615_v40 = vcombine.high %v11430_v12, %v16112_v27 }
 0x419   :  { %v6873_v7 = vrot.slane %v6865_v52, %v9858_v53  ;;  %v11442_v55 = vrot.slane %v6866_v61, %v9858_v53  ;;  %6688 = vrot.lane.b32.xlu0 %v6615_v40, %s9616_s15 }
 0x41a   :  { %v11445_v54 = vpop.permute.xlu1 %6073  ;;  %v11447_v59 = vpop.permute.xlu0 %6069 }
 0x41b   :  { %v6881_v62 = vcombine.low %v6857_v38, %v6873_v7  ;;  %v6155_v44 = vcombine.low %v11432_v4, %v11445_v54 }
 0x41d   :  { %v11454_v39 = vrot.slane %v6881_v62, %v9888_v11  ;;  %v6163_v23 = vrot.slane %v6155_v44, %v9858_v53 }
 0x41e   :  { %v6758_v52 = vpop.permute.xlu1 %6757  ;;  %v11456_v26 = vpop.permute.xlu0 %6077 }
 0x41f   :  { %16293 = vst [vmem:[#allocation34_spill] sm:$0xff] %v11454_v39  ;;  %v6171_v40 = vcombine.low %v11447_v59, %v11456_v26  ;;  %v6913_v61 = vcombine.high %v11454_v39, %v16112_v27 }
 0x421   :  { %v6179_v62 = vrot.slane %v6171_v40, %v9858_v53  ;;  %6946 = vrot.lane.b32.xlu0 %v6913_v61, %s9616_s15  ;;  %v6684_v40 = vcombine.high %v6666_v20, %v16112_v27  ;;  %v6882_v61 = vcombine.high %v6857_v38, %v6873_v7  ;;  %v6598_v38 = vrot.slane %v6584_v42, %v9888_v11 }
 0x422   :  { %v6766_v5 = vpop.permute.xlu1 %6765  ;;  %v6762_v21 = vpop.permute.xlu0 %6761 }
 0x423   :  { %v6187_v30 = vcombine.low %v6163_v23, %v6179_v62  ;;  %v6781_v51 = vcombine.low %v6758_v52, %v6766_v5  ;;  %v6782_v3 = vcombine.high %v6758_v52, %v6766_v5  ;;  %v6188_v6 = vcombine.high %v6163_v23, %v6179_v62 }
 0x425   :  { %6486 = vrot.lane.b32.xlu0 %v6453_v24, %s9616_s15  ;;  %v11475_v32 = vrot.slane %v6187_v30, %v9888_v11  ;;  %v11482_v15 = vrot.slane %v6781_v51, %v9858_v53  ;;  %v11485_v24 = vrot.slane %v6782_v3, %v9858_v53  ;;  %v6202_v62 = vrot.slane %v6188_v6, %v9888_v11 }
 0x426   :  { %v6064_v44 = vpop.permute.xlu1 %6063  ;;  %v6770_v34 = vpop.permute.xlu0 %6769 }
 0x427   :  { %16295 = vst [vmem:[#allocation25_spill] sm:$0xff] %v11475_v32  ;;  %v6797_v17 = vcombine.low %v6762_v21, %v6770_v34  ;;  %v6798_v57 = vcombine.high %v6762_v21, %v6770_v34  ;;  %v6219_v12 = vcombine.high %v11475_v32, %v16112_v27 }
 0x429   :  { %v11488_v30 = vrot.slane %v6797_v17, %v9858_v53  ;;  %v11491_v47 = vrot.slane %v6798_v57, %v9858_v53  ;;  %6724 = vrot.lane.b32.xlu0 %v6684_v40, %s9617_s16  ;;  %6252 = vrot.lane.b32.xlu1 %v6219_v12, %s9616_s15  ;;  %v6896_v17 = vrot.slane %v6882_v61, %v9888_v11 }
 0x42a   :  { %v6072_v34 = vpop.permute.xlu1 %6071  ;;  %v6068_v21 = vpop.permute.xlu0 %6067 }
 0x42b   :  { %v6813_v51 = vcombine.low %v11482_v15, %v11488_v30  ;;  %v6087_v20 = vcombine.low %v6064_v44, %v6072_v34  ;;  %v6088_v57 = vcombine.high %v6064_v44, %v6072_v34 }
 0x42d   :  { %6950 = vrot.lane.b32.xlu0 %v6896_v17, %s9613_s12  ;;  %6692 = vrot.lane.b32.xlu1 %v6598_v38, %s9613_s12  ;;  %v11504_v12 = vrot.slane %v6813_v51, %v9888_v11  ;;  %v11510_v40 = vrot.slane %v6087_v20, %v9858_v53  ;;  %v11513_v44 = vrot.slane %v6088_v57, %v9858_v53 }
 0x42e   :  { %v5836_v7 = vpop.permute.xlu1 %5835  ;;  %v6076_v5 = vpop.permute.xlu0 %6075  ;;  %v6667_v51 = vcombine.low %v11400_v49, %v11404_v35  ;;  %v11540_v57 = vrot.slane %v16301_v43, %v9888_v11 }
 0x42f   :  { %16296 = vst [vmem:[#allocation28_spill] sm:$0xff] %v11504_v12  ;;  %v6103_v23 = vcombine.low %v6068_v21, %v6076_v5  ;;  %v6104_v52 = vcombine.high %v6068_v21, %v6076_v5  ;;  %v6845_v42 = vcombine.high %v11504_v12, %v16112_v27  ;;  %16297 = vst [vmem:[#allocation39_spill] sm:$0xff] %v11513_v44 }
 0x430   :  { %v16299_v5 = vcombine.high %v11215_v10, %v11218_v9  ;;  %16302 = vst [vmem:[#allocation17_spill] sm:$0xff] %v11540_v57  ;;  %v6675_v10 = vrot.slane %v6667_v51, %v9888_v11 }
 0x431   :  { %v6111_v61 = vrot.slane %v6103_v23, %v9858_v53  ;;  %v11517_v34 = vrot.slane %v6104_v52, %v9858_v53  ;;  %6256 = vrot.lane.b32.xlu0 %v6202_v62, %s9613_s12  ;;  %6918 = vrot.lane.b32.xlu1 %v6845_v42, %s9616_s15 }
 0x432   :  { %v5844_v21 = vpop.permute.xlu1 %5843  ;;  %v5840_v6 = vpop.permute.xlu0 %5839  ;;  %v6436_v23 = vrot.slane %v16299_v5, %v9888_v11 }
 0x433   :  { %16298 = vst [vmem:[#allocation40_spill] sm:$0xff] %v11517_v34  ;;  %v6119_v20 = vcombine.low %v11510_v40, %v6111_v61  ;;  %v5925_v52 = vcombine.low %v5836_v7, %v5844_v21  ;;  %v5926_v3 = vcombine.high %v5836_v7, %v5844_v21 }
 0x435   :  { %6490 = vrot.lane.b32.xlu0 %v6436_v23, %s9613_s12  ;;  %v11532_v42 = vrot.slane %v6119_v20, %v9888_v11  ;;  %v11546_v7 = vrot.slane %v5925_v52, %v9858_v53  ;;  %v11549_v21 = vrot.slane %v5926_v3, %v9858_v53  ;;  %v6616_v3 = vcombine.high %v6598_v38, %v16112_v27 }
 0x436   :  { %v11534_v32 = vpop.permute.xlu1 %5833  ;;  %v5848_v12 = vpop.permute.xlu0 %5847 }
 0x437   :  { %16300 = vst [vmem:[#allocation55_spill] sm:$0xff] %v11532_v42  ;;  %v5941_v39 = vcombine.low %v5840_v6, %v5848_v12  ;;  %v5942_v1 = vcombine.high %v5840_v6, %v5848_v12  ;;  %v6151_v9 = vcombine.high %v11532_v42, %v16112_v27  ;;  %16303 = vst [vmem:[#allocation63_spill] sm:$0xff] %v11549_v21 }
 0x439   :  { %v11552_v20 = vrot.slane %v5941_v39, %v9858_v53  ;;  %v11555_v5 = vrot.slane %v5942_v1, %v9858_v53  ;;  %6728 = vrot.lane.b32.xlu0 %v6675_v10, %s9614_s13  ;;  %6224 = vrot.lane.b32.xlu1 %v6151_v9, %s9616_s15  ;;  %v6914_v39 = vcombine.high %v6896_v17, %v16112_v27 }
 0x43a   :  { %v11559_v43 = vpop.permute.xlu1 %5841  ;;  %v11561_v12 = vpop.permute.xlu0 %5837  ;;  %v6385_v1 = vcombine.high %v11540_v57, %v16112_v27  ;;  %v6814_v9 = vcombine.high %v11482_v15, %v11488_v30  ;;  %v6220_v57 = vcombine.high %v6202_v62, %v16112_v27  ;;  %v16309_v15 = vcombine.low %v11241_v58, %v11229_v56 }
 0x43b   :  { %16304 = vst [vmem:[#allocation20_spill] sm:$0xff] %v11555_v5  ;;  %v5957_v6 = vcombine.low %v11546_v7, %v11552_v20  ;;  %v6454_v62 = vcombine.high %v6436_v23, %v16112_v27 }
 0x43c   :  { %v11596_v30 = vrot.slane %v16309_v15, %v9888_v11 }
 0x43d   :  { %6954 = vrot.lane.b32.xlu0 %v6914_v39, %s9617_s16  ;;  %6458 = vrot.lane.b32.xlu1 %v6385_v1, %s9616_s15  ;;  %v11573_v51 = vrot.slane %v5957_v6, %v9888_v11  ;;  %v6828_v1 = vrot.slane %v6814_v9, %v9888_v11 }
 0x43e   :  { %v11575_v52 = vpop.permute.xlu1 %5137  ;;  %v11579_v42 = vpop.permute.xlu0 %5845  ;;  %16310 = vst [vmem:[#allocation36_spill] sm:$0xff] %v11596_v30  ;;  %v5759_v9 = vcombine.high %v11596_v30, %v16112_v27 }
 0x43f   :  { %16305 = vst [vmem:[#allocation23_spill] sm:$0xff] %v11573_v51  ;;  %16306 = vst [vmem:[#allocation64_spill] sm:$0xff] %v11575_v52  ;;  %v5989_v17 = vcombine.high %v11573_v51, %v16112_v27  ;;  %v2328_v31 = vpop.f32.mrf.mxu0  ;;  %v6846_v8 = vcombine.high %v6828_v1, %v16112_v27 }
 0x440   :  { %v2329_v63 = vadd.f32 %v2328_v31, %v11094_v19 }
 0x441   :  { %6696 = vrot.lane.b32.xlu1 %v6616_v3, %s9617_s16  ;;  %6022 = vrot.lane.b32.xlu0 %v5989_v17, %s9616_s15  ;;  %v6120_v3 = vcombine.high %v11510_v40, %v6111_v61  ;;  %v6685_v61 = vcombine.high %v6675_v10, %v16112_v27  ;;  %v2330_v13 = vpop.f32.mrf.mxu0 }
 0x442   :  { %v11586_v39 = vpop.permute.xlu1 %5145  ;;  %v11588_v6 = vpop.permute.xlu0 %5141  ;;  %v2335_v31 = vmul.f32 0.01, %v2329_v63  ;;  %vm2333_vm14 = vcmp.gt.f32.partialorder %v2329_v63, 0.0 }
 0x443   :  { %16307 = vst [vmem:[#allocation21_spill] sm:$0xff] %v11586_v39  ;;  %16308 = vst [vmem:[#allocation35_spill] sm:$0xff] %v11588_v6  ;;  %v11617_v40 = vrot.slane %v6120_v3, %v9888_v11  ;;  %v16317_v3 = vcombine.high %v11275_v36, %v11278_v29  ;;  %v16320_v36 = vcombine.high %v11241_v58, %v11229_v56 }
 0x444   :  { %v16323_v56 = vcombine.low %v11287_v45, %v11290_v0 }
 0x445   :  { %6922 = vrot.lane.b32.xlu1 %v6828_v1, %s9613_s12  ;;  %6260 = vrot.lane.b32.xlu0 %v6220_v57, %s9617_s16  ;;  %v6897_v57 = vcombine.low %v11438_v18, %v11442_v55  ;;  %v11633_v30 = vrot.slane %v16317_v3, %v9888_v11  ;;  %v11654_v29 = vrot.slane %v16320_v36, %v9888_v11 }
 0x446   :  { %v11600_v38 = vpop.permute.xlu1 %5367  ;;  %v11603_v17 = vpop.permute.xlu0 %5149  ;;  %v11671_v58 = vrot.slane %v16323_v56, %v9888_v11  ;;  %v11673_v36 = vsel %vm2333_vm14, %v2329_v63, %v2335_v31  ;;  %v2331_v31 = vadd.f32 %v2330_v13, %v11094_v19 }
 0x447   :  { %16311 = vst [vmem:[#allocation27_spill] sm:$0xff] %v11600_v38  ;;  %16312 = vst [vmem:[#allocation56_spill] sm:$0xff] %v11603_v17  ;;  %v11636_v10 = vrot.slane %v6897_v57, %v9888_v11 }
 0x448   :  { %16324 = vst [vmem:[#allocation66_spill] sm:$0xff] %v11671_v58  ;;  %v5691_v63 = vcombine.high %v11671_v58, %v16112_v27  ;;  %vm2334_vm15 = vcmp.gt.f32.partialorder %v2331_v31, 0.0  ;;  %v6172_v58 = vcombine.high %v11447_v59, %v11456_v26  ;;  %v5857_v59 = vcombine.low %v11534_v32, %v11559_v43 }
 0x449   :  { %5792 = vrot.lane.b32.xlu1 %v5759_v9, %s9616_s15  ;;  %6494 = vrot.lane.b32.xlu0 %v6454_v62, %s9617_s16  ;;  %v6599_v9 = vcombine.low %v11417_v22, %v11421_v14 }
 0x44a   :  { %v11610_v15 = vpop.permute.xlu1 %5375  ;;  %v11614_v51 = vpop.permute.xlu0 %5371 }
 0x44b   :  { %16313 = vst [vmem:[#allocation18_spill] sm:$0xff] %v11610_v15  ;;  %16314 = vst [vmem:[#allocation31_spill] sm:$0xff] %v11614_v51  ;;  %v11648_v60 = vrot.slane %v6599_v9, %v9888_v11 }
 0x44d   :  { %6228 = vrot.lane.b32.xlu1 %v11617_v40, %s9613_s12  ;;  %6732 = vrot.lane.b32.xlu0 %v6685_v61, %s9618_s17 }
 0x44e   :  { %v11623_v23 = vpop.permute.xlu1 %5135  ;;  %v11627_v62 = vpop.permute.xlu0 %5379 }
 0x44f   :  { %16315 = vst [vmem:[#allocation41_spill] sm:$0xff] %v11623_v23  ;;  %16316 = vst [vmem:[#allocation45_spill] sm:$0xff] %v11627_v62 }
 0x451   :  { %6462 = vrot.lane.b32.xlu1 %v11633_v30, %s9613_s12  ;;  %6958 = vrot.lane.b32.xlu0 %v11636_v10, %s9614_s13 }
 0x452   :  { %v11643_v61 = vpop.permute.xlu1 %5143  ;;  %v11645_v41 = vpop.permute.xlu0 %5139 }
 0x453   :  { %16318 = vst [vmem:[#allocation52_spill] sm:$0xff] %v11643_v61  ;;  %16319 = vst [vmem:[#allocation65_spill] sm:$0xff] %v11645_v41  ;;  %v5159_v57 = vcombine.low %v11623_v23, %v11643_v61 }
 0x455   :  { %6700 = vrot.lane.b32.xlu1 %v11648_v60, %s9614_s13  ;;  %5796 = vrot.lane.b32.xlu0 %v11654_v29, %s9613_s12  ;;  %v11681_v23 = vrot.slane %v5159_v57, %v9858_v53 }
 0x456   :  { %v11662_v3 = vpop.permute.xlu1 %5365  ;;  %v11664_v9 = vpop.permute.xlu0 %5147 }
 0x457   :  { %16321 = vst [vmem:[#allocation49_spill] sm:$0xff] %v11662_v3  ;;  %16322 = vst [vmem:[#allocation44_spill] sm:$0xff] %v11664_v9  ;;  %v5175_v2 = vcombine.low %v11645_v41, %v11664_v9  ;;  %v2336_v41 = vmul.f32 0.01, %v2331_v31 }
 0x459   :  { %6926 = vrot.lane.b32.xlu1 %v6846_v8, %s9617_s16  ;;  %2346 = vrot.lane.b32.xlu0 %v11673_v36, %s9618_s17  ;;  %v11684_v1 = vrot.slane %v5175_v2, %v9858_v53  ;;  %v11714_v8 = vsel %vm2334_vm15, %v2331_v31, %v2336_v41  ;;  %v11731_v41 = vrot.slane %v6172_v58, %v9858_v53 }
 0x45a   :  { %v11686_v61 = vpop.permute.xlu1 %5373  ;;  %v11688_v56 = vpop.permute.xlu0 %5369 }
 0x45b   :  { %16325 = vst [vmem:[#allocation91_spill] sm:$0xff] %v11686_v61  ;;  %16326 = vst [vmem:[#allocation57_spill] sm:$0xff] %v11688_v56  ;;  %v5389_v2 = vcombine.low %v11662_v3, %v11686_v61  ;;  %v16328_v3 = vcombine.low %v11248_v28, %v11221_v48 }
 0x45d   :  { %5764 = vrot.lane.b32.xlu1 %v5691_v63, %s9616_s15  ;;  %2352 = vrot.lane.b32.xlu0 %v11673_v36, %s9617_s16  ;;  %v11709_v13 = vrot.slane %v5389_v2, %v9858_v53  ;;  %v6156_v2 = vcombine.high %v11432_v4, %v11445_v54  ;;  %v5873_v4 = vcombine.low %v11561_v12, %v11579_v42 }
 0x45e   :  { %v11700_v57 = vpop.permute.xlu0 %5377 }
 0x45f   :  { %16327 = vst [vmem:[#allocation58_spill] sm:$0xff] %v11700_v57  ;;  %v5405_v9 = vcombine.low %v11688_v56, %v11700_v57  ;;  %v11736_v31 = vrot.slane %v6156_v2, %v9858_v53  ;;  %v5865_v2 = vrot.slane %v5857_v59, %v9858_v53 }
 0x461   :  { %2340 = vrot.lane.b32.xlu1 %v11673_v36, %s9619_s18  ;;  %2358 = vrot.lane.b32.xlu0 %v11673_v36, %s9616_s15  ;;  %v11712_v63 = vrot.slane %v5405_v9, %v9858_v53  ;;  %v5958_v9 = vcombine.high %v11546_v7, %v11552_v20  ;;  %v6203_v26 = vcombine.low %v11736_v31, %v11731_v41 }
 0x462   :  { %v11753_v7 = vrot.slane %v5873_v4, %v9858_v53  ;;  %v5473_v20 = vcombine.low %v11614_v51, %v11627_v62 }
 0x463   :  { %v5972_v54 = vrot.slane %v5958_v9, %v9888_v11  ;;  %v6211_v58 = vrot.slane %v6203_v26, %v9888_v11  ;;  %v5457_v9 = vcombine.low %v11600_v38, %v11610_v15  ;;  %v6445_v26 = vrot.slane %v16328_v3, %v9888_v11 }
 0x464   :  { %v5889_v19 = vcombine.low %v5865_v2, %v11753_v7  ;;  %v11766_v4 = vrot.slane %v5473_v20, %v9858_v53  ;;  %v16329_v20 = vcombine.high %v11400_v49, %v11404_v35  ;;  %v6915_v3 = vcombine.high %v11636_v10, %v16112_v27 }
 0x465   :  { %2343 = vrot.lane.b32.xlu1 %v11673_v36, %s9615_s14  ;;  %2365 = vrot.lane.b32.xlu0 %v11714_v8, %s9615_s14  ;;  %v11773_v59 = vrot.slane %v5457_v9, %v9858_v53  ;;  %v6152_v49 = vcombine.high %v11617_v40, %v16112_v27  ;;  %v5227_v10 = vcombine.low %v11575_v52, %v11586_v39 }
 0x466   :  { %v6682_v56 = vrot.slane %v16329_v20, %v9888_v11  ;;  %v11785_v57 = vrot.slane %v5889_v19, %v9888_v11  ;;  %v5243_v19 = vcombine.low %v11588_v6, %v11603_v17  ;;  %v6386_v20 = vcombine.high %v11633_v30, %v16112_v27 }
 0x467   :  { %v5489_v61 = vcombine.low %v11773_v59, %v11766_v4  ;;  %v5235_v40 = vrot.slane %v5227_v10, %v9858_v53  ;;  %v6221_v10 = vcombine.high %v6211_v58, %v16112_v27 }
 0x468   :  { %16330 = vst [vmem:[#allocation77_spill] sm:$0xff] %v11785_v57  ;;  %v5921_v9 = vcombine.high %v11785_v57, %v16112_v27 }
 0x469   :  { %2349 = vrot.lane.b32.xlu1 %v11673_v36, %s9614_s13  ;;  %2371 = vrot.lane.b32.xlu0 %v11714_v8, %s9614_s13  ;;  %v11795_v38 = vrot.slane %v5489_v61, %v9888_v11  ;;  %v5251_v61 = vrot.slane %v5243_v19, %v9858_v53  ;;  %v5990_v19 = vcombine.high %v5972_v54, %v16112_v27 }
 0x46b   :  { %16331 = vst [vmem:[#allocation32_spill] sm:$0xff] %v11795_v38  ;;  %v5521_v35 = vcombine.high %v11795_v38, %v16112_v27  ;;  %v6686_v38 = vcombine.high %v6682_v56, %v16112_v27 }
 0x46d   :  { %2355 = vrot.lane.b32.xlu1 %v11673_v36, %s9613_s12  ;;  %2377 = vrot.lane.b32.xlu0 %v11714_v8, %s9613_s12 }
 0x471   :  { %2362 = vrot.lane.b32.xlu1 %v11714_v8, %s9619_s18  ;;  %6026 = vrot.lane.b32.xlu0 %v5972_v54, %s9613_s12 }
 0x475   :  { %2368 = vrot.lane.b32.xlu1 %v11714_v8, %s9618_s17  ;;  %6264 = vrot.lane.b32.xlu0 %v6211_v58, %s9614_s13  ;;  %v5890_v58 = vcombine.high %v5865_v2, %v11753_v7 }
 0x479   :  { %2374 = vrot.lane.b32.xlu1 %v11714_v8, %s9617_s16  ;;  %6498 = vrot.lane.b32.xlu0 %v6445_v26, %s9614_s13 }
 0x47d   :  { %2380 = vrot.lane.b32.xlu1 %v11714_v8, %s9616_s15  ;;  %6736 = vrot.lane.b32.xlu0 %v6682_v56, %s9615_s14 }
 0x481   :  { %6962 = vrot.lane.b32.xlu0 %v6915_v3, %s9618_s17  ;;  %5994 = vrot.lane.b32.xlu1 %v5921_v9, %s9616_s15  ;;  %v5760_v3 = vcombine.high %v11654_v29, %v16112_v27  ;;  %v6829_v9 = vcombine.low %v11485_v24, %v11491_v47 }
 0x483   :  { %v6837_v29 = vrot.slane %v6829_v9, %v9888_v11 }
 0x485   :  { %6232 = vrot.lane.b32.xlu1 %v6152_v49, %s9617_s16  ;;  %5554 = vrot.lane.b32.xlu0 %v5521_v35, %s9616_s15  ;;  %v5259_v49 = vcombine.low %v5235_v40, %v5251_v61  ;;  %v6617_v35 = vcombine.high %v11648_v60, %v16112_v27 }
 0x489   :  { %6466 = vrot.lane.b32.xlu1 %v6386_v20, %s9617_s16  ;;  %5800 = vrot.lane.b32.xlu0 %v5760_v3, %s9617_s16  ;;  %v11829_v20 = vrot.slane %v5259_v49, %v9888_v11  ;;  %v11831_v3 = vpop.permute.xlu1 %6716 }
 0x48a   :  { %16334 = vst [vmem:[#allocation29_spill] sm:$0xff] %v11831_v3 }
 0x48b   :  { %v11824_v30 = vpop.permute.xlu0 %6688  ;;  %16333 = vst [vmem:[#allocation74_spill] sm:$0xff] %v11829_v20  ;;  %v5291_v54 = vcombine.high %v11829_v20, %v16112_v27  ;;  %v16349_v20 = vcombine.low %v11252_v50, %v11232_v46 }
 0x48c   :  { %16332 = vst [vmem:[#allocation54_spill] sm:$0xff] %v11824_v30 }
 0x48d   :  { %6704 = vrot.lane.b32.xlu1 %v6617_v35, %s9618_s17  ;;  %6030 = vrot.lane.b32.xlu0 %v5990_v19, %s9617_s16  ;;  %v6455_v35 = vcombine.high %v6445_v26, %v16112_v27  ;;  %v11843_v9 = vpop.permute.xlu1 %6720  ;;  %v16338_v19 = vcombine.high %v11287_v45, %v11290_v0  ;;  %v6135_v26 = vcombine.low %v11513_v44, %v11517_v34 }
 0x48e   :  { %16336 = vst [vmem:[#allocation51_spill] sm:$0xff] %v11843_v9  ;;  %v16341_v45 = vcombine.high %v11438_v18, %v11442_v55  ;;  %v16345_v55 = vcombine.low %v11296_v25, %v11281_v16  ;;  %v11913_v57 = vrot.slane %v16349_v20, %v9888_v11 }
 0x490   :  { %v11865_v0 = vrot.slane %v16341_v45, %v9888_v11 }
 0x491   :  { %6930 = vrot.lane.b32.xlu1 %v6837_v29, %s9614_s13  ;;  %6268 = vrot.lane.b32.xlu0 %v6221_v10, %s9618_s17  ;;  %v5674_v10 = vrot.slane %v16338_v19, %v9888_v11  ;;  %v5973_v19 = vcombine.low %v11549_v21, %v11555_v5 }
 0x493   :  { %v11835_v60 = vpop.permute.xlu0 %6946  ;;  %v11929_v20 = vrot.slane %v5973_v19, %v9888_v11 }
 0x494   :  { %16335 = vst [vmem:[#allocation82_spill] sm:$0xff] %v11835_v60 }
 0x495   :  { %5324 = vrot.lane.b32.xlu1 %v5291_v54, %s9616_s15  ;;  %6502 = vrot.lane.b32.xlu0 %v6455_v35, %s9618_s17  ;;  %v5260_v54 = vcombine.high %v5235_v40, %v5251_v61  ;;  %v5904_v35 = vrot.slane %v5890_v58, %v9888_v11  ;;  %v6143_v61 = vrot.slane %v6135_v26, %v9888_v11 }
 0x496   :  { %v5191_v26 = vcombine.low %v11681_v23, %v11684_v1  ;;  %16352 = vst [vmem:[#allocation84_spill] sm:$0xff] %v11929_v20 }
 0x497   :  { %v11845_v49 = vpop.permute.xlu0 %6486  ;;  %v11876_v40 = vrot.slane %v5260_v54, %v9888_v11 }
 0x498   :  { %16337 = vst [vmem:[#allocation86_spill] sm:$0xff] %v11845_v49 }
 0x499   :  { %5768 = vrot.lane.b32.xlu1 %v5674_v10, %s9613_s12  ;;  %6740 = vrot.lane.b32.xlu0 %v6686_v38, %s9619_s18  ;;  %v5490_v38 = vcombine.high %v11773_v59, %v11766_v4  ;;  %v6377_v4 = vrot.slane %v16345_v55, %v9888_v11 }
 0x49b   :  { %v11856_v7 = vpop.permute.xlu1 %6252  ;;  %v11858_v2 = vpop.permute.xlu0 %6724  ;;  %v11890_v59 = vrot.slane %v5490_v38, %v9888_v11  ;;  %v16348_v38 = vcombine.high %v11417_v22, %v11421_v14  ;;  %v5421_v22 = vcombine.low %v11709_v13, %v11712_v63 }
 0x49c   :  { %16339 = vst [vmem:[#allocation90_spill] sm:$0xff] %v11856_v7  ;;  %16340 = vst [vmem:[#allocation68_spill] sm:$0xff] %v11858_v2  ;;  %v6847_v7 = vcombine.high %v6837_v29, %v16112_v27 }
 0x49d   :  { %5998 = vrot.lane.b32.xlu1 %v5904_v35, %s9613_s12  ;;  %6966 = vrot.lane.b32.xlu0 %v11865_v0, %s9615_s14  ;;  %v11907_v55 = vrot.slane %v16348_v38, %v9888_v11  ;;  %v11947_v19 = vrot.slane %v5421_v22, %v9888_v11  ;;  %v5692_v22 = vcombine.high %v5674_v10, %v16112_v27 }
 0x49f   :  { %v11872_v56 = vpop.permute.xlu0 %6950  ;;  %v11878_v58 = vpop.permute.xlu1 %6692  ;;  %16357 = vst [vmem:[#allocation70_spill] sm:$0xff] %v11947_v19 }
 0x4a0   :  { %16342 = vst [vmem:[#allocation88_spill] sm:$0xff] %v11872_v56  ;;  %16343 = vst [vmem:[#allocation93_spill] sm:$0xff] %v11878_v58  ;;  %v11932_v58 = vrot.slane %v5191_v26, %v9888_v11 }
 0x4a1   :  { %6236 = vrot.lane.b32.xlu1 %v6143_v61, %s9614_s13  ;;  %5328 = vrot.lane.b32.xlu0 %v11876_v40, %s9613_s12 }
 0x4a2   :  { %16353 = vst [vmem:[#allocation53_spill] sm:$0xff] %v11932_v58  ;;  %v5223_v29 = vcombine.high %v11932_v58, %v16112_v27 }
 0x4a3   :  { %v11883_v18 = vpop.permute.xlu0 %6256  ;;  %v11899_v54 = vpop.permute.xlu1 %6918 }
 0x4a4   :  { %16344 = vst [vmem:[#allocation67_spill] sm:$0xff] %v11883_v18  ;;  %16346 = vst [vmem:[#allocation71_spill] sm:$0xff] %v11899_v54  ;;  %v6204_v18 = vcombine.high %v11736_v31, %v11731_v41 }
 0x4a5   :  { %6470 = vrot.lane.b32.xlu1 %v6377_v4, %s9614_s13  ;;  %5558 = vrot.lane.b32.xlu0 %v11890_v59, %s9613_s12 }
 0x4a7   :  { %v11901_v45 = vpop.permute.xlu0 %6490 }
 0x4a8   :  { %16347 = vst [vmem:[#allocation79_spill] sm:$0xff] %v11901_v45 }
 0x4a9   :  { %6708 = vrot.lane.b32.xlu1 %v11907_v55, %s9615_s14  ;;  %5804 = vrot.lane.b32.xlu0 %v11913_v57, %s9614_s13 }
 0x4ab   :  { %v11923_v14 = vpop.permute.xlu1 %6224  ;;  %v11925_v38 = vpop.permute.xlu0 %6728 }
 0x4ac   :  { %16350 = vst [vmem:[#allocation72_spill] sm:$0xff] %v11923_v14  ;;  %16351 = vst [vmem:[#allocation76_spill] sm:$0xff] %v11925_v38  ;;  %v11942_v14 = vrot.slane %v6204_v18, %v9888_v11 }
 0x4ad   :  { %6934 = vrot.lane.b32.xlu1 %v6847_v7, %s9618_s17  ;;  %6034 = vrot.lane.b32.xlu0 %v11929_v20, %s9614_s13 }
 0x4ae   :  { %16356 = vst [vmem:[#allocation47_spill] sm:$0xff] %v11942_v14 }
 0x4af   :  { %v11937_v41 = vpop.permute.xlu1 %6458  ;;  %v11939_v31 = vpop.permute.xlu0 %6954 }
 0x4b0   :  { %16354 = vst [vmem:[#allocation87_spill] sm:$0xff] %v11937_v41  ;;  %16355 = vst [vmem:[#allocation92_spill] sm:$0xff] %v11939_v31  ;;  %v5453_v41 = vcombine.high %v11947_v19, %v16112_v27 }
 0x4b1   :  { %6272 = vrot.lane.b32.xlu0 %v11942_v14, %s9615_s14  ;;  %5296 = vrot.lane.b32.xlu1 %v5223_v29, %s9616_s15 }
 0x4b3   :  { %v11952_v7 = vpop.permute.xlu1 %6696  ;;  %v11954_v26 = vpop.permute.xlu0 %6022 }
 0x4b4   :  { %16358 = vst [vmem:[#allocation89_spill] sm:$0xff] %v11952_v7  ;;  %16359 = vst [vmem:[#allocation69_spill] sm:$0xff] %v11954_v26  ;;  %v5922_v7 = vcombine.high %v5904_v35, %v16112_v27 }
 0x4b5   :  { %5526 = vrot.lane.b32.xlu1 %v5453_v41, %s9616_s15  ;;  %v6153_v41 = vcombine.high %v6143_v61, %v16112_v27 }
 0x4b7   :  { %v11959_v18 = vpop.permute.xlu1 %6922  ;;  %v11961_v58 = vpop.permute.xlu0 %6260 }
 0x4b8   :  { %16360 = vst [vmem:[#allocation73_spill] sm:$0xff] %v11959_v18  ;;  %16361 = vst [vmem:[#allocation81_spill] sm:$0xff] %v11961_v58 }
 0x4b9   :  { %5772 = vrot.lane.b32.xlu1 %v5692_v22, %s9617_s16  ;;  %v6387_v22 = vcombine.high %v6377_v4, %v16112_v27 }
 0x4bb   :  { %v11965_v30 = vpop.permute.xlu1 %5792  ;;  %v11967_v29 = vpop.permute.xlu0 %6494 }
 0x4bc   :  { %16362 = vst [vmem:[#allocation78_spill] sm:$0xff] %v11965_v30  ;;  %16363 = vst [vmem:[#allocation85_spill] sm:$0xff] %v11967_v29 }
 0x4bd   :  { %6002 = vrot.lane.b32.xlu1 %v5922_v7, %s9617_s16 }
 0x4bf   :  { %v11971_v26 = vpop.permute.xlu1 %6228  ;;  %v11973_v19 = vpop.permute.xlu0 %6732 }
 0x4c0   :  { %16364 = vst [vmem:[#allocation59_spill] sm:$0xff] %v11971_v26  ;;  %16365 = vst [vmem:[#allocation46_spill] sm:$0xff] %v11973_v19 }
 0x4c1   :  { %6240 = vrot.lane.b32.xlu1 %v6153_v41, %s9618_s17 }
 0x4c3   :  { %v11977_v58 = vpop.permute.xlu1 %6462  ;;  %v11979_v10 = vpop.permute.xlu0 %6958 }
 0x4c4   :  { %16366 = vst [vmem:[#allocation60_spill] sm:$0xff] %v11977_v58  ;;  %16367 = vst [vmem:[#allocation75_spill] sm:$0xff] %v11979_v10 }
 0x4c5   :  { %6474 = vrot.lane.b32.xlu1 %v6387_v22, %s9618_s17 }
 0x4c7   :  { %v11983_v30 = vpop.permute.xlu1 %6700  ;;  %v11985_v35 = vpop.permute.xlu0 %5796 }
 0x4c8   :  { %16368 = vst [vmem:[#allocation83_spill] sm:$0xff] %v11983_v30  ;;  %16369 = vst [vmem:[#allocation42_spill] sm:$0xff] %v11985_v35 }
 0x4cb   :  { %v11987_v7 = vpop.permute.xlu1 %6926  ;;  %v2347_v26 = vpop.permute.xlu0 %2346 }
 0x4cc   :  { %16370 = vst [vmem:[#allocation50_spill] sm:$0xff] %v11987_v7 }
 0x4cf   :  { %v11989_v18 = vpop.permute.xlu1 %5764  ;;  %v2353_v61 = vpop.permute.xlu0 %2352 }
 0x4d0   :  { %16371 = vst [vmem:[#allocation80_spill] sm:$0xff] %v11989_v18 }
 0x4d3   :  { %v2341_v19 = vpop.permute.xlu1 %2340  ;;  %v2359_v29 = vpop.permute.xlu0 %2358 }
 0x4d4   :  { %v2391_v38 = vcombine.low %v2341_v19, %v2347_v26  ;;  %v2407_v4 = vcombine.low %v2353_v61, %v2359_v29 }
 0x4d6   :  { %v2398_v35 = vrot.slane %v2391_v38, %v9858_v53  ;;  %v2414_v7 = vrot.slane %v2407_v4, %v9858_v53 }
 0x4d7   :  { %v2344_v41 = vpop.permute.xlu1 %2343  ;;  %v2366_v45 = vpop.permute.xlu0 %2365 }
 0x4d8   :  { %v2383_v58 = vcombine.low %v11673_v36, %v2344_v41 }
 0x4da   :  { %v2390_v22 = vrot.slane %v2383_v58, %v9858_v53 }
 0x4db   :  { %v2350_v54 = vpop.permute.xlu1 %2349  ;;  %v2372_v36 = vpop.permute.xlu0 %2371 }
 0x4dc   :  { %v2415_v49 = vcombine.low %v2390_v22, %v2398_v35  ;;  %v2416_v9 = vcombine.high %v2390_v22, %v2398_v35 }
 0x4de   :  { %v2423_v19 = vrot.slane %v2415_v49, %v9888_v11  ;;  %v2430_v29 = vrot.slane %v2416_v9, %v9888_v11 }
 0x4df   :  { %v2356_v30 = vpop.permute.xlu1 %2355  ;;  %v2378_v22 = vpop.permute.xlu0 %2377 }
 0x4e0   :  { %v2399_v2 = vcombine.low %v2350_v54, %v2356_v30 }
 0x4e2   :  { %v2406_v18 = vrot.slane %v2399_v2, %v9858_v53 }
 0x4e3   :  { %v2363_v3 = vpop.permute.xlu1 %2362 }
 0x4e4   :  { %v2431_v10 = vcombine.low %v2406_v18, %v2414_v7  ;;  %v2432_v31 = vcombine.high %v2406_v18, %v2414_v7  ;;  %v2451_v18 = vcombine.low %v11714_v8, %v2366_v45 }
 0x4e6   :  { %v2439_v26 = vrot.slane %v2431_v10, %v9888_v11  ;;  %v2446_v58 = vrot.slane %v2432_v31, %v9888_v11  ;;  %v2467_v10 = vcombine.low %v2372_v36, %v2378_v22 }
 0x4e7   :  { %v2369_v38 = vpop.permute.xlu1 %2368 }
 0x4e8   :  { %v2448_v30 = vcombine.high %v2423_v19, %v2439_v26  ;;  %v2447_v54 = vcombine.low %v2423_v19, %v2439_v26  ;;  %v2450_v61 = vcombine.high %v2430_v29, %v2446_v58  ;;  %v2449_v41 = vcombine.low %v2430_v29, %v2446_v58 }
 0x4e9   :  { %v2459_v4 = vcombine.low %v2363_v3, %v2369_v38  ;;  %v2458_v26 = vrot.slane %v2451_v18, %v9858_v53  ;;  %v2474_v45 = vrot.slane %v2467_v10, %v9858_v53 }
 0x4ea   :  { %v2530_v2 = vrot.slane %v2448_v30, 7  ;;  %v2527_v35 = vrot.slane %v2447_v54, 7  ;;  %v2536_v7 = vrot.slane %v2450_v61, 7  ;;  %v2533_v9 = vrot.slane %v2449_v41, 7 }
 0x4eb   :  { %v2375_v56 = vpop.permute.xlu1 %2374  ;;  %v2466_v19 = vrot.slane %v2459_v4, %v9858_v53 }
 0x4ec   :  { %v2548_v49 = vsel %vm40_vm0, 0.0, %v2530_v2  ;;  %v2547_v31 = vsel %vm40_vm0, 0.0, %v2527_v35  ;;  %v2550_v29 = vsel %vm40_vm0, 0.0, %v2536_v7  ;;  %v2549_v8 = vsel %vm40_vm0, 0.0, %v2533_v9 }
 0x4ed   :  { %2569 = vrot.lane.b32.xlu1 %v2548_v49, %s9607_s26  ;;  %2563 = vrot.lane.b32.xlu0 %v2547_v31, %s9607_s26  ;;  %v2483_v38 = vcombine.low %v2458_v26, %v2466_v19  ;;  %v2484_v41 = vcombine.high %v2458_v26, %v2466_v19 }
 0x4ef   :  { %v2381_v3 = vpop.permute.xlu1 %2380  ;;  %v2498_v31 = vrot.slane %v2484_v41, %v9888_v11 }
 0x4f0   :  { %v2475_v58 = vcombine.low %v2375_v56, %v2381_v3  ;;  %v2491_v56 = vrot.slane %v2483_v38, %v9888_v11 }
 0x4f1   :  { %2581 = vrot.lane.b32.xlu1 %v2550_v29, %s9607_s26  ;;  %2575 = vrot.lane.b32.xlu0 %v2549_v8, %s9607_s26 }
 0x4f2   :  { %v2482_v30 = vrot.slane %v2475_v58, %v9858_v53  ;;  %v12021_v58 = vpop.permute.xlu0 %6026 }
 0x4f3   :  { %v12013_v61 = vpop.permute.xlu1 %5994  ;;  %16374 = vst [vmem:[#allocation48_spill] sm:$0xff] %v12021_v58 }
 0x4f4   :  { %v2499_v36 = vcombine.low %v2474_v45, %v2482_v30  ;;  %v2500_v54 = vcombine.high %v2474_v45, %v2482_v30  ;;  %16372 = vst [vmem:[#allocation30_spill] sm:$0xff] %v12013_v61 }
 0x4f6   :  { %v2507_v4 = vrot.slane %v2499_v36, %v9888_v11  ;;  %v2514_v22 = vrot.slane %v2500_v54, %v9888_v11  ;;  %v12033_v41 = vpop.permute.xlu0 %6264 }
 0x4f7   :  { %v12019_v3 = vpop.permute.xlu1 %6232  ;;  %16376 = vst [vmem:[#allocation62_spill] sm:$0xff] %v12033_v41 }
 0x4f8   :  { %v2515_v18 = vcombine.low %v2491_v56, %v2507_v4  ;;  %v2516_v49 = vcombine.high %v2491_v56, %v2507_v4  ;;  %16373 = vst [vmem:[#allocation61_spill] sm:$0xff] %v12019_v3  ;;  %v2517_v26 = vcombine.low %v2498_v31, %v2514_v22  ;;  %v2518_v36 = vcombine.high %v2498_v31, %v2514_v22 }
 0x4fa   :  { %v2528_v10 = vrot.slane %v2515_v18, 7  ;;  %v2531_v19 = vrot.slane %v2516_v49, 7  ;;  %v2534_v30 = vrot.slane %v2517_v26, 7  ;;  %v2537_v4 = vrot.slane %v2518_v36, 7  ;;  %v12041_v22 = vpop.permute.xlu0 %6498 }
 0x4fb   :  { %v12029_v54 = vpop.permute.xlu1 %6466  ;;  %16378 = vst [vmem:[#allocation8_spill] sm:$0xff] %v12041_v22 }
 0x4fc   :  { %v2551_v29 = vsel %vm40_vm0, %v2528_v10, 0.0  ;;  %v2529_v8 = vsel %vm40_vm0, %v2527_v35, %v2528_v10  ;;  %v2532_v45 = vsel %vm40_vm0, %v2530_v2, %v2531_v19  ;;  %v2552_v38 = vsel %vm40_vm0, %v2531_v19, 0.0  ;;  %16375 = vst [vmem:[#allocation43_spill] sm:$0xff] %v12029_v54 }
 0x4fd   :  { %2567 = vrot.lane.b32.xlu0 %v2551_v29, %s9607_s26  ;;  %2565 = vrot.lane.b32.xlu1 %v2529_v8, %s9607_s26  ;;  %v2553_v35 = vsel %vm40_vm0, %v2534_v30, 0.0  ;;  %v2535_v56 = vsel %vm40_vm0, %v2533_v9, %v2534_v30  ;;  %v2538_v18 = vsel %vm40_vm0, %v2536_v7, %v2537_v4  ;;  %v2554_v49 = vsel %vm40_vm0, %v2537_v4, 0.0 }
 0x4fe   :  { %v12049_v9 = vpop.permute.xlu0 %6736 }
 0x4ff   :  { %v12039_v2 = vpop.permute.xlu1 %6704  ;;  %16380 = vst [vmem:[#allocation11_spill] sm:$0xff] %v12049_v9 }
 0x500   :  { %16377 = vst [vmem:[#allocation7_spill] sm:$0xff] %v12039_v2 }
 0x501   :  { %2571 = vrot.lane.b32.xlu0 %v2532_v45, %s9607_s26  ;;  %2573 = vrot.lane.b32.xlu1 %v2552_v38, %s9607_s26 }
 0x502   :  { %v12053_v29 = vpop.permute.xlu0 %6962 }
 0x503   :  { %v12047_v31 = vpop.permute.xlu1 %6930  ;;  %16382 = vst [vmem:[#allocation95_spill] sm:$0xff] %v12053_v29 }
 0x504   :  { %16379 = vst [vmem:[#allocation12_spill] sm:$0xff] %v12047_v31 }
 0x505   :  { %2579 = vrot.lane.b32.xlu0 %v2553_v35, %s9607_s26  ;;  %2577 = vrot.lane.b32.xlu1 %v2535_v56, %s9607_s26 }
 0x506   :  { %v12057_v19 = vpop.permute.xlu0 %5554 }
 0x507   :  { %v12051_v10 = vpop.permute.xlu1 %5324  ;;  %16384 = vst [vmem:[#allocation97_spill] sm:$0xff] %v12057_v19 }
 0x508   :  { %16381 = vst [vmem:[#allocation94_spill] sm:$0xff] %v12051_v10 }
 0x509   :  { %2583 = vrot.lane.b32.xlu0 %v2538_v18, %s9607_s26  ;;  %2585 = vrot.lane.b32.xlu1 %v2554_v49, %s9607_s26 }
 0x50a   :  { %v12061_v7 = vpop.permute.xlu0 %5800 }
 0x50b   :  { %v12055_v8 = vpop.permute.xlu1 %5768  ;;  %16386 = vst [vmem:[#allocation99_spill] sm:$0xff] %v12061_v7 }
 0x50c   :  { %16383 = vst [vmem:[#allocation96_spill] sm:$0xff] %v12055_v8 }
 0x50e   :  { %v12065_v38 = vpop.permute.xlu0 %6030 }
 0x50f   :  { %v12059_v26 = vpop.permute.xlu1 %5998  ;;  %16388 = vst [vmem:[#allocation101_spill] sm:$0xff] %v12065_v38 }
 0x510   :  { %16385 = vst [vmem:[#allocation98_spill] sm:$0xff] %v12059_v26 }
 0x512   :  { %v12069_v36 = vpop.permute.xlu0 %6268 }
 0x513   :  { %v12063_v45 = vpop.permute.xlu1 %6236  ;;  %16390 = vst [vmem:[#allocation103_spill] sm:$0xff] %v12069_v36 }
 0x514   :  { %16387 = vst [vmem:[#allocation100_spill] sm:$0xff] %v12063_v45 }
 0x516   :  { %v12073_v56 = vpop.permute.xlu0 %6502 }
 0x517   :  { %v12067_v30 = vpop.permute.xlu1 %6470  ;;  %16392 = vst [vmem:[#allocation105_spill] sm:$0xff] %v12073_v56 }
 0x518   :  { %16389 = vst [vmem:[#allocation102_spill] sm:$0xff] %v12067_v30 }
 0x51a   :  { %v12077_v18 = vpop.permute.xlu0 %6740 }
 0x51b   :  { %v12071_v35 = vpop.permute.xlu1 %6708  ;;  %16394 = vst [vmem:[#allocation107_spill] sm:$0xff] %v12077_v18 }
 0x51c   :  { %16391 = vst [vmem:[#allocation104_spill] sm:$0xff] %v12071_v35 }
 0x51e   :  { %v12081_v10 = vpop.permute.xlu0 %6966 }
 0x51f   :  { %v12075_v4 = vpop.permute.xlu1 %6934  ;;  %16396 = vst [vmem:[#allocation109_spill] sm:$0xff] %v12081_v10 }
 0x520   :  { %16393 = vst [vmem:[#allocation106_spill] sm:$0xff] %v12075_v4 }
 0x522   :  { %v12085_v19 = vpop.permute.xlu0 %5328 }
 0x523   :  { %v12079_v49 = vpop.permute.xlu1 %5296  ;;  %16398 = vst [vmem:[#allocation111_spill] sm:$0xff] %v12085_v19 }
 0x524   :  { %16395 = vst [vmem:[#allocation108_spill] sm:$0xff] %v12079_v49 }
 0x526   :  { %v12089_v26 = vpop.permute.xlu0 %5558 }
 0x527   :  { %v12083_v8 = vpop.permute.xlu1 %5526  ;;  %16400 = vst [vmem:[#allocation113_spill] sm:$0xff] %v12089_v26 }
 0x528   :  { %16397 = vst [vmem:[#allocation110_spill] sm:$0xff] %v12083_v8 }
 0x52a   :  { %v12093_v45 = vpop.permute.xlu0 %5804 }
 0x52b   :  { %v12087_v7 = vpop.permute.xlu1 %5772  ;;  %16402 = vst [vmem:[#allocation115_spill] sm:$0xff] %v12093_v45 }
 0x52c   :  { %16399 = vst [vmem:[#allocation112_spill] sm:$0xff] %v12087_v7 }
 0x52e   :  { %v12097_v38 = vpop.permute.xlu0 %6034 }
 0x52f   :  { %v12091_v61 = vpop.permute.xlu1 %6002  ;;  %16404 = vst [vmem:[#allocation117_spill] sm:$0xff] %v12097_v38 }
 0x530   :  { %16401 = vst [vmem:[#allocation114_spill] sm:$0xff] %v12091_v61 }
 0x532   :  { %v12101_v49 = vpop.permute.xlu0 %6272 }
 0x533   :  { %v12095_v3 = vpop.permute.xlu1 %6240  ;;  %16406 = vst [vmem:[#allocation119_spill] sm:$0xff] %v12101_v49 }
 0x534   :  { %16403 = vst [vmem:[#allocation116_spill] sm:$0xff] %v12095_v3 }
 0x537   :  { %v12099_v58 = vpop.permute.xlu1 %6474 }
 0x538   :  { %16405 = vst [vmem:[#allocation118_spill] sm:$0xff] %v12099_v58 }
 0x55f   :  { %v2570_v36 = vpop.permute.xlu1 %2569  ;;  %v2564_v8 = vpop.permute.xlu0 %2563 }
 0x560   :  { %v2599_v19 = vsel %vm113_vm1, 0.0, %v2564_v8  ;;  %v2602_v7 = vsel %vm113_vm1, 0.0, %v2570_v36 }
 0x561   :  { %v12106_v26 = vsel %vm126_vm2, %v2599_v19, 0.0  ;;  %v12112_v38 = vsel %vm126_vm2, %v2602_v7, 0.0 }
 0x562   :  { %2837 = vrot.lane.b32.xlu0 %v12106_v26, %s9609_s10  ;;  %v3301_v22 = vrot.slane %v12106_v26, 1 }
 0x563   :  { %v2582_v45 = vpop.permute.xlu1 %2581  ;;  %v2576_v3 = vpop.permute.xlu0 %2575 }
 0x564   :  { %v2608_v61 = vsel %vm113_vm1, 0.0, %v2582_v45  ;;  %v2605_v8 = vsel %vm113_vm1, 0.0, %v2576_v3 }
 0x565   :  { %v12115_v49 = vsel %vm126_vm2, %v2608_v61, 0.0  ;;  %v12123_v41 = vsel %vm126_vm2, %v2605_v8, 0.0 }
 0x566   :  { %v2639_v36 = vcombine.low %v12112_v38, %v12115_v49  ;;  %v2640_v19 = vcombine.high %v12112_v38, %v12115_v49  ;;  %v2623_v45 = vcombine.low %v12106_v26, %v12123_v41  ;;  %v2624_v7 = vcombine.high %v12106_v26, %v12123_v41  ;;  %2841 = vrot.lane.b32.xlu0 %v12112_v38, %s9609_s10 }
 0x567   :  { %v3316_v50 = vrot.slane %v12115_v49, 1 }
 0x568   :  { %v12132_v61 = vrot.slane %v2639_v36, %v9858_v53  ;;  %v12135_v3 = vrot.slane %v2640_v19, %v9858_v53  ;;  %v12138_v58 = vrot.slane %v2623_v45, %v9858_v53  ;;  %v12141_v8 = vrot.slane %v2624_v7, %v9858_v53 }
 0x56a   :  { %2845 = vrot.lane.b32.xlu0 %v12123_v41, %s9609_s10 }
 0x56e   :  { %2849 = vrot.lane.b32.xlu0 %v12115_v49, %s9609_s10 }
 0x56f   :  { %v2566_v45 = vpop.permute.xlu1 %2565  ;;  %v2568_v7 = vpop.permute.xlu0 %2567 }
 0x570   :  { %v2600_v35 = vsel %vm113_vm1, 0.0, %v2566_v45  ;;  %v2601_v52 = vsel %vm113_vm1, 0.0, %v2568_v7 }
 0x571   :  { %v12157_v2 = vsel %vm126_vm2, %v2600_v35, 0.0 }
 0x572   :  { %2839 = vrot.lane.b32.xlu1 %v12157_v2, %s9609_s10  ;;  %3067 = vrot.lane.b32.xlu0 %v12106_v26, %s9610_s11 }
 0x573   :  { %v2574_v36 = vpop.permute.xlu1 %2573  ;;  %v2572_v54 = vpop.permute.xlu0 %2571 }
 0x574   :  { %v2603_v19 = vsel %vm113_vm1, 0.0, %v2572_v54 }
 0x575   :  { %v12165_v30 = vsel %vm126_vm2, %v2603_v19, 0.0  ;;  %v3302_v19 = vrot.slane %v12157_v2, 1 }
 0x576   :  { %2843 = vrot.lane.b32.xlu1 %v12165_v30, %s9609_s10  ;;  %3071 = vrot.lane.b32.xlu0 %v12112_v38, %s9610_s11  ;;  %v3307_v29 = vrot.slane %v12165_v30, 1 }
 0x577   :  { %v2578_v35 = vpop.permute.xlu1 %2577  ;;  %v2580_v45 = vpop.permute.xlu0 %2579  ;;  %v3303_v21 = vsel %vm824_vm4, %v3301_v22, %v3302_v19 }
 0x578   :  { %v2606_v4 = vsel %vm113_vm1, 0.0, %v2578_v35  ;;  %v3311_v35 = vrot.slane %v12123_v41, 1 }
 0x579   :  { %v12173_v31 = vsel %vm126_vm2, %v2606_v4, 0.0 }
 0x57a   :  { %v2691_v18 = vcombine.low %v12157_v2, %v12173_v31  ;;  %v2692_v54 = vcombine.high %v12157_v2, %v12173_v31  ;;  %2847 = vrot.lane.b32.xlu1 %v12173_v31, %s9609_s10  ;;  %3075 = vrot.lane.b32.xlu0 %v12123_v41, %s9610_s11  ;;  %v15989_v4 = vrot.slane %v12173_v31, 1 }
 0x57b   :  { %v2584_v56 = vpop.permute.xlu0 %2583 }
 0x57c   :  { %v2609_v9 = vsel %vm113_vm1, 0.0, %v2584_v56  ;;  %v3313_v60 = vsel %vm824_vm4, %v3311_v35, %v15989_v4  ;;  %v3306_v56 = vrot.slane %v12112_v38, 1  ;;  %v12223_v39 = vrot.slane %v2692_v54, %v9858_v53 }
 0x57d   :  { %v12189_v10 = vsel %vm126_vm2, %v2609_v9, 0.0  ;;  %v3329_v9 = vcombine.low %v3303_v21, %v3313_v60  ;;  %v3330_v46 = vcombine.high %v3303_v21, %v3313_v60  ;;  %v2604_v54 = vsel %vm113_vm1, 0.0, %v2574_v36 }
 0x57e   :  { %v2708_v5 = vcombine.high %v12165_v30, %v12189_v10  ;;  %2851 = vrot.lane.b32.xlu1 %v12189_v10, %s9609_s10  ;;  %3079 = vrot.lane.b32.xlu0 %v12115_v49, %s9610_s11  ;;  %v3317_v15 = vrot.slane %v12189_v10, 1  ;;  %v3308_v35 = vsel %vm824_vm4, %v3306_v56, %v3307_v29  ;;  %v2707_v62 = vcombine.low %v12165_v30, %v12189_v10 }
 0x57f   :  { %v12217_v56 = vrot.slane %v2691_v18, %v9858_v53  ;;  %v2613_v18 = vsel %vm126_vm2, %v2601_v52, 0.0  ;;  %v12248_v6 = vrot.slane %v3329_v9, %v9858_v53  ;;  %v12251_v7 = vrot.slane %v3330_v46, %v9858_v53  ;;  %v2586_v46 = vpop.permute.xlu1 %2585 }
 0x580   :  { %v3318_v4 = vsel %vm824_vm4, %v3316_v50, %v3317_v15  ;;  %v12220_v50 = vrot.slane %v2707_v62, %v9858_v53  ;;  %v12226_v16 = vrot.slane %v2708_v5, %v9858_v53  ;;  %v3304_v52 = vrot.slane %v2613_v18, 1 }
 0x581   :  { %v3345_v51 = vcombine.low %v3308_v35, %v3318_v4  ;;  %v3346_v22 = vcombine.high %v3308_v35, %v3318_v4  ;;  %v2607_v5 = vsel %vm113_vm1, 0.0, %v2580_v45  ;;  %v2610_v45 = vsel %vm113_vm1, 0.0, %v2586_v46 }
 0x582   :  { %3069 = vrot.lane.b32.xlu1 %v12157_v2, %s9610_s11  ;;  %3535 = vrot.lane.b32.xlu0 %v3303_v21, %s9609_s10  ;;  %v12267_v34 = vsel %vm824_vm4, %v3302_v19, %v3304_v52  ;;  %v2619_v36 = vsel %vm126_vm2, %v2607_v5, 0.0  ;;  %v2622_v44 = vsel %vm126_vm2, %v2610_v45, 0.0  ;;  %v16407_v5 = vrot.slane %v12173_v31, 1 }
 0x583   :  { %v12238_v62 = vrot.slane %v3345_v51, %v9858_v53  ;;  %v12245_v25 = vrot.slane %v3346_v22, %v9858_v53  ;;  %v2616_v51 = vsel %vm126_vm2, %v2604_v54, 0.0  ;;  %v3314_v9 = vrot.slane %v2619_v36, 1 }
 0x584   :  { %v3309_v17 = vrot.slane %v2616_v51, 1  ;;  %v3319_v19 = vrot.slane %v2622_v44, 1  ;;  %v3998_v46 = vrot.slane %v2613_v18, 2  ;;  %v16415_v18 = vcombine.high %v12138_v58, %v12132_v61 }
 0x585   :  { %v3378_v54 = vcombine.high %v12251_v7, %v12245_v25  ;;  %v12284_v52 = vsel %vm824_vm4, %v16407_v5, %v3314_v9  ;;  %v4001_v9 = vrot.slane %v12165_v30, 2 }
 0x586   :  { %3073 = vrot.lane.b32.xlu1 %v12165_v30, %s9610_s11  ;;  %3539 = vrot.lane.b32.xlu0 %v3308_v35, %s9609_s10  ;;  %v12275_v22 = vsel %vm824_vm4, %v3307_v29, %v3309_v17  ;;  %v3996_v17 = vrot.slane %v12157_v2, 2  ;;  %v3995_v29 = vrot.slane %v12106_v26, 2  ;;  %v4006_v2 = vrot.slane %v12173_v31, 2 }
 0x587   :  { %v4005_v26 = vrot.slane %v12123_v41, 2  ;;  %v2670_v5 = vrot.slane %v16415_v18, %v9888_v11 }
 0x589   :  { %v12315_v30 = vsel %vm1519_vm3, %v4005_v26, %v4006_v2 }
 0x58a   :  { %3077 = vrot.lane.b32.xlu1 %v12173_v31, %s9610_s11  ;;  %3543 = vrot.lane.b32.xlu0 %v3313_v60, %s9609_s10  ;;  %16410 = vst [vmem:[#allocation122_spill] sm:$0xff] %v12315_v30  ;;  %v16411_v31 = vcombine.low %v12138_v58, %v12132_v61  ;;  %v4013_v58 = vrot.slane %v2622_v44, 2 }
 0x58c   :  { %v12325_v45 = vrot.slane %v16411_v31, %v9888_v11 }
 0x58e   :  { %3081 = vrot.lane.b32.xlu1 %v12189_v10, %s9610_s11  ;;  %3547 = vrot.lane.b32.xlu0 %v3318_v4, %s9609_s10  ;;  %16412 = vst [vmem:[#allocation123_spill] sm:$0xff] %v12325_v45 }
 0x592   :  { %3537 = vrot.lane.b32.xlu1 %v12267_v34, %s9609_s10  ;;  %3765 = vrot.lane.b32.xlu0 %v3303_v21, %s9610_s11  ;;  %v3320_v21 = vsel %vm824_vm4, %v3317_v15, %v3319_v19  ;;  %v4000_v15 = vrot.slane %v12112_v38, 2  ;;  %v4011_v38 = vrot.slane %v12189_v10, 2  ;;  %v4003_v10 = vrot.slane %v2616_v51, 2 }
 0x593   :  { %v12334_v19 = vsel %vm1519_vm3, %v3996_v17, %v3998_v46  ;;  %v2688_v51 = vcombine.high %v2670_v5, %v16112_v27  ;;  %v3414_v31 = vcombine.high %v12275_v22, %v3320_v21 }
 0x594   :  { %16414 = vst [vmem:[#allocation125_spill] sm:$0xff] %v12334_v19  ;;  %v12368_v46 = vsel %vm1519_vm3, %v4011_v38, %v4013_v58 }
 0x595   :  { %16420 = vst [vmem:[#allocation128_spill] sm:$0xff] %v12368_v46 }
 0x596   :  { %3541 = vrot.lane.b32.xlu1 %v12275_v22, %s9609_s10  ;;  %3769 = vrot.lane.b32.xlu0 %v3308_v35, %s9610_s11  ;;  %v12297_v35 = vsel %vm1519_vm3, %v3995_v29, %v3996_v17  ;;  %v4008_v29 = vrot.slane %v2619_v36, 2  ;;  %v16417_v17 = vcombine.low %v12141_v8, %v12135_v3 }
 0x597   :  { %16408 = vst [vmem:[#allocation120_spill] sm:$0xff] %v12297_v35 }
 0x598   :  { %v2679_v26 = vrot.slane %v16417_v17, %v9888_v11  ;;  %v12357_v61 = vsel %vm1519_vm3, %v4006_v2, %v4008_v29  ;;  %v3413_v2 = vcombine.low %v12275_v22, %v3320_v21  ;;  %v16425_v17 = vcombine.high %v12223_v39, %v12226_v16 }
 0x599   :  { %16418 = vst [vmem:[#allocation127_spill] sm:$0xff] %v12357_v61 }
 0x59a   :  { %3545 = vrot.lane.b32.xlu1 %v12284_v52, %s9609_s10  ;;  %3773 = vrot.lane.b32.xlu0 %v3313_v60, %s9610_s11  ;;  %v12306_v60 = vsel %vm1519_vm3, %v4000_v15, %v4001_v9  ;;  %v12346_v15 = vsel %vm1519_vm3, %v4001_v9, %v4003_v10  ;;  %v2689_v36 = vcombine.high %v2679_v26, %v16112_v27 }
 0x59b   :  { %16409 = vst [vmem:[#allocation121_spill] sm:$0xff] %v12306_v60  ;;  %16416 = vst [vmem:[#allocation126_spill] sm:$0xff] %v12346_v15  ;;  %v16419_v9 = vcombine.high %v12141_v8, %v12135_v3  ;;  %v16421_v3 = vcombine.high %v12217_v56, %v12220_v50  ;;  %v12385_v10 = vrot.slane %v3413_v2, %v9858_v53 }
 0x59d   :  { %v2738_v8 = vrot.slane %v16421_v3, %v9888_v11  ;;  %v4092_v3 = vcombine.high %v12334_v19, %v12357_v61 }
 0x59e   :  { %3549 = vrot.lane.b32.xlu1 %v3320_v21, %s9609_s10  ;;  %3777 = vrot.lane.b32.xlu0 %v3318_v4, %s9610_s11  ;;  %v4010_v4 = vrot.slane %v12115_v49, 2  ;;  %v2687_v49 = vcombine.high %v12325_v45, %v16112_v27 }
 0x5a0   :  { %v12329_v41 = vsel %vm1519_vm3, %v4010_v4, %v4011_v38  ;;  %v2686_v4 = vrot.slane %v16419_v9, %v9888_v11  ;;  %v3397_v38 = vcombine.low %v12267_v34, %v12284_v52  ;;  %v4108_v9 = vcombine.high %v12346_v15, %v12368_v46 }
 0x5a1   :  { %16413 = vst [vmem:[#allocation124_spill] sm:$0xff] %v12329_v41 }
 0x5a2   :  { %3767 = vrot.lane.b32.xlu1 %v12267_v34, %s9610_s11  ;;  %4229 = vrot.lane.b32.xlu0 %v12297_v35, %s9609_s10  ;;  %v2690_v44 = vcombine.high %v2686_v4, %v16112_v27  ;;  %v12395_v29 = vrot.slane %v3397_v38, %v9858_v53 }
 0x5a6   :  { %3771 = vrot.lane.b32.xlu1 %v12275_v22, %s9610_s11  ;;  %4233 = vrot.lane.b32.xlu0 %v12306_v60, %s9609_s10  ;;  %v16423_v22 = vcombine.low %v12217_v56, %v12220_v50  ;;  %v4107_v50 = vcombine.low %v12346_v15, %v12368_v46 }
 0x5aa   :  { %3775 = vrot.lane.b32.xlu1 %v12284_v52, %s9610_s11  ;;  %4237 = vrot.lane.b32.xlu0 %v12315_v30, %s9609_s10 }
 0x5ae   :  { %3779 = vrot.lane.b32.xlu1 %v3320_v21, %s9610_s11  ;;  %4241 = vrot.lane.b32.xlu0 %v12329_v41, %s9609_s10  ;;  %v12402_v21 = vrot.slane %v16423_v22, %v9888_v11 }
 0x5b0   :  { %16424 = vst [vmem:[#allocation129_spill] sm:$0xff] %v12402_v21  ;;  %v2755_v56 = vcombine.high %v12402_v21, %v16112_v27 }
 0x5b2   :  { %4231 = vrot.lane.b32.xlu1 %v12334_v19, %s9609_s10  ;;  %2760 = vrot.lane.b32.xlu0 %v2687_v49, %s9616_s15  ;;  %v16422_v49 = vcombine.low %v12223_v39, %v12226_v16  ;;  %v4091_v39 = vcombine.low %v12334_v19, %v12357_v61 }
 0x5b4   :  { %v2747_v18 = vrot.slane %v16422_v49, %v9888_v11  ;;  %v12439_v38 = vrot.slane %v4091_v39, %v9858_v53 }
 0x5b6   :  { %4235 = vrot.lane.b32.xlu1 %v12346_v15, %s9609_s10  ;;  %2768 = vrot.lane.b32.xlu0 %v2688_v51, %s9617_s16  ;;  %v3428_v51 = vrot.slane %v3414_v31, %v9858_v53  ;;  %v4122_v31 = vrot.slane %v4108_v9, %v9858_v53  ;;  %v4023_v9 = vcombine.low %v12297_v35, %v12315_v30 }
 0x5ba   :  { %4239 = vrot.lane.b32.xlu1 %v12357_v61, %s9609_s10  ;;  %2776 = vrot.lane.b32.xlu0 %v2689_v36, %s9618_s17  ;;  %v2756_v36 = vcombine.high %v2738_v8, %v16112_v27 }
 0x5be   :  { %4243 = vrot.lane.b32.xlu1 %v12368_v46, %s9609_s10  ;;  %2784 = vrot.lane.b32.xlu0 %v2690_v44, %s9619_s18 }
 0x5c2   :  { %2764 = vrot.lane.b32.xlu1 %v2670_v5, %s9613_s12  ;;  %2792 = vrot.lane.b32.xlu0 %v2738_v8, %s9613_s12  ;;  %v3398_v5 = vcombine.high %v12267_v34, %v12284_v52  ;;  %v3430_v34 = vcombine.high %v12395_v29, %v12385_v10  ;;  %v2757_v8 = vcombine.high %v2747_v18, %v16112_v27 }
 0x5c4   :  { %v3412_v52 = vrot.slane %v3398_v5, %v9858_v53  ;;  %v12419_v58 = vrot.slane %v3430_v34, %v9888_v11 }
 0x5c6   :  { %2772 = vrot.lane.b32.xlu1 %v2679_v26, %s9614_s13  ;;  %2800 = vrot.lane.b32.xlu0 %v2747_v18, %s9614_s13  ;;  %v2754_v26 = vrot.slane %v16425_v17, %v9888_v11  ;;  %v3445_v16 = vcombine.low %v3412_v52, %v3428_v51  ;;  %v3446_v2 = vcombine.high %v3412_v52, %v3428_v51 }
 0x5c7   :  { %v4106_v51 = vrot.slane %v4092_v3, %v9858_v53 }
 0x5c8   :  { %v12433_v44 = vrot.slane %v3445_v16, %v9888_v11  ;;  %v12448_v5 = vrot.slane %v3446_v2, %v9888_v11  ;;  %v2758_v17 = vcombine.high %v2754_v26, %v16112_v27  ;;  %v4040_v2 = vcombine.high %v12306_v60, %v12329_v41 }
 0x5c9   :  { %v4139_v52 = vcombine.low %v4106_v51, %v4122_v31 }
 0x5ca   :  { %2780 = vrot.lane.b32.xlu1 %v2686_v4, %s9615_s14  ;;  %2808 = vrot.lane.b32.xlu0 %v2754_v26, %s9615_s14  ;;  %v12430_v4 = vrot.slane %v4107_v50, %v9858_v53  ;;  %v16426_v50 = vcombine.high %v12248_v6, %v12238_v62 }
 0x5cb   :  { %v12474_v39 = vrot.slane %v4139_v52, %v9888_v11 }
 0x5cc   :  { %v4124_v22 = vcombine.high %v12439_v38, %v12430_v4  ;;  %v3376_v16 = vrot.slane %v16426_v50, %v9888_v11  ;;  %v4024_v50 = vcombine.high %v12297_v35, %v12315_v30 }
 0x5ce   :  { %2788 = vrot.lane.b32.xlu1 %v2755_v56, %s9616_s15  ;;  %3498 = vrot.lane.b32.xlu0 %v12419_v58, %s9613_s12  ;;  %v12460_v34 = vrot.slane %v4124_v22, %v9888_v11  ;;  %v4039_v56 = vcombine.low %v12306_v60, %v12329_v41  ;;  %v4038_v21 = vrot.slane %v4024_v50, %v9858_v53 }
 0x5d0   :  { %v4047_v3 = vrot.slane %v4039_v56, %v9858_v53  ;;  %v4031_v56 = vrot.slane %v4023_v9, %v9858_v53 }
 0x5d2   :  { %2796 = vrot.lane.b32.xlu1 %v2756_v36, %s9617_s16  ;;  %3506 = vrot.lane.b32.xlu0 %v12433_v44, %s9614_s13  ;;  %v4140_v36 = vcombine.high %v4106_v51, %v4122_v31  ;;  %v16428_v51 = vcombine.low %v12248_v6, %v12238_v62  ;;  %v3392_v6 = vrot.slane %v3378_v54, %v9888_v11 }
 0x5d3   :  { %v4056_v62 = vcombine.high %v4031_v56, %v4047_v3  ;;  %v4055_v41 = vcombine.low %v4031_v56, %v4047_v3 }
 0x5d4   :  { %v12445_v49 = vpop.permute.xlu0 %2837  ;;  %v12491_v31 = vrot.slane %v4140_v36, %v9888_v11  ;;  %v12497_v52 = vrot.slane %v16428_v51, %v9888_v11 }
 0x5d5   :  { %v4070_v45 = vrot.slane %v4056_v62, %v9888_v11 }
 0x5d6   :  { %2804 = vrot.lane.b32.xlu1 %v2757_v8, %s9618_s17  ;;  %3514 = vrot.lane.b32.xlu0 %v12448_v5, %s9615_s14  ;;  %v16427_v8 = vcombine.low %v12251_v7, %v12245_v25  ;;  %16429 = vst [vmem:[#allocation130_spill] sm:$0xff] %v12497_v52  ;;  %v3393_v9 = vcombine.high %v12497_v52, %v16112_v27 }
 0x5d7   :  { %v3394_v25 = vcombine.high %v3376_v16, %v16112_v27 }
 0x5d8   :  { %v12457_v18 = vpop.permute.xlu0 %2841  ;;  %v3385_v22 = vrot.slane %v16427_v8, %v9888_v11  ;;  %v4054_v8 = vrot.slane %v4040_v2, %v9858_v53 }
 0x5da   :  { %2812 = vrot.lane.b32.xlu1 %v2758_v17, %s9619_s18  ;;  %4192 = vrot.lane.b32.xlu0 %v12460_v34, %s9613_s12  ;;  %v4071_v46 = vcombine.low %v4038_v21, %v4054_v8  ;;  %v4072_v50 = vcombine.high %v4038_v21, %v4054_v8  ;;  %v3395_v62 = vcombine.high %v3385_v22, %v16112_v27 }
 0x5dc   :  { %v12471_v26 = vpop.permute.xlu0 %2845  ;;  %v4079_v54 = vrot.slane %v4071_v46, %v9888_v11 }
 0x5de   :  { %3470 = vrot.lane.b32.xlu1 %v3376_v16, %s9613_s12  ;;  %4200 = vrot.lane.b32.xlu0 %v12474_v39, %s9614_s13 }
 0x5e0   :  { %v12488_v17 = vpop.permute.xlu0 %2849 }
 0x5e2   :  { %3478 = vrot.lane.b32.xlu1 %v3385_v22, %s9614_s13  ;;  %4208 = vrot.lane.b32.xlu0 %v12491_v31, %s9615_s14  ;;  %v2877_v22 = vcombine.low %v12457_v18, %v12488_v17 }
 0x5e4   :  { %v12506_v36 = vpop.permute.xlu1 %2839  ;;  %v12512_v51 = vpop.permute.xlu0 %3067 }
 0x5e6   :  { %3486 = vrot.lane.b32.xlu1 %v3392_v6, %s9615_s14  ;;  %3466 = vrot.lane.b32.xlu0 %v3393_v9, %s9616_s15  ;;  %v3429_v9 = vcombine.low %v12395_v29, %v12385_v10  ;;  %v3396_v10 = vcombine.high %v3392_v6, %v16112_v27  ;;  %v12547_v29 = vrot.slane %v4055_v41, %v9888_v11 }
 0x5e7   :  { %v2861_v41 = vcombine.low %v12445_v49, %v12471_v26 }
 0x5e8   :  { %v12519_v2 = vpop.permute.xlu1 %2843  ;;  %v12522_v61 = vpop.permute.xlu0 %3071  ;;  %v12541_v15 = vrot.slane %v3429_v9, %v9888_v11  ;;  %16431 = vst [vmem:[#allocation132_spill] sm:$0xff] %v12547_v29  ;;  %v4087_v8 = vcombine.high %v12547_v29, %v16112_v27  ;;  %v2885_v9 = vrot.slane %v2877_v22, %v9858_v53  ;;  %v2878_v22 = vcombine.high %v12457_v18, %v12488_v17 }
 0x5ea   :  { %4164 = vrot.lane.b32.xlu1 %v4070_v45, %s9613_s12  ;;  %3474 = vrot.lane.b32.xlu0 %v3394_v25, %s9617_s16  ;;  %v4086_v25 = vrot.slane %v4072_v50, %v9888_v11  ;;  %16430 = vst [vmem:[#allocation131_spill] sm:$0xff] %v12541_v15  ;;  %v3461_v3 = vcombine.high %v12541_v15, %v16112_v27 }
 0x5eb   :  { %v3462_v50 = vcombine.high %v12419_v58, %v16112_v27  ;;  %v4123_v58 = vcombine.low %v12439_v38, %v12430_v4  ;;  %v3464_v4 = vcombine.high %v12448_v5, %v16112_v27  ;;  %v2892_v38 = vrot.slane %v2878_v22, %v9858_v53 }
 0x5ec   :  { %v12527_v7 = vpop.permute.xlu1 %2847  ;;  %v12532_v52 = vpop.permute.xlu0 %3075 }
 0x5ee   :  { %4172 = vrot.lane.b32.xlu1 %v4079_v54, %s9614_s13  ;;  %3482 = vrot.lane.b32.xlu0 %v3395_v62, %s9618_s17 }
 0x5f0   :  { %v12537_v16 = vpop.permute.xlu1 %2851  ;;  %v12543_v46 = vpop.permute.xlu0 %3079 }
 0x5f2   :  { %4180 = vrot.lane.b32.xlu1 %v4086_v25, %s9615_s14  ;;  %3490 = vrot.lane.b32.xlu0 %v3396_v10, %s9619_s18  ;;  %v4088_v10 = vcombine.high %v4070_v45, %v16112_v27  ;;  %v4089_v45 = vcombine.high %v4079_v54, %v16112_v27  ;;  %v4090_v54 = vcombine.high %v4086_v25, %v16112_v27 }
 0x5f4   :  { %v12551_v21 = vpop.permute.xlu1 %3069  ;;  %v12557_v56 = vpop.permute.xlu0 %3535 }
 0x5f6   :  { %3494 = vrot.lane.b32.xlu1 %v3461_v3, %s9616_s15  ;;  %4160 = vrot.lane.b32.xlu0 %v4087_v8, %s9616_s15  ;;  %v2869_v3 = vrot.slane %v2861_v41, %v9858_v53  ;;  %v3463_v8 = vcombine.high %v12433_v44, %v16112_v27  ;;  %v2862_v41 = vcombine.high %v12445_v49, %v12471_v26 }
 0x5f7   :  { %v12596_v44 = vrot.slane %v4123_v58, %v9888_v11  ;;  %v4156_v58 = vcombine.high %v12460_v34, %v16112_v27  ;;  %v4157_v34 = vcombine.high %v12474_v39, %v16112_v27 }
 0x5f8   :  { %v12565_v6 = vpop.permute.xlu1 %3073  ;;  %v12570_v62 = vpop.permute.xlu0 %3539  ;;  %v2893_v15 = vcombine.low %v2869_v3, %v2885_v9  ;;  %v2894_v18 = vcombine.high %v2869_v3, %v2885_v9  ;;  %v2876_v49 = vrot.slane %v2862_v41, %v9858_v53 }
 0x5f9   :  { %16432 = vst [vmem:[#allocation133_spill] sm:$0xff] %v12596_v44  ;;  %v4155_v26 = vcombine.high %v12596_v44, %v16112_v27 }
 0x5fa   :  { %3502 = vrot.lane.b32.xlu1 %v3462_v50, %s9617_s16  ;;  %4168 = vrot.lane.b32.xlu0 %v4088_v10, %s9617_s16  ;;  %v12603_v10 = vrot.slane %v2893_v15, %v9888_v11  ;;  %v2908_v15 = vrot.slane %v2894_v18, %v9888_v11  ;;  %v2910_v22 = vcombine.high %v2876_v49, %v2892_v38 }
 0x5fb   :  { %v2929_v18 = vcombine.low %v12506_v36, %v12527_v7 }
 0x5fc   :  { %v12576_v29 = vpop.permute.xlu1 %3077  ;;  %v12584_v30 = vpop.permute.xlu0 %3543  ;;  %16433 = vst [vmem:[#allocation134_spill] sm:$0xff] %v12603_v10  ;;  %v2925_v25 = vcombine.high %v12603_v10, %v16112_v27 }
 0x5fd   :  { %v2937_v10 = vrot.slane %v2929_v18, %v9858_v53  ;;  %v3091_v18 = vcombine.low %v12512_v51, %v12532_v52 }
 0x5fe   :  { %3510 = vrot.lane.b32.xlu1 %v3463_v8, %s9618_s17  ;;  %4176 = vrot.lane.b32.xlu0 %v4089_v45, %s9618_s17  ;;  %v2909_v8 = vcombine.low %v2876_v49, %v2892_v38  ;;  %v2945_v45 = vcombine.low %v12519_v2, %v12537_v16  ;;  %v2946_v38 = vcombine.high %v12519_v2, %v12537_v16 }
 0x5ff   :  { %v4158_v2 = vcombine.high %v12491_v31, %v16112_v27 }
 0x600   :  { %v12591_v50 = vpop.permute.xlu1 %3081  ;;  %v12599_v17 = vpop.permute.xlu0 %3547  ;;  %v12640_v49 = vrot.slane %v2945_v45, %v9858_v53  ;;  %v2960_v16 = vrot.slane %v2946_v38, %v9858_v53 }
 0x602   :  { %3518 = vrot.lane.b32.xlu1 %v3464_v4, %s9619_s18  ;;  %4184 = vrot.lane.b32.xlu0 %v4090_v54, %s9619_s18  ;;  %v2926_v4 = vcombine.high %v2908_v15, %v16112_v27  ;;  %v2917_v54 = vrot.slane %v2909_v8, %v9888_v11  ;;  %v2962_v45 = vcombine.high %v2937_v10, %v12640_v49 }
 0x604   :  { %v12608_v5 = vpop.permute.xlu1 %3537  ;;  %v12612_v9 = vpop.permute.xlu0 %3765  ;;  %v2927_v8 = vcombine.high %v2917_v54, %v16112_v27  ;;  %v2976_v19 = vrot.slane %v2962_v45, %v9888_v11  ;;  %v3092_v45 = vcombine.high %v12512_v51, %v12532_v52 }
 0x606   :  { %4188 = vrot.lane.b32.xlu1 %v4155_v26, %s9616_s15  ;;  %2998 = vrot.lane.b32.xlu0 %v2925_v25, %s9616_s15 }
 0x608   :  { %v12619_v3 = vpop.permute.xlu1 %3541  ;;  %v12625_v41 = vpop.permute.xlu0 %3769 }
 0x60a   :  { %4196 = vrot.lane.b32.xlu1 %v4156_v58, %s9617_s16  ;;  %3006 = vrot.lane.b32.xlu0 %v2926_v4, %s9617_s16  ;;  %v2924_v58 = vrot.slane %v2910_v22, %v9888_v11  ;;  %v2930_v4 = vcombine.high %v12506_v36, %v12527_v7  ;;  %v3107_v22 = vcombine.low %v12522_v61, %v12543_v46 }
 0x60c   :  { %v12633_v26 = vpop.permute.xlu1 %3545  ;;  %v12642_v25 = vpop.permute.xlu0 %3773  ;;  %v2928_v36 = vcombine.high %v2924_v58, %v16112_v27  ;;  %v2944_v7 = vrot.slane %v2930_v4, %v9858_v53  ;;  %v3108_v4 = vcombine.high %v12522_v61, %v12543_v46 }
 0x60e   :  { %4204 = vrot.lane.b32.xlu1 %v4157_v34, %s9618_s17  ;;  %3014 = vrot.lane.b32.xlu0 %v2927_v8, %s9618_s17  ;;  %v2977_v38 = vcombine.low %v2944_v7, %v2960_v16  ;;  %v3115_v8 = vrot.slane %v3107_v22, %v9858_v53 }
 0x610   :  { %v12651_v39 = vpop.permute.xlu1 %3549  ;;  %v12659_v34 = vpop.permute.xlu0 %3777  ;;  %v2985_v22 = vrot.slane %v2977_v38, %v9888_v11 }
 0x612   :  { %4212 = vrot.lane.b32.xlu1 %v4158_v2, %s9619_s18  ;;  %3022 = vrot.lane.b32.xlu0 %v2928_v36, %s9619_s18  ;;  %v3099_v2 = vrot.slane %v3091_v18, %v9858_v53  ;;  %v2978_v36 = vcombine.high %v2944_v7, %v2960_v16  ;;  %v3106_v7 = vrot.slane %v3092_v45, %v9858_v53 }
 0x614   :  { %v12667_v31 = vpop.permute.xlu1 %3767  ;;  %v12670_v44 = vpop.permute.xlu0 %4229  ;;  %v3123_v35 = vcombine.low %v3099_v2, %v3115_v8  ;;  %v3124_v18 = vcombine.high %v3099_v2, %v3115_v8  ;;  %v12693_v46 = vrot.slane %v2978_v36, %v9888_v11  ;;  %v3175_v36 = vcombine.low %v12565_v6, %v12591_v50 }
 0x616   :  { %3002 = vrot.lane.b32.xlu1 %v2908_v15, %s9613_s12  ;;  %3030 = vrot.lane.b32.xlu0 %v2976_v19, %s9613_s12  ;;  %v3122_v15 = vrot.slane %v3108_v4, %v9858_v53  ;;  %v12696_v16 = vrot.slane %v3123_v35, %v9888_v11  ;;  %v2961_v35 = vcombine.low %v2937_v10, %v12640_v49 }
 0x618   :  { %v12678_v60 = vpop.permute.xlu1 %3771  ;;  %v12680_v14 = vpop.permute.xlu0 %4233  ;;  %16434 = vst [vmem:[#allocation135_spill] sm:$0xff] %v12696_v16  ;;  %v3139_v52 = vcombine.low %v3106_v7, %v3122_v15  ;;  %v3155_v8 = vcombine.high %v12696_v16, %v16112_v27  ;;  %v3159_v16 = vcombine.low %v12551_v21, %v12576_v29 }
 0x61a   :  { %3010 = vrot.lane.b32.xlu1 %v2917_v54, %s9614_s13  ;;  %3038 = vrot.lane.b32.xlu0 %v2985_v22, %s9614_s13  ;;  %v3138_v54 = vrot.slane %v3124_v18, %v9888_v11  ;;  %v3147_v4 = vrot.slane %v3139_v52, %v9888_v11  ;;  %v3183_v52 = vrot.slane %v3175_v36, %v9858_v53 }
 0x61c   :  { %v12688_v20 = vpop.permute.xlu1 %3775  ;;  %v12690_v61 = vpop.permute.xlu0 %4237  ;;  %v3156_v18 = vcombine.high %v3138_v54, %v16112_v27 }
 0x61e   :  { %3018 = vrot.lane.b32.xlu1 %v2924_v58, %s9615_s14  ;;  %3046 = vrot.lane.b32.xlu0 %v12693_v46, %s9615_s14  ;;  %v3140_v58 = vcombine.high %v3106_v7, %v3122_v15  ;;  %v12728_v15 = vrot.slane %v2961_v35, %v9888_v11  ;;  %v3176_v7 = vcombine.high %v12565_v6, %v12591_v50 }
 0x620   :  { %v12702_v51 = vpop.permute.xlu1 %3779  ;;  %v12705_v38 = vpop.permute.xlu0 %4241  ;;  %v3154_v49 = vrot.slane %v3140_v58, %v9888_v11  ;;  %16436 = vst [vmem:[#allocation137_spill] sm:$0xff] %v12728_v15  ;;  %v2993_v6 = vcombine.high %v12728_v15, %v16112_v27  ;;  %v3190_v50 = vrot.slane %v3176_v7, %v9858_v53  ;;  %v3643_v15 = vcombine.low %v12619_v3, %v12651_v39 }
 0x622   :  { %3232 = vrot.lane.b32.xlu1 %v3138_v54, %s9613_s12  ;;  %3228 = vrot.lane.b32.xlu0 %v3155_v8, %s9616_s15  ;;  %v3157_v8 = vcombine.high %v3147_v4, %v16112_v27 }
 0x624   :  { %v12712_v2 = vpop.permute.xlu1 %4231  ;;  %v12717_v45 = vpop.permute.xlu0 %2760 }
 0x625   :  { %16435 = vst [vmem:[#allocation136_spill] sm:$0xff] %v12717_v45  ;;  %v3167_v45 = vrot.slane %v3159_v16, %v9858_v53  ;;  %v2994_v16 = vcombine.high %v2976_v19, %v16112_v27  ;;  %v2995_v19 = vcombine.high %v2985_v22, %v16112_v27 }
 0x626   :  { %3240 = vrot.lane.b32.xlu1 %v3147_v4, %s9614_s13  ;;  %3236 = vrot.lane.b32.xlu0 %v3156_v18, %s9617_s16  ;;  %v3160_v18 = vcombine.high %v12551_v21, %v12576_v29  ;;  %v3158_v4 = vcombine.high %v3154_v49, %v16112_v27 }
 0x627   :  { %v3192_v58 = vcombine.high %v3167_v45, %v3183_v52 }
 0x628   :  { %v12724_v10 = vpop.permute.xlu1 %4235  ;;  %v12733_v54 = vpop.permute.xlu0 %2768  ;;  %v3174_v29 = vrot.slane %v3160_v18, %v9858_v53  ;;  %v3191_v18 = vcombine.low %v3167_v45, %v3183_v52  ;;  %v3628_v45 = vcombine.high %v12608_v5, %v12633_v26 }
 0x629   :  { %16437 = vst [vmem:[#allocation138_spill] sm:$0xff] %v12733_v54  ;;  %v3644_v54 = vcombine.high %v12619_v3, %v12651_v39  ;;  %v2996_v3 = vcombine.high %v12693_v46, %v16112_v27 }
 0x62a   :  { %3248 = vrot.lane.b32.xlu1 %v3154_v49, %s9615_s14  ;;  %3244 = vrot.lane.b32.xlu0 %v3157_v8, %s9618_s17  ;;  %v3207_v8 = vcombine.low %v3174_v29, %v3190_v50  ;;  %v3627_v49 = vcombine.low %v12608_v5, %v12633_v26  ;;  %v12787_v39 = vrot.slane %v3191_v18, %v9888_v11 }
 0x62b   :  { %v3642_v26 = vrot.slane %v3628_v45, %v9858_v53  ;;  %v3575_v45 = vcombine.low %v12570_v62, %v12599_v17 }
 0x62c   :  { %v12741_v35 = vpop.permute.xlu1 %4239  ;;  %v12746_v36 = vpop.permute.xlu0 %2776  ;;  %v12779_v52 = vrot.slane %v3627_v49, %v9858_v53  ;;  %16443 = vst [vmem:[#allocation144_spill] sm:$0xff] %v12787_v39  ;;  %v3223_v46 = vcombine.high %v12787_v39, %v16112_v27 }
 0x62d   :  { %16438 = vst [vmem:[#allocation139_spill] sm:$0xff] %v12746_v36  ;;  %v3206_v36 = vrot.slane %v3192_v58, %v9888_v11 }
 0x62e   :  { %3026 = vrot.lane.b32.xlu1 %v2993_v6, %s9616_s15  ;;  %3252 = vrot.lane.b32.xlu0 %v3158_v4, %s9619_s18  ;;  %v3208_v4 = vcombine.high %v3174_v29, %v3190_v50 }
 0x62f   :  { %v3224_v39 = vcombine.high %v3206_v36, %v16112_v27 }
 0x630   :  { %v12752_v21 = vpop.permute.xlu1 %4243  ;;  %v12757_v7 = vpop.permute.xlu0 %2784  ;;  %v3222_v5 = vrot.slane %v3208_v4, %v9888_v11  ;;  %v3857_v4 = vcombine.low %v12667_v31, %v12688_v20 }
 0x631   :  { %16439 = vst [vmem:[#allocation140_spill] sm:$0xff] %v12757_v7  ;;  %v12770_v7 = vrot.slane %v3643_v15, %v9858_v53  ;;  %v3658_v15 = vrot.slane %v3644_v54, %v9858_v53  ;;  %v3873_v54 = vcombine.low %v12678_v60, %v12702_v51 }
 0x632   :  { %3034 = vrot.lane.b32.xlu1 %v2994_v16, %s9617_s16  ;;  %3260 = vrot.lane.b32.xlu0 %v3206_v36, %s9613_s12  ;;  %v3215_v16 = vrot.slane %v3207_v8, %v9888_v11  ;;  %v3858_v36 = vcombine.high %v12667_v31, %v12688_v20 }
 0x633   :  { %v3660_v50 = vcombine.high %v12779_v52, %v12770_v7  ;;  %v3675_v49 = vcombine.low %v3642_v26, %v3658_v15 }
 0x634   :  { %v12764_v6 = vpop.permute.xlu1 %2764  ;;  %v12772_v58 = vpop.permute.xlu0 %2792 }
 0x635   :  { %16440 = vst [vmem:[#allocation141_spill] sm:$0xff] %v12764_v6  ;;  %16441 = vst [vmem:[#allocation142_spill] sm:$0xff] %v12772_v58  ;;  %v3559_v58 = vcombine.low %v12557_v56, %v12584_v30 }
 0x636   :  { %3042 = vrot.lane.b32.xlu1 %v2995_v19, %s9618_s17  ;;  %3268 = vrot.lane.b32.xlu0 %v3215_v16, %s9614_s13  ;;  %v12807_v19 = vrot.slane %v3660_v50, %v9888_v11  ;;  %v3874_v50 = vcombine.high %v12678_v60, %v12702_v51  ;;  %v3576_v60 = vcombine.high %v12570_v62, %v12599_v17 }
 0x637   :  { %v3583_v51 = vrot.slane %v3575_v45, %v9858_v53  ;;  %v3567_v62 = vrot.slane %v3559_v58, %v9858_v53  ;;  %v3872_v17 = vrot.slane %v3858_v36, %v9858_v53  ;;  %v3805_v36 = vcombine.low %v12625_v41, %v12659_v34 }
 0x638   :  { %v12782_v22 = vpop.permute.xlu1 %2772  ;;  %v12792_v29 = vpop.permute.xlu0 %2800 }
 0x639   :  { %16442 = vst [vmem:[#allocation143_spill] sm:$0xff] %v12782_v22  ;;  %16444 = vst [vmem:[#allocation145_spill] sm:$0xff] %v12792_v29  ;;  %v3676_v29 = vcombine.high %v3642_v26, %v3658_v15  ;;  %v12835_v15 = vrot.slane %v3857_v4, %v9858_v53  ;;  %v3560_v4 = vcombine.high %v12557_v56, %v12584_v30 }
 0x63a   :  { %3050 = vrot.lane.b32.xlu1 %v2996_v3, %s9619_s18  ;;  %3276 = vrot.lane.b32.xlu0 %v3222_v5, %s9615_s14  ;;  %v3592_v45 = vcombine.high %v3567_v62, %v3583_v51 }
 0x63b   :  { %v3574_v56 = vrot.slane %v3560_v4, %v9858_v53  ;;  %v3789_v4 = vcombine.low %v12612_v9, %v12642_v25 }
 0x63c   :  { %v12798_v8 = vpop.permute.xlu1 %2780  ;;  %v12804_v18 = vpop.permute.xlu0 %2808 }
 0x63d   :  { %16445 = vst [vmem:[#allocation146_spill] sm:$0xff] %v12798_v8  ;;  %16446 = vst [vmem:[#allocation147_spill] sm:$0xff] %v12804_v18  ;;  %v12822_v18 = vrot.slane %v3873_v54, %v9858_v53  ;;  %v12827_v8 = vrot.slane %v3675_v49, %v9888_v11  ;;  %v3225_v49 = vcombine.high %v3215_v16, %v16112_v27 }
 0x63e   :  { %3256 = vrot.lane.b32.xlu1 %v3223_v46, %s9616_s15  ;;  %3728 = vrot.lane.b32.xlu0 %v12807_v19, %s9613_s12  ;;  %v12851_v54 = vrot.slane %v3676_v29, %v9888_v11  ;;  %v3590_v16 = vrot.slane %v3576_v60, %v9858_v53  ;;  %v3226_v29 = vcombine.high %v3222_v5, %v16112_v27 }
 0x63f   :  { %v3890_v20 = vcombine.high %v12835_v15, %v12822_v18  ;;  %v3606_v5 = vrot.slane %v3592_v45, %v9888_v11 }
 0x640   :  { %v12816_v3 = vpop.permute.xlu1 %2788  ;;  %v12824_v46 = vpop.permute.xlu0 %3498  ;;  %v3607_v58 = vcombine.low %v3574_v56, %v3590_v16 }
 0x641   :  { %16447 = vst [vmem:[#allocation148_spill] sm:$0xff] %v12816_v3  ;;  %16448 = vst [vmem:[#allocation149_spill] sm:$0xff] %v12824_v46  ;;  %v12867_v30 = vrot.slane %v3890_v20, %v9888_v11  ;;  %v16636_v3 = vld [vmem:[#allocation117_spill] sm:$0xff] }
 0x642   :  { %3264 = vrot.lane.b32.xlu1 %v3224_v39, %s9617_s16  ;;  %3736 = vrot.lane.b32.xlu0 %v12827_v8, %s9614_s13  ;;  %v3888_v39 = vrot.slane %v3874_v50, %v9858_v53 }
 0x644   :  { %v12842_v26 = vpop.permute.xlu1 %2796  ;;  %v12848_v31 = vpop.permute.xlu0 %3506 }
 0x645   :  { %16449 = vst [vmem:[#allocation150_spill] sm:$0xff] %v12842_v26  ;;  %16450 = vst [vmem:[#allocation151_spill] sm:$0xff] %v12848_v31  ;;  %v3905_v31 = vcombine.low %v3872_v17, %v3888_v39 }
 0x646   :  { %3272 = vrot.lane.b32.xlu1 %v3225_v49, %s9618_s17  ;;  %3744 = vrot.lane.b32.xlu0 %v12851_v54, %s9615_s14  ;;  %v3591_v49 = vcombine.low %v3567_v62, %v3583_v51  ;;  %v3813_v51 = vrot.slane %v3805_v36, %v9858_v53  ;;  %v3615_v62 = vrot.slane %v3607_v58, %v9888_v11 }
 0x647   :  { %v12881_v20 = vrot.slane %v3905_v31, %v9888_v11 }
 0x648   :  { %v12861_v50 = vpop.permute.xlu1 %2804  ;;  %v12864_v46 = vpop.permute.xlu0 %3514  ;;  %v12900_v45 = vrot.slane %v3591_v49, %v9888_v11  ;;  %v3625_v22 = vcombine.high %v3615_v62, %v16112_v27 }
 0x649   :  { %16451 = vst [vmem:[#allocation152_spill] sm:$0xff] %v12861_v50  ;;  %16452 = vst [vmem:[#allocation153_spill] sm:$0xff] %v12864_v46  ;;  %v3906_v46 = vcombine.high %v3872_v17, %v3888_v39 }
 0x64a   :  { %3280 = vrot.lane.b32.xlu1 %v3226_v29, %s9619_s18  ;;  %3958 = vrot.lane.b32.xlu0 %v12867_v30, %s9613_s12  ;;  %v3608_v29 = vcombine.high %v3574_v56, %v3590_v16  ;;  %16456 = vst [vmem:[#allocation157_spill] sm:$0xff] %v12900_v45  ;;  %v3790_v16 = vcombine.high %v12612_v9, %v12642_v25 }
 0x64b   :  { %v12897_v17 = vrot.slane %v3906_v46, %v9888_v11  ;;  %v3797_v56 = vrot.slane %v3789_v4, %v9858_v53  ;;  %v3623_v49 = vcombine.high %v12900_v45, %v16112_v27  ;;  %v4253_v45 = vcombine.low %v12670_v44, %v12690_v61 }
 0x64c   :  { %v12875_v60 = vpop.permute.xlu1 %2812  ;;  %v12878_v50 = vpop.permute.xlu0 %4192  ;;  %v3622_v46 = vrot.slane %v3608_v29, %v9888_v11  ;;  %v3804_v9 = vrot.slane %v3790_v16, %v9858_v53 }
 0x64d   :  { %16453 = vst [vmem:[#allocation154_spill] sm:$0xff] %v12875_v60  ;;  %16454 = vst [vmem:[#allocation155_spill] sm:$0xff] %v12878_v50  ;;  %v3806_v60 = vcombine.high %v12625_v41, %v12659_v34  ;;  %v3822_v34 = vcombine.high %v3797_v56, %v3813_v51  ;;  %v3821_v26 = vcombine.low %v3797_v56, %v3813_v51 }
 0x64e   :  { %3700 = vrot.lane.b32.xlu1 %v3606_v5, %s9613_s12  ;;  %3966 = vrot.lane.b32.xlu0 %v12881_v20, %s9614_s13  ;;  %v3626_v51 = vcombine.high %v3622_v46, %v16112_v27 }
 0x64f   :  { %v3820_v41 = vrot.slane %v3806_v60, %v9858_v53  ;;  %v4269_v60 = vcombine.low %v12680_v14, %v12705_v38 }
 0x650   :  { %v12891_v39 = vpop.permute.xlu1 %3470  ;;  %v12894_v31 = vpop.permute.xlu0 %4200 }
 0x651   :  { %16455 = vst [vmem:[#allocation156_spill] sm:$0xff] %v12894_v31  ;;  %v3837_v25 = vcombine.low %v3804_v9, %v3820_v41  ;;  %v3836_v31 = vrot.slane %v3822_v34, %v9888_v11  ;;  %v3838_v16 = vcombine.high %v3804_v9, %v3820_v41  ;;  %v3659_v41 = vcombine.low %v12779_v52, %v12770_v7 }
 0x652   :  { %3708 = vrot.lane.b32.xlu1 %v3615_v62, %s9614_s13  ;;  %3974 = vrot.lane.b32.xlu0 %v12897_v17, %s9615_s14  ;;  %v12950_v62 = vrot.slane %v3821_v26, %v9888_v11 }
 0x653   :  { %v12958_v52 = vrot.slane %v3659_v41, %v9888_v11 }
 0x654   :  { %v12909_v58 = vpop.permute.xlu1 %3478  ;;  %v12912_v36 = vpop.permute.xlu0 %4208  ;;  %16464 = vst [vmem:[#allocation165_spill] sm:$0xff] %v12950_v62  ;;  %v3853_v56 = vcombine.high %v12950_v62, %v16112_v27 }
 0x655   :  { %16457 = vst [vmem:[#allocation158_spill] sm:$0xff] %v12909_v58  ;;  %16458 = vst [vmem:[#allocation159_spill] sm:$0xff] %v12912_v36  ;;  %v3624_v36 = vcombine.high %v3606_v5, %v16112_v27  ;;  %v4261_v5 = vrot.slane %v4253_v45, %v9858_v53 }
 0x656   :  { %3716 = vrot.lane.b32.xlu1 %v3622_v46, %s9615_s14  ;;  %3696 = vrot.lane.b32.xlu0 %v3623_v49, %s9616_s15  ;;  %v4277_v49 = vrot.slane %v4269_v60, %v9858_v53  ;;  %v3852_v60 = vrot.slane %v3838_v16, %v9888_v11  ;;  %16466 = vst [vmem:[#allocation167_spill] sm:$0xff] %v12958_v52 }
 0x657   :  { %v3691_v46 = vcombine.high %v12958_v52, %v16112_v27 }
 0x658   :  { %v12921_v4 = vpop.permute.xlu1 %3486  ;;  %v12924_v29 = vpop.permute.xlu0 %3466  ;;  %v4285_v62 = vcombine.low %v4261_v5, %v4277_v49 }
 0x659   :  { %16459 = vst [vmem:[#allocation160_spill] sm:$0xff] %v12921_v4  ;;  %v3845_v4 = vrot.slane %v3837_v25, %v9888_v11 }
 0x65a   :  { %3930 = vrot.lane.b32.xlu1 %v3836_v31, %s9613_s12  ;;  %3704 = vrot.lane.b32.xlu0 %v3624_v36, %s9617_s16  ;;  %v4286_v36 = vcombine.high %v4261_v5, %v4277_v49  ;;  %v12994_v49 = vrot.slane %v4285_v62, %v9888_v11  ;;  %v16477_v5 = vld [vmem:[#allocation5_spill] sm:$0xff] }
 0x65c   :  { %v12932_v50 = vpop.permute.xlu1 %4164  ;;  %v12935_v34 = vpop.permute.xlu0 %3474  ;;  %v4300_v7 = vrot.slane %v4286_v36, %v9888_v11  ;;  %v3854_v36 = vcombine.high %v3836_v31, %v16112_v27  ;;  %v3889_v31 = vcombine.low %v12835_v15, %v12822_v18  ;;  %16474 = vst [vmem:[#allocation175_spill] sm:$0xff] %v12994_v49  ;;  %v3694_v18 = vcombine.high %v12851_v54, %v16112_v27 }
 0x65d   :  { %16460 = vst [vmem:[#allocation161_spill] sm:$0xff] %v12932_v50  ;;  %16461 = vst [vmem:[#allocation162_spill] sm:$0xff] %v12935_v34  ;;  %v16623_v50 = vld [vmem:[#allocation102_spill] sm:$0xff]  ;;  %v16644_v34 = vld [vmem:[#allocation116_spill] sm:$0xff] }
 0x65e   :  { %3938 = vrot.lane.b32.xlu1 %v3845_v4, %s9614_s13  ;;  %3712 = vrot.lane.b32.xlu0 %v3625_v22, %s9618_s17  ;;  %v13003_v15 = vrot.slane %v3889_v31, %v9888_v11 }
 0x660   :  { %v12943_v9 = vpop.permute.xlu1 %4172  ;;  %v12946_v25 = vpop.permute.xlu0 %3482  ;;  %16476 = vst [vmem:[#allocation177_spill] sm:$0xff] %v13003_v15  ;;  %v3921_v54 = vcombine.high %v13003_v15, %v16112_v27 }
 0x661   :  { %16462 = vst [vmem:[#allocation163_spill] sm:$0xff] %v12943_v9  ;;  %16463 = vst [vmem:[#allocation164_spill] sm:$0xff] %v12946_v25 }
 0x662   :  { %3946 = vrot.lane.b32.xlu1 %v3852_v60, %s9615_s14  ;;  %3720 = vrot.lane.b32.xlu0 %v3626_v51, %s9619_s18  ;;  %v3692_v51 = vcombine.high %v12807_v19, %v16112_v27  ;;  %v3856_v19 = vcombine.high %v3852_v60, %v16112_v27  ;;  %v16478_v60 = vld [vmem:[#allocation22_spill] sm:$0xff] }
 0x664   :  { %v12954_v22 = vpop.permute.xlu1 %4180  ;;  %v12960_v45 = vpop.permute.xlu0 %3490 }
 0x665   :  { %16465 = vst [vmem:[#allocation166_spill] sm:$0xff] %v12954_v22  ;;  %16467 = vst [vmem:[#allocation168_spill] sm:$0xff] %v12960_v45  ;;  %v3855_v22 = vcombine.high %v3845_v4, %v16112_v27  ;;  %v16631_v45 = vld [vmem:[#allocation23_spill] sm:$0xff] }
 0x666   :  { %4394 = vrot.lane.b32.xlu1 %v4300_v7, %s9613_s12  ;;  %3926 = vrot.lane.b32.xlu0 %v3853_v56, %s9616_s15 }
 0x668   :  { %v12966_v26 = vpop.permute.xlu1 %3494  ;;  %v12970_v16 = vpop.permute.xlu0 %4160 }
 0x669   :  { %16468 = vst [vmem:[#allocation169_spill] sm:$0xff] %v12966_v26  ;;  %16469 = vst [vmem:[#allocation170_spill] sm:$0xff] %v12970_v16  ;;  %v16632_v26 = vld [vmem:[#allocation103_spill] sm:$0xff] }
 0x66a   :  { %3724 = vrot.lane.b32.xlu1 %v3691_v46, %s9616_s15  ;;  %3934 = vrot.lane.b32.xlu0 %v3854_v36, %s9617_s16  ;;  %v3693_v36 = vcombine.high %v12827_v8, %v16112_v27  ;;  %v4989_v8 = vcombine.low %v11098_v33, %v11110_v37 }
 0x66c   :  { %v12975_v41 = vpop.permute.xlu1 %3502  ;;  %v12979_v56 = vpop.permute.xlu0 %4168 }
 0x66d   :  { %16470 = vst [vmem:[#allocation171_spill] sm:$0xff] %v12975_v41  ;;  %16471 = vst [vmem:[#allocation172_spill] sm:$0xff] %v12979_v56  ;;  %v16630_v41 = vld [vmem:[#allocation69_spill] sm:$0xff] }
 0x66e   :  { %3732 = vrot.lane.b32.xlu1 %v3692_v51, %s9617_s16  ;;  %3942 = vrot.lane.b32.xlu0 %v3855_v22, %s9618_s17  ;;  %v5005_v22 = vcombine.low %v16478_v60, %v16477_v5  ;;  %v4317_v51 = vcombine.high %v12994_v49, %v16112_v27  ;;  %v16487_v49 = vcombine.high %v11485_v24, %v11491_v47 }
 0x66f   :  { %v6056_v16 = vsel %vm331_vm5, %v16631_v45, %v16630_v41 }
 0x670   :  { %v12986_v46 = vpop.permute.xlu1 %3510  ;;  %v12990_v52 = vpop.permute.xlu0 %4176 }
 0x671   :  { %16472 = vst [vmem:[#allocation173_spill] sm:$0xff] %v12986_v46  ;;  %16473 = vst [vmem:[#allocation174_spill] sm:$0xff] %v12990_v52 }
 0x672   :  { %3740 = vrot.lane.b32.xlu1 %v3693_v36, %s9618_s17  ;;  %3950 = vrot.lane.b32.xlu0 %v3856_v19, %s9619_s18  ;;  %v4318_v19 = vcombine.high %v4300_v7, %v16112_v27  ;;  %v16484_v7 = vcombine.high %v11248_v28, %v11221_v48  ;;  %v13054_v48 = vrot.slane %v16487_v49, %v9888_v11 }
 0x673   :  { %v6618_v49 = vcombine.high %v11907_v55, %v16112_v27 }
 0x674   :  { %v12998_v4 = vpop.permute.xlu1 %3518  ;;  %v13009_v62 = vpop.permute.xlu0 %4184 }
 0x675   :  { %16475 = vst [vmem:[#allocation176_spill] sm:$0xff] %v12998_v4  ;;  %16479 = vst [vmem:[#allocation5_spill] sm:$0xff] %v13009_v62  ;;  %v13023_v4 = vrot.slane %v4989_v8, %v9858_v53  ;;  %v13026_v62 = vrot.slane %v5005_v22, %v9858_v53  ;;  %v6452_v8 = vrot.slane %v16484_v7, %v9888_v11 }
 0x676   :  { %3748 = vrot.lane.b32.xlu1 %v3694_v18, %s9619_s18  ;;  %4390 = vrot.lane.b32.xlu0 %v4317_v51, %s9616_s15  ;;  %v3922_v51 = vcombine.high %v12867_v30, %v16112_v27 }
 0x677   :  { %v5021_v22 = vcombine.low %v13023_v4, %v13026_v62 }
 0x678   :  { %v13015_v36 = vpop.permute.xlu1 %4188  ;;  %v13019_v31 = vpop.permute.xlu0 %2998 }
 0x679   :  { %16480 = vst [vmem:[#allocation22_spill] sm:$0xff] %v13015_v36  ;;  %16481 = vst [vmem:[#allocation178_spill] sm:$0xff] %v13019_v31  ;;  %v13057_v28 = vrot.slane %v5021_v22, %v9888_v11  ;;  %v16526_v31 = vld [vmem:[#allocation64_spill] sm:$0xff] }
 0x67a   :  { %3954 = vrot.lane.b32.xlu1 %v3921_v54, %s9616_s15  ;;  %4398 = vrot.lane.b32.xlu0 %v4318_v19, %s9617_s16  ;;  %v3923_v19 = vcombine.high %v12881_v20, %v16112_v27  ;;  %v3924_v20 = vcombine.high %v12897_v17, %v16112_v27 }
 0x67b   :  { %v5053_v24 = vcombine.high %v13057_v28, %v16112_v27 }
 0x67c   :  { %v13030_v18 = vpop.permute.xlu1 %4196  ;;  %v13034_v15 = vpop.permute.xlu0 %3006 }
 0x67d   :  { %16482 = vst [vmem:[#allocation179_spill] sm:$0xff] %v13030_v18  ;;  %16483 = vst [vmem:[#allocation180_spill] sm:$0xff] %v13034_v15  ;;  %v16514_v15 = vld [vmem:[#allocation39_spill] sm:$0xff] }
 0x67e   :  { %3962 = vrot.lane.b32.xlu1 %v3922_v51, %s9617_s16  ;;  %6506 = vrot.lane.b32.xlu0 %v6452_v8, %s9615_s14 }
 0x680   :  { %v13044_v54 = vpop.permute.xlu1 %4204  ;;  %v13048_v30 = vpop.permute.xlu0 %3014 }
 0x681   :  { %16485 = vst [vmem:[#allocation181_spill] sm:$0xff] %v13044_v54  ;;  %16486 = vst [vmem:[#allocation182_spill] sm:$0xff] %v13048_v30 }
 0x682   :  { %3970 = vrot.lane.b32.xlu1 %v3923_v19, %s9618_s17  ;;  %6938 = vrot.lane.b32.xlu0 %v13054_v48, %s9615_s14  ;;  %v5292_v19 = vcombine.high %v11876_v40, %v16112_v27  ;;  %v5874_v40 = vcombine.high %v11561_v12, %v11579_v42  ;;  %v16499_v42 = vld [vmem:[#allocation37_spill] sm:$0xff]  ;;  %v16500_v12 = vld [vmem:[#allocation26_spill] sm:$0xff] }
 0x684   :  { %v13062_v51 = vpop.permute.xlu1 %4212  ;;  %v13066_v7 = vpop.permute.xlu0 %3022 }
 0x685   :  { %16488 = vst [vmem:[#allocation183_spill] sm:$0xff] %v13062_v51  ;;  %16489 = vst [vmem:[#allocation184_spill] sm:$0xff] %v13066_v7  ;;  %v5522_v7 = vcombine.high %v11890_v59, %v16112_v27  ;;  %v16497_v51 = vld [vmem:[#allocation6_spill] sm:$0xff]  ;;  %v5761_v59 = vcombine.high %v11913_v57, %v16112_v27 }
 0x686   :  { %3978 = vrot.lane.b32.xlu1 %v3924_v20, %s9619_s18  ;;  %5086 = vrot.lane.b32.xlu0 %v5053_v24, %s9616_s15  ;;  %v6916_v20 = vcombine.high %v11865_v0, %v16112_v27  ;;  %v16496_v0 = vld [vmem:[#allocation33_spill] sm:$0xff] }
 0x688   :  { %v13072_v47 = vpop.permute.xlu1 %3002  ;;  %v13076_v22 = vpop.permute.xlu0 %3030 }
 0x689   :  { %16490 = vst [vmem:[#allocation185_spill] sm:$0xff] %v13072_v47  ;;  %16491 = vst [vmem:[#allocation186_spill] sm:$0xff] %v13076_v22  ;;  %v16522_v47 = vld [vmem:[#allocation9_spill] sm:$0xff] }
 0x68a   :  { %6712 = vrot.lane.b32.xlu1 %v6618_v49, %s9619_s18  ;;  %5332 = vrot.lane.b32.xlu0 %v5292_v19, %s9617_s16  ;;  %v16495_v49 = vcombine.high %v11681_v23, %v11684_v1  ;;  %v13113_v23 = vrot.slane %v5874_v40, %v9858_v53 }
 0x68c   :  { %v13082_v17 = vpop.permute.xlu1 %3010  ;;  %v13086_v24 = vpop.permute.xlu0 %3038  ;;  %v5206_v19 = vrot.slane %v16495_v49, %v9888_v11  ;;  %v16502_v49 = vcombine.high %v11709_v13, %v11712_v63 }
 0x68d   :  { %16492 = vst [vmem:[#allocation187_spill] sm:$0xff] %v13082_v17  ;;  %16493 = vst [vmem:[#allocation188_spill] sm:$0xff] %v13086_v24  ;;  %v4937_v24 = vcombine.low %v16497_v51, %v16496_v0 }
 0x68e   :  { %6970 = vrot.lane.b32.xlu1 %v6916_v20, %s9619_s18  ;;  %5562 = vrot.lane.b32.xlu0 %v5522_v7, %s9617_s16  ;;  %v5858_v7 = vcombine.high %v11534_v32, %v11559_v43  ;;  %v4921_v20 = vcombine.low %v16500_v12, %v16499_v42  ;;  %v5436_v57 = vrot.slane %v16502_v49, %v9888_v11  ;;  %v16504_v32 = vld [vmem:[#allocation84_spill] sm:$0xff]  ;;  %v16506_v49 = vld [vmem:[#allocation19_spill] sm:$0xff] }
 0x68f   :  { %v5991_v43 = vcombine.high %v16504_v32, %v16112_v27  ;;  %v16507_v32 = vld [vmem:[#allocation14_spill] sm:$0xff] }
 0x690   :  { %v13094_v55 = vpop.permute.xlu1 %3018  ;;  %v13102_v30 = vpop.permute.xlu0 %3046  ;;  %v13134_v40 = vrot.slane %v4921_v20, %v9858_v53 }
 0x691   :  { %16494 = vst [vmem:[#allocation189_spill] sm:$0xff] %v13094_v55  ;;  %16498 = vst [vmem:[#allocation33_spill] sm:$0xff] %v13102_v30  ;;  %v13126_v55 = vrot.slane %v4937_v24, %v9858_v53  ;;  %v16508_v24 = vcombine.low %v16506_v49, %v16507_v32 }
 0x692   :  { %5300 = vrot.lane.b32.xlu1 %v5206_v19, %s9613_s12  ;;  %5808 = vrot.lane.b32.xlu0 %v5761_v59, %s9618_s17  ;;  %v13129_v59 = vrot.slane %v5858_v7, %v9858_v53  ;;  %v16510_v7 = vld [vmem:[#allocation47_spill] sm:$0xff] }
 0x693   :  { %v5683_v54 = vrot.slane %v16508_v24, %v9888_v11  ;;  %v6456_v24 = vcombine.high %v6452_v8, %v16112_v27  ;;  %v16518_v8 = vld [vmem:[#allocation56_spill] sm:$0xff]  ;;  %v4954_v46 = vcombine.high %v13134_v40, %v13126_v55 }
 0x694   :  { %v13115_v1 = vpop.permute.xlu1 %3232  ;;  %v13121_v30 = vpop.permute.xlu0 %3228  ;;  %v5905_v13 = vcombine.low %v13129_v59, %v13113_v23 }
 0x695   :  { %16501 = vst [vmem:[#allocation6_spill] sm:$0xff] %v13115_v1  ;;  %16503 = vst [vmem:[#allocation37_spill] sm:$0xff] %v13121_v30  ;;  %v6222_v1 = vcombine.high %v16510_v7, %v16112_v27 }
 0x696   :  { %5530 = vrot.lane.b32.xlu1 %v5436_v57, %s9613_s12  ;;  %6038 = vrot.lane.b32.xlu0 %v5991_v43, %s9618_s17  ;;  %v4953_v43 = vcombine.low %v13134_v40, %v13126_v55 }
 0x698   :  { %v13138_v63 = vpop.permute.xlu1 %3240  ;;  %v13144_v22 = vpop.permute.xlu0 %3236 }
 0x699   :  { %16505 = vst [vmem:[#allocation26_spill] sm:$0xff] %v13138_v63  ;;  %16509 = vst [vmem:[#allocation84_spill] sm:$0xff] %v13144_v22  ;;  %v5913_v63 = vrot.slane %v5905_v13, %v9888_v11  ;;  %v13159_v22 = vrot.slane %v4953_v43, %v9888_v11  ;;  %v16519_v43 = vld [vmem:[#allocation35_spill] sm:$0xff] }
 0x69a   :  { %5776 = vrot.lane.b32.xlu1 %v5683_v54, %s9614_s13  ;;  %6276 = vrot.lane.b32.xlu0 %v6222_v1, %s9619_s18  ;;  %v16515_v1 = vld [vmem:[#allocation40_spill] sm:$0xff] }
 0x69b   :  { %v16516_v18 = vcombine.high %v16514_v15, %v16515_v1  ;;  %v4985_v13 = vcombine.high %v13159_v22, %v16112_v27  ;;  %v5224_v1 = vcombine.high %v5206_v19, %v16112_v27  ;;  %v5022_v19 = vcombine.high %v13023_v4, %v13026_v62 }
 0x69c   :  { %v13152_v20 = vpop.permute.xlu1 %3248  ;;  %v13155_v17 = vpop.permute.xlu0 %3244 }
 0x69d   :  { %16511 = vst [vmem:[#allocation19_spill] sm:$0xff] %v13152_v20  ;;  %16512 = vst [vmem:[#allocation14_spill] sm:$0xff] %v13155_v17  ;;  %v6150_v20 = vrot.slane %v16516_v18, %v9888_v11  ;;  %v5244_v17 = vcombine.high %v16519_v43, %v16518_v8  ;;  %v16527_v8 = vld [vmem:[#allocation45_spill] sm:$0xff]  ;;  %v16528_v43 = vld [vmem:[#allocation31_spill] sm:$0xff]  ;;  %v5036_v62 = vrot.slane %v5022_v19, %v9888_v11 }
 0x69e   :  { %6006 = vrot.lane.b32.xlu1 %v5913_v63, %s9614_s13  ;;  %6510 = vrot.lane.b32.xlu0 %v6456_v24, %s9619_s18  ;;  %v16537_v19 = vld [vmem:[#allocation65_spill] sm:$0xff] }
 0x6a0   :  { %v13163_v7 = vpop.permute.xlu1 %3026  ;;  %v13169_v30 = vpop.permute.xlu0 %3252 }
 0x6a1   :  { %16513 = vst [vmem:[#allocation47_spill] sm:$0xff] %v13163_v7  ;;  %16517 = vst [vmem:[#allocation39_spill] sm:$0xff] %v13169_v30  ;;  %v16521_v7 = vld [vmem:[#allocation4_spill] sm:$0xff]  ;;  %v16525_v30 = vld [vmem:[#allocation21_spill] sm:$0xff] }
 0x6a2   :  { %6244 = vrot.lane.b32.xlu1 %v6150_v20, %s9615_s14  ;;  %5058 = vrot.lane.b32.xlu0 %v4985_v13, %s9616_s15  ;;  %v16523_v52 = vcombine.high %v16521_v7, %v16522_v47  ;;  %v5228_v36 = vcombine.high %v16526_v31, %v16525_v30  ;;  %v13194_v13 = vrot.slane %v5244_v17, %v9858_v53  ;;  %v16531_v17 = vld [vmem:[#allocation18_spill] sm:$0xff] }
 0x6a3   :  { %v5474_v47 = vcombine.high %v16528_v43, %v16527_v8  ;;  %v6848_v7 = vcombine.high %v13054_v48, %v16112_v27  ;;  %v5454_v30 = vcombine.high %v5436_v57, %v16112_v27 }
 0x6a4   :  { %v13177_v24 = vpop.permute.xlu1 %3034  ;;  %v13183_v15 = vrot.slane %v16523_v52, %v9888_v11  ;;  %v13185_v18 = vpop.permute.xlu0 %3260 }
 0x6a5   :  { %16520 = vst [vmem:[#allocation40_spill] sm:$0xff] %v13177_v24  ;;  %16524 = vst [vmem:[#allocation56_spill] sm:$0xff] %v13185_v18  ;;  %v16532_v18 = vld [vmem:[#allocation27_spill] sm:$0xff]  ;;  %v13217_v8 = vrot.slane %v5474_v47, %v9858_v53 }
 0x6a6   :  { %6478 = vrot.lane.b32.xlu1 %v13183_v15, %s9615_s14  ;;  %5304 = vrot.lane.b32.xlu0 %v5224_v1, %s9617_s16  ;;  %v13208_v1 = vrot.slane %v5228_v36, %v9858_v53  ;;  %v5458_v24 = vcombine.high %v16532_v18, %v16531_v17  ;;  %v5693_v36 = vcombine.high %v5683_v54, %v16112_v27 }
 0x6a7   :  { %v5923_v54 = vcombine.high %v5913_v63, %v16112_v27  ;;  %v6154_v63 = vcombine.high %v6150_v20, %v16112_v27 }
 0x6a8   :  { %v13198_v52 = vpop.permute.xlu1 %3042  ;;  %v13204_v31 = vpop.permute.xlu0 %3268  ;;  %v5275_v48 = vcombine.low %v13208_v1, %v13194_v13  ;;  %v13226_v18 = vrot.slane %v5458_v24, %v9858_v53  ;;  %v16539_v24 = vld [vmem:[#allocation52_spill] sm:$0xff] }
 0x6a9   :  { %16529 = vst [vmem:[#allocation35_spill] sm:$0xff] %v13198_v52  ;;  %16530 = vst [vmem:[#allocation4_spill] sm:$0xff] %v13204_v31  ;;  %v16540_v31 = vld [vmem:[#allocation41_spill] sm:$0xff]  ;;  %v16542_v52 = vld [vmem:[#allocation58_spill] sm:$0xff] }
 0x6aa   :  { %6942 = vrot.lane.b32.xlu1 %v6848_v7, %s9619_s18  ;;  %5534 = vrot.lane.b32.xlu0 %v5454_v30, %s9617_s16  ;;  %v5505_v43 = vcombine.low %v13226_v18, %v13217_v8  ;;  %v5283_v7 = vrot.slane %v5275_v48, %v9888_v11  ;;  %v16536_v30 = vld [vmem:[#allocation44_spill] sm:$0xff] }
 0x6ab   :  { %v5176_v17 = vcombine.high %v16537_v19, %v16536_v30  ;;  %v16543_v30 = vld [vmem:[#allocation57_spill] sm:$0xff] }
 0x6ac   :  { %v13219_v4 = vpop.permute.xlu1 %3050  ;;  %v13222_v57 = vpop.permute.xlu0 %3276  ;;  %v5406_v19 = vcombine.high %v16543_v30, %v16542_v52  ;;  %v16548_v52 = vld [vmem:[#allocation38_spill] sm:$0xff]  ;;  %v16549_v30 = vld [vmem:[#allocation16_spill] sm:$0xff] }
 0x6ad   :  { %16533 = vst [vmem:[#allocation9_spill] sm:$0xff] %v13219_v4  ;;  %16534 = vst [vmem:[#allocation21_spill] sm:$0xff] %v13222_v57  ;;  %v5160_v4 = vcombine.high %v16540_v31, %v16539_v24  ;;  %v13248_v48 = vrot.slane %v5176_v17, %v9858_v53 }
 0x6ae   :  { %5090 = vrot.lane.b32.xlu1 %v5036_v62, %s9613_s12  ;;  %5780 = vrot.lane.b32.xlu0 %v5693_v36, %s9618_s17  ;;  %v13273_v40 = vrot.slane %v5406_v19, %v9858_v53 }
 0x6af   :  { %v13259_v31 = vrot.slane %v5160_v4, %v9858_v53 }
 0x6b0   :  { %v13232_v47 = vpop.permute.xlu1 %3256  ;;  %v13237_v57 = vpop.permute.xlu0 %3728 }
 0x6b1   :  { %16535 = vst [vmem:[#allocation64_spill] sm:$0xff] %v13232_v47  ;;  %16538 = vst [vmem:[#allocation45_spill] sm:$0xff] %v13237_v57  ;;  %v5513_v47 = vrot.slane %v5505_v43, %v9888_v11  ;;  %v16546_v43 = vld [vmem:[#allocation49_spill] sm:$0xff]  ;;  %v5207_v55 = vcombine.low %v13259_v31, %v13248_v48 }
 0x6b2   :  { %5336 = vrot.lane.b32.xlu1 %v5283_v7, %s9614_s13  ;;  %6010 = vrot.lane.b32.xlu0 %v5923_v54, %s9618_s17  ;;  %v16545_v54 = vld [vmem:[#allocation91_spill] sm:$0xff] }
 0x6b3   :  { %v5390_v24 = vcombine.high %v16546_v43, %v16545_v54  ;;  %v16554_v43 = vld [vmem:[#allocation20_spill] sm:$0xff] }
 0x6b4   :  { %v13244_v36 = vpop.permute.xlu1 %3264  ;;  %v13252_v57 = vpop.permute.xlu0 %3736 }
 0x6b5   :  { %16541 = vst [vmem:[#allocation31_spill] sm:$0xff] %v13244_v36  ;;  %16544 = vst [vmem:[#allocation18_spill] sm:$0xff] %v13252_v57  ;;  %v16550_v57 = vcombine.high %v16548_v52, %v16549_v30  ;;  %v4968_v36 = vrot.slane %v4954_v46, %v9888_v11  ;;  %v5215_v46 = vrot.slane %v5207_v55, %v9888_v11 }
 0x6b6   :  { %5566 = vrot.lane.b32.xlu1 %v5513_v47, %s9614_s13  ;;  %6248 = vrot.lane.b32.xlu0 %v6154_v63, %s9619_s18  ;;  %v13280_v63 = vrot.slane %v5390_v24, %v9858_v53  ;;  %v5054_v55 = vcombine.high %v5036_v62, %v16112_v27 }
 0x6b7   :  { %v5758_v20 = vrot.slane %v16550_v57, %v9888_v11  ;;  %v16553_v57 = vld [vmem:[#allocation63_spill] sm:$0xff] }
 0x6b8   :  { %v13264_v17 = vpop.permute.xlu1 %3272  ;;  %v13275_v4 = vpop.permute.xlu0 %3744  ;;  %v16555_v52 = vcombine.high %v16553_v57, %v16554_v43  ;;  %v5437_v19 = vcombine.low %v13280_v63, %v13273_v40 }
 0x6b9   :  { %16547 = vst [vmem:[#allocation27_spill] sm:$0xff] %v13264_v17  ;;  %16551 = vst [vmem:[#allocation44_spill] sm:$0xff] %v13275_v4 }
 0x6ba   :  { %5812 = vrot.lane.b32.xlu1 %v5758_v20, %s9615_s14  ;;  %5062 = vrot.lane.b32.xlu0 %v4968_v36, %s9613_s12  ;;  %v5988_v30 = vrot.slane %v16555_v52, %v9888_v11  ;;  %v5445_v57 = vrot.slane %v5437_v19, %v9888_v11  ;;  %v5906_v52 = vcombine.high %v13129_v59, %v13113_v23 }
 0x6bb   :  { %v5293_v19 = vcombine.high %v5283_v7, %v16112_v27  ;;  %v4990_v23 = vcombine.high %v11098_v33, %v11110_v37  ;;  %v5006_v59 = vcombine.high %v16478_v60, %v16477_v5  ;;  %v4986_v7 = vcombine.high %v4968_v36, %v16112_v27 }
 0x6bc   :  { %v13283_v54 = vpop.permute.xlu1 %3280  ;;  %v13291_v4 = vpop.permute.xlu0 %3958  ;;  %v5920_v62 = vrot.slane %v5906_v52, %v9888_v11  ;;  %v4938_v5 = vcombine.high %v16497_v51, %v16496_v0  ;;  %v4922_v36 = vcombine.high %v16500_v12, %v16499_v42  ;;  %v5455_v51 = vcombine.high %v5445_v57, %v16112_v27 }
 0x6bd   :  { %16552 = vst [vmem:[#allocation65_spill] sm:$0xff] %v13283_v54  ;;  %16556 = vst [vmem:[#allocation52_spill] sm:$0xff] %v13291_v4  ;;  %v6388_v54 = vcombine.high %v13183_v15, %v16112_v27  ;;  %v16561_v15 = vcombine.high %v16506_v49, %v16507_v32  ;;  %v5523_v32 = vcombine.high %v5513_v47, %v16112_v27 }
 0x6be   :  { %6042 = vrot.lane.b32.xlu1 %v5988_v30, %s9615_s14  ;;  %5308 = vrot.lane.b32.xlu0 %v5215_v46, %s9614_s13  ;;  %v13342_v33 = vrot.slane %v4990_v23, %v9858_v53  ;;  %v13345_v37 = vrot.slane %v5006_v59, %v9858_v53  ;;  %v5225_v47 = vcombine.high %v5215_v46, %v16112_v27 }
 0x6bf   :  { %v4952_v0 = vrot.slane %v4938_v5, %v9858_v53  ;;  %v4936_v42 = vrot.slane %v4922_v36, %v9858_v53  ;;  %v5276_v12 = vcombine.high %v13208_v1, %v13194_v13  ;;  %v5208_v1 = vcombine.high %v13259_v31, %v13248_v48 }
 0x6c0   :  { %v13296_v24 = vpop.permute.xlu1 %3700  ;;  %v13300_v17 = vpop.permute.xlu0 %3966  ;;  %v5037_v23 = vcombine.low %v13342_v33, %v13345_v37  ;;  %v5924_v31 = vcombine.high %v5920_v62, %v16112_v27 }
 0x6c1   :  { %16557 = vst [vmem:[#allocation41_spill] sm:$0xff] %v13296_v24  ;;  %16558 = vst [vmem:[#allocation58_spill] sm:$0xff] %v13300_v17  ;;  %v5690_v17 = vrot.slane %v16561_v15, %v9888_v11  ;;  %v5762_v15 = vcombine.high %v5758_v20, %v16112_v27  ;;  %v5290_v13 = vrot.slane %v5276_v12, %v9888_v11 }
 0x6c2   :  { %6482 = vrot.lane.b32.xlu1 %v6388_v54, %s9619_s18  ;;  %5538 = vrot.lane.b32.xlu0 %v5445_v57, %s9614_s13  ;;  %v4969_v57 = vcombine.low %v4936_v42, %v4952_v0 }
 0x6c4   :  { %v13305_v43 = vpop.permute.xlu1 %3708  ;;  %v13310_v4 = vpop.permute.xlu0 %3974  ;;  %v4977_v36 = vrot.slane %v4969_v57, %v9888_v11 }
 0x6c5   :  { %16559 = vst [vmem:[#allocation57_spill] sm:$0xff] %v13305_v43  ;;  %16560 = vst [vmem:[#allocation91_spill] sm:$0xff] %v13310_v4  ;;  %v16595_v4 = vld [vmem:[#allocation86_spill] sm:$0xff] }
 0x6c6   :  { %5094 = vrot.lane.b32.xlu1 %v5054_v55, %s9617_s16  ;;  %5784 = vrot.lane.b32.xlu0 %v5690_v17, %s9615_s14  ;;  %v4987_v57 = vcombine.high %v4977_v36, %v16112_v27 }
 0x6c8   :  { %v13318_v54 = vpop.permute.xlu1 %3716  ;;  %v13321_v43 = vpop.permute.xlu0 %3696 }
 0x6c9   :  { %16562 = vst [vmem:[#allocation49_spill] sm:$0xff] %v13318_v54  ;;  %16563 = vst [vmem:[#allocation38_spill] sm:$0xff] %v13321_v43 }
 0x6ca   :  { %5340 = vrot.lane.b32.xlu1 %v5293_v19, %s9618_s17  ;;  %6014 = vrot.lane.b32.xlu0 %v5920_v62, %s9615_s14  ;;  %v5992_v19 = vcombine.high %v5988_v30, %v16112_v27  ;;  %v5045_v30 = vrot.slane %v5037_v23, %v9888_v11  ;;  %v5222_v23 = vrot.slane %v5208_v1, %v9888_v11 }
 0x6cc   :  { %v13330_v49 = vpop.permute.xlu1 %3930  ;;  %v13333_v55 = vpop.permute.xlu0 %3704 }
 0x6cd   :  { %16564 = vst [vmem:[#allocation16_spill] sm:$0xff] %v13330_v49  ;;  %16565 = vst [vmem:[#allocation63_spill] sm:$0xff] %v13333_v55  ;;  %v16598_v55 = vld [vmem:[#allocation79_spill] sm:$0xff]  ;;  %v16603_v49 = vld [vmem:[#allocation46_spill] sm:$0xff] }
 0x6ce   :  { %5570 = vrot.lane.b32.xlu1 %v5523_v32, %s9618_s17  ;;  %5066 = vrot.lane.b32.xlu0 %v4986_v7, %s9617_s16  ;;  %v5694_v7 = vcombine.high %v5690_v17, %v16112_v27 }
 0x6d0   :  { %v13338_v52 = vpop.permute.xlu1 %3938  ;;  %v13349_v60 = vpop.permute.xlu0 %3712 }
 0x6d1   :  { %16566 = vst [vmem:[#allocation20_spill] sm:$0xff] %v13338_v52  ;;  %16567 = vst [vmem:[#allocation190_spill] sm:$0xff] %v13349_v60 }
 0x6d2   :  { %5816 = vrot.lane.b32.xlu1 %v5762_v15, %s9619_s18  ;;  %5312 = vrot.lane.b32.xlu0 %v5225_v47, %s9618_s17  ;;  %v5506_v15 = vcombine.high %v13226_v18, %v13217_v8  ;;  %v5438_v8 = vcombine.high %v13280_v63, %v13273_v40  ;;  %v5055_v63 = vcombine.high %v5045_v30, %v16112_v27 }
 0x6d4   :  { %v13356_v20 = vpop.permute.xlu1 %3946  ;;  %v13361_v59 = vpop.permute.xlu0 %3720  ;;  %v5452_v12 = vrot.slane %v5438_v8, %v9888_v11  ;;  %v5226_v8 = vcombine.high %v5222_v23, %v16112_v27 }
 0x6d5   :  { %16568 = vst [vmem:[#allocation191_spill] sm:$0xff] %v13356_v20  ;;  %16569 = vst [vmem:[#allocation192_spill] sm:$0xff] %v13361_v59 }
 0x6d6   :  { %6046 = vrot.lane.b32.xlu1 %v5992_v19, %s9619_s18  ;;  %5542 = vrot.lane.b32.xlu0 %v5455_v51, %s9618_s17  ;;  %v5520_v19 = vrot.slane %v5506_v15, %v9888_v11  ;;  %v5294_v15 = vcombine.high %v5290_v13, %v16112_v27 }
 0x6d8   :  { %v13370_v46 = vpop.permute.xlu1 %4394  ;;  %v13373_v32 = vpop.permute.xlu0 %3926 }
 0x6d9   :  { %16570 = vst [vmem:[#allocation193_spill] sm:$0xff] %v13370_v46  ;;  %16571 = vst [vmem:[#allocation194_spill] sm:$0xff] %v13373_v32 }
 0x6da   :  { %5098 = vrot.lane.b32.xlu1 %v5045_v30, %s9614_s13  ;;  %5788 = vrot.lane.b32.xlu0 %v5694_v7, %s9619_s18 }
 0x6dc   :  { %v13380_v5 = vpop.permute.xlu1 %3724  ;;  %v13385_v47 = vpop.permute.xlu0 %3934 }
 0x6dd   :  { %16572 = vst [vmem:[#allocation195_spill] sm:$0xff] %v13380_v5  ;;  %16573 = vst [vmem:[#allocation196_spill] sm:$0xff] %v13385_v47  ;;  %v16601_v47 = vld [vmem:[#allocation28_spill] sm:$0xff] }
 0x6de   :  { %5344 = vrot.lane.b32.xlu1 %v5290_v13, %s9615_s14  ;;  %5070 = vrot.lane.b32.xlu0 %v4977_v36, %s9614_s13  ;;  %v5524_v36 = vcombine.high %v5520_v19, %v16112_v27 }
 0x6e0   :  { %v13390_v17 = vpop.permute.xlu1 %3732  ;;  %v13395_v18 = vpop.permute.xlu0 %3942 }
 0x6e1   :  { %16574 = vst [vmem:[#allocation197_spill] sm:$0xff] %v13390_v17  ;;  %16575 = vst [vmem:[#allocation198_spill] sm:$0xff] %v13395_v18  ;;  %v16596_v17 = vld [vmem:[#allocation24_spill] sm:$0xff] }
 0x6e2   :  { %5574 = vrot.lane.b32.xlu1 %v5520_v19, %s9615_s14  ;;  %5316 = vrot.lane.b32.xlu0 %v5222_v23, %s9615_s14  ;;  %v6520_v18 = vsel %vm331_vm5, %v16596_v17, %v16595_v4  ;;  %v16604_v17 = vld [vmem:[#allocation73_spill] sm:$0xff] }
 0x6e3   :  { %v6521_v24 = vsel %vm333_vm6, %v6520_v18, %v16598_v55  ;;  %v16606_v55 = vld [vmem:[#allocation11_spill] sm:$0xff] }
 0x6e4   :  { %v13400_v48 = vpop.permute.xlu1 %3740  ;;  %v13403_v51 = vpop.permute.xlu0 %3950 }
 0x6e5   :  { %16576 = vst [vmem:[#allocation199_spill] sm:$0xff] %v13400_v48  ;;  %16577 = vst [vmem:[#allocation200_spill] sm:$0xff] %v13403_v51 }
 0x6e6   :  { %6018 = vrot.lane.b32.xlu1 %v5924_v31, %s9619_s18  ;;  %5546 = vrot.lane.b32.xlu0 %v5452_v12, %s9615_s14  ;;  %v4970_v31 = vcombine.high %v4936_v42, %v4952_v0 }
 0x6e8   :  { %v13408_v40 = vpop.permute.xlu1 %3748  ;;  %v13411_v7 = vpop.permute.xlu0 %4390  ;;  %v4984_v59 = vrot.slane %v4970_v31, %v9888_v11 }
 0x6e9   :  { %16578 = vst [vmem:[#allocation201_spill] sm:$0xff] %v13408_v40  ;;  %16579 = vst [vmem:[#allocation202_spill] sm:$0xff] %v13411_v7  ;;  %v16619_v7 = vld [vmem:[#allocation7_spill] sm:$0xff] }
 0x6ea   :  { %5102 = vrot.lane.b32.xlu1 %v5055_v63, %s9618_s17  ;;  %5074 = vrot.lane.b32.xlu0 %v4987_v57, %s9618_s17  ;;  %v5038_v63 = vcombine.high %v13342_v33, %v13345_v37  ;;  %v4988_v23 = vcombine.high %v4984_v59, %v16112_v27  ;;  %v5456_v33 = vcombine.high %v5452_v12, %v16112_v27  ;;  %v16589_v12 = vld [vmem:[#allocation75_spill] sm:$0xff] }
 0x6ec   :  { %v13416_v62 = vpop.permute.xlu1 %3954  ;;  %v13419_v1 = vpop.permute.xlu0 %4398  ;;  %v5052_v0 = vrot.slane %v5038_v63, %v9888_v11 }
 0x6ed   :  { %16580 = vst [vmem:[#allocation203_spill] sm:$0xff] %v13416_v62  ;;  %16581 = vst [vmem:[#allocation204_spill] sm:$0xff] %v13419_v1  ;;  %v16618_v62 = vld [vmem:[#allocation17_spill] sm:$0xff] }
 0x6ee   :  { %5348 = vrot.lane.b32.xlu1 %v5294_v15, %s9619_s18  ;;  %5320 = vrot.lane.b32.xlu0 %v5226_v8, %s9619_s18  ;;  %v16585_v15 = vld [vmem:[#allocation82_spill] sm:$0xff]  ;;  %v5056_v40 = vcombine.high %v5052_v0, %v16112_v27 }
 0x6ef   :  { %v16586_v8 = vld [vmem:[#allocation34_spill] sm:$0xff] }
 0x6f0   :  { %v13424_v30 = vpop.permute.xlu1 %3962  ;;  %v6507_v57 = vpop.permute.xlu0 %6506  ;;  %v6980_v31 = vsel %vm331_vm5, %v16586_v8, %v16585_v15  ;;  %v16591_v8 = vld [vmem:[#allocation109_spill] sm:$0xff] }
 0x6f1   :  { %16582 = vst [vmem:[#allocation205_spill] sm:$0xff] %v13424_v30  ;;  %v16599_v30 = vld [vmem:[#allocation76_spill] sm:$0xff] }
 0x6f2   :  { %5578 = vrot.lane.b32.xlu1 %v5524_v36, %s9619_s18  ;;  %5078 = vrot.lane.b32.xlu0 %v4984_v59, %s9615_s14  ;;  %v16587_v36 = vld [vmem:[#allocation88_spill] sm:$0xff] }
 0x6f3   :  { %v6981_v63 = vsel %vm333_vm6, %v6980_v31, %v16587_v36 }
 0x6f4   :  { %v13432_v13 = vpop.permute.xlu1 %3970  ;;  %v6939_v42 = vpop.permute.xlu0 %6938 }
 0x6f5   :  { %16583 = vst [vmem:[#allocation206_spill] sm:$0xff] %v13432_v13  ;;  %v16597_v13 = vld [vmem:[#allocation68_spill] sm:$0xff] }
 0x6f6   :  { %5106 = vrot.lane.b32.xlu1 %v5052_v0, %s9615_s14  ;;  %5082 = vrot.lane.b32.xlu0 %v4988_v23, %s9619_s18  ;;  %v16588_v23 = vld [vmem:[#allocation92_spill] sm:$0xff] }
 0x6f7   :  { %v6982_v54 = vsel %vm335_vm7, %v6981_v63, %v16588_v23 }
 0x6f8   :  { %v13438_v19 = vpop.permute.xlu1 %3978  ;;  %v13441_v37 = vpop.permute.xlu0 %5086  ;;  %v6983_v51 = vsel %vm337_vm8, %v6982_v54, %v16589_v12 }
 0x6f9   :  { %16584 = vst [vmem:[#allocation207_spill] sm:$0xff] %v13438_v19 }
 0x6fa   :  { %5550 = vrot.lane.b32.xlu1 %v5456_v33, %s9619_s18  ;;  %v16590_v33 = vld [vmem:[#allocation95_spill] sm:$0xff] }
 0x6fb   :  { %v6984_v15 = vsel %vm339_vm9, %v6983_v51, %v16590_v33 }
 0x6fc   :  { %v13449_v59 = vpop.permute.xlu1 %6712  ;;  %v13454_v48 = vpop.permute.xlu0 %5332  ;;  %v6985_v31 = vsel %vm341_vm10, %v6984_v15, %v16591_v8  ;;  %v16592_v8 = vld [vmem:[#allocation29_spill] sm:$0xff] }
 0x6fe   :  { %5110 = vrot.lane.b32.xlu1 %v5056_v40, %s9619_s18 }
 0x700   :  { %v6971_v36 = vpop.permute.xlu1 %6970  ;;  %v13464_v0 = vpop.permute.xlu0 %5562 }
 0x701   :  { %v6986_v19 = vsel %vm343_vm11, %v6985_v31, %v6971_v36  ;;  %v16593_v31 = vld [vmem:[#allocation10_spill] sm:$0xff] }
 0x702   :  { %9582 = vmatprep.subr.msk.mxu0 %vm2238_vm12, %v6986_v19  ;;  %v6750_v36 = vsel %vm331_vm5, %v16593_v31, %v16592_v8  ;;  %v16594_v19 = vld [vmem:[#allocation51_spill] sm:$0xff] }
 0x703   :  { %v6751_v20 = vsel %vm333_vm6, %v6750_v36, %v16594_v19  ;;  %v16600_v31 = vld [vmem:[#allocation71_spill] sm:$0xff]  ;;  %v16602_v19 = vld [vmem:[#allocation85_spill] sm:$0xff] }
 0x704   :  { %v13467_v63 = vpop.permute.xlu1 %5300  ;;  %v13469_v23 = vpop.permute.xlu0 %5808  ;;  %v6752_v52 = vsel %vm335_vm7, %v6751_v20, %v16597_v13  ;;  %v6973_v36 = vsel %vm331_vm5, %v16601_v47, %v16600_v31  ;;  %v6522_v1 = vsel %vm335_vm7, %v6521_v24, %v16602_v19  ;;  %v16605_v13 = vld [vmem:[#allocation8_spill] sm:$0xff]  ;;  %v16608_v47 = vld [vmem:[#allocation105_spill] sm:$0xff]  ;;  %v16609_v24 = vld [vmem:[#allocation107_spill] sm:$0xff] }
 0x705   :  { %v6753_v8 = vsel %vm337_vm8, %v6752_v52, %v16599_v30  ;;  %v6974_v20 = vsel %vm333_vm6, %v6973_v36, %v16604_v17  ;;  %v6523_v46 = vsel %vm337_vm8, %v6522_v1, %v16605_v13  ;;  %v16607_v30 = vld [vmem:[#allocation50_spill] sm:$0xff] }
 0x706   :  { %v6754_v4 = vsel %vm339_vm9, %v6753_v8, %v16603_v49  ;;  %v6975_v43 = vsel %vm335_vm7, %v6974_v20, %v16607_v30  ;;  %v6524_v31 = vsel %vm339_vm9, %v6523_v46, %v16608_v47  ;;  %v16610_v8 = vld [vmem:[#allocation12_spill] sm:$0xff]  ;;  %v16611_v17 = vld [vmem:[#allocation106_spill] sm:$0xff] }
 0x707   :  { %v6755_v18 = vsel %vm341_vm10, %v6754_v4, %v16606_v55  ;;  %v6976_v36 = vsel %vm337_vm8, %v6975_v43, %v16610_v8  ;;  %v6525_v1 = vsel %vm341_vm10, %v6524_v31, %v6507_v57  ;;  %v16613_v8 = vld [vmem:[#allocation15_spill] sm:$0xff] }
 0x708   :  { %v13471_v54 = vpop.permute.xlu1 %5530  ;;  %v13473_v40 = vpop.permute.xlu0 %6038  ;;  %v6756_v19 = vsel %vm343_vm11, %v6755_v18, %v16609_v24  ;;  %v6977_v4 = vsel %vm339_vm9, %v6976_v36, %v16611_v17 }
 0x709   :  { %v7008_v55 = vrot.slane %v6756_v19, 4  ;;  %v6978_v20 = vsel %vm341_vm10, %v6977_v4, %v6939_v42  ;;  %v16612_v19 = vld [vmem:[#allocation54_spill] sm:$0xff] }
 0x70a   :  { %v6743_v36 = vsel %vm331_vm5, %v16613_v8, %v16612_v19  ;;  %v16620_v8 = vld [vmem:[#allocation60_spill] sm:$0xff] }
 0x70c   :  { %v13475_v12 = vpop.permute.xlu1 %5776  ;;  %v13477_v51 = vpop.permute.xlu0 %6276 }
 0x710   :  { %v13479_v33 = vpop.permute.xlu1 %6006  ;;  %v6511_v15 = vpop.permute.xlu0 %6510 }
 0x711   :  { %v6526_v13 = vsel %vm343_vm11, %v6525_v1, %v6511_v15  ;;  %v16614_v1 = vld [vmem:[#allocation93_spill] sm:$0xff] }
 0x712   :  { %v7018_v18 = vsel %vm2238_vm12, %v6526_v13, %v7008_v55  ;;  %v6744_v17 = vsel %vm333_vm6, %v6743_v36, %v16614_v1  ;;  %v16615_v13 = vld [vmem:[#allocation89_spill] sm:$0xff]  ;;  %v16621_v1 = vld [vmem:[#allocation104_spill] sm:$0xff] }
 0x713   :  { %v6745_v55 = vsel %vm335_vm7, %v6744_v17, %v16615_v13  ;;  %v16622_v17 = vld [vmem:[#allocation43_spill] sm:$0xff] }
 0x714   :  { %v13486_v60 = vpop.permute.xlu1 %6244  ;;  %v13493_v5 = vpop.permute.xlu0 %5058 }
 0x718   :  { %v6479_v52 = vpop.permute.xlu1 %6478  ;;  %v13518_v49 = vpop.permute.xlu0 %5304 }
 0x71c   :  { %v6943_v30 = vpop.permute.xlu1 %6942  ;;  %v13528_v47 = vpop.permute.xlu0 %5534 }
 0x71d   :  { %v6979_v46 = vsel %vm343_vm11, %v6978_v20, %v6943_v30  ;;  %v16616_v30 = vld [vmem:[#allocation83_spill] sm:$0xff] }
 0x71e   :  { %9583 = vmatpush1.msk.msra.mxu0 %vm2238_vm12, %v6979_v46  ;;  %v6746_v46 = vsel %vm337_vm8, %v6745_v55, %v16616_v30 }
 0x71f   :  { %7049 = vmatprep.subr.mxu0 %v7018_v18  ;;  %v16617_v18 = vld [vmem:[#allocation87_spill] sm:$0xff]  ;;  %v6747_v19 = vsel %vm339_vm9, %v6746_v46, %v16619_v7 }
 0x720   :  { %v13532_v43 = vpop.permute.xlu1 %5090  ;;  %v13534_v57 = vpop.permute.xlu0 %5780  ;;  %v6513_v32 = vsel %vm331_vm5, %v16618_v62, %v16617_v18  ;;  %v6748_v9 = vsel %vm341_vm10, %v6747_v19, %v16621_v1  ;;  %v16624_v18 = vld [vmem:[#allocation118_spill] sm:$0xff] }
 0x721   :  { %v6514_v36 = vsel %vm333_vm6, %v6513_v32, %v16620_v8  ;;  %v6749_v55 = vsel %vm343_vm11, %v6748_v9, %v13449_v59 }
 0x722   :  { %v6515_v13 = vsel %vm335_vm7, %v6514_v36, %v16622_v17  ;;  %v7007_v46 = vrot.slane %v6749_v55, 4 }
 0x723   :  { %v6516_v62 = vsel %vm337_vm8, %v6515_v13, %v16623_v50  ;;  %v16625_v13 = vld [vmem:[#allocation90_spill] sm:$0xff] }
 0x724   :  { %v13536_v31 = vpop.permute.xlu1 %5336  ;;  %v13538_v15 = vpop.permute.xlu0 %6010  ;;  %v6517_v7 = vsel %vm339_vm9, %v6516_v62, %v16624_v18  ;;  %v16626_v62 = vld [vmem:[#allocation25_spill] sm:$0xff] }
 0x725   :  { %v6518_v32 = vsel %vm341_vm10, %v6517_v7, %v6479_v52  ;;  %v6286_v55 = vsel %vm331_vm5, %v16626_v62, %v16625_v13  ;;  %v16627_v52 = vld [vmem:[#allocation67_spill] sm:$0xff]  ;;  %v16633_v62 = vld [vmem:[#allocation48_spill] sm:$0xff] }
 0x726   :  { %v6287_v18 = vsel %vm333_vm6, %v6286_v55, %v16627_v52  ;;  %v6057_v55 = vsel %vm333_vm6, %v6056_v16, %v16633_v62  ;;  %v16634_v52 = vld [vmem:[#allocation119_spill] sm:$0xff] }
 0x728   :  { %v13540_v24 = vpop.permute.xlu1 %5566  ;;  %v13542_v42 = vpop.permute.xlu0 %6248 }
 0x72c   :  { %v13549_v4 = vpop.permute.xlu1 %5812  ;;  %v13553_v20 = vpop.permute.xlu0 %5062 }
 0x730   :  { %v6043_v56 = vpop.permute.xlu1 %6042  ;;  %v13570_v30 = vpop.permute.xlu0 %5308 }
 0x734   :  { %v6483_v8 = vpop.permute.xlu1 %6482  ;;  %v13578_v1 = vpop.permute.xlu0 %5538 }
 0x735   :  { %v6519_v19 = vsel %vm343_vm11, %v6518_v32, %v6483_v8  ;;  %v16628_v32 = vld [vmem:[#allocation81_spill] sm:$0xff] }
 0x736   :  { %v7017_v36 = vsel %vm2238_vm12, %v6519_v19, %v7007_v46  ;;  %v6288_v46 = vsel %vm335_vm7, %v6287_v18, %v16628_v32  ;;  %v16629_v19 = vld [vmem:[#allocation62_spill] sm:$0xff]  ;;  %v16635_v18 = vld [vmem:[#allocation101_spill] sm:$0xff] }
 0x737   :  { %7050 = vmatpush1.msra.mxu0 %v7017_v36  ;;  %v6289_v36 = vsel %vm337_vm8, %v6288_v46, %v16629_v19  ;;  %v6058_v32 = vsel %vm335_vm7, %v6057_v55, %v16635_v18 }
 0x738   :  { %v13581_v9 = vpop.permute.xlu1 %5094  ;;  %v13583_v59 = vpop.permute.xlu0 %5784  ;;  %v6290_v13 = vsel %vm339_vm9, %v6289_v36, %v16632_v26  ;;  %v6059_v45 = vsel %vm337_vm8, %v6058_v32, %v16636_v3  ;;  %v16638_v3 = vld [vmem:[#allocation55_spill] sm:$0xff] }
 0x739   :  { %v6291_v25 = vsel %vm341_vm10, %v6290_v13, %v16634_v52  ;;  %v6060_v26 = vsel %vm339_vm9, %v6059_v45, %v13473_v40  ;;  %v16637_v52 = vld [vmem:[#allocation72_spill] sm:$0xff]  ;;  %v16639_v40 = vld [vmem:[#allocation59_spill] sm:$0xff] }
 0x73a   :  { %v6292_v46 = vsel %vm343_vm11, %v6291_v25, %v13477_v51  ;;  %v6061_v16 = vsel %vm341_vm10, %v6060_v26, %v6043_v56  ;;  %v6279_v18 = vsel %vm331_vm5, %v16638_v3, %v16637_v52  ;;  %v16645_v3 = vld [vmem:[#allocation98_spill] sm:$0xff] }
 0x73b   :  { %v7002_v41 = vrot.slane %v6292_v46, 4  ;;  %v6280_v32 = vsel %vm333_vm6, %v6279_v18, %v16639_v40  ;;  %v16640_v46 = vld [vmem:[#allocation61_spill] sm:$0xff] }
 0x73c   :  { %v13585_v17 = vpop.permute.xlu1 %5340  ;;  %v6015_v50 = vpop.permute.xlu0 %6014  ;;  %v6281_v45 = vsel %vm335_vm7, %v6280_v32, %v16640_v46  ;;  %v16646_v32 = vld [vmem:[#allocation114_spill] sm:$0xff] }
 0x740   :  { %v13592_v7 = vpop.permute.xlu1 %5570  ;;  %v13596_v8 = vpop.permute.xlu0 %5066 }
 0x744   :  { %v5817_v58 = vpop.permute.xlu1 %5816  ;;  %v13613_v19 = vpop.permute.xlu0 %5312 }
 0x748   :  { %v6047_v36 = vpop.permute.xlu1 %6046  ;;  %v13621_v62 = vpop.permute.xlu0 %5542 }
 0x749   :  { %v6062_v13 = vsel %vm343_vm11, %v6061_v16, %v6047_v36  ;;  %v16642_v36 = vld [vmem:[#allocation30_spill] sm:$0xff] }
 0x74a   :  { %v7016_v55 = vsel %vm2238_vm12, %v6062_v13, %v7002_v41  ;;  %v16641_v41 = vld [vmem:[#allocation100_spill] sm:$0xff]  ;;  %v16643_v13 = vld [vmem:[#allocation77_spill] sm:$0xff] }
 0x74b   :  { %7051 = vmatprep.subr.mxu0 %v7016_v55  ;;  %v6282_v16 = vsel %vm337_vm8, %v6281_v45, %v16641_v41  ;;  %v6049_v55 = vsel %vm331_vm5, %v16643_v13, %v16642_v36 }
 0x74c   :  { %v13624_v25 = vpop.permute.xlu1 %5098  ;;  %v13626_v51 = vpop.permute.xlu0 %5788  ;;  %v6283_v52 = vsel %vm339_vm9, %v6282_v16, %v16644_v34  ;;  %v6050_v18 = vsel %vm333_vm6, %v6049_v55, %v16645_v3 }
 0x74d   :  { %v6284_v40 = vsel %vm341_vm10, %v6283_v52, %v13486_v60  ;;  %v6051_v46 = vsel %vm335_vm7, %v6050_v18, %v16646_v32  ;;  %v16647_v18 = vld [vmem:[#allocation78_spill] sm:$0xff]  ;;  %v16648_v32 = vld [vmem:[#allocation36_spill] sm:$0xff] }
 0x74e   :  { %v6285_v45 = vsel %vm343_vm11, %v6284_v40, %v13542_v42  ;;  %v6052_v36 = vsel %vm337_vm8, %v6051_v46, %v13479_v33  ;;  %v5826_v42 = vsel %vm331_vm5, %v16648_v32, %v16647_v18  ;;  %v16649_v40 = vld [vmem:[#allocation42_spill] sm:$0xff] }
 0x74f   :  { %v6053_v34 = vsel %vm339_vm9, %v6052_v36, %v13538_v15  ;;  %v7001_v16 = vrot.slane %v6285_v45, 4  ;;  %v5827_v33 = vsel %vm333_vm6, %v5826_v42, %v16649_v40  ;;  %v16650_v15 = vld [vmem:[#allocation99_spill] sm:$0xff] }
 0x750   :  { %v13633_v56 = vpop.permute.xlu1 %5344  ;;  %v13637_v26 = vpop.permute.xlu0 %5070  ;;  %v6054_v13 = vsel %vm341_vm10, %v6053_v34, %v6015_v50  ;;  %v5828_v45 = vsel %vm335_vm7, %v5827_v33, %v16650_v15  ;;  %v16651_v36 = vld [vmem:[#allocation115_spill] sm:$0xff] }
 0x751   :  { %v5829_v34 = vsel %vm337_vm8, %v5828_v45, %v16651_v36  ;;  %v16655_v36 = vld [vmem:[#allocation80_spill] sm:$0xff] }
 0x754   :  { %v5575_v6 = vpop.permute.xlu1 %5574  ;;  %v13654_v41 = vpop.permute.xlu0 %5316 }
 0x758   :  { %v6019_v55 = vpop.permute.xlu1 %6018  ;;  %v5547_v52 = vpop.permute.xlu0 %5546 }
 0x759   :  { %v6055_v60 = vsel %vm343_vm11, %v6054_v13, %v6019_v55  ;;  %v16652_v13 = vld [vmem:[#allocation97_spill] sm:$0xff]  ;;  %v16653_v55 = vld [vmem:[#allocation32_spill] sm:$0xff] }
 0x75a   :  { %v7015_v3 = vsel %vm2238_vm12, %v6055_v60, %v7001_v16  ;;  %v5588_v16 = vsel %vm331_vm5, %v16653_v55, %v16652_v13  ;;  %v5830_v60 = vsel %vm339_vm9, %v5829_v34, %v13469_v23  ;;  %v16656_v13 = vld [vmem:[#allocation66_spill] sm:$0xff]  ;;  %v16657_v55 = vld [vmem:[#allocation96_spill] sm:$0xff] }
 0x75b   :  { %7052 = vmatpush1.msra.mxu0 %v7015_v3  ;;  %v16654_v3 = vld [vmem:[#allocation113_spill] sm:$0xff]  ;;  %v5831_v32 = vsel %vm341_vm10, %v5830_v60, %v13549_v4  ;;  %v5819_v23 = vsel %vm331_vm5, %v16656_v13, %v16655_v36  ;;  %v16661_v36 = vld [vmem:[#allocation111_spill] sm:$0xff] }
 0x75c   :  { %v13668_v46 = vpop.permute.xlu1 %5102  ;;  %v5075_v50 = vpop.permute.xlu0 %5074  ;;  %v5589_v18 = vsel %vm333_vm6, %v5588_v16, %v16654_v3  ;;  %v5832_v33 = vsel %vm343_vm11, %v5831_v32, %v5817_v58  ;;  %v5820_v4 = vsel %vm333_vm6, %v5819_v23, %v16657_v55  ;;  %v16658_v3 = vld [vmem:[#allocation94_spill] sm:$0xff]  ;;  %v16660_v32 = vld [vmem:[#allocation112_spill] sm:$0xff] }
 0x75d   :  { %v5590_v40 = vsel %vm335_vm7, %v5589_v18, %v13464_v0  ;;  %v6996_v16 = vrot.slane %v5832_v33, 4  ;;  %v16659_v58 = vld [vmem:[#allocation74_spill] sm:$0xff] }
 0x75e   :  { %v5591_v45 = vsel %vm337_vm8, %v5590_v40, %v13540_v24  ;;  %v5358_v18 = vsel %vm331_vm5, %v16659_v58, %v16658_v3  ;;  %v5821_v24 = vsel %vm335_vm7, %v5820_v4, %v16660_v32  ;;  %v16665_v55 = vld [vmem:[#allocation70_spill] sm:$0xff]  ;;  %v5120_v4 = vsel %vm331_vm5, %v13057_v28, %v13441_v37 }
 0x75f   :  { %v5592_v34 = vsel %vm339_vm9, %v5591_v45, %v13592_v7  ;;  %v5359_v13 = vsel %vm333_vm6, %v5358_v18, %v16661_v36  ;;  %v16662_v7 = vld [vmem:[#allocation108_spill] sm:$0xff]  ;;  %v16663_v45 = vld [vmem:[#allocation53_spill] sm:$0xff]  ;;  %v5113_v18 = vsel %vm331_vm5, %v13159_v22, %v13493_v5 }
 0x760   :  { %v5349_v42 = vpop.permute.xlu1 %5348  ;;  %v5321_v15 = vpop.permute.xlu0 %5320  ;;  %v5593_v60 = vsel %vm341_vm10, %v5592_v34, %v5575_v6  ;;  %v5351_v23 = vsel %vm331_vm5, %v16663_v45, %v16662_v7  ;;  %v5822_v6 = vsel %vm337_vm8, %v5821_v24, %v13475_v12  ;;  %v16664_v34 = vld [vmem:[#allocation110_spill] sm:$0xff]  ;;  %v5114_v22 = vsel %vm333_vm6, %v5113_v18, %v13553_v20 }
 0x761   :  { %v5581_v3 = vsel %vm331_vm5, %v16665_v55, %v16664_v34  ;;  %v5352_v12 = vsel %vm333_vm6, %v5351_v23, %v13467_v63  ;;  %v5121_v63 = vsel %vm333_vm6, %v5120_v4, %v13532_v43 }
 0x764   :  { %v5579_v0 = vpop.permute.xlu1 %5578  ;;  %v5079_v58 = vpop.permute.xlu0 %5078 }
 0x765   :  { %v5594_v40 = vsel %vm343_vm11, %v5593_v60, %v5579_v0  ;;  %v5360_v60 = vsel %vm335_vm7, %v5359_v13, %v13454_v48  ;;  %v5823_v0 = vsel %vm339_vm9, %v5822_v6, %v13534_v57  ;;  %v5353_v48 = vsel %vm335_vm7, %v5352_v12, %v13518_v49 }
 0x766   :  { %v7014_v33 = vsel %vm2238_vm12, %v5594_v40, %v6996_v16  ;;  %v5582_v16 = vsel %vm333_vm6, %v5581_v3, %v13471_v54  ;;  %v5824_v28 = vsel %vm341_vm10, %v5823_v0, %v13583_v59  ;;  %v5361_v32 = vsel %vm337_vm8, %v5360_v60, %v13536_v31 }
 0x767   :  { %7053 = vmatprep.subr.mxu0 %v7014_v33  ;;  %v5583_v57 = vsel %vm335_vm7, %v5582_v16, %v13528_v47  ;;  %v5825_v54 = vsel %vm343_vm11, %v5824_v28, %v13626_v51  ;;  %v5354_v5 = vsel %vm337_vm8, %v5353_v48, %v13570_v30  ;;  %v5122_v47 = vsel %vm335_vm7, %v5121_v63, %v13581_v9  ;;  %v16666_v33 = vld [vmem:[#allocation13_spill] sm:$0xff] }
 0x768   :  { %v5107_v37 = vpop.permute.xlu1 %5106  ;;  %v5584_v49 = vsel %vm337_vm8, %v5583_v57, %v13578_v1  ;;  %v5362_v43 = vsel %vm339_vm9, %v5361_v32, %v13585_v17  ;;  %v5115_v59 = vsel %vm335_vm7, %v5114_v22, %v13596_v8  ;;  %v5355_v20 = vsel %vm339_vm9, %v5354_v5, %v13613_v19  ;;  %v5083_v40 = vpop.permute.xlu0 %5082 }
 0x769   :  { %v5585_v31 = vsel %vm339_vm9, %v5584_v49, %v13621_v62  ;;  %v6995_v51 = vrot.slane %v5825_v54, 4  ;;  %v5363_v30 = vsel %vm341_vm10, %v5362_v43, %v13633_v56  ;;  %v5116_v9 = vsel %vm337_vm8, %v5115_v59, %v13637_v26 }
 0x76a   :  { %v5586_v1 = vsel %vm341_vm10, %v5585_v31, %v5547_v52  ;;  %v5356_v17 = vsel %vm341_vm10, %v5355_v20, %v13654_v41  ;;  %v5364_v8 = vsel %vm343_vm11, %v5363_v30, %v5349_v42  ;;  %v5123_v19 = vsel %vm337_vm8, %v5122_v47, %v13624_v25 }
 0x76b   :  { %v5117_v36 = vsel %vm339_vm9, %v5116_v9, %v5075_v50  ;;  %v5357_v56 = vsel %vm343_vm11, %v5356_v17, %v5321_v15  ;;  %v5124_v26 = vsel %vm339_vm9, %v5123_v19, %v13668_v46  ;;  %v6990_v41 = vrot.slane %v5364_v8, 4  ;;  %v9605_v46 = vld [vmem:[%s15928_s1] sm:$0xf]  ;;  %v16667_v9 = vld [vmem:[#allocation120_spill] sm:$0xff]  ;;  %v16668_v17 = vld [vmem:[#allocation121_spill] sm:$0xff] }
 0x76c   :  { %v5551_v24 = vpop.permute.xlu1 %5550  ;;  %v5118_v13 = vsel %vm341_vm10, %v5117_v36, %v5079_v58  ;;  %v5125_v42 = vsel %vm341_vm10, %v5124_v26, %v5107_v37  ;;  %v6989_v23 = vrot.slane %v5357_v56, 4  ;;  %v4270_v58 = vcombine.high %v12680_v14, %v12705_v38  ;;  %v16669_v8 = vld [vmem:[#allocation125_spill] sm:$0xff]  ;;  %v16672_v19 = vld [vmem:[#allocation124_spill] sm:$0xff]  ;;  %v16673_v36 = vld [vmem:[#allocation127_spill] sm:$0xff] }
 0x76d   :  { %v5587_v62 = vsel %vm343_vm11, %v5586_v1, %v5551_v24  ;;  %v5119_v7 = vsel %vm343_vm11, %v5118_v13, %v5083_v40  ;;  %v4254_v16 = vcombine.high %v12670_v44, %v12690_v61  ;;  %v4337_v44 = vcombine.low %v12724_v10, %v12752_v21  ;;  %v16670_v40 = vld [vmem:[#allocation122_spill] sm:$0xff]  ;;  %v16674_v56 = vld [vmem:[#allocation128_spill] sm:$0xff] }
 0x76e   :  { %v7013_v52 = vsel %vm2238_vm12, %v5587_v62, %v6995_v51  ;;  %v7011_v15 = vsel %vm2238_vm12, %v5119_v7, %v6989_v23  ;;  %v4284_v18 = vrot.slane %v4270_v58, %v9858_v53  ;;  %v4321_v61 = vcombine.low %v12712_v2, %v12741_v35  ;;  %v16671_v62 = vld [vmem:[#allocation126_spill] sm:$0xff] }
 0x76f   :  { %7054 = vmatpush1.msra.mxu0 %v7013_v52  ;;  %v4268_v28 = vrot.slane %v4254_v16, %v9858_v53  ;;  %v4345_v37 = vrot.slane %v4337_v44, %v9858_v53  ;;  %v4338_v63 = vcombine.high %v12724_v10, %v12752_v21  ;;  %v4322_v5 = vcombine.high %v12712_v2, %v12741_v35 }
 0x770   :  { %v5111_v45 = vpop.permute.xlu1 %5110  ;;  %v4329_v57 = vrot.slane %v4321_v61, %v9858_v53 }
 0x771   :  { %v5126_v25 = vsel %vm343_vm11, %v5125_v42, %v5111_v45  ;;  %v4301_v14 = vcombine.low %v4268_v28, %v4284_v18  ;;  %v4302_v38 = vcombine.high %v4268_v28, %v4284_v18  ;;  %v4352_v49 = vrot.slane %v4338_v63, %v9858_v53 }
 0x772   :  { %v7012_v50 = vsel %vm2238_vm12, %v5126_v25, %v6990_v41  ;;  %v4353_v54 = vcombine.low %v4329_v57, %v4345_v37  ;;  %v4354_v47 = vcombine.high %v4329_v57, %v4345_v37  ;;  %v4336_v10 = vrot.slane %v4322_v5, %v9858_v53 }
 0x773   :  { %7055 = vmatprep.subr.mxu0 %v7012_v50  ;;  %v4309_v48 = vrot.slane %v4301_v14, %v9888_v11  ;;  %v4316_v22 = vrot.slane %v4302_v38, %v9888_v11 }
 0x774   :  { %7056 = vmatpush1.msra.mxu0 %v7011_v15  ;;  %v13839_v59 = vrot.slane %v4353_v54, %v9888_v11  ;;  %v4369_v21 = vcombine.low %v4336_v10, %v4352_v49  ;;  %v4368_v2 = vrot.slane %v4354_v47, %v9888_v11  ;;  %v4370_v31 = vcombine.high %v4336_v10, %v4352_v49 }
 0x775   :  { %9584 = vmatmul.mubr.msk.f32.vlgmr.msra.gmra.mxu0 %vm2252_vm13, %v9605_v46  ;;  %v4319_v32 = vcombine.high %v4309_v48, %v16112_v27  ;;  %v4320_v43 = vcombine.high %v4316_v22, %v16112_v27 }
 0x776   :  { %v4385_v35 = vcombine.high %v13839_v59, %v16112_v27  ;;  %v4377_v20 = vrot.slane %v4369_v21, %v9888_v11  ;;  %v4386_v51 = vcombine.high %v4368_v2, %v16112_v27  ;;  %v4384_v30 = vrot.slane %v4370_v31, %v9888_v11 }
 0x778   :  { %v4387_v1 = vcombine.high %v4377_v20, %v16112_v27  ;;  %v4388_v24 = vcombine.high %v4384_v30, %v16112_v27 }
 0x835   :  { %v7091_v6 = vpop.f32.mrf.mxu0 }
 0x836   :  { %v7092_v34 = vadd.f32 %v7091_v6, %v16666_v33 }
 0x837   :  { %v7093_v4 = vpop.f32.mrf.mxu0 }
 0x838   :  { %vm7096_vm14 = vcmp.gt.f32.partialorder %v7092_v34, 0.0  ;;  %v7098_v55 = vmul.f32 0.01, %v7092_v34  ;;  %v7094_v60 = vadd.f32 %v7093_v4, %v16666_v33 }
 0x83a   :  { %v13782_v3 = vsel %vm7096_vm14, %v7092_v34, %v7098_v55  ;;  %v7099_v0 = vmul.f32 0.01, %v7094_v60  ;;  %vm7097_vm15 = vcmp.gt.f32.partialorder %v7094_v60, 0.0 }
 0x83b   :  { %7106 = vrot.lane.b32.xlu0 %v13782_v3, %s9615_s14  ;;  %7103 = vrot.lane.b32.xlu1 %v13782_v3, %s9619_s18 }
 0x83c   :  { %v13799_v12 = vsel %vm7097_vm15, %v7094_v60, %v7099_v0 }
 0x83f   :  { %7112 = vrot.lane.b32.xlu0 %v13782_v3, %s9614_s13  ;;  %7109 = vrot.lane.b32.xlu1 %v13782_v3, %s9618_s17 }
 0x843   :  { %7118 = vrot.lane.b32.xlu0 %v13782_v3, %s9613_s12  ;;  %7115 = vrot.lane.b32.xlu1 %v13782_v3, %s9617_s16 }
 0x847   :  { %7125 = vrot.lane.b32.xlu0 %v13799_v12, %s9619_s18  ;;  %7121 = vrot.lane.b32.xlu1 %v13782_v3, %s9616_s15 }
 0x84b   :  { %7131 = vrot.lane.b32.xlu0 %v13799_v12, %s9618_s17  ;;  %7128 = vrot.lane.b32.xlu1 %v13799_v12, %s9615_s14 }
 0x84f   :  { %7137 = vrot.lane.b32.xlu0 %v13799_v12, %s9617_s16  ;;  %7134 = vrot.lane.b32.xlu1 %v13799_v12, %s9614_s13 }
 0x853   :  { %7143 = vrot.lane.b32.xlu0 %v13799_v12, %s9616_s15  ;;  %7140 = vrot.lane.b32.xlu1 %v13799_v12, %s9613_s12 }
 0x857   :  { %4406 = vrot.lane.b32.xlu0 %v4319_v32, %s9618_s17  ;;  %4402 = vrot.lane.b32.xlu1 %v4309_v48, %s9614_s13 }
 0x85b   :  { %4414 = vrot.lane.b32.xlu0 %v4320_v43, %s9619_s18  ;;  %4410 = vrot.lane.b32.xlu1 %v4316_v22, %s9615_s14 }
 0x85f   :  { %4422 = vrot.lane.b32.xlu0 %v4368_v2, %s9613_s12  ;;  %4418 = vrot.lane.b32.xlu1 %v4385_v35, %s9616_s15 }
 0x863   :  { %4430 = vrot.lane.b32.xlu0 %v4377_v20, %s9614_s13  ;;  %4426 = vrot.lane.b32.xlu1 %v4386_v51, %s9617_s16 }
 0x867   :  { %4438 = vrot.lane.b32.xlu0 %v4384_v30, %s9615_s14  ;;  %4434 = vrot.lane.b32.xlu1 %v4387_v1, %s9618_s17 }
 0x86b   :  { %4459 = vrot.lane.b32.xlu0 %v16667_v9, %s9610_s11  ;;  %4442 = vrot.lane.b32.xlu1 %v4388_v24, %s9619_s18 }
 0x86f   :  { %4463 = vrot.lane.b32.xlu0 %v16668_v17, %s9610_s11  ;;  %4461 = vrot.lane.b32.xlu1 %v16669_v8, %s9610_s11 }
 0x873   :  { %4467 = vrot.lane.b32.xlu0 %v16670_v40, %s9610_s11  ;;  %4465 = vrot.lane.b32.xlu1 %v16671_v62, %s9610_s11 }
 0x877   :  { %4471 = vrot.lane.b32.xlu0 %v16672_v19, %s9610_s11  ;;  %4469 = vrot.lane.b32.xlu1 %v16673_v36, %s9610_s11 }
 0x87b   :  { %4473 = vrot.lane.b32.xlu1 %v16674_v56, %s9610_s11 }
 0x8ad   :  { %v7107_v52 = vpop.permute.xlu0 %7106  ;;  %v7104_v26 = vpop.permute.xlu1 %7103 }
 0x8ae   :  { %v7146_v33 = vcombine.low %v13782_v3, %v7107_v52 }
 0x8b0   :  { %v7153_v18 = vrot.slane %v7146_v33, %v9858_v53 }
 0x8b1   :  { %v7113_v13 = vpop.permute.xlu0 %7112  ;;  %v7110_v41 = vpop.permute.xlu1 %7109 }
 0x8b2   :  { %v7154_v46 = vcombine.low %v7104_v26, %v7110_v41 }
 0x8b4   :  { %v7161_v58 = vrot.slane %v7154_v46, %v9858_v53 }
 0x8b5   :  { %v7119_v42 = vpop.permute.xlu0 %7118  ;;  %v7116_v7 = vpop.permute.xlu1 %7115 }
 0x8b6   :  { %v7162_v6 = vcombine.low %v7113_v13, %v7119_v42  ;;  %v7178_v38 = vcombine.low %v7153_v18, %v7161_v58  ;;  %v7179_v31 = vcombine.high %v7153_v18, %v7161_v58 }
 0x8b8   :  { %v7169_v16 = vrot.slane %v7162_v6, %v9858_v53  ;;  %v7186_v5 = vrot.slane %v7178_v38, %v9888_v11  ;;  %v7193_v19 = vrot.slane %v7179_v31, %v9888_v11 }
 0x8b9   :  { %v7126_v45 = vpop.permute.xlu0 %7125  ;;  %v7122_v23 = vpop.permute.xlu1 %7121 }
 0x8ba   :  { %v7170_v25 = vcombine.low %v7116_v7, %v7122_v23 }
 0x8bc   :  { %v7177_v34 = vrot.slane %v7170_v25, %v9858_v53 }
 0x8bd   :  { %v7132_v50 = vpop.permute.xlu0 %7131  ;;  %v7129_v15 = vpop.permute.xlu1 %7128 }
 0x8be   :  { %v7222_v55 = vcombine.low %v7126_v45, %v7132_v50  ;;  %v7214_v4 = vcombine.low %v13799_v12, %v7129_v15  ;;  %v7194_v28 = vcombine.low %v7169_v16, %v7177_v34  ;;  %v7195_v43 = vcombine.high %v7169_v16, %v7177_v34 }
 0x8c0   :  { %v7229_v14 = vrot.slane %v7222_v55, %v9858_v53  ;;  %v7221_v44 = vrot.slane %v7214_v4, %v9858_v53  ;;  %v7202_v12 = vrot.slane %v7194_v28, %v9888_v11  ;;  %v7209_v9 = vrot.slane %v7195_v43, %v9888_v11 }
 0x8c1   :  { %v7138_v60 = vpop.permute.xlu0 %7137  ;;  %v7135_v0 = vpop.permute.xlu1 %7134 }
 0x8c2   :  { %v7246_v57 = vcombine.low %v7221_v44, %v7229_v14  ;;  %v7247_v10 = vcombine.high %v7221_v44, %v7229_v14  ;;  %v7210_v35 = vcombine.low %v7186_v5, %v7202_v12  ;;  %v7211_v62 = vcombine.high %v7186_v5, %v7202_v12 }
 0x8c3   :  { %v7212_v7 = vcombine.low %v7193_v19, %v7209_v9  ;;  %v7213_v33 = vcombine.high %v7193_v19, %v7209_v9 }
 0x8c4   :  { %v7254_v21 = vrot.slane %v7246_v57, %v9888_v11  ;;  %v7261_v17 = vrot.slane %v7247_v10, %v9888_v11  ;;  %v7290_v40 = vrot.slane %v7210_v35, 7  ;;  %v7293_v42 = vrot.slane %v7211_v62, 7 }
 0x8c5   :  { %v7144_v61 = vpop.permute.xlu0 %7143  ;;  %v7141_v3 = vpop.permute.xlu1 %7140  ;;  %v7296_v6 = vrot.slane %v7212_v7, 7  ;;  %v7299_v58 = vrot.slane %v7213_v33, 7 }
 0x8c6   :  { %v7238_v37 = vcombine.low %v7138_v60, %v7144_v61  ;;  %v7230_v48 = vcombine.low %v7135_v0, %v7141_v3  ;;  %v7311_v3 = vsel %vm40_vm0, 0.0, %v7293_v42  ;;  %v7310_v38 = vsel %vm40_vm0, 0.0, %v7290_v40 }
 0x8c7   :  { %v7313_v12 = vsel %vm40_vm0, 0.0, %v7299_v58  ;;  %v7312_v57 = vsel %vm40_vm0, 0.0, %v7296_v6 }
 0x8c8   :  { %v7245_v63 = vrot.slane %v7238_v37, %v9858_v53  ;;  %v7237_v54 = vrot.slane %v7230_v48, %v9858_v53 }
 0x8c9   :  { %v13886_v32 = vpop.permute.xlu0 %4406  ;;  %v13888_v22 = vpop.permute.xlu1 %4402 }
 0x8ca   :  { %v7262_v49 = vcombine.low %v7237_v54, %v7245_v63  ;;  %v7263_v47 = vcombine.high %v7237_v54, %v7245_v63 }
 0x8cc   :  { %v7270_v2 = vrot.slane %v7262_v49, %v9888_v11  ;;  %v7277_v30 = vrot.slane %v7263_v47, %v9888_v11 }
 0x8cd   :  { %v13893_v20 = vpop.permute.xlu0 %4414  ;;  %v13895_v51 = vpop.permute.xlu1 %4410 }
 0x8ce   :  { %v7278_v1 = vcombine.low %v7254_v21, %v7270_v2  ;;  %v7279_v24 = vcombine.high %v7254_v21, %v7270_v2  ;;  %v7280_v41 = vcombine.low %v7261_v17, %v7277_v30  ;;  %v7281_v46 = vcombine.high %v7261_v17, %v7277_v30 }
 0x8d0   :  { %v7291_v8 = vrot.slane %v7278_v1, 7  ;;  %v7294_v13 = vrot.slane %v7279_v24, 7  ;;  %v7297_v15 = vrot.slane %v7280_v41, 7  ;;  %v7300_v0 = vrot.slane %v7281_v46, 7 }
 0x8d1   :  { %v13901_v36 = vpop.permute.xlu0 %4422  ;;  %v13903_v56 = vpop.permute.xlu1 %4418 }
 0x8d2   :  { %v7314_v52 = vsel %vm40_vm0, %v7291_v8, 0.0  ;;  %v7292_v26 = vsel %vm40_vm0, %v7290_v40, %v7291_v8  ;;  %v7315_v25 = vsel %vm40_vm0, %v7294_v13, 0.0  ;;  %v7295_v50 = vsel %vm40_vm0, %v7293_v42, %v7294_v13 }
 0x8d3   :  { %7330 = vrot.lane.b32.xlu1 %v7314_v52, %s9607_s26  ;;  %7328 = vrot.lane.b32.xlu0 %v7292_v26, %s9607_s26  ;;  %v7316_v4 = vsel %vm40_vm0, %v7297_v15, 0.0  ;;  %v7298_v60 = vsel %vm40_vm0, %v7296_v6, %v7297_v15  ;;  %v7317_v28 = vsel %vm40_vm0, %v7300_v0, 0.0  ;;  %v7301_v14 = vsel %vm40_vm0, %v7299_v58, %v7300_v0 }
 0x8d5   :  { %v13909_v45 = vpop.permute.xlu0 %4430  ;;  %v13911_v23 = vpop.permute.xlu1 %4426 }
 0x8d7   :  { %7336 = vrot.lane.b32.xlu1 %v7315_v25, %s9607_s26  ;;  %7334 = vrot.lane.b32.xlu0 %v7295_v50, %s9607_s26 }
 0x8d9   :  { %v13917_v34 = vpop.permute.xlu0 %4438  ;;  %v13919_v55 = vpop.permute.xlu1 %4434 }
 0x8db   :  { %7342 = vrot.lane.b32.xlu1 %v7316_v4, %s9607_s26  ;;  %7340 = vrot.lane.b32.xlu0 %v7298_v60, %s9607_s26 }
 0x8dd   :  { %v4460_v16 = vpop.permute.xlu0 %4459  ;;  %v13925_v18 = vpop.permute.xlu1 %4442 }
 0x8df   :  { %7348 = vrot.lane.b32.xlu1 %v7317_v28, %s9607_s26  ;;  %7346 = vrot.lane.b32.xlu0 %v7301_v14, %s9607_s26 }
 0x8e1   :  { %v4464_v44 = vpop.permute.xlu0 %4463  ;;  %v4462_v61 = vpop.permute.xlu1 %4461 }
 0x8e3   :  { %7332 = vrot.lane.b32.xlu1 %v7311_v3, %s9607_s26  ;;  %7326 = vrot.lane.b32.xlu0 %v7310_v38, %s9607_s26 }
 0x8e5   :  { %v4468_v37 = vpop.permute.xlu0 %4467  ;;  %v4466_v48 = vpop.permute.xlu1 %4465 }
 0x8e6   :  { %v4483_v63 = vcombine.low %v4460_v16, %v4468_v37  ;;  %v4484_v49 = vcombine.high %v4460_v16, %v4468_v37  ;;  %v23_v37 = vld [vmem:[%s15929_s4] sm:$0xff] }
 0x8e7   :  { %7344 = vrot.lane.b32.xlu1 %v7313_v12, %s9607_s26  ;;  %7338 = vrot.lane.b32.xlu0 %v7312_v57, %s9607_s26  ;;  %v16676_v57 = vld [vmem:[#allocation136_spill] sm:$0xff] }
 0x8e8   :  { %v4491_v10 = vrot.slane %v4483_v63, %v9858_v53  ;;  %v4498_v31 = vrot.slane %v4484_v49, %v9858_v53  ;;  %v16677_v63 = vld [vmem:[#allocation123_spill] sm:$0xff]  ;;  %v16678_v49 = vld [vmem:[#allocation141_spill] sm:$0xff] }
 0x8e9   :  { %v4472_v54 = vpop.permute.xlu0 %4471  ;;  %v4470_v5 = vpop.permute.xlu1 %4469 }
 0x8ea   :  { %v4499_v47 = vcombine.low %v4464_v44, %v4472_v54  ;;  %v4500_v43 = vcombine.high %v4464_v44, %v4472_v54  ;;  %v4551_v24 = vcombine.low %v4462_v61, %v4470_v5  ;;  %v4552_v7 = vcombine.high %v4462_v61, %v4470_v5 }
 0x8eb   :  { %v2815_v54 = vsel %vm331_vm5, %v16677_v63, %v16676_v57 }
 0x8ec   :  { %v4507_v21 = vrot.slane %v4499_v47, %v9858_v53  ;;  %v4514_v2 = vrot.slane %v4500_v43, %v9858_v53  ;;  %v4559_v19 = vrot.slane %v4551_v24, %v9858_v53  ;;  %v4566_v33 = vrot.slane %v4552_v7, %v9858_v53  ;;  %v16679_v43 = vld [vmem:[#allocation162_spill] sm:$0xff]  ;;  %v16688_v7 = vld [vmem:[#allocation169_spill] sm:$0xff] }
 0x8ed   :  { %v4474_v35 = vpop.permute.xlu1 %4473  ;;  %v2816_v47 = vsel %vm333_vm6, %v2815_v54, %v16678_v49  ;;  %v16683_v24 = vld [vmem:[#allocation158_spill] sm:$0xff] }
 0x8ee   :  { %v4515_v30 = vcombine.low %v4491_v10, %v4507_v21  ;;  %v4516_v1 = vcombine.high %v4491_v10, %v4507_v21  ;;  %v4567_v9 = vcombine.low %v4466_v48, %v4474_v35  ;;  %v4531_v17 = vcombine.low %v4498_v31, %v4514_v2  ;;  %v16680_v21 = vld [vmem:[#allocation148_spill] sm:$0xff] }
 0x8ef   :  { %v4532_v26 = vcombine.high %v4498_v31, %v4514_v2  ;;  %v4568_v13 = vcombine.high %v4466_v48, %v4474_v35  ;;  %v16675_v48 = vld [vmem:[#allocation130_spill] sm:$0xff]  ;;  %v16681_v2 = vld [vmem:[#allocation129_spill] sm:$0xff] }
 0x8f0   :  { %v4530_v8 = vrot.slane %v4516_v1, %v9888_v11  ;;  %v13945_v40 = vrot.slane %v4515_v30, %v9888_v11  ;;  %v4575_v62 = vrot.slane %v4567_v9, %v9858_v53  ;;  %v4539_v42 = vrot.slane %v4531_v17, %v9888_v11  ;;  %v16684_v17 = vld [vmem:[#allocation143_spill] sm:$0xff] }
 0x8f1   :  { %v4582_v50 = vrot.slane %v4568_v13, %v9858_v53  ;;  %v4546_v46 = vrot.slane %v4532_v26, %v9888_v11  ;;  %v3521_v12 = vsel %vm331_vm5, %v16675_v48, %v12924_v29  ;;  %v2822_v35 = vsel %vm331_vm5, %v16681_v2, %v16680_v21  ;;  %v16682_v29 = vld [vmem:[#allocation138_spill] sm:$0xff]  ;;  %v16701_v21 = vld [vmem:[#allocation161_spill] sm:$0xff] }
 0x8f2   :  { %4624 = vrot.lane.b32.xlu1 %v4530_v8, %s9613_s12  ;;  %v4547_v52 = vcombine.high %v13945_v40, %v16112_v27  ;;  %v4583_v41 = vcombine.low %v4559_v19, %v4575_v62  ;;  %v4548_v25 = vcombine.high %v4530_v8, %v16112_v27  ;;  %v4584_v15 = vcombine.high %v4559_v19, %v4575_v62  ;;  %v16685_v8 = vld [vmem:[#allocation142_spill] sm:$0xff]  ;;  %v16686_v19 = vld [vmem:[#allocation164_spill] sm:$0xff] }
 0x8f3   :  { %v4549_v4 = vcombine.high %v4539_v42, %v16112_v27  ;;  %v4599_v60 = vcombine.low %v4566_v33, %v4582_v50  ;;  %v4550_v16 = vcombine.high %v4546_v46, %v16112_v27  ;;  %v4600_v28 = vcombine.high %v4566_v33, %v4582_v50  ;;  %v16687_v26 = vld [vmem:[#allocation150_spill] sm:$0xff]  ;;  %v16690_v33 = vld [vmem:[#allocation139_spill] sm:$0xff] }
 0x8f4   :  { %4620 = vrot.lane.b32.xlu0 %v4547_v52, %s9616_s15  ;;  %v13960_v6 = vrot.slane %v4583_v41, %v9888_v11  ;;  %v4598_v58 = vrot.slane %v4584_v15, %v9888_v11  ;;  %v3522_v5 = vsel %vm333_vm6, %v3521_v12, %v12891_v39  ;;  %v2817_v1 = vsel %vm335_vm7, %v2816_v47, %v16682_v29  ;;  %v16699_v12 = vld [vmem:[#allocation149_spill] sm:$0xff] }
 0x8f5   :  { %v4607_v44 = vrot.slane %v4599_v60, %v9888_v11  ;;  %v4614_v3 = vrot.slane %v4600_v28, %v9888_v11  ;;  %v3523_v10 = vsel %vm335_vm7, %v3522_v5, %v16679_v43  ;;  %v2818_v39 = vsel %vm337_vm8, %v2817_v1, %v16684_v17  ;;  %v16691_v60 = vld [vmem:[#allocation160_spill] sm:$0xff]  ;;  %v16700_v43 = vld [vmem:[#allocation171_spill] sm:$0xff] }
 0x8f6   :  { %4632 = vrot.lane.b32.xlu1 %v4539_v42, %s9614_s13  ;;  %v4615_v0 = vcombine.high %v13960_v6, %v16112_v27  ;;  %v4616_v14 = vcombine.high %v4598_v58, %v16112_v27  ;;  %v3524_v9 = vsel %vm337_vm8, %v3523_v10, %v16683_v24  ;;  %v2823_v62 = vsel %vm333_vm6, %v2822_v35, %v16685_v8 }
 0x8f7   :  { %v4617_v61 = vcombine.high %v4607_v44, %v16112_v27  ;;  %v4618_v38 = vcombine.high %v4614_v3, %v16112_v27  ;;  %v3525_v52 = vsel %vm339_vm9, %v3524_v9, %v16686_v19  ;;  %v2824_v13 = vsel %vm335_vm7, %v2823_v62, %v16687_v26  ;;  %v16704_v19 = vld [vmem:[#allocation152_spill] sm:$0xff] }
 0x8f8   :  { %4628 = vrot.lane.b32.xlu0 %v4548_v25, %s9617_s16  ;;  %v16689_v25 = vld [vmem:[#allocation131_spill] sm:$0xff] }
 0x8f9   :  { %v3528_v50 = vsel %vm331_vm5, %v16689_v25, %v16688_v7 }
 0x8fa   :  { %4640 = vrot.lane.b32.xlu1 %v4546_v46, %s9615_s14  ;;  %v3529_v57 = vsel %vm333_vm6, %v3528_v50, %v16699_v12  ;;  %v16707_v50 = vld [vmem:[#allocation163_spill] sm:$0xff] }
 0x8fb   :  { %v3530_v10 = vsel %vm335_vm7, %v3529_v57, %v16700_v43  ;;  %v16711_v57 = vld [vmem:[#allocation178_spill] sm:$0xff] }
 0x8fc   :  { %4636 = vrot.lane.b32.xlu0 %v4549_v4, %s9618_s17  ;;  %v2819_v4 = vsel %vm339_vm9, %v2818_v39, %v16690_v33 }
 0x8fe   :  { %4648 = vrot.lane.b32.xlu1 %v4615_v0, %s9616_s15  ;;  %v3526_v0 = vsel %vm341_vm10, %v3525_v52, %v16691_v60 }
 0x900   :  { %4644 = vrot.lane.b32.xlu0 %v4550_v16, %s9619_s18  ;;  %v16693_v16 = vld [vmem:[#allocation132_spill] sm:$0xff] }
 0x902   :  { %4656 = vrot.lane.b32.xlu1 %v4616_v14, %s9617_s16  ;;  %v16694_v14 = vld [vmem:[#allocation146_spill] sm:$0xff] }
 0x904   :  { %4652 = vrot.lane.b32.xlu0 %v4598_v58, %s9613_s12  ;;  %v16692_v58 = vld [vmem:[#allocation170_spill] sm:$0xff] }
 0x905   :  { %v4215_v28 = vsel %vm331_vm5, %v16693_v16, %v16692_v58 }
 0x906   :  { %4664 = vrot.lane.b32.xlu1 %v4617_v61, %s9618_s17  ;;  %v16696_v61 = vld [vmem:[#allocation145_spill] sm:$0xff]  ;;  %v4216_v2 = vsel %vm333_vm6, %v4215_v28, %v16701_v21 }
 0x907   :  { %v16708_v28 = vld [vmem:[#allocation173_spill] sm:$0xff] }
 0x908   :  { %4660 = vrot.lane.b32.xlu0 %v4607_v44, %s9614_s13  ;;  %v14027_v44 = vsel %vm341_vm10, %v2819_v4, %v16694_v14 }
 0x909   :  { %16695 = vst [vmem:[#allocation82_spill] sm:$0xff] %v14027_v44  ;;  %v16742_v44 = vld [vmem:[#allocation186_spill] sm:$0xff] }
 0x90a   :  { %4672 = vrot.lane.b32.xlu1 %v4618_v38, %s9619_s18  ;;  %v16697_v38 = vld [vmem:[#allocation168_spill] sm:$0xff] }
 0x90c   :  { %4668 = vrot.lane.b32.xlu0 %v4614_v3, %s9615_s14  ;;  %v2825_v3 = vsel %vm337_vm8, %v2824_v13, %v16696_v61  ;;  %v16706_v13 = vld [vmem:[#allocation151_spill] sm:$0xff]  ;;  %v16709_v61 = vld [vmem:[#allocation22_spill] sm:$0xff] }
 0x90d   :  { %v14070_v52 = vsel %vm339_vm9, %v2825_v3, %v16704_v19  ;;  %v16710_v3 = vld [vmem:[#allocation133_spill] sm:$0xff]  ;;  %v16715_v19 = vld [vmem:[#allocation155_spill] sm:$0xff] }
 0x90e   :  { %16705 = vst [vmem:[#allocation92_spill] sm:$0xff] %v14070_v52 }
 0x910   :  { %4723 = vperm.xlu0 %9604, %v23_v37   ;;  %v14033_v37 = vsel %vm343_vm11, %v3526_v0, %v16697_v38  ;;  %v4222_v38 = vsel %vm331_vm5, %v16710_v3, %v16709_v61  ;;  %v16720_v3 = vld [vmem:[#allocation153_spill] sm:$0xff] }
 0x911   :  { %16698 = vst [vmem:[#allocation34_spill] sm:$0xff] %v14033_v37  ;;  %v16748_v37 = vld [vmem:[#allocation40_spill] sm:$0xff] }
 0x945   :  { %v7329_v31 = vpop.permute.xlu0 %7328  ;;  %v7331_v30 = vpop.permute.xlu1 %7330 }
 0x946   :  { %v7363_v15 = vsel %vm113_vm1, 0.0, %v7329_v31  ;;  %v7364_v46 = vsel %vm113_vm1, 0.0, %v7331_v30  ;;  %v16702_v30 = vld [vmem:[#allocation172_spill] sm:$0xff] }
 0x947   :  { %v14039_v63 = vsel %vm126_vm2, %v7363_v15, 0.0  ;;  %v14042_v54 = vsel %vm126_vm2, %v7364_v46, 0.0  ;;  %v4217_v29 = vsel %vm335_vm7, %v4216_v2, %v16702_v30  ;;  %v16714_v30 = vld [vmem:[#allocation185_spill] sm:$0xff] }
 0x948   :  { %v8761_v17 = vrot.slane %v14042_v54, 2  ;;  %v8759_v62 = vrot.slane %v14039_v63, 2  ;;  %v4218_v15 = vsel %vm337_vm8, %v4217_v29, %v16707_v50 }
 0x949   :  { %v7335_v41 = vpop.permute.xlu0 %7334  ;;  %v7337_v42 = vpop.permute.xlu1 %7336 }
 0x94a   :  { %v7367_v48 = vsel %vm113_vm1, 0.0, %v7337_v42  ;;  %v7366_v5 = vsel %vm113_vm1, 0.0, %v7335_v41  ;;  %v3531_v41 = vsel %vm337_vm8, %v3530_v10, %v16706_v13  ;;  %v14100_v12 = vsel %vm1519_vm3, %v8759_v62, %v8761_v17 }
 0x94b   :  { %v14054_v1 = vsel %vm126_vm2, %v7367_v48, 0.0  ;;  %v14064_v39 = vsel %vm126_vm2, %v7366_v5, 0.0  ;;  %v3532_v14 = vsel %vm339_vm9, %v3531_v41, %v16708_v28  ;;  %v16712_v5 = vld [vmem:[#allocation134_spill] sm:$0xff]  ;;  %v4223_v13 = vsel %vm333_vm6, %v4222_v38, %v16715_v19  ;;  %v16716_v41 = vld [vmem:[#allocation37_spill] sm:$0xff] }
 0x94c   :  { %v8766_v46 = vrot.slane %v14054_v1, 2  ;;  %v8764_v58 = vrot.slane %v14064_v39, 2  ;;  %v14139_v38 = vsel %vm341_vm10, %v3532_v14, %v16720_v3 }
 0x94d   :  { %v7341_v49 = vpop.permute.xlu0 %7340  ;;  %v7343_v47 = vpop.permute.xlu1 %7342 }
 0x94e   :  { %v7369_v35 = vsel %vm113_vm1, 0.0, %v7341_v49  ;;  %v7370_v31 = vsel %vm113_vm1, 0.0, %v7343_v47  ;;  %v3053_v49 = vsel %vm331_vm5, %v16712_v5, %v16711_v57  ;;  %v14122_v50 = vsel %vm1519_vm3, %v8764_v58, %v8766_v46  ;;  %v16721_v46 = vld [vmem:[#allocation166_spill] sm:$0xff]  ;;  %v16722_v57 = vld [vmem:[#allocation179_spill] sm:$0xff] }
 0x94f   :  { %v14057_v24 = vsel %vm126_vm2, %v7369_v35, 0.0  ;;  %v14060_v9 = vsel %vm126_vm2, %v7370_v31, 0.0  ;;  %v16713_v35 = vld [vmem:[#allocation174_spill] sm:$0xff]  ;;  %v3054_v29 = vsel %vm333_vm6, %v3053_v49, %v16714_v30  ;;  %v14147_v5 = vsel %vm335_vm7, %v4223_v13, %v16722_v57  ;;  %v16723_v49 = vld [vmem:[#allocation180_spill] sm:$0xff]  ;;  %v16724_v30 = vld [vmem:[#allocation187_spill] sm:$0xff] }
 0x950   :  { %16703 = vst [vmem:[#allocation88_spill] sm:$0xff] %v14057_v24  ;;  %v8771_v8 = vrot.slane %v14060_v9, 2  ;;  %v8769_v25 = vrot.slane %v14057_v24, 2  ;;  %v4219_v31 = vsel %vm339_vm9, %v4218_v15, %v16713_v35 }
 0x951   :  { %v7347_v42 = vpop.permute.xlu0 %7346  ;;  %v7349_v7 = vpop.permute.xlu1 %7348 }
 0x952   :  { %v7372_v33 = vsel %vm113_vm1, 0.0, %v7347_v42  ;;  %v7373_v4 = vsel %vm113_vm1, 0.0, %v7349_v7  ;;  %v14089_v16 = vsel %vm1519_vm3, %v8769_v25, %v8771_v8  ;;  %v16717_v42 = vld [vmem:[#allocation135_spill] sm:$0xff] }
 0x953   :  { %v14082_v60 = vsel %vm126_vm2, %v7372_v33, 0.0  ;;  %v14085_v0 = vsel %vm126_vm2, %v7373_v4, 0.0  ;;  %v8854_v21 = vcombine.low %v14100_v12, %v14089_v16  ;;  %v3283_v7 = vsel %vm331_vm5, %v16717_v42, %v16716_v41 }
 0x954   :  { %v8776_v48 = vrot.slane %v14085_v0, 2  ;;  %v8774_v10 = vrot.slane %v14082_v60, 2 }
 0x955   :  { %v7327_v47 = vpop.permute.xlu0 %7326  ;;  %v7333_v43 = vpop.permute.xlu1 %7332 }
 0x956   :  { %v7362_v17 = vsel %vm113_vm1, 0.0, %v7327_v47  ;;  %v7365_v8 = vsel %vm113_vm1, 0.0, %v7333_v43  ;;  %v14125_v33 = vsel %vm1519_vm3, %v8774_v10, %v8776_v48  ;;  %v14143_v48 = vsel %vm341_vm10, %v4219_v31, %v16721_v46 }
 0x957   :  { %v14128_v15 = vsel %vm126_vm2, %v7362_v17, 0.0  ;;  %v14131_v4 = vsel %vm126_vm2, %v7365_v8, 0.0  ;;  %v8870_v28 = vcombine.low %v14122_v50, %v14125_v33  ;;  %v3055_v47 = vsel %vm335_vm7, %v3054_v29, %v16723_v49  ;;  %v16725_v8 = vld [vmem:[#allocation6_spill] sm:$0xff]  ;;  %v16728_v49 = vld [vmem:[#allocation47_spill] sm:$0xff] }
 0x958   :  { %16718 = vst [vmem:[#allocation75_spill] sm:$0xff] %v14128_v15  ;;  %16719 = vst [vmem:[#allocation95_spill] sm:$0xff] %v14131_v4  ;;  %v14153_v17 = vsel %vm337_vm8, %v3055_v47, %v16724_v30  ;;  %v3284_v14 = vsel %vm333_vm6, %v3283_v7, %v16725_v8  ;;  %v8763_v29 = vrot.slane %v14131_v4, 2  ;;  %v8758_v42 = vrot.slane %v14128_v15, 2  ;;  %v16729_v47 = vld [vmem:[#allocation137_spill] sm:$0xff] }
 0x959   :  { %v7339_v43 = vpop.permute.xlu0 %7338  ;;  %v7345_v35 = vpop.permute.xlu1 %7344  ;;  %v14190_v61 = vrot.slane %v8870_v28, %v9858_v53 }
 0x95a   :  { %v7368_v19 = vsel %vm113_vm1, 0.0, %v7339_v43  ;;  %v7371_v31 = vsel %vm113_vm1, 0.0, %v7345_v35  ;;  %v3060_v43 = vsel %vm331_vm5, %v16729_v47, %v16728_v49  ;;  %v14193_v49 = vsel %vm1519_vm3, %v8763_v29, %v8764_v58 }
 0x95b   :  { %v14160_v41 = vsel %vm126_vm2, %v7368_v19, 0.0  ;;  %v14163_v13 = vsel %vm126_vm2, %v7371_v31, 0.0  ;;  %16732 = vst [vmem:[#allocation86_spill] sm:$0xff] %v14190_v61  ;;  %v3061_v61 = vsel %vm333_vm6, %v3060_v43, %v16742_v44 }
 0x95c   :  { %16726 = vst [vmem:[#allocation109_spill] sm:$0xff] %v14160_v41  ;;  %16727 = vst [vmem:[#allocation29_spill] sm:$0xff] %v14163_v13  ;;  %v7386_v3 = vcombine.low %v14128_v15, %v14160_v41  ;;  %v7387_v7 = vcombine.high %v14128_v15, %v14160_v41  ;;  %v7402_v46 = vcombine.low %v14131_v4, %v14163_v13  ;;  %v8773_v35 = vrot.slane %v14163_v13, 2 }
 0x95d   :  { %v7403_v57 = vcombine.high %v14131_v4, %v14163_v13  ;;  %v8768_v30 = vrot.slane %v14160_v41, 2 }
 0x95e   :  { %v7394_v19 = vrot.slane %v7386_v3, %v9858_v53  ;;  %v7410_v31 = vrot.slane %v7402_v46, %v9858_v53  ;;  %v14184_v26 = vrot.slane %v7387_v7, %v9858_v53  ;;  %v14196_v47 = vsel %vm1519_vm3, %v8773_v35, %v8774_v10 }
 0x95f   :  { %v14187_v2 = vrot.slane %v7403_v57, %v9858_v53  ;;  %v14199_v8 = vsel %vm1519_vm3, %v8768_v30, %v8769_v25  ;;  %v14204_v7 = vsel %vm1519_vm3, %v8758_v42, %v8759_v62  ;;  %v8802_v28 = vcombine.low %v14193_v49, %v14196_v47 }
 0x960   :  { %16730 = vst [vmem:[#allocation10_spill] sm:$0xff] %v14184_v26  ;;  %v7419_v3 = vcombine.high %v7394_v19, %v7410_v31  ;;  %v7418_v46 = vcombine.low %v7394_v19, %v7410_v31  ;;  %v8803_v10 = vcombine.high %v14193_v49, %v14196_v47  ;;  %v8786_v25 = vcombine.low %v14204_v7, %v14199_v8 }
 0x961   :  { %16731 = vst [vmem:[#allocation51_spill] sm:$0xff] %v14187_v2  ;;  %v7434_v58 = vcombine.low %v14184_v26, %v14187_v2  ;;  %v8787_v29 = vcombine.high %v14204_v7, %v14199_v8  ;;  %v14221_v42 = vrot.slane %v8802_v28, %v9858_v53  ;;  %v8069_v35 = vrot.slane %v14131_v4, 1 }
 0x962   :  { %v7433_v57 = vrot.slane %v7419_v3, %v9888_v11  ;;  %v14218_v62 = vrot.slane %v7418_v46, %v9888_v11  ;;  %v14225_v30 = vrot.slane %v8854_v21, %v9858_v53  ;;  %v14228_v19 = vrot.slane %v8786_v25, %v9858_v53 }
 0x963   :  { %16734 = vst [vmem:[#allocation68_spill] sm:$0xff] %v14221_v42  ;;  %v8064_v4 = vrot.slane %v14128_v15, 1  ;;  %v8079_v21 = vrot.slane %v14163_v13, 1  ;;  %v8074_v25 = vrot.slane %v14160_v41, 1  ;;  %v14251_v28 = vrot.slane %v7434_v58, %v9888_v11 }
 0x964   :  { %16733 = vst [vmem:[#allocation24_spill] sm:$0xff] %v14218_v62  ;;  %16735 = vst [vmem:[#allocation79_spill] sm:$0xff] %v14225_v30  ;;  %7527 = vrot.lane.b32.xlu0 %v7433_v57, %s9613_s12  ;;  %v14233_v3 = vpop.permute.xlu1 %4624  ;;  %v7450_v46 = vcombine.high %v14218_v62, %v16112_v27  ;;  %v16738_v62 = vrot.slane %v14064_v39, 1  ;;  %v16740_v31 = vrot.slane %v14082_v60, 1  ;;  %v3062_v42 = vsel %vm335_vm7, %v3061_v61, %v16748_v37 }
 0x965   :  { %16736 = vst [vmem:[#allocation76_spill] sm:$0xff] %v14228_v19  ;;  %16737 = vst [vmem:[#allocation71_spill] sm:$0xff] %v14251_v28  ;;  %v14300_v37 = vrot.slane %v8787_v29, %v9858_v53  ;;  %v16755_v19 = vld [vmem:[#allocation182_spill] sm:$0xff] }
 0x966   :  { %v14247_v52 = vpop.permute.xlu0 %4620  ;;  %7523 = vrot.lane.b32.xlu1 %v7450_v46, %s9616_s15  ;;  %v14256_v41 = vsel %vm824_vm4, %v8069_v35, %v16738_v62  ;;  %v14261_v13 = vsel %vm824_vm4, %v8079_v21, %v16740_v31  ;;  %v16743_v46 = vrot.slane %v14039_v63, 1  ;;  %v16745_v35 = vrot.slane %v14057_v24, 1  ;;  %v16747_v31 = vld [vmem:[#allocation84_spill] sm:$0xff] }
 0x967   :  { %16739 = vst [vmem:[#allocation28_spill] sm:$0xff] %v14256_v41  ;;  %16741 = vst [vmem:[#allocation85_spill] sm:$0xff] %v14261_v13  ;;  %v8108_v62 = vcombine.low %v14256_v41, %v14261_v13  ;;  %v3285_v21 = vsel %vm335_vm7, %v3284_v14, %v16747_v31  ;;  %v14297_v14 = vrot.slane %v8803_v10, %v9858_v53 }
 0x968   :  { %v14270_v58 = vsel %vm824_vm4, %v8064_v4, %v16743_v46  ;;  %v14277_v30 = vsel %vm824_vm4, %v8074_v25, %v16745_v35  ;;  %7535 = vrot.lane.b32.xlu0 %v14251_v28, %s9614_s13  ;;  %v14285_v44 = vpop.permute.xlu1 %4632  ;;  %v7451_v4 = vcombine.high %v7433_v57, %v16112_v27  ;;  %v16749_v25 = vcombine.high %v14122_v50, %v14125_v33  ;;  %v16752_v35 = vld [vmem:[#allocation156_spill] sm:$0xff]  ;;  %v16754_v28 = vld [vmem:[#allocation181_spill] sm:$0xff] }
 0x969   :  { %16744 = vst [vmem:[#allocation46_spill] sm:$0xff] %v14270_v58  ;;  %16746 = vst [vmem:[#allocation73_spill] sm:$0xff] %v14277_v30  ;;  %v8092_v43 = vcombine.low %v14270_v58, %v14277_v30  ;;  %v14303_v61 = vrot.slane %v8108_v62, %v9858_v53  ;;  %v4225_v57 = vsel %vm337_vm8, %v14147_v5, %v16752_v35  ;;  %v16756_v35 = vld [vmem:[#allocation26_spill] sm:$0xff] }
 0x96a   :  { %v14294_v46 = vrot.slane %v16749_v25, %v9858_v53  ;;  %v14308_v31 = vpop.permute.xlu0 %4628  ;;  %7531 = vrot.lane.b32.xlu1 %v7451_v4, %s9617_s16  ;;  %v8109_v25 = vcombine.high %v14256_v41, %v14261_v13  ;;  %v8093_v10 = vcombine.high %v14270_v58, %v14277_v30  ;;  %v4226_v62 = vsel %vm339_vm9, %v4225_v57, %v16754_v28  ;;  %v16759_v30 = vld [vmem:[#allocation189_spill] sm:$0xff]  ;;  %v16760_v13 = vld [vmem:[#allocation14_spill] sm:$0xff]  ;;  %v16761_v28 = vld [vmem:[#allocation188_spill] sm:$0xff] }
 0x96b   :  { %16751 = vst [vmem:[#allocation11_spill] sm:$0xff] %v14303_v61  ;;  %v14316_v29 = vrot.slane %v8092_v43, %v9858_v53  ;;  %v3057_v5 = vsel %vm339_vm9, %v14153_v17, %v16755_v19  ;;  %v3286_v11 = vsel %vm337_vm8, %v3285_v21, %v16756_v35  ;;  %v16757_v4 = vcombine.high %v14100_v12, %v14089_v16  ;;  %v16762_v21 = vld [vmem:[#allocation35_spill] sm:$0xff]  ;;  %v16781_v41 = vld [vmem:[#allocation9_spill] sm:$0xff] }
 0x96c   :  { %16750 = vst [vmem:[#allocation8_spill] sm:$0xff] %v14294_v46  ;;  %v3058_v43 = vsel %vm341_vm10, %v3057_v5, %v16759_v30  ;;  %v3287_v58 = vsel %vm339_vm9, %v3286_v11, %v16760_v13  ;;  %v3063_v57 = vsel %vm337_vm8, %v3062_v42, %v16761_v28  ;;  %8998 = vrot.lane.b32.xlu0 %v14122_v50, %s9609_s10  ;;  %v14339_v17 = vpop.permute.xlu1 %4640  ;;  %v16763_v42 = vld [vmem:[#allocation64_spill] sm:$0xff]  ;;  %v16769_v19 = vld [vmem:[#allocation159_spill] sm:$0xff] }
 0x96d   :  { %16753 = vst [vmem:[#allocation50_spill] sm:$0xff] %v14316_v29  ;;  %v14329_v15 = vrot.slane %v16757_v4, %v9858_v53  ;;  %v3064_v35 = vsel %vm339_vm9, %v3063_v57, %v16762_v21  ;;  %v16764_v5 = vld [vmem:[#allocation144_spill] sm:$0xff]  ;;  %v14359_v57 = vrot.slane %v8109_v25, %v9858_v53  ;;  %v14362_v21 = vrot.slane %v8093_v10, %v9858_v53  ;;  %v16770_v61 = vld [vmem:[#allocation183_spill] sm:$0xff] }
 0x96e   :  { %v3290_v4 = vsel %vm331_vm5, %v16764_v5, %v16763_v42  ;;  %v14354_v28 = vpop.permute.xlu0 %4636  ;;  %8994 = vrot.lane.b32.xlu1 %v14100_v12, %s9609_s10  ;;  %v16767_v30 = vld [vmem:[#allocation176_spill] sm:$0xff]  ;;  %v16768_v42 = vld [vmem:[#allocation5_spill] sm:$0xff]  ;;  %v4227_v25 = vsel %vm341_vm10, %v4226_v62, %v16769_v19  ;;  %v4452_v10 = vsel %vm331_vm5, %v13839_v59, %v13903_v56 }
 0x96f   :  { %16758 = vst [vmem:[#allocation105_spill] sm:$0xff] %v14329_v15  ;;  %16765 = vst [vmem:[#allocation107_spill] sm:$0xff] %v14359_v57  ;;  %v14369_v13 = vsel %vm343_vm11, %v14139_v38, %v16767_v30  ;;  %v14374_v5 = vsel %vm343_vm11, %v14143_v48, %v16768_v42  ;;  %v14383_v11 = vsel %vm343_vm11, %v4227_v25, %v16770_v61  ;;  %v16771_v46 = vld [vmem:[#allocation184_spill] sm:$0xff]  ;;  %v16772_v30 = vld [vmem:[#allocation19_spill] sm:$0xff] }
 0x970   :  { %16766 = vst [vmem:[#allocation12_spill] sm:$0xff] %v14362_v21  ;;  %v14387_v38 = vsel %vm343_vm11, %v3058_v43, %v16771_v46  ;;  %v14391_v15 = vsel %vm341_vm10, %v3287_v58, %v16772_v30  ;;  %v16773_v48 = vld [vmem:[#allocation202_spill] sm:$0xff]  ;;  %v16774_v42 = vld [vmem:[#allocation175_spill] sm:$0xff]  ;;  %9006 = vrot.lane.b32.xlu0 %v14125_v33, %s9609_s10  ;;  %v4649_v59 = vpop.permute.xlu1 %4648  ;;  %v16775_v56 = vld [vmem:[#allocation33_spill] sm:$0xff] }
 0x971   :  { %v4445_v62 = vsel %vm331_vm5, %v16774_v42, %v16773_v48  ;;  %v3065_v61 = vsel %vm341_vm10, %v3064_v35, %v16775_v56  ;;  %v16776_v19 = vld [vmem:[#allocation56_spill] sm:$0xff]  ;;  %v16777_v46 = vld [vmem:[#allocation194_spill] sm:$0xff]  ;;  %v16778_v43 = vld [vmem:[#allocation165_spill] sm:$0xff]  ;;  %v4453_v35 = vsel %vm333_vm6, %v4452_v10, %v13901_v36 }
 0x972   :  { %v3291_v25 = vsel %vm333_vm6, %v3290_v4, %v16776_v19  ;;  %v3981_v29 = vsel %vm331_vm5, %v16778_v43, %v16777_v46  ;;  %v16779_v58 = vld [vmem:[#allocation203_spill] sm:$0xff]  ;;  %v16780_v30 = vld [vmem:[#allocation177_spill] sm:$0xff]  ;;  %v14410_v48 = vsel %vm343_vm11, %v3065_v61, %v16781_v41  ;;  %v14416_v56 = vpop.permute.xlu0 %4644  ;;  %9002 = vrot.lane.b32.xlu1 %v14089_v16, %s9609_s10  ;;  %v16783_v19 = vld [vmem:[#allocation38_spill] sm:$0xff] }
 0x973   :  { %v3988_v53 = vsel %vm331_vm5, %v16780_v30, %v16779_v58  ;;  %v16782_v42 = vld [vmem:[#allocation31_spill] sm:$0xff]  ;;  %v16784_v46 = vld [vmem:[#allocation157_spill] sm:$0xff]  ;;  %v16786_v10 = vld [vmem:[#allocation16_spill] sm:$0xff] }
 0x974   :  { %v3292_v27 = vsel %vm335_vm7, %v3291_v25, %v16782_v42  ;;  %v3751_v43 = vsel %vm331_vm5, %v16784_v46, %v16783_v19  ;;  %v16785_v41 = vld [vmem:[#allocation193_spill] sm:$0xff]  ;;  %v4454_v25 = vsel %vm335_vm7, %v4453_v35, %v13911_v23  ;;  %v3982_v58 = vsel %vm333_vm6, %v3981_v29, %v16786_v10  ;;  %v16787_v30 = vld [vmem:[#allocation204_spill] sm:$0xff]  ;;  %8996 = vrot.lane.b32.xlu0 %v14193_v49, %s9609_s10  ;;  %v4657_v19 = vpop.permute.xlu1 %4656 }
 0x975   :  { %v4446_v61 = vsel %vm333_vm6, %v4445_v62, %v16785_v41  ;;  %v16788_v4 = vld [vmem:[#allocation52_spill] sm:$0xff]  ;;  %v16790_v46 = vld [vmem:[#allocation205_spill] sm:$0xff]  ;;  %v4455_v62 = vsel %vm337_vm8, %v4454_v25, %v13909_v45 }
 0x976   :  { %v4447_v42 = vsel %vm335_vm7, %v4446_v61, %v16787_v30  ;;  %v3989_v24 = vsel %vm333_vm6, %v3988_v53, %v16788_v4  ;;  %v16789_v23 = vld [vmem:[#allocation196_spill] sm:$0xff]  ;;  %v4675_v53 = vsel %vm331_vm5, %v13945_v40, %v14247_v52  ;;  %v16792_v10 = vld [vmem:[#allocation41_spill] sm:$0xff]  ;;  %8992 = vrot.lane.b32.xlu1 %v14204_v7, %s9609_s10  ;;  %v16794_v40 = vld [vmem:[#allocation195_spill] sm:$0xff] }
 0x977   :  { %v3983_v35 = vsel %vm335_vm7, %v3982_v58, %v16789_v23  ;;  %v3990_v41 = vsel %vm335_vm7, %v3989_v24, %v16790_v46  ;;  %v4448_v29 = vsel %vm337_vm8, %v4447_v42, %v13888_v22  ;;  %v16791_v4 = vld [vmem:[#allocation4_spill] sm:$0xff]  ;;  %v3752_v30 = vsel %vm333_vm6, %v3751_v43, %v16792_v10  ;;  %v4653_v24 = vpop.permute.xlu0 %4652  ;;  %v16793_v22 = vld [vmem:[#allocation63_spill] sm:$0xff]  ;;  %v16798_v10 = vld [vmem:[#allocation206_spill] sm:$0xff] }
 0x978   :  { %v3293_v61 = vsel %vm337_vm8, %v3292_v27, %v16791_v4  ;;  %v4682_v58 = vsel %vm331_vm5, %v13960_v6, %v4649_v59  ;;  %v3753_v42 = vsel %vm335_vm7, %v3752_v30, %v16793_v22  ;;  %v16795_v52 = vld [vmem:[#allocation167_spill] sm:$0xff]  ;;  %v4456_v43 = vsel %vm339_vm9, %v4455_v62, %v13919_v55  ;;  %v16796_v45 = vld [vmem:[#allocation20_spill] sm:$0xff]  ;;  %v16797_v6 = vld [vmem:[#allocation58_spill] sm:$0xff]  ;;  %9004 = vrot.lane.b32.xlu0 %v14196_v47, %s9609_s10  ;;  %v4665_v30 = vpop.permute.xlu1 %4664 }
 0x979   :  { %v3758_v27 = vsel %vm331_vm5, %v16795_v52, %v16794_v40  ;;  %v4683_v23 = vsel %vm333_vm6, %v4682_v58, %v4653_v24  ;;  %v3984_v25 = vsel %vm337_vm8, %v3983_v35, %v16796_v45  ;;  %v3991_v59 = vsel %vm337_vm8, %v3990_v41, %v16797_v6  ;;  %v16802_v40 = vld [vmem:[#allocation197_spill] sm:$0xff]  ;;  %v16805_v6 = vld [vmem:[#allocation190_spill] sm:$0xff] }
 0x97a   :  { %v4449_v46 = vsel %vm339_vm9, %v4448_v29, %v13886_v32  ;;  %v4676_v4 = vsel %vm333_vm6, %v4675_v53, %v14233_v3  ;;  %v3992_v55 = vsel %vm339_vm9, %v3991_v59, %v16798_v10  ;;  %v16799_v32 = vld [vmem:[#allocation45_spill] sm:$0xff]  ;;  %v16800_v3 = vld [vmem:[#allocation198_spill] sm:$0xff]  ;;  %v4457_v58 = vsel %vm341_vm10, %v4456_v43, %v13917_v34  ;;  %9000 = vrot.lane.b32.xlu1 %v14199_v8, %s9609_s10  ;;  %v16804_v43 = vld [vmem:[#allocation91_spill] sm:$0xff] }
 0x97b   :  { %v4450_v62 = vsel %vm341_vm10, %v4449_v46, %v13895_v51  ;;  %v4677_v35 = vsel %vm335_vm7, %v4676_v4, %v14308_v31  ;;  %v3759_v29 = vsel %vm333_vm6, %v3758_v27, %v16799_v32  ;;  %v3985_v53 = vsel %vm339_vm9, %v3984_v25, %v16800_v3  ;;  %v4661_v24 = vpop.permute.xlu0 %4660  ;;  %v16801_v51 = vld [vmem:[#allocation27_spill] sm:$0xff]  ;;  %v16803_v25 = vld [vmem:[#allocation57_spill] sm:$0xff] }
 0x97c   :  { %v4684_v22 = vsel %vm335_vm7, %v4683_v23, %v4657_v19  ;;  %v3294_v31 = vsel %vm339_vm9, %v3293_v61, %v16801_v51  ;;  %v3760_v52 = vsel %vm335_vm7, %v3759_v29, %v16802_v40  ;;  %v4458_v27 = vsel %vm343_vm11, %v4457_v58, %v13925_v18  ;;  %9228 = vrot.lane.b32.xlu0 %v14122_v50, %s9610_s11  ;;  %v16806_v59 = vld [vmem:[#allocation191_spill] sm:$0xff] }
 0x97d   :  { %v4685_v45 = vsel %vm337_vm8, %v4684_v22, %v4661_v24  ;;  %v3754_v34 = vsel %vm337_vm8, %v3753_v42, %v16803_v25  ;;  %v3993_v19 = vsel %vm341_vm10, %v3992_v55, %v16804_v43  ;;  %v4451_v23 = vsel %vm343_vm11, %v4450_v62, %v13893_v20  ;;  %v16807_v4 = vld [vmem:[#allocation207_spill] sm:$0xff]  ;;  %v16808_v55 = vld [vmem:[#allocation18_spill] sm:$0xff]  ;;  %v16809_v62 = vld [vmem:[#allocation200_spill] sm:$0xff] }
 0x97e   :  { %v4678_v61 = vsel %vm337_vm8, %v4677_v35, %v14285_v44  ;;  %v3755_v18 = vsel %vm339_vm9, %v3754_v34, %v16805_v6  ;;  %v3986_v46 = vsel %vm341_vm10, %v3985_v53, %v16806_v59  ;;  %v3994_v42 = vsel %vm343_vm11, %v3993_v19, %v16807_v4  ;;  %9224 = vrot.lane.b32.xlu1 %v14100_v12, %s9610_s11  ;;  %v16810_v29 = vld [vmem:[#allocation199_spill] sm:$0xff]  ;;  %v16811_v22 = vld [vmem:[#allocation21_spill] sm:$0xff]  ;;  %v16814_v43 = vld [vmem:[#allocation44_spill] sm:$0xff] }
 0x97f   :  { %v4679_v10 = vsel %vm339_vm9, %v4678_v61, %v14354_v28  ;;  %v3761_v20 = vsel %vm337_vm8, %v3760_v52, %v16808_v55  ;;  %v3987_v44 = vsel %vm343_vm11, %v3986_v46, %v16809_v62  ;;  %v4710_v35 = vrot.slane %v4458_v27, 4  ;;  %v4669_v50 = vpop.permute.xlu0 %4668  ;;  %v4673_v28 = vpop.permute.xlu1 %4672  ;;  %v16812_v52 = vld [vmem:[#allocation65_spill] sm:$0xff]  ;;  %v16818_v59 = vld [vmem:[#allocation192_spill] sm:$0xff]  ;;  %v16822_v62 = vld [vmem:[#allocation154_spill] sm:$0xff] }
 0x980   :  { %v4686_v32 = vsel %vm339_vm9, %v4685_v45, %v4665_v30  ;;  %v3762_v3 = vsel %vm339_vm9, %v3761_v20, %v16810_v29  ;;  %v4709_v53 = vrot.slane %v4451_v23, 4  ;;  %v8072_v58 = vrot.slane %v14054_v1, 1  ;;  %9236 = vrot.lane.b32.xlu0 %v14125_v33, %s9610_s11  ;;  %v16813_v34 = vld [vmem:[#allocation49_spill] sm:$0xff]  ;;  %v16821_v55 = vld [vmem:[#allocation92_spill] sm:$0xff] }
 0x981   :  { %v4687_v24 = vsel %vm341_vm10, %v4686_v32, %v4669_v50  ;;  %v3295_v51 = vsel %vm341_vm10, %v3294_v31, %v16811_v22  ;;  %v4704_v40 = vrot.slane %v3994_v42, 4  ;;  %v4680_v12 = vsel %vm341_vm10, %v4679_v10, %v14339_v17  ;;  %v16815_v17 = vld [vmem:[#allocation201_spill] sm:$0xff]  ;;  %v16820_v10 = vld [vmem:[#allocation147_spill] sm:$0xff]  ;;  %v16824_v50 = vld [vmem:[#allocation34_spill] sm:$0xff] }
 0x982   :  { %v4688_v30 = vsel %vm343_vm11, %v4687_v24, %v4673_v28  ;;  %v3296_v27 = vsel %vm343_vm11, %v3295_v51, %v16812_v52  ;;  %v4703_v45 = vrot.slane %v3987_v44, 4  ;;  %v8067_v1 = vrot.slane %v14042_v54, 1  ;;  %9232 = vrot.lane.b32.xlu1 %v14089_v16, %s9610_s11  ;;  %v16817_v16 = vld [vmem:[#allocation39_spill] sm:$0xff]  ;;  %v22_v24 = vld [vmem:[%s15930_s3] sm:$0xff]  ;;  %v16828_v22 = vld [vmem:[#allocation88_spill] sm:$0xff] }
 0x983   :  { %9571 = vmatprep.subr.msk.mxu1 %vm2238_vm12, %v4688_v30  ;;  %v4681_v31 = vsel %vm343_vm11, %v4680_v12, %v14416_v56  ;;  %v4698_v25 = vrot.slane %v14369_v13, 4  ;;  %v3756_v33 = vsel %vm341_vm10, %v3755_v18, %v16813_v34  ;;  %v3763_v19 = vsel %vm341_vm10, %v3762_v3, %v16814_v43  ;;  %v16831_v52 = vld [vmem:[#allocation28_spill] sm:$0xff] }
 0x984   :  { %9572 = vmatpush1.msk.msra.mxu1 %vm2238_vm12, %v4681_v31  ;;  %v4720_v54 = vsel %vm2238_vm12, %v14383_v11, %v4710_v35  ;;  %v3764_v23 = vsel %vm343_vm11, %v3763_v19, %v16815_v17  ;;  %v8082_v56 = vrot.slane %v14085_v0, 1  ;;  %v16816_v13 = vrot.slane %v14064_v39, 1 }
 0x985   :  { %4759 = vmatprep.subr.mxu1 %v4720_v54  ;;  %v4719_v6 = vsel %vm2238_vm12, %v14374_v5, %v4709_v53  ;;  %v3289_v18 = vsel %vm343_vm11, %v14391_v15, %v16817_v16  ;;  %v4692_v11 = vrot.slane %v14410_v48, 4  ;;  %v3757_v46 = vsel %vm343_vm11, %v3756_v33, %v16818_v59  ;;  %v16826_v53 = vld [vmem:[#allocation140_spill] sm:$0xff]  ;;  %v16844_v16 = vld [vmem:[#allocation2_spill] sm:$0xff] }
 0x986   :  { %v14560_v61 = vsel %vm824_vm4, %v16816_v13, %v8072_v58  ;;  %4760 = vmatpush1.msra.mxu1 %v4719_v6  ;;  %v4718_v0 = vsel %vm2238_vm12, %v3764_v23, %v4704_v40  ;;  %v4691_v4 = vrot.slane %v14387_v38, 4  ;;  %v8077_v42 = vrot.slane %v14060_v9, 1  ;;  %v16827_v58 = vld [vmem:[#allocation82_spill] sm:$0xff] }
 0x987   :  { %8534 = vrot.lane.b32.xlu0 %v14560_v61, %s9610_s11  ;;  %4761 = vmatprep.subr.mxu1 %v4718_v0  ;;  %v16819_v5 = vrot.slane %v14039_v63, 1  ;;  %v4717_v48 = vsel %vm2238_vm12, %v3757_v46, %v4703_v45  ;;  %v2827_v20 = vsel %vm341_vm10, %v16821_v55, %v16820_v10  ;;  %v4716_v38 = vsel %vm2238_vm12, %v3296_v27, %v4698_v25  ;;  %v16832_v27 = vld [vmem:[#allocation46_spill] sm:$0xff]  ;;  %v16833_v45 = vld [vmem:[#allocation85_spill] sm:$0xff] }
 0x988   :  { %4762 = vmatpush1.msra.mxu1 %v4717_v48  ;;  %v2828_v9 = vsel %vm343_vm11, %v2827_v20, %v16822_v62  ;;  %v16823_v44 = vrot.slane %v14082_v60, 1  ;;  %v16825_v32 = vrot.slane %v16824_v50, 4  ;;  %v2821_v28 = vsel %vm343_vm11, %v16827_v58, %v16826_v53 }
 0x989   :  { %v14578_v15 = vsel %vm824_vm4, %v16819_v5, %v8067_v1  ;;  %4763 = vmatprep.subr.mxu1 %v4716_v38  ;;  %v4714_v3 = vsel %vm2238_vm12, %v2828_v9, %v4692_v11  ;;  %v16829_v51 = vrot.slane %v16828_v22, 1  ;;  %v4713_v30 = vsel %vm2238_vm12, %v2821_v28, %v4691_v4  ;;  %v16838_v1 = vld [vmem:[#allocation109_spill] sm:$0xff] }
 0x98a   :  { %8530 = vrot.lane.b32.xlu1 %v14578_v15, %s9610_s11  ;;  %v14592_v35 = vsel %vm824_vm4, %v16823_v44, %v8082_v56  ;;  %v4715_v29 = vsel %vm2238_vm12, %v3289_v18, %v16825_v32  ;;  %v16830_v12 = vmov 0.0  }
 0x98b   :  { %8542 = vrot.lane.b32.xlu0 %v14592_v35, %s9610_s11  ;;  %4764 = vmatpush1.msra.mxu1 %v4715_v29  ;;  %v14609_v40 = vsel %vm824_vm4, %v16829_v51, %v8077_v42  ;;  %v14680_v31 = vpop.permute.xlu0 %4723  ;;  %v16845_v42 = vld [vmem:[#allocation3_spill] sm:$0xff]  ;;  %v8176_v2 = vcombine.low %v14560_v61, %v14592_v35 }
 0x98c   :  { %4765 = vmatprep.subr.mxu1 %v4714_v3  ;;  %16839 = vst [vmem:[#allocation106_spill] sm:$0xff] %v14680_v31 }
 0x98d   :  { %4766 = vmatpush1.msra.mxu1 %v4713_v30 }
 0x98e   :  { %8538 = vrot.lane.b32.xlu1 %v14609_v40, %s9610_s11  ;;  %9573 = vmatmul.mubr.msk.f32.vlgmr.msra.gmra.mxu1 %vm2252_vm13, %v22_v24 }
 0x98f   :  { %9226 = vrot.lane.b32.xlu0 %v14193_v49, %s9610_s11  ;;  %9554 = vmatprep.mubr.f32.mxu1 %v16830_v12  ;;  %v16834_v49 = vld [vmem:[#allocation73_spill] sm:$0xff] }
 0x992   :  { %9222 = vrot.lane.b32.xlu1 %v14204_v7, %s9610_s11  ;;  %v16837_v7 = vld [vmem:[#allocation29_spill] sm:$0xff] }
 0x993   :  { %9234 = vrot.lane.b32.xlu0 %v14196_v47, %s9610_s11  ;;  %v16836_v47 = vld [vmem:[#allocation75_spill] sm:$0xff] }
 0x996   :  { %9230 = vrot.lane.b32.xlu1 %v14199_v8, %s9610_s11  ;;  %v16835_v8 = vld [vmem:[#allocation95_spill] sm:$0xff] }
 0x997   :  { %8532 = vrot.lane.b32.xlu0 %v16831_v52, %s9610_s11 }
 0x99a   :  { %8528 = vrot.lane.b32.xlu1 %v16832_v27, %s9610_s11 }
 0x99b   :  { %8540 = vrot.lane.b32.xlu0 %v16833_v45, %s9610_s11 }
 0x99e   :  { %8536 = vrot.lane.b32.xlu1 %v16834_v49, %s9610_s11 }
 0x99f   :  { %8304 = vrot.lane.b32.xlu0 %v14560_v61, %s9609_s10 }
 0x9a2   :  { %8300 = vrot.lane.b32.xlu1 %v14578_v15, %s9609_s10 }
 0x9a3   :  { %8312 = vrot.lane.b32.xlu0 %v14592_v35, %s9609_s10 }
 0x9a6   :  { %8308 = vrot.lane.b32.xlu1 %v14609_v40, %s9609_s10 }
 0x9a7   :  { %8302 = vrot.lane.b32.xlu0 %v16831_v52, %s9609_s10 }
 0x9aa   :  { %8298 = vrot.lane.b32.xlu1 %v16832_v27, %s9609_s10 }
 0x9ab   :  { %8310 = vrot.lane.b32.xlu0 %v16833_v45, %s9609_s10 }
 0x9ae   :  { %8306 = vrot.lane.b32.xlu1 %v16834_v49, %s9609_s10 }
 0x9af   :  { %7606 = vrot.lane.b32.xlu0 %v14064_v39, %s9609_s10 }
 0x9b2   :  { %7602 = vrot.lane.b32.xlu1 %v14039_v63, %s9609_s10 }
 0x9b3   :  { %7614 = vrot.lane.b32.xlu0 %v14082_v60, %s9609_s10 }
 0x9b6   :  { %7610 = vrot.lane.b32.xlu1 %v16828_v22, %s9609_s10 }
 0x9b7   :  { %7836 = vrot.lane.b32.xlu0 %v14064_v39, %s9610_s11 }
 0x9ba   :  { %7832 = vrot.lane.b32.xlu1 %v14039_v63, %s9610_s11 }
 0x9bb   :  { %7844 = vrot.lane.b32.xlu0 %v14082_v60, %s9610_s11 }
 0x9be   :  { %7840 = vrot.lane.b32.xlu1 %v16828_v22, %s9610_s11 }
 0x9bf   :  { %7604 = vrot.lane.b32.xlu0 %v16835_v8, %s9609_s10 }
 0x9c2   :  { %7600 = vrot.lane.b32.xlu1 %v16836_v47, %s9609_s10 }
 0x9c3   :  { %7612 = vrot.lane.b32.xlu0 %v16837_v7, %s9609_s10 }
 0x9c6   :  { %7608 = vrot.lane.b32.xlu1 %v16838_v1, %s9609_s10 }
 0x9c7   :  { %7834 = vrot.lane.b32.xlu0 %v16835_v8, %s9610_s11 }
 0x9ca   :  { %7830 = vrot.lane.b32.xlu1 %v16836_v47, %s9610_s11 }
 0x9cb   :  { %7842 = vrot.lane.b32.xlu0 %v16837_v7, %s9610_s11 }
 0x9ce   :  { %7838 = vrot.lane.b32.xlu1 %v16838_v1, %s9610_s11 }
 0x9d6   :  { %v14682_v25 = vpop.permute.xlu0 %7527 }
 0x9d7   :  { %16840 = vst [vmem:[#allocation54_spill] sm:$0xff] %v14682_v25 }
 0x9d8   :  { %v14684_v34 = vpop.permute.xlu1 %7523 }
 0x9d9   :  { %16841 = vst [vmem:[#allocation15_spill] sm:$0xff] %v14684_v34 }
 0x9da   :  { %v14686_v33 = vpop.permute.xlu0 %7535 }
 0x9db   :  { %16842 = vst [vmem:[#allocation93_spill] sm:$0xff] %v14686_v33 }
 0x9dc   :  { %v14688_v43 = vpop.permute.xlu1 %7531 }
 0x9dd   :  { %16843 = vst [vmem:[#allocation89_spill] sm:$0xff] %v14688_v43 }
 0x9de   :  { %v14690_v19 = vpop.permute.xlu0 %8998 }
 0x9e0   :  { %v14692_v54 = vpop.permute.xlu1 %8994 }
 0x9e2   :  { %v14694_v17 = vpop.permute.xlu0 %9006 }
 0x9e3   :  { %v9100_v23 = vcombine.low %v14690_v19, %v14694_v17 }
 0x9e4   :  { %v14698_v56 = vpop.permute.xlu1 %9002 }
 0x9e5   :  { %v9084_v13 = vcombine.low %v14692_v54, %v14698_v56  ;;  %v9108_v18 = vrot.slane %v9100_v23, %v16844_v16 }
 0x9e6   :  { %v14702_v6 = vpop.permute.xlu0 %8996 }
 0x9e7   :  { %v9092_v11 = vrot.slane %v9084_v13, %v16844_v16 }
 0x9e8   :  { %v14706_v59 = vpop.permute.xlu1 %8992 }
 0x9e9   :  { %v9116_v46 = vcombine.low %v9092_v11, %v9108_v18  ;;  %v9117_v55 = vcombine.high %v9092_v11, %v9108_v18  ;;  %v16849_v18 = vld [vmem:[#allocation79_spill] sm:$0xff]  ;;  %v16850_v11 = vld [vmem:[#allocation86_spill] sm:$0xff] }
 0x9ea   :  { %v14708_v0 = vpop.permute.xlu0 %9004 }
 0x9eb   :  { %v9032_v4 = vcombine.low %v14702_v6, %v14708_v0  ;;  %v14713_v5 = vrot.slane %v9116_v46, %v16845_v42  ;;  %v9131_v29 = vrot.slane %v9117_v55, %v16845_v42  ;;  %v16851_v46 = vcombine.low %v16849_v18, %v16850_v11 }
 0x9ec   :  { %v14715_v48 = vpop.permute.xlu1 %9000 }
 0x9ed   :  { %16846 = vst [vmem:[#allocation83_spill] sm:$0xff] %v14713_v5  ;;  %v9016_v10 = vcombine.low %v14706_v59, %v14715_v48  ;;  %v9148_v38 = vcombine.high %v14713_v5, %v16830_v12  ;;  %v9040_v62 = vrot.slane %v9032_v4, %v16844_v16  ;;  %v14769_v4 = vrot.slane %v16851_v46, %v16845_v42 }
 0x9ee   :  { %v14719_v20 = vpop.permute.xlu0 %9228  ;;  %v9149_v36 = vcombine.high %v9131_v29, %v16830_v12 }
 0x9ef   :  { %v9024_v9 = vrot.slane %v9016_v10, %v16844_v16  ;;  %9181 = vrot.lane.b32.xlu1 %v9148_v38, %s9616_s15  ;;  %16852 = vst [vmem:[#allocation7_spill] sm:$0xff] %v14769_v4 }
 0x9f0   :  { %v14726_v44 = vpop.permute.xlu1 %9224 }
 0x9f1   :  { %v9048_v50 = vcombine.low %v9024_v9, %v9040_v62 }
 0x9f2   :  { %v14728_v32 = vpop.permute.xlu0 %9236 }
 0x9f3   :  { %v9330_v3 = vcombine.low %v14719_v20, %v14728_v32  ;;  %v14734_v53 = vrot.slane %v9048_v50, %v16845_v42  ;;  %9185 = vrot.lane.b32.xlu1 %v9131_v29, %s9613_s12 }
 0x9f4   :  { %v14737_v58 = vpop.permute.xlu1 %9232 }
 0x9f5   :  { %16847 = vst [vmem:[#allocation87_spill] sm:$0xff] %v14734_v53  ;;  %v9314_v28 = vcombine.low %v14726_v44, %v14737_v58  ;;  %v9080_v51 = vcombine.high %v14734_v53, %v16830_v12  ;;  %v9338_v30 = vrot.slane %v9330_v3, %v16844_v16  ;;  %v8160_v53 = vcombine.low %v14578_v15, %v14609_v40 }
 0x9f7   :  { %v9322_v52 = vrot.slane %v9314_v28, %v16844_v16  ;;  %9153 = vrot.lane.b32.xlu0 %v9080_v51, %s9616_s15  ;;  %v8918_v28 = vcombine.high %v14769_v4, %v16830_v12  ;;  %v8168_v57 = vrot.slane %v8160_v53, %v16844_v16 }
 0x9f9   :  { %v14741_v24 = vpop.permute.xlu0 %8534  ;;  %v9346_v45 = vcombine.low %v9322_v52, %v9338_v30  ;;  %v9347_v46 = vcombine.high %v9322_v52, %v9338_v30 }
 0x9fb   :  { %v14755_v47 = vrot.slane %v9346_v45, %v16845_v42  ;;  %v9361_v52 = vrot.slane %v9347_v46, %v16845_v42 }
 0x9fc   :  { %v14748_v27 = vpop.permute.xlu1 %8530 }
 0x9fd   :  { %v14750_v49 = vpop.permute.xlu0 %8542  ;;  %16848 = vst [vmem:[#allocation17_spill] sm:$0xff] %v14755_v47  ;;  %v9378_v13 = vcombine.high %v14755_v47, %v16830_v12 }
 0x9fe   :  { %v8636_v8 = vcombine.low %v14741_v24, %v14750_v49 }
 0x9ff   :  { %9411 = vrot.lane.b32.xlu0 %v9378_v13, %s9616_s15  ;;  %v9049_v13 = vcombine.high %v9024_v9, %v9040_v62  ;;  %v9085_v9 = vcombine.high %v14692_v54, %v14698_v56 }
 0xa00   :  { %v14757_v7 = vpop.permute.xlu1 %8538  ;;  %v8644_v10 = vrot.slane %v8636_v8, %v16844_v16 }
 0xa01   :  { %v8620_v1 = vcombine.low %v14748_v27, %v14757_v7  ;;  %v14761_v23 = vpop.permute.xlu0 %9226 }
 0xa03   :  { %v8628_v55 = vrot.slane %v8620_v1, %v16844_v16  ;;  %8951 = vrot.lane.b32.xlu0 %v8918_v28, %s9616_s15 }
 0xa04   :  { %v14774_v38 = vpop.permute.xlu1 %9222 }
 0xa05   :  { %v8652_v50 = vcombine.low %v8628_v55, %v8644_v10  ;;  %v14776_v3 = vpop.permute.xlu0 %9234  ;;  %v8653_v29 = vcombine.high %v8628_v55, %v8644_v10  ;;  %v14815_v10 = vrot.slane %v9085_v9, %v16844_v16 }
 0xa06   :  { %v9262_v51 = vcombine.low %v14761_v23, %v14776_v3 }
 0xa07   :  { %v14783_v45 = vrot.slane %v8652_v50, %v16845_v42  ;;  %9189 = vrot.lane.b32.xlu0 %v9149_v36, %s9617_s16  ;;  %v9101_v36 = vcombine.high %v14690_v19, %v14694_v17 }
 0xa08   :  { %v14786_v8 = vpop.permute.xlu1 %9230  ;;  %v14794_v43 = vrot.slane %v9262_v51, %v16844_v16  ;;  %v9063_v51 = vrot.slane %v9049_v13, %v16845_v42 }
 0xa09   :  { %16853 = vst [vmem:[#allocation60_spill] sm:$0xff] %v14783_v45  ;;  %v9246_v1 = vcombine.low %v14774_v38, %v14786_v8  ;;  %v8533_v41 = vpop.permute.xlu0 %8532  ;;  %v8684_v33 = vcombine.high %v14783_v45, %v16830_v12 }
 0xa0b   :  { %v14797_v50 = vrot.slane %v9246_v1, %v16844_v16  ;;  %8717 = vrot.lane.b32.xlu1 %v8684_v33, %s9616_s15  ;;  %9415 = vrot.lane.b32.xlu0 %v9361_v52, %s9613_s12 }
 0xa0c   :  { %v8529_v28 = vpop.permute.xlu1 %8528 }
 0xa0d   :  { %v9278_v62 = vcombine.low %v14797_v50, %v14794_v43  ;;  %v8541_v30 = vpop.permute.xlu0 %8540 }
 0xa0e   :  { %v8568_v25 = vcombine.low %v8533_v41, %v8541_v30  ;;  %v8569_v1 = vcombine.high %v8533_v41, %v8541_v30  ;;  %v8667_v41 = vrot.slane %v8653_v29, %v16845_v42 }
 0xa0f   :  { %v14808_v34 = vrot.slane %v9278_v62, %v16845_v42  ;;  %9157 = vrot.lane.b32.xlu1 %v9063_v51, %s9613_s12  ;;  %v14835_v62 = vrot.slane %v9101_v36, %v16844_v16  ;;  %v16855_v36 = vcombine.high %v16849_v18, %v16850_v11  ;;  %v16857_v11 = vld [vmem:[#allocation76_spill] sm:$0xff] }
 0xa10   :  { %v8537_v33 = vpop.permute.xlu1 %8536  ;;  %v14823_v46 = vrot.slane %v8568_v25, %v16844_v16  ;;  %v14826_v19 = vrot.slane %v8569_v1, %v16844_v16  ;;  %8721 = vrot.lane.b32.xlu0 %v8667_v41, %s9613_s12 }
 0xa11   :  { %16854 = vst [vmem:[#allocation104_spill] sm:$0xff] %v14808_v34  ;;  %v8552_v54 = vcombine.low %v8529_v28, %v8537_v33  ;;  %v8553_v56 = vcombine.high %v8529_v28, %v8537_v33  ;;  %v14817_v55 = vpop.permute.xlu0 %8304  ;;  %v9310_v13 = vcombine.high %v14808_v34, %v16830_v12  ;;  %v9132_v30 = vcombine.low %v14815_v10, %v14835_v62 }
 0xa12   :  { %v8901_v33 = vrot.slane %v16855_v36, %v16845_v42  ;;  %v16858_v36 = vld [vmem:[#allocation68_spill] sm:$0xff] }
 0xa13   :  { %v14829_v17 = vrot.slane %v8552_v54, %v16844_v16  ;;  %v14832_v28 = vrot.slane %v8553_v56, %v16844_v16  ;;  %9383 = vrot.lane.b32.xlu1 %v9310_v13, %s9616_s15  ;;  %v9140_v26 = vrot.slane %v9132_v30, %v16845_v42 }
 0xa14   :  { %v14839_v9 = vpop.permute.xlu1 %8300  ;;  %8955 = vrot.lane.b32.xlu0 %v8901_v33, %s9613_s12 }
 0xa15   :  { %v8584_v25 = vcombine.low %v14829_v17, %v14823_v46  ;;  %v14847_v1 = vpop.permute.xlu0 %8312 }
 0xa16   :  { %v8406_v54 = vcombine.low %v14817_v55, %v14847_v1 }
 0xa17   :  { %v14856_v56 = vrot.slane %v8584_v25, %v16845_v42  ;;  %v16859_v25 = vcombine.low %v16857_v11, %v16858_v36 }
 0xa18   :  { %v14859_v13 = vpop.permute.xlu1 %8308  ;;  %v14875_v45 = vrot.slane %v8406_v54, %v16844_v16  ;;  %9193 = vrot.lane.b32.xlu0 %v9140_v26, %s9614_s13  ;;  %v9379_v54 = vcombine.high %v9361_v52, %v16830_v12 }
 0xa19   :  { %16856 = vst [vmem:[#allocation43_spill] sm:$0xff] %v14856_v56  ;;  %v8390_v29 = vcombine.low %v14839_v9, %v14859_v13  ;;  %v8616_v18 = vcombine.high %v14856_v56, %v16830_v12  ;;  %v14872_v4 = vrot.slane %v16859_v25, %v16845_v42  ;;  %v8184_v25 = vrot.slane %v8176_v2, %v16844_v16  ;;  %v14892_v47 = vpop.permute.xlu0 %8302 }
 0xa1a   :  { %v9081_v2 = vcombine.high %v9063_v51, %v16830_v12  ;;  %v9331_v51 = vcombine.high %v14719_v20, %v14728_v32 }
 0xa1b   :  { %16860 = vst [vmem:[#allocation102_spill] sm:$0xff] %v14872_v4  ;;  %v14878_v34 = vrot.slane %v8390_v29, %v16844_v16  ;;  %8689 = vrot.lane.b32.xlu1 %v8616_v18, %s9616_s15  ;;  %v8850_v29 = vcombine.high %v14872_v4, %v16830_v12  ;;  %v9279_v18 = vcombine.high %v14797_v50, %v14794_v43 }
 0xa1c   :  { %v14886_v56 = vpop.permute.xlu1 %8298  ;;  %9419 = vrot.lane.b32.xlu0 %v9379_v54, %s9617_s16  ;;  %v8192_v4 = vcombine.low %v8168_v57, %v8184_v25  ;;  %v8685_v43 = vcombine.high %v8667_v41, %v16830_v12  ;;  %v9033_v41 = vcombine.high %v14702_v6, %v14708_v0 }
 0xa1d   :  { %v8422_v30 = vcombine.low %v14878_v34, %v14875_v45  ;;  %v14909_v53 = vpop.permute.xlu0 %8310  ;;  %v9293_v54 = vrot.slane %v9279_v18, %v16845_v42  ;;  %v14939_v18 = vrot.slane %v9331_v51, %v16844_v16  ;;  %v8621_v51 = vcombine.high %v14748_v27, %v14757_v7 }
 0xa1e   :  { %v14916_v50 = vrot.slane %v8192_v4, %v16845_v42  ;;  %v8585_v4 = vcombine.high %v14829_v17, %v14823_v46  ;;  %v9150_v17 = vcombine.high %v9140_v26, %v16830_v12  ;;  %v14953_v6 = vrot.slane %v9033_v41, %v16844_v16 }
 0xa1f   :  { %v14895_v5 = vrot.slane %v8422_v30, %v16845_v42  ;;  %8923 = vrot.lane.b32.xlu1 %v8850_v29, %s9616_s15  ;;  %v9315_v30 = vcombine.high %v14726_v44, %v14737_v58  ;;  %v9017_v44 = vcombine.high %v14706_v59, %v14715_v48  ;;  %v14982_v27 = vrot.slane %v8621_v51, %v16844_v16 }
 0xa20   :  { %v14905_v21 = vpop.permute.xlu1 %8306  ;;  %16862 = vst [vmem:[#allocation90_spill] sm:$0xff] %v14916_v50  ;;  %v8224_v20 = vcombine.high %v14916_v50, %v16830_v12  ;;  %v8599_v46 = vrot.slane %v8585_v4, %v16845_v42  ;;  %v8637_v4 = vcombine.high %v14741_v24, %v14750_v49  ;;  %v8423_v7 = vcombine.high %v14878_v34, %v14875_v45  ;;  %v16866_v34 = vld [vmem:[#allocation50_spill] sm:$0xff]  ;;  %v16867_v45 = vld [vmem:[#allocation11_spill] sm:$0xff] }
 0xa21   :  { %16861 = vst [vmem:[#allocation118_spill] sm:$0xff] %v14895_v5  ;;  %v8454_v52 = vcombine.high %v14895_v5, %v16830_v12  ;;  %v14928_v58 = vrot.slane %v9315_v30, %v16844_v16  ;;  %v14934_v32 = vpop.permute.xlu0 %7606  ;;  %v14944_v59 = vrot.slane %v9017_v44, %v16844_v16 }
 0xa22   :  { %v8437_v51 = vrot.slane %v8423_v7, %v16845_v42 }
 0xa23   :  { %9161 = vrot.lane.b32.xlu1 %v9081_v2, %s9617_s16  ;;  %8487 = vrot.lane.b32.xlu0 %v8454_v52, %s9616_s15  ;;  %v8919_v2 = vcombine.high %v8901_v33, %v16830_v12  ;;  %v9362_v48 = vcombine.low %v14928_v58, %v14939_v18  ;;  %v16863_v52 = vcombine.high %v16857_v11, %v16858_v36 }
 0xa24   :  { %v14922_v29 = vpop.permute.xlu1 %7602  ;;  %v9064_v26 = vcombine.low %v14944_v59, %v14953_v6 }
 0xa25   :  { %v14957_v0 = vpop.permute.xlu0 %7614  ;;  %v8833_v30 = vrot.slane %v16863_v52, %v16845_v42  ;;  %v9370_v44 = vrot.slane %v9362_v48, %v16845_v42  ;;  %v16868_v48 = vcombine.low %v16866_v34, %v16867_v45 }
 0xa26   :  { %v9072_v49 = vrot.slane %v9064_v26, %v16845_v42  ;;  %v9311_v26 = vcombine.high %v9293_v54, %v16830_v12 }
 0xa27   :  { %9387 = vrot.lane.b32.xlu1 %v9293_v54, %s9613_s12  ;;  %8725 = vrot.lane.b32.xlu0 %v8685_v43, %s9617_s16  ;;  %v8193_v43 = vcombine.high %v8168_v57, %v8184_v25  ;;  %v14993_v25 = vrot.slane %v8637_v4, %v16844_v16 }
 0xa28   :  { %v14950_v33 = vpop.permute.xlu1 %7610 }
 0xa29   :  { %v14979_v11 = vrot.slane %v8193_v43, %v16845_v42  ;;  %v14990_v36 = vpop.permute.xlu0 %7836  ;;  %v8668_v52 = vcombine.low %v14982_v27, %v14993_v25 }
 0xa2a   :  { %16865 = vst [vmem:[#allocation67_spill] sm:$0xff] %v14990_v36 }
 0xa2b   :  { %8257 = vrot.lane.b32.xlu1 %v8224_v20, %s9616_s15  ;;  %8959 = vrot.lane.b32.xlu0 %v8919_v2, %s9617_s16  ;;  %v8322_v2 = vcombine.low %v14886_v56, %v14905_v21  ;;  %v8338_v20 = vcombine.low %v14892_v47, %v14909_v53  ;;  %v8676_v5 = vrot.slane %v8668_v52, %v16845_v42 }
 0xa2c   :  { %v14976_v57 = vpop.permute.xlu1 %7832 }
 0xa2d   :  { %16864 = vst [vmem:[#allocation25_spill] sm:$0xff] %v14976_v57  ;;  %v14987_v24 = vrot.slane %v8322_v2, %v16844_v16  ;;  %v14996_v41 = vrot.slane %v8338_v20, %v16844_v16  ;;  %v15017_v4 = vpop.permute.xlu0 %7844 }
 0xa2e   :  { %v7938_v7 = vcombine.low %v14990_v36, %v15017_v4 }
 0xa2f   :  { %8693 = vrot.lane.b32.xlu1 %v8599_v46, %s9613_s12  ;;  %9197 = vrot.lane.b32.xlu0 %v9150_v17, %s9618_s17  ;;  %v15005_v17 = vrot.slane %v16868_v48, %v16845_v42  ;;  %v8354_v43 = vcombine.low %v14987_v24, %v14996_v41 }
 0xa30   :  { %v15013_v2 = vpop.permute.xlu1 %7840  ;;  %v15043_v36 = vrot.slane %v7938_v7, %v16844_v16  ;;  %v9263_v7 = vcombine.high %v14761_v23, %v14776_v3 }
 0xa31   :  { %16869 = vst [vmem:[#allocation81_spill] sm:$0xff] %v15005_v17  ;;  %16870 = vst [vmem:[#allocation62_spill] sm:$0xff] %v15013_v2  ;;  %v7922_v20 = vcombine.low %v14976_v57, %v15013_v2  ;;  %v8156_v48 = vcombine.high %v15005_v17, %v16830_v12  ;;  %v15025_v54 = vrot.slane %v8354_v43, %v16845_v42  ;;  %v16872_v17 = vld [vmem:[#allocation105_spill] sm:$0xff]  ;;  %v16873_v57 = vld [vmem:[#allocation8_spill] sm:$0xff] }
 0xa32   :  { %v16874_v52 = vcombine.low %v16872_v17, %v16873_v57  ;;  %v15073_v23 = vrot.slane %v9263_v7, %v16844_v16 }
 0xa33   :  { %8927 = vrot.lane.b32.xlu1 %v8833_v30, %s9613_s12  ;;  %9423 = vrot.lane.b32.xlu0 %v9370_v44, %s9614_s13  ;;  %16871 = vst [vmem:[#allocation69_spill] sm:$0xff] %v15025_v54  ;;  %v15034_v50 = vrot.slane %v7922_v20, %v16844_v16  ;;  %v8386_v43 = vcombine.high %v15025_v54, %v16830_v12 }
 0xa34   :  { %v8910_v2 = vrot.slane %v16874_v52, %v16845_v42  ;;  %v7692_v20 = vcombine.low %v14922_v29, %v14950_v33  ;;  %v8617_v52 = vcombine.high %v8599_v46, %v16830_v12  ;;  %v7708_v54 = vcombine.low %v14934_v32, %v14957_v0 }
 0xa35   :  { %v9380_v46 = vcombine.high %v9370_v44, %v16830_v12  ;;  %v9082_v44 = vcombine.high %v9072_v49, %v16830_v12 }
 0xa36   :  { %v15076_v3 = vrot.slane %v7708_v54, %v16844_v16  ;;  %v15090_v54 = vpop.permute.xlu1 %7600 }
 0xa37   :  { %9165 = vrot.lane.b32.xlu1 %v9072_v49, %s9614_s13  ;;  %8261 = vrot.lane.b32.xlu0 %v14979_v11, %s9613_s12 }
 0xa3b   :  { %9391 = vrot.lane.b32.xlu1 %v9311_v26, %s9617_s16  ;;  %8491 = vrot.lane.b32.xlu0 %v8437_v51, %s9613_s12  ;;  %v9133_v26 = vcombine.high %v14815_v10, %v14835_v62  ;;  %v9247_v62 = vcombine.high %v14774_v38, %v14786_v8  ;;  %v8851_v38 = vcombine.high %v8833_v30, %v16830_v12 }
 0xa3d   :  { %v9147_v10 = vrot.slane %v9133_v26, %v16845_v42  ;;  %v15063_v8 = vrot.slane %v9247_v62, %v16844_v16  ;;  %v15066_v26 = vrot.slane %v7692_v20, %v16844_v16 }
 0xa3f   :  { %8229 = vrot.lane.b32.xlu1 %v8156_v48, %s9616_s15  ;;  %8729 = vrot.lane.b32.xlu0 %v8676_v5, %s9614_s13  ;;  %v7954_v48 = vcombine.low %v15034_v50, %v15043_v36  ;;  %v9294_v30 = vcombine.low %v15063_v8, %v15073_v23  ;;  %v7724_v62 = vcombine.low %v15066_v26, %v15076_v3 }
 0xa41   :  { %v9302_v49 = vrot.slane %v9294_v30, %v16845_v42  ;;  %v8455_v30 = vcombine.high %v8437_v51, %v16830_v12 }
 0xa43   :  { %8963 = vrot.lane.b32.xlu0 %v8910_v2, %s9614_s13  ;;  %8459 = vrot.lane.b32.xlu1 %v8386_v43, %s9616_s15  ;;  %v15070_v43 = vrot.slane %v7954_v48, %v16845_v42 }
 0xa45   :  { %16875 = vst [vmem:[#allocation23_spill] sm:$0xff] %v15070_v43  ;;  %v7986_v20 = vcombine.high %v15070_v43, %v16830_v12 }
 0xa47   :  { %9201 = vrot.lane.b32.xlu0 %v9147_v10, %s9615_s14  ;;  %8697 = vrot.lane.b32.xlu1 %v8617_v52, %s9617_s16 }
 0xa4b   :  { %9427 = vrot.lane.b32.xlu0 %v9380_v46, %s9618_s17  ;;  %8931 = vrot.lane.b32.xlu1 %v8851_v38, %s9617_s16  ;;  %v8225_v46 = vcombine.high %v14979_v11, %v16830_v12 }
 0xa4e   :  { %v4801_v48 = vpop.f32.mrf.mxu1 }
 0xa4f   :  { %v4802_v52 = vadd.f32 %v4801_v48, %v14680_v31  ;;  %9169 = vrot.lane.b32.xlu1 %v9082_v44, %s9618_s17  ;;  %8019 = vrot.lane.b32.xlu0 %v7986_v20, %s9616_s15  ;;  %v15100_v48 = vrot.slane %v7724_v62, %v16845_v42  ;;  %v15102_v44 = vpop.permute.xlu0 %7604  ;;  %v8355_v62 = vcombine.high %v14987_v24, %v14996_v41 }
 0xa50   :  { %v4803_v7 = vpop.f32.mrf.mxu1  ;;  %v8920_v41 = vcombine.high %v8910_v2, %v16830_v12 }
 0xa51   :  { %4806 = vst [vmem:[%s15931_s5] sm:$0xff] %v4802_v52  ;;  %v4804_v38 = vadd.f32 %v4803_v7, %v14680_v31  ;;  %16876 = vst [vmem:[#allocation103_spill] sm:$0xff] %v15100_v48  ;;  %v7756_v20 = vcombine.high %v15100_v48, %v16830_v12  ;;  %v15112_v52 = vpop.permute.xlu1 %7608  ;;  %v16877_v7 = vcombine.high %v16866_v34, %v16867_v45 }
 0xa52   :  { %v15135_v24 = vrot.slane %v8355_v62, %v16845_v42  ;;  %v7624_v45 = vcombine.low %v15090_v54, %v15112_v52  ;;  %v9151_v62 = vcombine.high %v9147_v10, %v16830_v12  ;;  %v16878_v10 = vcombine.low %v14300_v37, %v14297_v14 }
 0xa53   :  { %4807 = vst [vmem:[%s15931_s5 + $0x8] sm:$0xff] %v4804_v38  ;;  %9395 = vrot.lane.b32.xlu1 %v9302_v49, %s9614_s13  ;;  %8265 = vrot.lane.b32.xlu0 %v8225_v46, %s9617_s16  ;;  %v15116_v11 = vpop.permute.xlu0 %7612  ;;  %v15124_v38 = vrot.slane %v16877_v7, %v16845_v42  ;;  %v8686_v46 = vcombine.high %v8676_v5, %v16830_v12 }
 0xa54   :  { %v9363_v5 = vcombine.high %v14928_v58, %v14939_v18  ;;  %v7640_v2 = vcombine.low %v15102_v44, %v15116_v11  ;;  %v8177_v58 = vcombine.high %v14560_v61, %v14592_v35  ;;  %v9065_v18 = vcombine.high %v14944_v59, %v14953_v6 }
 0xa55   :  { %v15130_v51 = vpop.permute.xlu1 %7830  ;;  %v15173_v31 = vrot.slane %v7624_v45, %v16844_v16  ;;  %v8161_v59 = vcombine.high %v14578_v15, %v14609_v40  ;;  %v7955_v40 = vcombine.high %v15034_v50, %v15043_v36  ;;  %v9312_v50 = vcombine.high %v9302_v49, %v16830_v12 }
 0xa56   :  { %v15178_v35 = vrot.slane %v9363_v5, %v16845_v42  ;;  %v15183_v6 = vrot.slane %v7640_v2, %v16844_v16  ;;  %v15197_v15 = vrot.slane %v9065_v18, %v16845_v42 }
 0xa57   :  { %7789 = vrot.lane.b32.xlu1 %v7756_v20, %s9616_s15  ;;  %8495 = vrot.lane.b32.xlu0 %v8455_v30, %s9617_s16  ;;  %v8600_v20 = vcombine.low %v14832_v28, %v14826_v19  ;;  %v15138_v34 = vpop.permute.xlu0 %7834 }
 0xa58   :  { %v7656_v5 = vcombine.low %v15173_v31, %v15183_v6 }
 0xa59   :  { %v15148_v30 = vrot.slane %v8600_v20, %v16845_v42  ;;  %v15151_v7 = vpop.permute.xlu1 %7838  ;;  %v15168_v20 = vrot.slane %v16878_v10, %v16845_v42 }
 0xa5a   :  { %v7854_v61 = vcombine.low %v15130_v51, %v15151_v7 }
 0xa5b   :  { %8233 = vrot.lane.b32.xlu1 %v15124_v38, %s9613_s12  ;;  %8733 = vrot.lane.b32.xlu0 %v8686_v46, %s9618_s17  ;;  %v15162_v46 = vpop.permute.xlu0 %7842 }
 0xa5c   :  { %v15204_v45 = vrot.slane %v7854_v61, %v16844_v16 }
 0xa5f   :  { %8463 = vrot.lane.b32.xlu1 %v15135_v24, %s9613_s12  ;;  %8967 = vrot.lane.b32.xlu0 %v8920_v41, %s9618_s17  ;;  %v7725_v41 = vcombine.high %v15066_v26, %v15076_v3  ;;  %v15192_v26 = vrot.slane %v8177_v58, %v16844_v16  ;;  %v8391_v3 = vcombine.high %v14839_v9, %v14859_v13 }
 0xa60   :  { %v15208_v58 = vrot.slane %v8161_v59, %v16844_v16  ;;  %v8407_v9 = vcombine.high %v14817_v55, %v14847_v1  ;;  %v7969_v55 = vrot.slane %v7955_v40, %v16845_v42  ;;  %v15228_v1 = vrot.slane %v7656_v5, %v16845_v42 }
 0xa61   :  { %v7739_v2 = vrot.slane %v7725_v41, %v16845_v42  ;;  %v15222_v18 = vrot.slane %v8391_v3, %v16844_v16  ;;  %v15245_v40 = vpop.permute.xlu1 %9181  ;;  %v7470_v5 = vcombine.low %v14064_v39, %v14082_v60 }
 0xa62   :  { %v8208_v36 = vcombine.low %v15208_v58, %v15192_v26  ;;  %16879 = vst [vmem:[#allocation48_spill] sm:$0xff] %v15228_v1  ;;  %v15231_v41 = vrot.slane %v8407_v9, %v16844_v16  ;;  %v8669_v9 = vcombine.high %v14982_v27, %v14993_v25  ;;  %v8157_v25 = vcombine.high %v15124_v38, %v16830_v12 }
 0xa63   :  { %8701 = vrot.lane.b32.xlu1 %v15148_v30, %s9614_s13  ;;  %9205 = vrot.lane.b32.xlu0 %v9151_v62, %s9619_s18  ;;  %v7870_v62 = vcombine.low %v15138_v34, %v15162_v46  ;;  %v16882_v38 = vcombine.high %v16872_v17, %v16873_v57 }
 0xa64   :  { %v8438_v49 = vcombine.low %v15222_v18, %v15231_v41  ;;  %v8216_v59 = vrot.slane %v8208_v36, %v16845_v42  ;;  %v8683_v27 = vrot.slane %v8669_v9, %v16845_v42  ;;  %v8387_v9 = vcombine.high %v15135_v24, %v16830_v12 }
 0xa65   :  { %v15213_v13 = vrot.slane %v7870_v62, %v16844_v16  ;;  %v7688_v62 = vcombine.high %v15228_v1, %v16830_v12  ;;  %v7454_v1 = vcombine.low %v14039_v63, %v16828_v22 }
 0xa66   :  { %v8446_v36 = vrot.slane %v8438_v49, %v16845_v42  ;;  %v15270_v49 = vrot.slane %v7470_v5, %v16844_v16  ;;  %v8917_v5 = vrot.slane %v16882_v38, %v16845_v42 }
 0xa67   :  { %8935 = vrot.lane.b32.xlu1 %v15168_v20, %s9614_s13  ;;  %9431 = vrot.lane.b32.xlu0 %v15178_v35, %s9615_s14  ;;  %v7886_v10 = vcombine.low %v15204_v45, %v15213_v13 }
 0xa69   :  { %v15237_v61 = vpop.permute.xlu0 %9153  ;;  %v15243_v3 = vrot.slane %v7886_v10, %v16845_v42 }
 0xa6b   :  { %9173 = vrot.lane.b32.xlu1 %v15197_v15, %s9615_s14  ;;  %7793 = vrot.lane.b32.xlu0 %v7739_v2, %s9613_s12  ;;  %16880 = vst [vmem:[#allocation119_spill] sm:$0xff] %v15243_v3  ;;  %v7918_v10 = vcombine.high %v15243_v3, %v16830_v12  ;;  %v15275_v3 = vrot.slane %v7454_v1, %v16844_v16 }
 0xa6c   :  { %v8618_v1 = vcombine.high %v15148_v30, %v16830_v12 }
 0xa6f   :  { %9399 = vrot.lane.b32.xlu1 %v9312_v50, %s9618_s17  ;;  %8023 = vrot.lane.b32.xlu0 %v7969_v55, %s9613_s12 }
 0xa71   :  { %v15253_v50 = vpop.permute.xlu0 %9411 }
 0xa73   :  { %8269 = vrot.lane.b32.xlu0 %v8216_v59, %s9614_s13  ;;  %7761 = vrot.lane.b32.xlu1 %v7688_v62, %s9616_s15  ;;  %v15262_v62 = vpop.permute.xlu1 %9185 }
 0xa75   :  { %v15264_v43 = vpop.permute.xlu0 %8951 }
 0xa76   :  { %16881 = vst [vmem:[#allocation101_spill] sm:$0xff] %v15264_v43 }
 0xa77   :  { %8499 = vrot.lane.b32.xlu0 %v8446_v36, %s9614_s13  ;;  %7991 = vrot.lane.b32.xlu1 %v7918_v10, %s9616_s15  ;;  %v9295_v10 = vcombine.high %v15063_v8, %v15073_v23 }
 0xa79   :  { %v15279_v48 = vpop.permute.xlu0 %9189  ;;  %v15296_v23 = vrot.slane %v9295_v10, %v16845_v42  ;;  %v8852_v10 = vcombine.high %v15168_v20, %v16830_v12  ;;  %v7657_v20 = vcombine.high %v15173_v31, %v15183_v6 }
 0xa7b   :  { %8737 = vrot.lane.b32.xlu0 %v8683_v27, %s9615_s14  ;;  %8237 = vrot.lane.b32.xlu1 %v8157_v25, %s9617_s16  ;;  %v7486_v25 = vcombine.low %v15275_v3, %v15270_v49 }
 0xa7d   :  { %v15281_v43 = vpop.permute.xlu1 %8717  ;;  %v15293_v8 = vpop.permute.xlu0 %9415  ;;  %v15301_v57 = vrot.slane %v7486_v25, %v16845_v42  ;;  %v7757_v25 = vcombine.high %v7739_v2, %v16830_v12  ;;  %v7887_v2 = vcombine.high %v15204_v45, %v15213_v13  ;;  %v8456_v13 = vcombine.high %v8446_v36, %v16830_v12 }
 0xa7e   :  { %v8687_v36 = vcombine.high %v8683_v27, %v16830_v12 }
 0xa7f   :  { %8971 = vrot.lane.b32.xlu0 %v8917_v5, %s9615_s14  ;;  %8467 = vrot.lane.b32.xlu1 %v8387_v9, %s9617_s16  ;;  %16883 = vst [vmem:[#allocation117_spill] sm:$0xff] %v15301_v57  ;;  %v7518_v38 = vcombine.high %v15301_v57, %v16830_v12 }
 0xa81   :  { %v15303_v17 = vpop.permute.xlu1 %9157 }
 0xa82   :  { %v15308_v24 = vpop.permute.xlu0 %8721 }
 0xa83   :  { %9403 = vrot.lane.b32.xlu0 %v15296_v23, %s9615_s14  ;;  %8705 = vrot.lane.b32.xlu1 %v8618_v1, %s9618_s17  ;;  %v9083_v1 = vcombine.high %v15197_v15, %v16830_v12  ;;  %v8323_v15 = vcombine.high %v14886_v56, %v14905_v21 }
 0xa85   :  { %v15316_v30 = vpop.permute.xlu1 %9383  ;;  %v15351_v21 = vrot.slane %v8323_v15, %v16844_v16  ;;  %v16889_v15 = vld [vmem:[#allocation107_spill] sm:$0xff] }
 0xa86   :  { %v15318_v9 = vpop.permute.xlu0 %8955 }
 0xa87   :  { %7551 = vrot.lane.b32.xlu0 %v7518_v38, %s9616_s15  ;;  %8939 = vrot.lane.b32.xlu1 %v8852_v10, %s9618_s17  ;;  %16884 = vst [vmem:[#allocation72_spill] sm:$0xff] %v15318_v9  ;;  %v7987_v10 = vcombine.high %v7969_v55, %v16830_v12  ;;  %v9381_v9 = vcombine.high %v15178_v35, %v16830_v12 }
 0xa88   :  { %v7671_v55 = vrot.slane %v7657_v20, %v16845_v42  ;;  %v8339_v35 = vcombine.high %v14892_v47, %v14909_v53  ;;  %v7693_v53 = vcombine.high %v14922_v29, %v14950_v33  ;;  %v8921_v29 = vcombine.high %v8917_v5, %v16830_v12  ;;  %v16893_v5 = vld [vmem:[#allocation67_spill] sm:$0xff] }
 0xa8a   :  { %v15327_v57 = vpop.permute.xlu0 %9193  ;;  %v15383_v33 = vrot.slane %v7693_v53, %v16844_v16  ;;  %v7939_v53 = vcombine.high %v16893_v5, %v15017_v4  ;;  %v16895_v4 = vcombine.high %v14832_v28, %v14826_v19  ;;  %v16897_v19 = vcombine.high %v14300_v37, %v14297_v14 }
 0xa8b   :  { %7797 = vrot.lane.b32.xlu0 %v7757_v25, %s9617_s16  ;;  %9177 = vrot.lane.b32.xlu1 %v9083_v1, %s9619_s18  ;;  %v8226_v25 = vcombine.high %v8216_v59, %v16830_v12  ;;  %v7901_v59 = vrot.slane %v7887_v2, %v16845_v42  ;;  %v8439_v14 = vcombine.high %v15222_v18, %v15231_v41 }
 0xa8c   :  { %v8849_v28 = vrot.slane %v16897_v19, %v16845_v42  ;;  %v7625_v37 = vcombine.high %v15090_v54, %v15112_v52  ;;  %v7855_v54 = vcombine.high %v15130_v51, %v15151_v7 }
 0xa8d   :  { %v15329_v38 = vpop.permute.xlu1 %8689 }
 0xa8e   :  { %16885 = vst [vmem:[#allocation55_spill] sm:$0xff] %v15329_v38  ;;  %v15340_v31 = vpop.permute.xlu0 %9419  ;;  %v15473_v18 = vrot.slane %v7625_v37, %v16844_v16 }
 0xa8f   :  { %8027 = vrot.lane.b32.xlu0 %v7987_v10, %s9617_s16  ;;  %9435 = vrot.lane.b32.xlu1 %v9381_v9, %s9619_s18  ;;  %v15360_v9 = vrot.slane %v8339_v35, %v16844_v16  ;;  %v16888_v10 = vld [vmem:[#allocation12_spill] sm:$0xff]  ;;  %v7709_v35 = vcombine.high %v14934_v32, %v14957_v0  ;;  %v7487_v32 = vcombine.high %v15275_v3, %v15270_v49 }
 0xa90   :  { %v16890_v2 = vcombine.low %v16888_v10, %v16889_v15  ;;  %v15418_v49 = vrot.slane %v16895_v4, %v16845_v42 }
 0xa91   :  { %v15342_v6 = vpop.permute.xlu1 %8923  ;;  %v8370_v47 = vcombine.low %v15351_v21, %v15360_v9  ;;  %v15397_v0 = vrot.slane %v7709_v35, %v16844_v16  ;;  %v15412_v3 = vrot.slane %v7487_v32, %v16845_v42  ;;  %v15421_v35 = vrot.slane %v7939_v53, %v16844_v16 }
 0xa92   :  { %16886 = vst [vmem:[#allocation59_spill] sm:$0xff] %v15342_v6  ;;  %v16892_v6 = vld [vmem:[#allocation25_spill] sm:$0xff] }
 0xa93   :  { %8273 = vrot.lane.b32.xlu0 %v8226_v25, %s9618_s17  ;;  %7765 = vrot.lane.b32.xlu1 %v7671_v55, %s9613_s12  ;;  %v8148_v25 = vrot.slane %v16890_v2, %v16845_v42  ;;  %v15392_v2 = vrot.slane %v8370_v47, %v16845_v42 }
 0xa95   :  { %v15353_v56 = vpop.permute.xlu0 %8487  ;;  %v15355_v45 = vpop.permute.xlu1 %9161  ;;  %v8158_v51 = vcombine.high %v8148_v25, %v16830_v12 }
 0xa97   :  { %8503 = vrot.lane.b32.xlu0 %v8456_v13, %s9618_s17  ;;  %7995 = vrot.lane.b32.xlu1 %v7901_v59, %s9613_s12  ;;  %v16891_v13 = vld [vmem:[#allocation62_spill] sm:$0xff] }
 0xa98   :  { %v7923_v27 = vcombine.high %v16892_v6, %v16891_v13  ;;  %v7740_v6 = vcombine.low %v15383_v33, %v15397_v0 }
 0xa99   :  { %v15368_v1 = vpop.permute.xlu0 %8725  ;;  %v15370_v20 = vpop.permute.xlu1 %9387 }
 0xa9a   :  { %16887 = vst [vmem:[#allocation61_spill] sm:$0xff] %v15368_v1  ;;  %v15407_v47 = vrot.slane %v7923_v27, %v16844_v16  ;;  %v15432_v5 = vrot.slane %v7740_v6, %v16845_v42  ;;  %v9313_v6 = vcombine.high %v15296_v23, %v16830_v12 }
 0xa9b   :  { %8741 = vrot.lane.b32.xlu0 %v8687_v36, %s9619_s18  ;;  %8241 = vrot.lane.b32.xlu1 %v8148_v25, %s9614_s13 }
 0xa9d   :  { %v15387_v38 = vpop.permute.xlu0 %8959  ;;  %v15389_v1 = vpop.permute.xlu1 %8257 }
 0xa9f   :  { %8975 = vrot.lane.b32.xlu0 %v8921_v29, %s9619_s18  ;;  %8471 = vrot.lane.b32.xlu1 %v15392_v2, %s9614_s13  ;;  %v7970_v29 = vcombine.low %v15407_v47, %v15421_v35 }
 0xaa1   :  { %v9198_v36 = vpop.permute.xlu0 %9197  ;;  %v15409_v13 = vpop.permute.xlu1 %8693 }
 0xaa2   :  { %16894 = vst [vmem:[#allocation100_spill] sm:$0xff] %v15409_v13  ;;  %v15446_v13 = vrot.slane %v7970_v29, %v16845_v42 }
 0xaa3   :  { %7555 = vrot.lane.b32.xlu0 %v15412_v3, %s9613_s12  ;;  %8709 = vrot.lane.b32.xlu1 %v15418_v49, %s9615_s14 }
 0xaa5   :  { %v9424_v27 = vpop.permute.xlu0 %9423  ;;  %v15429_v32 = vpop.permute.xlu1 %8927 }
 0xaa6   :  { %16896 = vst [vmem:[#allocation30_spill] sm:$0xff] %v15429_v32  ;;  %v8209_v32 = vcombine.high %v15208_v58, %v15192_v26  ;;  %v7689_v26 = vcombine.high %v7671_v55, %v16830_v12  ;;  %v7641_v58 = vcombine.high %v15102_v44, %v15116_v11  ;;  %v15482_v55 = vrot.slane %v8439_v14, %v16845_v42 }
 0xaa7   :  { %7801 = vrot.lane.b32.xlu0 %v15432_v5, %s9614_s13  ;;  %8943 = vrot.lane.b32.xlu1 %v8849_v28, %s9615_s14  ;;  %v7919_v44 = vcombine.high %v7901_v59, %v16830_v12  ;;  %v16898_v59 = vld [vmem:[#allocation83_spill] sm:$0xff] }
 0xaa8   :  { %v15464_v23 = vrot.slane %v8209_v32, %v16845_v42  ;;  %v15486_v11 = vrot.slane %v7641_v58, %v16844_v16  ;;  %v7871_v32 = vcombine.high %v15138_v34, %v15162_v46  ;;  %v9215_v14 = vsel %vm331_vm5, %v16898_v59, %v15245_v40  ;;  %v16899_v59 = vld [vmem:[#allocation17_spill] sm:$0xff] }
 0xaa9   :  { %v15441_v53 = vpop.permute.xlu0 %8261  ;;  %v15443_v4 = vpop.permute.xlu1 %9165  ;;  %v8853_v46 = vcombine.high %v8849_v28, %v16830_v12 }
 0xaaa   :  { %v7672_v7 = vcombine.low %v15473_v18, %v15486_v11  ;;  %v15510_v25 = vrot.slane %v7871_v32, %v16844_v16 }
 0xaab   :  { %8031 = vrot.lane.b32.xlu0 %v15446_v13, %s9614_s13  ;;  %9407 = vrot.lane.b32.xlu1 %v9313_v6, %s9619_s18  ;;  %v15497_v6 = vrot.slane %v7855_v54, %v16844_v16 }
 0xaac   :  { %v15524_v32 = vrot.slane %v7672_v7, %v16845_v42 }
 0xaad   :  { %v15459_v19 = vpop.permute.xlu0 %8491  ;;  %v15461_v29 = vpop.permute.xlu1 %9391  ;;  %v7902_v54 = vcombine.low %v15497_v6, %v15510_v25 }
 0xaaf   :  { %8277 = vrot.lane.b32.xlu0 %v15464_v23, %s9615_s14  ;;  %7769 = vrot.lane.b32.xlu1 %v7689_v26, %s9617_s16  ;;  %v9216_v26 = vsel %vm333_vm6, %v9215_v14, %v15262_v62 }
 0xab0   :  { %v9217_v58 = vsel %vm335_vm7, %v9216_v26, %v15279_v48  ;;  %v8388_v48 = vcombine.high %v15392_v2, %v16830_v12  ;;  %v15547_v26 = vrot.slane %v7902_v54, %v16845_v42  ;;  %v16901_v54 = vcombine.high %v16888_v10, %v16889_v15  ;;  %v16903_v15 = vld [vmem:[#allocation90_spill] sm:$0xff] }
 0xab1   :  { %v15477_v52 = vpop.permute.xlu0 %8729  ;;  %v15479_v41 = vpop.permute.xlu1 %8229  ;;  %v9218_v40 = vsel %vm337_vm8, %v9217_v58, %v15327_v57  ;;  %v7455_v58 = vcombine.high %v14039_v63, %v16828_v22  ;;  %v8371_v22 = vcombine.high %v15351_v21, %v15360_v9  ;;  %v16902_v9 = vld [vmem:[#allocation104_spill] sm:$0xff] }
 0xab2   :  { %v9219_v28 = vsel %vm339_vm9, %v9218_v40, %v9198_v36  ;;  %v7471_v36 = vcombine.high %v14064_v39, %v14082_v60  ;;  %v16900_v40 = vld [vmem:[#allocation87_spill] sm:$0xff] }
 0xab3   :  { %8507 = vrot.lane.b32.xlu0 %v15482_v55, %s9615_s14  ;;  %7999 = vrot.lane.b32.xlu1 %v7919_v44, %s9617_s16  ;;  %v9208_v39 = vsel %vm331_vm5, %v16900_v40, %v15237_v61  ;;  %v15587_v21 = vrot.slane %v7455_v58, %v16844_v16  ;;  %v7988_v58 = vcombine.high %v15446_v13, %v16830_v12  ;;  %v16905_v40 = vld [vmem:[#allocation60_spill] sm:$0xff] }
 0xab4   :  { %v15567_v63 = vrot.slane %v7471_v36, %v16844_v16  ;;  %v8227_v13 = vcombine.high %v15464_v23, %v16830_v12 }
 0xab5   :  { %v15502_v37 = vpop.permute.xlu0 %8963  ;;  %v15504_v34 = vpop.permute.xlu1 %8459 }
 0xab6   :  { %v7502_v16 = vcombine.low %v15587_v21, %v15567_v63 }
 0xab7   :  { %8947 = vrot.lane.b32.xlu0 %v8853_v46, %s9619_s18  ;;  %8245 = vrot.lane.b32.xlu1 %v8158_v51, %s9618_s17  ;;  %v9445_v51 = vsel %vm331_vm5, %v16899_v59, %v15253_v50 }
 0xab8   :  { %v9446_v14 = vsel %vm333_vm6, %v9445_v51, %v15293_v8  ;;  %v8619_v8 = vcombine.high %v15418_v49, %v16830_v12 }
 0xab9   :  { %v9202_v44 = vpop.permute.xlu0 %9201  ;;  %v15521_v62 = vpop.permute.xlu1 %8697  ;;  %v9447_v2 = vsel %vm335_vm7, %v9446_v14, %v15340_v31  ;;  %v9209_v31 = vsel %vm333_vm6, %v9208_v39, %v15303_v17  ;;  %v8385_v14 = vrot.slane %v8371_v22, %v16845_v42  ;;  %v8751_v39 = vsel %vm331_vm5, %v16905_v40, %v15281_v43 }
 0xaba   :  { %v15532_v57 = vsel %vm341_vm10, %v9219_v28, %v9202_v44  ;;  %v9448_v7 = vsel %vm337_vm8, %v9447_v2, %v9424_v27  ;;  %v9210_v49 = vsel %vm335_vm7, %v9209_v31, %v15355_v45  ;;  %v15579_v28 = vrot.slane %v16901_v54, %v16845_v42  ;;  %v16908_v54 = vld [vmem:[#allocation101_spill] sm:$0xff] }
 0xabb   :  { %7773 = vrot.lane.b32.xlu0 %v15524_v32, %s9614_s13  ;;  %8475 = vrot.lane.b32.xlu1 %v8388_v48, %s9618_s17  ;;  %v9211_v61 = vsel %vm337_vm8, %v9210_v49, %v15443_v4  ;;  %v7519_v45 = vcombine.high %v15412_v3, %v16830_v12  ;;  %v9438_v4 = vsel %vm331_vm5, %v16902_v9, %v15316_v30  ;;  %v16907_v49 = vld [vmem:[#allocation81_spill] sm:$0xff] }
 0xabc   :  { %v9439_v10 = vsel %vm333_vm6, %v9438_v4, %v15370_v20  ;;  %v8291_v3 = vsel %vm331_vm5, %v16903_v15, %v15389_v1  ;;  %v7758_v20 = vcombine.high %v15432_v5, %v16830_v12  ;;  %v7741_v2 = vcombine.high %v15383_v33, %v15397_v0  ;;  %v16906_v0 = vld [vmem:[#allocation61_spill] sm:$0xff] }
 0xabd   :  { %v9428_v50 = vpop.permute.xlu0 %9427  ;;  %v15544_v46 = vpop.permute.xlu1 %8931  ;;  %v8292_v48 = vsel %vm333_vm6, %v8291_v3, %v15441_v53  ;;  %v9440_v30 = vsel %vm335_vm7, %v9439_v10, %v15461_v29  ;;  %v16904_v53 = vld [vmem:[#allocation118_spill] sm:$0xff]  ;;  %v8752_v33 = vsel %vm333_vm6, %v8751_v39, %v15308_v24  ;;  %v7971_v43 = vcombine.high %v15407_v47, %v15421_v35  ;;  %v16910_v35 = vld [vmem:[#allocation72_spill] sm:$0xff]  ;;  %v16911_v10 = vld [vmem:[#allocation69_spill] sm:$0xff] }
 0xabe   :  { %v15557_v60 = vsel %vm339_vm9, %v9448_v7, %v9428_v50  ;;  %v8521_v29 = vsel %vm331_vm5, %v16904_v53, %v15353_v56  ;;  %v8284_v24 = vsel %vm331_vm5, %v16907_v49, %v15479_v41  ;;  %v8514_v15 = vsel %vm331_vm5, %v16911_v10, %v15504_v34  ;;  %v16914_v34 = vld [vmem:[#allocation100_spill] sm:$0xff]  ;;  %v16918_v49 = vld [vmem:[#allocation103_spill] sm:$0xff] }
 0xabf   :  { %8003 = vrot.lane.b32.xlu0 %v15547_v26, %s9614_s13  ;;  %8713 = vrot.lane.b32.xlu1 %v8619_v8, %s9619_s18  ;;  %v8522_v5 = vsel %vm333_vm6, %v8521_v29, %v15459_v19  ;;  %v15625_v8 = vrot.slane %v7502_v16, %v16845_v42  ;;  %v8753_v19 = vsel %vm335_vm7, %v8752_v33, %v16906_v0  ;;  %v16915_v33 = vld [vmem:[#allocation59_spill] sm:$0xff]  ;;  %v16916_v0 = vld [vmem:[#allocation102_spill] sm:$0xff] }
 0xac0   :  { %v8754_v31 = vsel %vm337_vm8, %v8753_v19, %v15477_v52 }
 0xac1   :  { %v15573_v27 = vpop.permute.xlu0 %8019  ;;  %v9170_v17 = vpop.permute.xlu1 %9169 }
 0xac2   :  { %v15584_v44 = vsel %vm339_vm9, %v9211_v61, %v9170_v17  ;;  %v7755_v17 = vrot.slane %v7741_v2, %v16845_v42 }
 0xac3   :  { %8249 = vrot.lane.b32.xlu0 %v15579_v28, %s9615_s14  ;;  %7559 = vrot.lane.b32.xlu1 %v7519_v45, %s9617_s16  ;;  %v16909_v45 = vld [vmem:[#allocation7_spill] sm:$0xff] }
 0xac4   :  { %v8985_v9 = vsel %vm331_vm5, %v16909_v45, %v16908_v54  ;;  %v16919_v54 = vld [vmem:[#allocation23_spill] sm:$0xff] }
 0xac5   :  { %v8266_v59 = vpop.permute.xlu0 %8265  ;;  %v9396_v51 = vpop.permute.xlu1 %9395  ;;  %v8986_v52 = vsel %vm333_vm6, %v8985_v9, %v16910_v35  ;;  %v16920_v35 = vld [vmem:[#allocation71_spill] sm:$0xff] }
 0xac6   :  { %v15610_v36 = vsel %vm335_vm7, %v8292_v48, %v8266_v59  ;;  %v15613_v1 = vsel %vm337_vm8, %v9440_v30, %v9396_v51  ;;  %v8987_v41 = vsel %vm335_vm7, %v8986_v52, %v15387_v38  ;;  %v7985_v48 = vrot.slane %v7971_v43, %v16845_v42  ;;  %v16912_v38 = vld [vmem:[#allocation55_spill] sm:$0xff] }
 0xac7   :  { %8479 = vrot.lane.b32.xlu0 %v8385_v14, %s9615_s14  ;;  %7805 = vrot.lane.b32.xlu1 %v7758_v20, %s9618_s17  ;;  %v8988_v4 = vsel %vm337_vm8, %v8987_v41, %v15502_v37  ;;  %v8457_v30 = vcombine.high %v15482_v55, %v16830_v12  ;;  %v16913_v20 = vld [vmem:[#allocation43_spill] sm:$0xff]  ;;  %v7673_v55 = vcombine.high %v15473_v18, %v15486_v11  ;;  %v16917_v11 = vld [vmem:[#allocation30_spill] sm:$0xff] }
 0xac8   :  { %v8744_v37 = vsel %vm331_vm5, %v16913_v20, %v16912_v38  ;;  %v8978_v18 = vsel %vm331_vm5, %v16916_v0, %v16915_v33  ;;  %v7920_v43 = vcombine.high %v15547_v26, %v16830_v12  ;;  %v7520_v52 = vcombine.high %v15625_v8, %v16830_v12 }
 0xac9   :  { %v8496_v7 = vpop.permute.xlu0 %8495  ;;  %v7790_v50 = vpop.permute.xlu1 %7789  ;;  %v8745_v53 = vsel %vm333_vm6, %v8744_v37, %v16914_v34  ;;  %v7989_v37 = vcombine.high %v7985_v48, %v16830_v12  ;;  %v7503_v34 = vcombine.high %v15587_v21, %v15567_v63 }
 0xaca   :  { %v15633_v56 = vsel %vm335_vm7, %v8522_v5, %v8496_v7  ;;  %v8746_v29 = vsel %vm335_vm7, %v8745_v53, %v15521_v62  ;;  %v8389_v7 = vcombine.high %v8385_v14, %v16830_v12  ;;  %v8979_v62 = vsel %vm333_vm6, %v8978_v18, %v16917_v11 }
 0xacb   :  { %7563 = vrot.lane.b32.xlu0 %v15625_v8, %s9614_s13  ;;  %8035 = vrot.lane.b32.xlu1 %v7988_v58, %s9618_s17  ;;  %v7690_v58 = vcombine.high %v15524_v32, %v16830_v12  ;;  %v7903_v32 = vcombine.high %v15497_v6, %v15510_v25  ;;  %v7823_v6 = vsel %vm331_vm5, %v16918_v49, %v7790_v50 }
 0xacc   :  { %v8053_v50 = vsel %vm331_vm5, %v16919_v54, %v15573_v27  ;;  %v7759_v27 = vcombine.high %v7755_v17, %v16830_v12 }
 0xacd   :  { %v8734_v22 = vpop.permute.xlu0 %8733  ;;  %v8234_v61 = vpop.permute.xlu1 %8233 }
 0xace   :  { %v15656_v23 = vsel %vm339_vm9, %v8754_v31, %v8734_v22  ;;  %v15659_v47 = vsel %vm333_vm6, %v8284_v24, %v8234_v61  ;;  %v7917_v24 = vrot.slane %v7903_v32, %v16845_v42  ;;  %v8159_v22 = vcombine.high %v15579_v28, %v16830_v12 }
 0xacf   :  { %7809 = vrot.lane.b32.xlu0 %v7755_v17, %s9615_s14  ;;  %8281 = vrot.lane.b32.xlu1 %v8227_v13, %s9619_s18  ;;  %v7687_v13 = vrot.slane %v7673_v55, %v16845_v42  ;;  %v7452_v28 = vcombine.high %v16920_v35, %v16830_v12 }
 0xad1   :  { %v8968_v3 = vpop.permute.xlu0 %8967  ;;  %v8464_v16 = vpop.permute.xlu1 %8463  ;;  %v7691_v10 = vcombine.high %v7687_v13, %v16830_v12 }
 0xad2   :  { %v15676_v59 = vsel %vm339_vm9, %v8988_v4, %v8968_v3  ;;  %v15679_v51 = vsel %vm333_vm6, %v8514_v15, %v8464_v16  ;;  %v16921_v16 = vld [vmem:[#allocation10_spill] sm:$0xff] }
 0xad3   :  { %8039 = vrot.lane.b32.xlu0 %v7985_v48, %s9615_s14  ;;  %8511 = vrot.lane.b32.xlu1 %v8457_v30, %s9619_s18  ;;  %v16922_v30 = vld [vmem:[#allocation51_spill] sm:$0xff] }
 0xad4   :  { %v16923_v38 = vcombine.high %v16921_v16, %v16922_v30 }
 0xad5   :  { %v9206_v2 = vpop.permute.xlu0 %9205  ;;  %v8702_v5 = vpop.permute.xlu1 %8701 }
 0xad6   :  { %v15697_v40 = vsel %vm343_vm11, %v15532_v57, %v9206_v2  ;;  %v15700_v39 = vsel %vm337_vm8, %v8746_v29, %v8702_v5  ;;  %v8980_v57 = vsel %vm335_vm7, %v8979_v62, %v15544_v46  ;;  %v7449_v20 = vrot.slane %v16923_v38, %v16845_v42 }
 0xad7   :  { %8483 = vrot.lane.b32.xlu0 %v8389_v7, %s9619_s18  ;;  %7777 = vrot.lane.b32.xlu1 %v7690_v58, %s9618_s17  ;;  %v7517_v29 = vrot.slane %v7503_v34, %v16845_v42  ;;  %v7921_v2 = vcombine.high %v7917_v24, %v16830_v12 }
 0xad8   :  { %v7453_v55 = vcombine.high %v7449_v20, %v16830_v12 }
 0xad9   :  { %v15713_v14 = vpop.permute.xlu0 %9431  ;;  %v8936_v19 = vpop.permute.xlu1 %8935  ;;  %v7521_v7 = vcombine.high %v7517_v29, %v16830_v12 }
 0xada   :  { %v15719_v31 = vsel %vm337_vm8, %v8980_v57, %v8936_v19  ;;  %v16924_v57 = vld [vmem:[#allocation48_spill] sm:$0xff] }
 0xadb   :  { %7781 = vrot.lane.b32.xlu0 %v7687_v13, %s9615_s14  ;;  %8007 = vrot.lane.b32.xlu1 %v7920_v43, %s9618_s17 }
 0xadd   :  { %v7794_v25 = vpop.permute.xlu0 %7793  ;;  %v9174_v46 = vpop.permute.xlu1 %9173 }
 0xade   :  { %v7824_v61 = vsel %vm333_vm6, %v7823_v6, %v7794_v25  ;;  %v15731_v26 = vsel %vm341_vm10, %v15584_v44, %v9174_v46 }
 0xadf   :  { %8011 = vrot.lane.b32.xlu0 %v7917_v24, %s9615_s14  ;;  %8253 = vrot.lane.b32.xlu1 %v8159_v22, %s9619_s18 }
 0xae1   :  { %v8024_v45 = vpop.permute.xlu0 %8023  ;;  %v15738_v9 = vpop.permute.xlu1 %9399 }
 0xae2   :  { %v8054_v44 = vsel %vm333_vm6, %v8053_v50, %v8024_v45  ;;  %v9473_v50 = vrot.slane %v15697_v40, 4 }
 0xae3   :  { %7539 = vrot.lane.b32.xlu0 %v7452_v28, %s9618_s17  ;;  %7567 = vrot.lane.b32.xlu1 %v7520_v52, %s9618_s17 }
 0xae5   :  { %v8270_v41 = vpop.permute.xlu0 %8269  ;;  %v7762_v4 = vpop.permute.xlu1 %7761 }
 0xae6   :  { %v8294_v15 = vsel %vm337_vm8, %v15610_v36, %v8270_v41  ;;  %v7816_v19 = vsel %vm331_vm5, %v16924_v57, %v7762_v4  ;;  %v16926_v41 = vld [vmem:[#allocation117_spill] sm:$0xff] }
 0xae7   :  { %7785 = vrot.lane.b32.xlu0 %v7691_v10, %s9619_s18  ;;  %7813 = vrot.lane.b32.xlu1 %v7759_v27, %s9619_s18 }
 0xae9   :  { %v8500_v8 = vpop.permute.xlu0 %8499  ;;  %v7992_v3 = vpop.permute.xlu1 %7991 }
 0xaea   :  { %v15762_v17 = vsel %vm337_vm8, %v15633_v56, %v8500_v8 }
 0xaeb   :  { %7543 = vrot.lane.b32.xlu0 %v7449_v20, %s9615_s14  ;;  %8043 = vrot.lane.b32.xlu1 %v7989_v37, %s9619_s18 }
 0xaed   :  { %v8738_v36 = vpop.permute.xlu0 %8737  ;;  %v8238_v53 = vpop.permute.xlu1 %8237 }
 0xaee   :  { %v15770_v48 = vsel %vm341_vm10, %v15656_v23, %v8738_v36  ;;  %v8286_v63 = vsel %vm335_vm7, %v15659_v47, %v8238_v53 }
 0xaef   :  { %7547 = vrot.lane.b32.xlu0 %v7453_v55, %s9619_s18  ;;  %7571 = vrot.lane.b32.xlu1 %v7517_v29, %s9615_s14 }
 0xaf1   :  { %v8972_v21 = vpop.permute.xlu0 %8971  ;;  %v8468_v56 = vpop.permute.xlu1 %8467 }
 0xaf2   :  { %v15779_v5 = vsel %vm335_vm7, %v15679_v51, %v8468_v56  ;;  %v9450_v51 = vsel %vm341_vm10, %v15557_v60, %v15713_v14  ;;  %v16925_v60 = vld [vmem:[#allocation119_spill] sm:$0xff]  ;;  %v8990_v45 = vsel %vm341_vm10, %v15676_v59, %v8972_v21  ;;  %v9442_v59 = vsel %vm339_vm9, %v15613_v1, %v15738_v9 }
 0xaf3   :  { %8015 = vrot.lane.b32.xlu1 %v7921_v2, %s9619_s18  ;;  %v8046_v14 = vsel %vm331_vm5, %v16925_v60, %v7992_v3 }
 0xaf5   :  { %v9404_v42 = vpop.permute.xlu0 %9403  ;;  %v8706_v23 = vpop.permute.xlu1 %8705 }
 0xaf6   :  { %v15785_v47 = vsel %vm339_vm9, %v15700_v39, %v8706_v23  ;;  %v9443_v16 = vsel %vm341_vm10, %v9442_v59, %v9404_v42 }
 0xaf7   :  { %7575 = vrot.lane.b32.xlu1 %v7521_v7, %s9619_s18 }
 0xaf9   :  { %v7552_v58 = vpop.permute.xlu0 %7551  ;;  %v8940_v33 = vpop.permute.xlu1 %8939 }
 0xafa   :  { %v7585_v4 = vsel %vm331_vm5, %v16926_v41, %v7552_v58  ;;  %v8982_v9 = vsel %vm339_vm9, %v15719_v31, %v8940_v33 }
 0xafd   :  { %v7798_v0 = vpop.permute.xlu0 %7797  ;;  %v9178_v18 = vpop.permute.xlu1 %9177 }
 0xafe   :  { %v7825_v11 = vsel %vm335_vm7, %v7824_v61, %v7798_v0  ;;  %v9214_v1 = vsel %vm343_vm11, %v15731_v26, %v9178_v18 }
 0xaff   :  { %v9472_v29 = vrot.slane %v9214_v1, 4 }
 0xb01   :  { %v8028_v62 = vpop.permute.xlu0 %8027  ;;  %v9436_v32 = vpop.permute.xlu1 %9435 }
 0xb02   :  { %v15793_v12 = vsel %vm335_vm7, %v8054_v44, %v8028_v62  ;;  %v9451_v39 = vsel %vm343_vm11, %v9450_v51, %v9436_v32 }
 0xb03   :  { %9585 = vmatprep.subr.msk.mxu1 %vm2238_vm12, %v9451_v39 }
 0xb05   :  { %v8274_v13 = vpop.permute.xlu0 %8273  ;;  %v7766_v43 = vpop.permute.xlu1 %7765 }
 0xb06   :  { %v15800_v49 = vsel %vm339_vm9, %v8294_v15, %v8274_v13  ;;  %v7817_v6 = vsel %vm333_vm6, %v7816_v19, %v7766_v43 }
 0xb09   :  { %v8504_v25 = vpop.permute.xlu0 %8503  ;;  %v7996_v46 = vpop.permute.xlu1 %7995 }
 0xb0a   :  { %v15806_v24 = vsel %vm333_vm6, %v8046_v14, %v7996_v46  ;;  %v8525_v57 = vsel %vm339_vm9, %v15762_v17, %v8504_v25 }
 0xb0d   :  { %v8742_v22 = vpop.permute.xlu0 %8741  ;;  %v8242_v61 = vpop.permute.xlu1 %8241 }
 0xb0e   :  { %v15809_v54 = vsel %vm337_vm8, %v8286_v63, %v8242_v61  ;;  %v8757_v39 = vsel %vm343_vm11, %v15770_v48, %v8742_v22 }
 0xb0f   :  { %v9467_v19 = vrot.slane %v8757_v39, 4  ;;  %v16931_v39 = vld [vmem:[#allocation93_spill] sm:$0xff] }
 0xb11   :  { %v8976_v35 = vpop.permute.xlu0 %8975  ;;  %v8472_v28 = vpop.permute.xlu1 %8471 }
 0xb12   :  { %v8991_v52 = vsel %vm343_vm11, %v8990_v45, %v8976_v35  ;;  %v8517_v61 = vsel %vm337_vm8, %v15779_v5, %v8472_v28 }
 0xb13   :  { %v9483_v44 = vsel %vm2238_vm12, %v8991_v52, %v9473_v50 }
 0xb15   :  { %v7556_v10 = vpop.permute.xlu0 %7555  ;;  %v8710_v27 = vpop.permute.xlu1 %8709 }
 0xb16   :  { %v15819_v15 = vsel %vm333_vm6, %v7585_v4, %v7556_v10  ;;  %v8749_v13 = vsel %vm341_vm10, %v15785_v47, %v8710_v27 }
 0xb19   :  { %v7802_v8 = vpop.permute.xlu0 %7801  ;;  %v8944_v3 = vpop.permute.xlu1 %8943 }
 0xb1a   :  { %v15822_v40 = vsel %vm337_vm8, %v7825_v11, %v7802_v8  ;;  %v8983_v63 = vsel %vm341_vm10, %v8982_v9, %v8944_v3 }
 0xb1d   :  { %v8032_v30 = vpop.permute.xlu0 %8031  ;;  %v9408_v38 = vpop.permute.xlu1 %9407 }
 0xb1e   :  { %v9444_v20 = vsel %vm343_vm11, %v9443_v16, %v9408_v38  ;;  %v8056_v59 = vsel %vm337_vm8, %v15793_v12, %v8032_v30  ;;  %v16927_v38 = vld [vmem:[#allocation15_spill] sm:$0xff] }
 0xb1f   :  { %9586 = vmatpush1.msk.msra.mxu1 %vm2238_vm12, %v9444_v20  ;;  %v16928_v20 = vld [vmem:[#allocation24_spill] sm:$0xff] }
 0xb20   :  { %9514 = vmatprep.subr.mxu1 %v9483_v44 }
 0xb21   :  { %v8278_v37 = vpop.permute.xlu0 %8277  ;;  %v7770_v34 = vpop.permute.xlu1 %7769 }
 0xb22   :  { %v15831_v36 = vsel %vm335_vm7, %v7817_v6, %v7770_v34  ;;  %v8296_v10 = vsel %vm341_vm10, %v15800_v49, %v8278_v37  ;;  %v7578_v34 = vsel %vm331_vm5, %v16928_v20, %v16927_v38  ;;  %v16929_v37 = vld [vmem:[#allocation54_spill] sm:$0xff] }
 0xb25   :  { %v8508_v53 = vpop.permute.xlu0 %8507  ;;  %v15833_v55 = vpop.permute.xlu1 %7999 }
 0xb26   :  { %v8526_v43 = vsel %vm341_vm10, %v8525_v57, %v8508_v53 }
 0xb29   :  { %v8948_v21 = vpop.permute.xlu0 %8947  ;;  %v8246_v56 = vpop.permute.xlu1 %8245 }
 0xb2a   :  { %v8984_v2 = vsel %vm343_vm11, %v8983_v63, %v8948_v21  ;;  %v7579_v63 = vsel %vm333_vm6, %v7578_v34, %v16929_v37  ;;  %v8288_v12 = vsel %vm339_vm9, %v15809_v54, %v8246_v56  ;;  %v16930_v21 = vld [vmem:[#allocation89_spill] sm:$0xff] }
 0xb2b   :  { %v9482_v42 = vsel %vm2238_vm12, %v8984_v2, %v9472_v29  ;;  %v7580_v2 = vsel %vm335_vm7, %v7579_v63, %v16930_v21 }
 0xb2c   :  { %9515 = vmatpush1.msra.mxu1 %v9482_v42 }
 0xb2d   :  { %v7774_v23 = vpop.permute.xlu0 %7773  ;;  %v8476_v7 = vpop.permute.xlu1 %8475 }
 0xb2e   :  { %v8518_v22 = vsel %vm339_vm9, %v8517_v61, %v8476_v7 }
 0xb31   :  { %v8004_v58 = vpop.permute.xlu0 %8003  ;;  %v8714_v0 = vpop.permute.xlu1 %8713 }
 0xb32   :  { %v8750_v14 = vsel %vm343_vm11, %v8749_v13, %v8714_v0  ;;  %v8048_v0 = vsel %vm335_vm7, %v15806_v24, %v15833_v55 }
 0xb33   :  { %v9466_v17 = vrot.slane %v8750_v14, 4 }
 0xb35   :  { %v8250_v11 = vpop.permute.xlu0 %8249  ;;  %v15842_v51 = vpop.permute.xlu1 %7559 }
 0xb36   :  { %v8289_v42 = vsel %vm341_vm10, %v8288_v12, %v8250_v11  ;;  %v7581_v11 = vsel %vm337_vm8, %v7580_v2, %v16931_v39 }
 0xb39   :  { %v8480_v26 = vpop.permute.xlu0 %8479  ;;  %v7806_v18 = vpop.permute.xlu1 %7805 }
 0xb3a   :  { %v8519_v25 = vsel %vm341_vm10, %v8518_v22, %v8480_v26  ;;  %v7827_v54 = vsel %vm339_vm9, %v15822_v40, %v7806_v18 }
 0xb3d   :  { %v15844_v31 = vpop.permute.xlu0 %7563  ;;  %v8036_v33 = vpop.permute.xlu1 %8035 }
 0xb3e   :  { %v8057_v16 = vsel %vm339_vm9, %v8056_v59, %v8036_v33  ;;  %v8049_v33 = vsel %vm337_vm8, %v8048_v0, %v8004_v58 }
 0xb41   :  { %v7810_v62 = vpop.permute.xlu0 %7809  ;;  %v8282_v32 = vpop.permute.xlu1 %8281 }
 0xb42   :  { %v8297_v8 = vsel %vm343_vm11, %v8296_v10, %v8282_v32  ;;  %v7819_v32 = vsel %vm337_vm8, %v15831_v36, %v7774_v23  ;;  %v7828_v57 = vsel %vm341_vm10, %v7827_v54, %v7810_v62  ;;  %v7587_v36 = vsel %vm335_vm7, %v15819_v15, %v15842_v51 }
 0xb43   :  { %v9461_v53 = vrot.slane %v8297_v8, 4  ;;  %v7588_v62 = vsel %vm337_vm8, %v7587_v36, %v15844_v31 }
 0xb45   :  { %v8040_v6 = vpop.permute.xlu0 %8039  ;;  %v8512_v60 = vpop.permute.xlu1 %8511 }
 0xb46   :  { %v8527_v46 = vsel %vm343_vm11, %v8526_v43, %v8512_v60  ;;  %v8058_v1 = vsel %vm341_vm10, %v8057_v16, %v8040_v6 }
 0xb47   :  { %v9481_v48 = vsel %vm2238_vm12, %v8527_v46, %v9467_v19 }
 0xb48   :  { %9516 = vmatprep.subr.mxu1 %v9481_v48 }
 0xb49   :  { %v8484_v47 = vpop.permute.xlu0 %8483  ;;  %v7778_v50 = vpop.permute.xlu1 %7777 }
 0xb4a   :  { %v8520_v45 = vsel %vm343_vm11, %v8519_v25, %v8484_v47  ;;  %v7820_v19 = vsel %vm339_vm9, %v7819_v32, %v7778_v50  ;;  %v9606_v47 = vld [vmem:[%s15930_s3] sm:$0xff] }
 0xb4b   :  { %v9480_v35 = vsel %vm2238_vm12, %v8520_v45, %v9466_v17  ;;  %v16932_v45 = vld [vmem:[#allocation106_spill] sm:$0xff] }
 0xb4c   :  { %9517 = vmatpush1.msra.mxu1 %v9480_v35 }
 0xb4d   :  { %v7782_v52 = vpop.permute.xlu0 %7781  ;;  %v8008_v44 = vpop.permute.xlu1 %8007 }
 0xb4e   :  { %v8050_v56 = vsel %vm339_vm9, %v8049_v33, %v8008_v44  ;;  %v7821_v23 = vsel %vm341_vm10, %v7820_v19, %v7782_v52 }
 0xb51   :  { %v8012_v41 = vpop.permute.xlu0 %8011  ;;  %v8254_v4 = vpop.permute.xlu1 %8253 }
 0xb52   :  { %v8290_v26 = vsel %vm343_vm11, %v8289_v42, %v8254_v4  ;;  %v8051_v24 = vsel %vm341_vm10, %v8050_v56, %v8012_v41 }
 0xb53   :  { %v9460_v55 = vrot.slane %v8290_v26, 4 }
 0xb55   :  { %v7540_v5 = vpop.permute.xlu0 %7539  ;;  %v7568_v28 = vpop.permute.xlu1 %7567 }
 0xb56   :  { %v7582_v43 = vsel %vm339_vm9, %v7581_v11, %v7540_v5  ;;  %v7589_v14 = vsel %vm339_vm9, %v7588_v62, %v7568_v28 }
 0xb59   :  { %v7814_v27 = vpop.permute.xlu1 %7813  ;;  %v7786_v3 = vpop.permute.xlu0 %7785 }
 0xb5a   :  { %v7829_v40 = vsel %vm343_vm11, %v7828_v57, %v7814_v27  ;;  %v7822_v6 = vsel %vm343_vm11, %v7821_v23, %v7786_v3 }
 0xb5b   :  { %v9455_v51 = vrot.slane %v7829_v40, 4  ;;  %v9454_v22 = vrot.slane %v7822_v6, 4 }
 0xb5d   :  { %v8044_v9 = vpop.permute.xlu1 %8043  ;;  %v7544_v30 = vpop.permute.xlu0 %7543 }
 0xb5e   :  { %v8059_v29 = vsel %vm343_vm11, %v8058_v1, %v8044_v9  ;;  %v7583_v15 = vsel %vm341_vm10, %v7582_v43, %v7544_v30 }
 0xb5f   :  { %v9479_v49 = vsel %vm2238_vm12, %v8059_v29, %v9461_v53 }
 0xb60   :  { %9518 = vmatprep.subr.mxu1 %v9479_v49 }
 0xb61   :  { %v7572_v7 = vpop.permute.xlu1 %7571  ;;  %v7548_v58 = vpop.permute.xlu0 %7547 }
 0xb62   :  { %v7584_v46 = vsel %vm343_vm11, %v7583_v15, %v7548_v58  ;;  %v7590_v61 = vsel %vm341_vm10, %v7589_v14, %v7572_v7 }
 0xb63   :  { %v9476_v25 = vsel %vm2238_vm12, %v7584_v46, %v9454_v22 }
 0xb65   :  { %v8016_v13 = vpop.permute.xlu1 %8015 }
 0xb66   :  { %v8052_v18 = vsel %vm343_vm11, %v8051_v24, %v8016_v13 }
 0xb67   :  { %v9478_v60 = vsel %vm2238_vm12, %v8052_v18, %v9460_v55 }
 0xb68   :  { %9519 = vmatpush1.msra.mxu1 %v9478_v60 }
 0xb69   :  { %v7576_v48 = vpop.permute.xlu1 %7575 }
 0xb6a   :  { %v7591_v31 = vsel %vm343_vm11, %v7590_v61, %v7576_v48 }
 0xb6b   :  { %v9477_v17 = vsel %vm2238_vm12, %v7591_v31, %v9455_v51 }
 0xb6c   :  { %9520 = vmatprep.subr.mxu1 %v9477_v17 }
 0xb6d   :  { %9521 = vmatpush1.msra.mxu1 %v9476_v25 }
 0xb6e   :  { %9587 = vmatmul.mubr.msk.f32.vlgmr.msra.gmra.mxu1 %vm2252_vm13, %v9606_v47 }
 0xc2e   :  { %v9556_v50 = vpop.f32.mrf.mxu1 }
 0xc2f   :  { %v9557_v35 = vadd.f32 %v9556_v50, %v16932_v45 }
 0xc30   :  { %v9558_v52 = vpop.f32.mrf.mxu1 }
 0xc31   :  { %9588 = vst [vmem:[%s15931_s5 + $0x10] sm:$0xff] %v9557_v35  ;;  %v9559_v44 = vadd.f32 %v9558_v52, %v16932_v45 }
 0xc33   :  { %9589 = vst [vmem:[%s15931_s5 + $0x18] sm:$0xff] %v9559_v44 }

</bundles_post_ra>
